<compile_context>
chip_gen: v6e
topology: v6e:2x2x1
jax: 0.10.0
libtpu: 0.0.40
codegen_flags: <defaults>
</compile_context>

<pallas_src>
import math

import jax
import jax.numpy as jnp
from jax.experimental import pallas as pl
from jax.experimental.pallas import tpu as pltpu

F32 = jnp.float32
BF16 = jnp.bfloat16
LN_EPS = 1e-5
BN_EPS = 1e-5
NEG_SLOPE = 0.2          # LeakyReLU slope used throughout the module
SCALE = 0.05             # synthetic parameter init scale
K = 5                    # every conv in the module uses kernel_size=5
IN_PAD = 128             # lane-dense padding of the 53-dim FLAME channels


# ----------------------------------------------------------------------------
# In-kernel helpers (operate on values / refs inside the fused kernel body)
# ----------------------------------------------------------------------------
def _leaky(x):
    return jnp.where(x >= 0, x, NEG_SLOPE * x)


def _gelu(x):
    # TODO(synk): reference uses exact (erf) GELU; tanh approximation in-kernel.
    return 0.5 * x * (1.0 + jnp.tanh(0.7978845608028654 *
                                     (x + 0.044715 * x * x * x)))


def _layernorm(x, g, b):
    m = jnp.mean(x, axis=-1, keepdims=True)
    xc = x - m
    var = jnp.mean(xc * xc, axis=-1, keepdims=True)
    return xc * jax.lax.rsqrt(var + LN_EPS) * g + b


def _linear(x, w_ref, b_ref):
    return (jnp.dot(x.astype(BF16), w_ref[...], preferred_element_type=F32)
            + b_ref[...])


def _conv_bn(col, cw):
    """im2col conv + bias + LeakyReLU(0.2) + folded eval-BatchNorm."""
    y = (jnp.dot(col.astype(BF16), cw["w"][...], preferred_element_type=F32)
         + cw["b"][...])
    y = _leaky(y)
    return y * cw["s"][...] + cw["t"][...]


def _tlayer(x, lp, nhead):
    """torch.nn.TransformerEncoderLayer (post-norm, gelu, eval) on (T, E)."""
    T, E = x.shape
    Dh = E // nhead
    sc = 1.0 / math.sqrt(Dh)
    qkv = _linear(x, lp["qkv_w"], lp["qkv_b"])                  # (T, 3E)
    a = jnp.zeros((T, E), F32)
    for h in range(nhead):
        q = qkv[:, h * Dh:(h + 1) * Dh].astype(BF16)
        k = qkv[:, E + h * Dh:E + (h + 1) * Dh].astype(BF16)
        v = qkv[:, 2 * E + h * Dh:2 * E + (h + 1) * Dh].astype(BF16)
        s = jax.lax.dot_general(q, k, (((1,), (1,)), ((), ())),
                                preferred_element_type=F32) * sc
        s = s - jnp.max(s, axis=-1, keepdims=True)
        pr = jnp.exp(s)
        pr = pr / jnp.sum(pr, axis=-1, keepdims=True)
        o_h = jnp.dot(pr.astype(BF16), v, preferred_element_type=F32)
        # concat-of-heads @ Wo == sum_h o_h @ Wo[h*Dh:(h+1)*Dh, :]
        a = a + jnp.dot(o_h.astype(BF16), lp["out_w"][h * Dh:(h + 1) * Dh, :],
                        preferred_element_type=F32)
    a = a + lp["out_b"][...]
    x = _layernorm(x + a, lp["ln1_g"][...], lp["ln1_b"][...])
    f = _linear(x, lp["w1"], lp["b1"])
    f = _gelu(f)
    f = _linear(f, lp["w2"], lp["b2"])
    return _layernorm(x + f, lp["ln2_g"][...], lp["ln2_b"][...])


# ----------------------------------------------------------------------------
# The fused TVAE forward kernel (one grid step = one batch element)
# ----------------------------------------------------------------------------
def _build_kernel(tdef, n_w, T, hid, nhead):
    To1, Tz = T // 2, T // 4

    def kernel(x_ref, eps_ref, *rest):
        w_refs = rest[:n_w]
        pred_ref, mu_ref, lv_ref = rest[n_w:n_w + 3]
        xpad, h1pad, zpad, yep, yop, rseq, dpad = rest[n_w + 3:]
        p = jax.tree_util.tree_unflatten(tdef, list(w_refs))
        enc, dec = p["enc"], p["dec"]

        # ===================== Encoder squasher =====================
        x = x_ref[0]                                            # (T, IN_PAD) f32
        # Conv1d(k=5, s=2, p=2, replicate) + LeakyReLU + BN(eval)
        xpad[pl.ds(2, T), :] = x
        xpad[pl.ds(0, 2), :] = jnp.broadcast_to(x[0:1, :], (2, IN_PAD))
        xpad[pl.ds(T + 2, 2), :] = jnp.broadcast_to(x[T - 1:T, :], (2, IN_PAD))
        col = jnp.concatenate(
            [xpad[pl.ds(k, To1, stride=2), :] for k in range(K)], axis=-1)
        h1 = _conv_bn(col, enc["conv1"])                        # (To1, hid)

        # Conv1d(k=5, s=1, p=2, replicate) + LeakyReLU + BN + MaxPool1d(2)
        h1pad[pl.ds(2, To1), :] = h1
        h1pad[pl.ds(0, 2), :] = jnp.broadcast_to(h1[0:1, :], (2, hid))
        h1pad[pl.ds(To1 + 2, 2), :] = jnp.broadcast_to(h1[To1 - 1:To1, :],
                                                       (2, hid))
        pooled = []
        for off in range(2):                                    # conv pos 2j / 2j+1
            col = jnp.concatenate(
                [h1pad[pl.ds(k + off, Tz, stride=2), :] for k in range(K)],
                axis=-1)
            pooled.append(_conv_bn(col, enc["conv2"]))
        h2 = jnp.maximum(pooled[0], pooled[1])                  # (Tz, hid)

        # ============== Encoder transformer + VAE head ==============
        # TODO(synk): LinearEmbedding class is not defined in the source file;
        # treated as nn.Linear.
        h = _linear(h2, enc["emb"]["w"], enc["emb"]["b"])
        for lp in enc["layers"]:
            h = _tlayer(h, lp, nhead)
        mu = _linear(h, p["mean"]["w"], p["mean"]["b"])
        lv = _linear(h, p["logvar"]["w"], p["logvar"]["b"])
        mu_ref[0] = mu
        lv_ref[0] = lv
        z = mu + eps_ref[0] * jnp.exp(0.5 * lv)                 # reparameterize

        # ===================== Decoder expander =====================
        # ConvTranspose1d(k=5, s=2, p=2, out_pad=1, zeros) + LeakyReLU + BN,
        # evaluated per output phase (no zero taps):
        #   y[2j]   = z[j+1]@W0 + z[j]@W2 + z[j-1]@W4
        #   y[2j+1] = z[j+1]@W1 + z[j]@W3
        dcv = dec["dconv"]
        zpad[pl.ds(1, Tz), :] = z
        zpad[pl.ds(0, 1), :] = jnp.zeros((1, hid), F32)
        zpad[pl.ds(Tz + 1, 1), :] = jnp.zeros((1, hid), F32)
        t2 = zpad[pl.ds(2, Tz), :]
        t1 = zpad[pl.ds(1, Tz), :]
        t0 = zpad[pl.ds(0, Tz), :]
        y_e = (jnp.dot(jnp.concatenate([t2, t1, t0], axis=-1).astype(BF16),
                       dcv["we"][...], preferred_element_type=F32)
               + dcv["b"][...])
        y_o = (jnp.dot(jnp.concatenate([t2, t1], axis=-1).astype(BF16),
                       dcv["wo"][...], preferred_element_type=F32)
               + dcv["b"][...])
        y_e = _leaky(y_e) * dcv["s"][...] + dcv["t"][...]
        y_o = _leaky(y_o) * dcv["s"][...] + dcv["t"][...]

        # Conv1d(k=5, s=1, p=2, replicate) + LeakyReLU + BN on the interleaved
        # sequence y = [y_e[0], y_o[0], y_e[1], ...], kept in phase form:
        #   c[2m]   = y[2m-2]@V0 + y[2m-1]@V1 + y[2m]@V2 + y[2m+1]@V3 + y[2m+2]@V4
        #   c[2m+1] = y[2m-1]@V0 + y[2m]@V1 + y[2m+1]@V2 + y[2m+2]@V3 + y[2m+3]@V4
        yep[pl.ds(1, Tz), :] = y_e
        yep[pl.ds(0, 1), :] = y_e[0:1, :]                # replicate pad = y[0]
        yep[pl.ds(Tz + 1, 1), :] = y_o[Tz - 1:Tz, :]     # replicate pad = y[-1]
        yop[pl.ds(1, Tz), :] = y_o
        yop[pl.ds(0, 1), :] = y_e[0:1, :]
        yop[pl.ds(Tz + 1, 1), :] = y_o[Tz - 1:Tz, :]
        e0 = yep[pl.ds(0, Tz), :]
        e1 = yep[pl.ds(1, Tz), :]
        e2 = yep[pl.ds(2, Tz), :]
        o0 = yop[pl.ds(0, Tz), :]
        o1 = yop[pl.ds(1, Tz), :]
        o2 = yop[pl.ds(2, Tz), :]
        c_e = _conv_bn(jnp.concatenate([e0, o0, e1, o1, e2], axis=-1),
                       dec["conv2"])
        c_o = _conv_bn(jnp.concatenate([o0, e1, o1, e2, o2], axis=-1),
                       dec["conv2"])

        # interleave + repeat_interleave(2, dim=time) -> ordered (T, hid)
        for m in range(Tz):
            rseq[pl.ds(4 * m, 2), :] = jnp.broadcast_to(c_e[m:m + 1, :],
                                                        (2, hid))
            rseq[pl.ds(4 * m + 2, 2), :] = jnp.broadcast_to(c_o[m:m + 1, :],
                                                            (2, hid))

        # ============ Decoder transformer + cross-smooth conv ============
        d = _linear(rseq[...], dec["emb"]["w"], dec["emb"]["b"])
        for lp in dec["layers"]:
            d = _tlayer(d, lp, nhead)
        # TODO(synk): post_transformer_linear is computed but unused in the
        # reference forward; skipped.
        dpad[pl.ds(2, T), :] = d
        dpad[pl.ds(0, 2), :] = jnp.zeros((2, hid), F32)         # zeros padding
        dpad[pl.ds(T + 2, 2), :] = jnp.zeros((2, hid), F32)
        col = jnp.concatenate([dpad[pl.ds(k, T), :] for k in range(K)],
                              axis=-1)
        pred = (jnp.dot(col.astype(BF16), dec["cross"]["w"][...],
                        preferred_element_type=F32) + dec["cross"]["b"][...])
        pred_ref[0] = pred                                      # (T, IN_PAD)

    return kernel


# ----------------------------------------------------------------------------
# Wrapper: one pallas_call for the whole TVAE forward
# ----------------------------------------------------------------------------
def tvae_forward(x, eps, params, nhead=4):
    B, T, in_dim = x.shape
    assert T % 4 == 0, "quant_factor=2 structure requires T % 4 == 0"
    hid = params["mean"]["w"].shape[1]
    Tz = T // 4

    # lane-dense zero-pad of the 53-dim input channels (sliced back below)
    x_p = jnp.pad(x, ((0, 0), (0, 0), (0, IN_PAD - in_dim)))

    flat, tdef = jax.tree_util.tree_flatten(params)
    kernel = _build_kernel(tdef, len(flat), T, hid, nhead)

    def _wspec(a):
        return pl.BlockSpec(a.shape, lambda b, nd=a.ndim: (0,) * nd)

    seq_in = pl.BlockSpec((1, T, IN_PAD), lambda b: (b, 0, 0))
    lat = pl.BlockSpec((1, Tz, hid), lambda b: (b, 0, 0))
    out_seq = pl.BlockSpec((1, T, IN_PAD), lambda b: (b, 0, 0))

    pred_full, mu, logvar = pl.pallas_call(
        kernel,
        grid=(B,),
        in_specs=[seq_in, lat] + [_wspec(a) for a in flat],
        out_specs=(out_seq, lat, lat),
        out_shape=(jax.ShapeDtypeStruct((B, T, IN_PAD), F32),
                   jax.ShapeDtypeStruct((B, Tz, hid), F32),
                   jax.ShapeDtypeStruct((B, Tz, hid), F32)),
        scratch_shapes=[
            pltpu.VMEM((T + 4, IN_PAD), F32),      # replicate-padded input
            pltpu.VMEM((T // 2 + 4, hid), F32),    # replicate-padded conv1 out
            pltpu.VMEM((Tz + 2, hid), F32),        # zero-padded latent z
            pltpu.VMEM((Tz + 2, hid), F32),        # even-phase padded y
            pltpu.VMEM((Tz + 2, hid), F32),        # odd-phase padded y
            pltpu.VMEM((T, hid), F32),             # repeat-interleaved sequence
            pltpu.VMEM((T + 4, hid), F32),         # zero-padded transformer out
        ],
        compiler_params=pltpu.CompilerParams(dimension_semantics=("parallel",)),
    )(x_p, eps, *flat)
    return pred_full[..., :in_dim], mu, logvar


# ----------------------------------------------------------------------------
# Deterministic synthetic parameters (folded / stacked once, outside the jit)
# ----------------------------------------------------------------------------
class KeyGen:
    def __init__(self, seed):
        self.key = jax.random.PRNGKey(seed)

    def __call__(self):
        self.key, k = jax.random.split(self.key)
        return k


def _nrm(kg, shape, s=SCALE):
    return jax.random.normal(kg(), shape, F32) * s


def _bn_fold(kg, cout):
    gamma = 1.0 + _nrm(kg, (cout,), 0.1)
    beta = _nrm(kg, (cout,))
    run_mean = jnp.zeros((cout,), F32)               # eval-mode running stats
    run_var = jnp.ones((cout,), F32)
    scale = gamma / jnp.sqrt(run_var + BN_EPS)
    shift = beta - run_mean * scale
    return scale.reshape(1, cout), shift.reshape(1, cout)


def init_conv(kg, cin, cout, cin_pad=None):
    """Conv1d(cin, cout, 5) + LeakyReLU + BN, stacked to (K*cin_pad, cout)."""
    cp = cin_pad or cin
    w = _nrm(kg, (K, cin, cout))                     # W_k = w[k] : (cin, cout)
    if cp != cin:
        w = jnp.pad(w, ((0, 0), (0, cp - cin), (0, 0)))
    s, t = _bn_fold(kg, cout)
    return dict(w=w.reshape(K * cp, cout).astype(BF16),
                b=_nrm(kg, (1, cout)), s=s, t=t)


def init_convT(kg, cin, cout):
    """ConvTranspose1d(k=5, s=2) split into even/odd output-phase stacks."""
    w = _nrm(kg, (K, cin, cout))                     # W_k = w[k] : (cin, cout)
    we = jnp.concatenate([w[0], w[2], w[4]], axis=0)  # taps z[j+1], z[j], z[j-1]
    wo = jnp.concatenate([w[1], w[3]], axis=0)        # taps z[j+1], z[j]
    s, t = _bn_fold(kg, cout)
    return dict(we=we.astype(BF16), wo=wo.astype(BF16),
                b=_nrm(kg, (1, cout)), s=s, t=t)


def init_cross_conv(kg, cin, cout, cout_pad):
    """Plain Conv1d(k=5, zeros pad), output channels padded to lane width."""
    w = _nrm(kg, (K, cin, cout))
    w = jnp.pad(w, ((0, 0), (0, 0), (0, cout_pad - cout)))
    b = jnp.pad(_nrm(kg, (1, cout)), ((0, 0), (0, cout_pad - cout)))
    return dict(w=w.reshape(K * cin, cout_pad).astype(BF16), b=b)


def init_linear(kg, n_in, n_out):
    return dict(w=_nrm(kg, (n_in, n_out)).astype(BF16), b=_nrm(kg, (1, n_out)))


def init_tlayer(kg, E, Fh):
    return dict(
        qkv_w=_nrm(kg, (E, 3 * E)).astype(BF16), qkv_b=_nrm(kg, (1, 3 * E)),
        out_w=_nrm(kg, (E, E)).astype(BF16), out_b=_nrm(kg, (1, E)),
        ln1_g=jnp.ones((1, E), F32), ln1_b=jnp.zeros((1, E), F32),
        w1=_nrm(kg, (E, Fh)).astype(BF16), b1=_nrm(kg, (1, Fh)),
        w2=_nrm(kg, (Fh, E)).astype(BF16), b2=_nrm(kg, (1, E)),
        ln2_g=jnp.ones((1, E), F32), ln2_b=jnp.zeros((1, E), F32))


def init_params(kg, in_dim, hid, ffn, nlayers):
    enc = dict(
        conv1=init_conv(kg, in_dim, hid, cin_pad=IN_PAD),
        conv2=init_conv(kg, hid, hid),
        emb=init_linear(kg, hid, hid),
        layers=[init_tlayer(kg, hid, ffn) for _ in range(nlayers)])
    dec = dict(
        dconv=init_convT(kg, hid, hid),
        conv2=init_conv(kg, hid, hid),
        emb=init_linear(kg, hid, hid),
        layers=[init_tlayer(kg, hid, ffn) for _ in range(nlayers)],
        cross=init_cross_conv(kg, hid, in_dim, IN_PAD))
    return dict(enc=enc, dec=dec,
                mean=init_linear(kg, hid, hid),
                logvar=init_linear(kg, hid, hid))


# ----------------------------------------------------------------------------
if __name__ == "__main__":
    # Config consistent with the module (FLAME params -> hidden 128):
    #   in_dim=53, hidden_size=128, quant_factor=2, 4 heads, ffn=256, 1 layer.
    B, T, IN_DIM = 2, 32, 53
    HID, HEADS, FFN, NLAYERS = 128, 4, 256, 1

    kg = KeyGen(0)
    params = init_params(kg, IN_DIM, HID, FFN, NLAYERS)

    x = jax.random.normal(kg(), (B, T, IN_DIM), F32)
    Tz = T // 4
    # torch.randn_like noise for reparameterize, generated with the JAX PRNG.
    eps = jax.random.normal(kg(), (B, Tz, HID), F32)

    fwd = jax.jit(lambda xx, ee: tvae_forward(xx, ee, params, nhead=HEADS))
    pred_recon, mu, logvar = fwd(x, eps)
    jax.block_until_ready((pred_recon, mu, logvar))

    assert pred_recon.shape == (B, T, IN_DIM), pred_recon.shape
    assert mu.shape == (B, Tz, HID), mu.shape
    assert logvar.shape == (B, Tz, HID), logvar.shape
    assert bool(jnp.all(jnp.isfinite(pred_recon)))
    assert bool(jnp.all(jnp.isfinite(mu)))
    assert bool(jnp.all(jnp.isfinite(logvar)))
    print("KERNEL_OK")
</pallas_src>

<mosaic_0001>
module attributes {stable_mosaic.version = 11 : i64} {
  func.func @kernel(%arg0: i32, %arg1: memref<1x32x128xf32, #tpu.memory_space<vmem>>, %arg2: memref<1x8x128xf32, #tpu.memory_space<vmem>>, %arg3: memref<1x128xf32, #tpu.memory_space<vmem>>, %arg4: memref<1x128xf32, #tpu.memory_space<vmem>>, %arg5: memref<1x128xf32, #tpu.memory_space<vmem>>, %arg6: memref<640x128xbf16, #tpu.memory_space<vmem>>, %arg7: memref<1x128xf32, #tpu.memory_space<vmem>>, %arg8: memref<640x128xbf16, #tpu.memory_space<vmem>>, %arg9: memref<1x128xf32, #tpu.memory_space<vmem>>, %arg10: memref<1x128xf32, #tpu.memory_space<vmem>>, %arg11: memref<1x128xf32, #tpu.memory_space<vmem>>, %arg12: memref<384x128xbf16, #tpu.memory_space<vmem>>, %arg13: memref<256x128xbf16, #tpu.memory_space<vmem>>, %arg14: memref<1x128xf32, #tpu.memory_space<vmem>>, %arg15: memref<128x128xbf16, #tpu.memory_space<vmem>>, %arg16: memref<1x256xf32, #tpu.memory_space<vmem>>, %arg17: memref<1x128xf32, #tpu.memory_space<vmem>>, %arg18: memref<1x128xf32, #tpu.memory_space<vmem>>, %arg19: memref<1x128xf32, #tpu.memory_space<vmem>>, %arg20: memref<1x128xf32, #tpu.memory_space<vmem>>, %arg21: memref<1x128xf32, #tpu.memory_space<vmem>>, %arg22: memref<1x128xf32, #tpu.memory_space<vmem>>, %arg23: memref<128x128xbf16, #tpu.memory_space<vmem>>, %arg24: memref<1x384xf32, #tpu.memory_space<vmem>>, %arg25: memref<128x384xbf16, #tpu.memory_space<vmem>>, %arg26: memref<128x256xbf16, #tpu.memory_space<vmem>>, %arg27: memref<256x128xbf16, #tpu.memory_space<vmem>>, %arg28: memref<1x128xf32, #tpu.memory_space<vmem>>, %arg29: memref<1x128xf32, #tpu.memory_space<vmem>>, %arg30: memref<1x128xf32, #tpu.memory_space<vmem>>, %arg31: memref<640x128xbf16, #tpu.memory_space<vmem>>, %arg32: memref<1x128xf32, #tpu.memory_space<vmem>>, %arg33: memref<1x128xf32, #tpu.memory_space<vmem>>, %arg34: memref<1x128xf32, #tpu.memory_space<vmem>>, %arg35: memref<640x128xbf16, #tpu.memory_space<vmem>>, %arg36: memref<1x128xf32, #tpu.memory_space<vmem>>, %arg37: memref<128x128xbf16, #tpu.memory_space<vmem>>, %arg38: memref<1x256xf32, #tpu.memory_space<vmem>>, %arg39: memref<1x128xf32, #tpu.memory_space<vmem>>, %arg40: memref<1x128xf32, #tpu.memory_space<vmem>>, %arg41: memref<1x128xf32, #tpu.memory_space<vmem>>, %arg42: memref<1x128xf32, #tpu.memory_space<vmem>>, %arg43: memref<1x128xf32, #tpu.memory_space<vmem>>, %arg44: memref<1x128xf32, #tpu.memory_space<vmem>>, %arg45: memref<128x128xbf16, #tpu.memory_space<vmem>>, %arg46: memref<1x384xf32, #tpu.memory_space<vmem>>, %arg47: memref<128x384xbf16, #tpu.memory_space<vmem>>, %arg48: memref<128x256xbf16, #tpu.memory_space<vmem>>, %arg49: memref<256x128xbf16, #tpu.memory_space<vmem>>, %arg50: memref<1x128xf32, #tpu.memory_space<vmem>>, %arg51: memref<128x128xbf16, #tpu.memory_space<vmem>>, %arg52: memref<1x128xf32, #tpu.memory_space<vmem>>, %arg53: memref<128x128xbf16, #tpu.memory_space<vmem>>, %arg54: memref<1x32x128xf32, #tpu.memory_space<vmem>>, %arg55: memref<1x8x128xf32, #tpu.memory_space<vmem>>, %arg56: memref<1x8x128xf32, #tpu.memory_space<vmem>>, %arg57: memref<36x128xf32, #tpu.memory_space<vmem>>, %arg58: memref<20x128xf32, #tpu.memory_space<vmem>>, %arg59: memref<10x128xf32, #tpu.memory_space<vmem>>, %arg60: memref<10x128xf32, #tpu.memory_space<vmem>>, %arg61: memref<10x128xf32, #tpu.memory_space<vmem>>, %arg62: memref<32x128xf32, #tpu.memory_space<vmem>>, %arg63: memref<36x128xf32, #tpu.memory_space<vmem>>) attributes {dimension_semantics = [#tpu.dimension_semantics<parallel>], iteration_bounds = array<i64: 2>, scalar_prefetch = 0 : i64, scratch_operands = 7 : i64, tpu.core_type = #tpu.core_type<tc>, window_params = [{transform_indices = @transform_0, window_bounds = array<i64: 1, 32, 128>}, {transform_indices = @transform_1, window_bounds = array<i64: 1, 8, 128>}, {pipeline_mode = #tpu.pipeline_mode<synchronous>, transform_indices = @transform_2, window_bounds = array<i64: 1, 128>}, {pipeline_mode = #tpu.pipeline_mode<synchronous>, transform_indices = @transform_3, window_bounds = array<i64: 1, 128>}, {pipeline_mode = #tpu.pipeline_mode<synchronous>, transform_indices = @transform_4, window_bounds = array<i64: 1, 128>}, {pipeline_mode = #tpu.pipeline_mode<synchronous>, transform_indices = @transform_5, window_bounds = array<i64: 640, 128>}, {pipeline_mode = #tpu.pipeline_mode<synchronous>, transform_indices = @transform_6, window_bounds = array<i64: 1, 128>}, {pipeline_mode = #tpu.pipeline_mode<synchronous>, transform_indices = @transform_7, window_bounds = array<i64: 640, 128>}, {pipeline_mode = #tpu.pipeline_mode<synchronous>, transform_indices = @transform_8, window_bounds = array<i64: 1, 128>}, {pipeline_mode = #tpu.pipeline_mode<synchronous>, transform_indices = @transform_9, window_bounds = array<i64: 1, 128>}, {pipeline_mode = #tpu.pipeline_mode<synchronous>, transform_indices = @transform_10, window_bounds = array<i64: 1, 128>}, {pipeline_mode = #tpu.pipeline_mode<synchronous>, transform_indices = @transform_11, window_bounds = array<i64: 384, 128>}, {pipeline_mode = #tpu.pipeline_mode<synchronous>, transform_indices = @transform_12, window_bounds = array<i64: 256, 128>}, {pipeline_mode = #tpu.pipeline_mode<synchronous>, transform_indices = @transform_13, window_bounds = array<i64: 1, 128>}, {pipeline_mode = #tpu.pipeline_mode<synchronous>, transform_indices = @transform_14, window_bounds = array<i64: 128, 128>}, {pipeline_mode = #tpu.pipeline_mode<synchronous>, transform_indices = @transform_15, window_bounds = array<i64: 1, 256>}, {pipeline_mode = #tpu.pipeline_mode<synchronous>, transform_indices = @transform_16, window_bounds = array<i64: 1, 128>}, {pipeline_mode = #tpu.pipeline_mode<synchronous>, transform_indices = @transform_17, window_bounds = array<i64: 1, 128>}, {pipeline_mode = #tpu.pipeline_mode<synchronous>, transform_indices = @transform_18, window_bounds = array<i64: 1, 128>}, {pipeline_mode = #tpu.pipeline_mode<synchronous>, transform_indices = @transform_19, window_bounds = array<i64: 1, 128>}, {pipeline_mode = #tpu.pipeline_mode<synchronous>, transform_indices = @transform_20, window_bounds = array<i64: 1, 128>}, {pipeline_mode = #tpu.pipeline_mode<synchronous>, transform_indices = @transform_21, window_bounds = array<i64: 1, 128>}, {pipeline_mode = #tpu.pipeline_mode<synchronous>, transform_indices = @transform_22, window_bounds = array<i64: 128, 128>}, {pipeline_mode = #tpu.pipeline_mode<synchronous>, transform_indices = @transform_23, window_bounds = array<i64: 1, 384>}, {pipeline_mode = #tpu.pipeline_mode<synchronous>, transform_indices = @transform_24, window_bounds = array<i64: 128, 384>}, {pipeline_mode = #tpu.pipeline_mode<synchronous>, transform_indices = @transform_25, window_bounds = array<i64: 128, 256>}, {pipeline_mode = #tpu.pipeline_mode<synchronous>, transform_indices = @transform_26, window_bounds = array<i64: 256, 128>}, {pipeline_mode = #tpu.pipeline_mode<synchronous>, transform_indices = @transform_27, window_bounds = array<i64: 1, 128>}, {pipeline_mode = #tpu.pipeline_mode<synchronous>, transform_indices = @transform_28, window_bounds = array<i64: 1, 128>}, {pipeline_mode = #tpu.pipeline_mode<synchronous>, transform_indices = @transform_29, window_bounds = array<i64: 1, 128>}, {pipeline_mode = #tpu.pipeline_mode<synchronous>, transform_indices = @transform_30, window_bounds = array<i64: 640, 128>}, {pipeline_mode = #tpu.pipeline_mode<synchronous>, transform_indices = @transform_31, window_bounds = array<i64: 1, 128>}, {pipeline_mode = #tpu.pipeline_mode<synchronous>, transform_indices = @transform_32, window_bounds = array<i64: 1, 128>}, {pipeline_mode = #tpu.pipeline_mode<synchronous>, transform_indices = @transform_33, window_bounds = array<i64: 1, 128>}, {pipeline_mode = #tpu.pipeline_mode<synchronous>, transform_indices = @transform_34, window_bounds = array<i64: 640, 128>}, {pipeline_mode = #tpu.pipeline_mode<synchronous>, transform_indices = @transform_35, window_bounds = array<i64: 1, 128>}, {pipeline_mode = #tpu.pipeline_mode<synchronous>, transform_indices = @transform_36, window_bounds = array<i64: 128, 128>}, {pipeline_mode = #tpu.pipeline_mode<synchronous>, transform_indices = @transform_37, window_bounds = array<i64: 1, 256>}, {pipeline_mode = #tpu.pipeline_mode<synchronous>, transform_indices = @transform_38, window_bounds = array<i64: 1, 128>}, {pipeline_mode = #tpu.pipeline_mode<synchronous>, transform_indices = @transform_39, window_bounds = array<i64: 1, 128>}, {pipeline_mode = #tpu.pipeline_mode<synchronous>, transform_indices = @transform_40, window_bounds = array<i64: 1, 128>}, {pipeline_mode = #tpu.pipeline_mode<synchronous>, transform_indices = @transform_41, window_bounds = array<i64: 1, 128>}, {pipeline_mode = #tpu.pipeline_mode<synchronous>, transform_indices = @transform_42, window_bounds = array<i64: 1, 128>}, {pipeline_mode = #tpu.pipeline_mode<synchronous>, transform_indices = @transform_43, window_bounds = array<i64: 1, 128>}, {pipeline_mode = #tpu.pipeline_mode<synchronous>, transform_indices = @transform_44, window_bounds = array<i64: 128, 128>}, {pipeline_mode = #tpu.pipeline_mode<synchronous>, transform_indices = @transform_45, window_bounds = array<i64: 1, 384>}, {pipeline_mode = #tpu.pipeline_mode<synchronous>, transform_indices = @transform_46, window_bounds = array<i64: 128, 384>}, {pipeline_mode = #tpu.pipeline_mode<synchronous>, transform_indices = @transform_47, window_bounds = array<i64: 128, 256>}, {pipeline_mode = #tpu.pipeline_mode<synchronous>, transform_indices = @transform_48, window_bounds = array<i64: 256, 128>}, {pipeline_mode = #tpu.pipeline_mode<synchronous>, transform_indices = @transform_49, window_bounds = array<i64: 1, 128>}, {pipeline_mode = #tpu.pipeline_mode<synchronous>, transform_indices = @transform_50, window_bounds = array<i64: 128, 128>}, {pipeline_mode = #tpu.pipeline_mode<synchronous>, transform_indices = @transform_51, window_bounds = array<i64: 1, 128>}, {pipeline_mode = #tpu.pipeline_mode<synchronous>, transform_indices = @transform_52, window_bounds = array<i64: 128, 128>}, {transform_indices = @transform_53, window_bounds = array<i64: 1, 32, 128>}, {transform_indices = @transform_54, window_bounds = array<i64: 1, 8, 128>}, {transform_indices = @transform_55, window_bounds = array<i64: 1, 8, 128>}]} {
    %c0 = arith.constant 0 : index
    %c0_0 = arith.constant 0 : index
    %c0_1 = arith.constant 0 : index
    %0 = vector.load %arg1[%c0, %c0_0, %c0_1] : memref<1x32x128xf32, #tpu.memory_space<vmem>>, vector<1x32x128xf32>
    %1 = vector.shape_cast %0 : vector<1x32x128xf32> to vector<32x128xf32>
    %c2 = arith.constant 2 : index
    %c0_2 = arith.constant 0 : index
    %2 = vector.load %arg57[%c2, %c0_2] : memref<36x128xf32, #tpu.memory_space<vmem>>, vector<32x128xf32>
    tpu.vector_store %arg57[%c2, %c0_2], %1 {strides = array<i32>} : memref<36x128xf32, #tpu.memory_space<vmem>>, vector<32x128xf32>,
    %3 = vector.extract_strided_slice %1 {offsets = [0, 0], sizes = [1, 128], strides = [1, 1]} : vector<32x128xf32> to vector<1x128xf32>
    %4 = vector.shape_cast %3 : vector<1x128xf32> to vector<1x128xf32>
    %5 = vector.broadcast %4 : vector<1x128xf32> to vector<2x128xf32>
    %c0_3 = arith.constant 0 : index
    %c0_4 = arith.constant 0 : index
    %6 = vector.load %arg57[%c0_3, %c0_4] : memref<36x128xf32, #tpu.memory_space<vmem>>, vector<2x128xf32>
    tpu.vector_store %arg57[%c0_3, %c0_4], %5 {strides = array<i32>} : memref<36x128xf32, #tpu.memory_space<vmem>>, vector<2x128xf32>,
    %7 = vector.extract_strided_slice %1 {offsets = [31, 0], sizes = [1, 128], strides = [1, 1]} : vector<32x128xf32> to vector<1x128xf32>
    %8 = vector.shape_cast %7 : vector<1x128xf32> to vector<1x128xf32>
    %9 = vector.broadcast %8 : vector<1x128xf32> to vector<2x128xf32>
    %c34 = arith.constant 34 : index
    %c0_5 = arith.constant 0 : index
    %10 = vector.load %arg57[%c34, %c0_5] : memref<36x128xf32, #tpu.memory_space<vmem>>, vector<2x128xf32>
    tpu.vector_store %arg57[%c34, %c0_5], %9 {strides = array<i32>} : memref<36x128xf32, #tpu.memory_space<vmem>>, vector<2x128xf32>,
    %c0_6 = arith.constant 0 : index
    %c0_7 = arith.constant 0 : index
    %11 = tpu.strided_load %arg57[%c0_6, %c0_7] {strides = array<i32: 2, 1>} : memref<36x128xf32, #tpu.memory_space<vmem>>, vector<16x128xf32>
    %c1 = arith.constant 1 : index
    %c0_8 = arith.constant 0 : index
    %12 = tpu.strided_load %arg57[%c1, %c0_8] {strides = array<i32: 2, 1>} : memref<36x128xf32, #tpu.memory_space<vmem>>, vector<16x128xf32>
    %c2_9 = arith.constant 2 : index
    %c0_10 = arith.constant 0 : index
    %13 = tpu.strided_load %arg57[%c2_9, %c0_10] {strides = array<i32: 2, 1>} : memref<36x128xf32, #tpu.memory_space<vmem>>, vector<16x128xf32>
    %c3 = arith.constant 3 : index
    %c0_11 = arith.constant 0 : index
    %14 = tpu.strided_load %arg57[%c3, %c0_11] {strides = array<i32: 2, 1>} : memref<36x128xf32, #tpu.memory_space<vmem>>, vector<16x128xf32>
    %c4 = arith.constant 4 : index
    %c0_12 = arith.constant 0 : index
    %15 = tpu.strided_load %arg57[%c4, %c0_12] {strides = array<i32: 2, 1>} : memref<36x128xf32, #tpu.memory_space<vmem>>, vector<16x128xf32>
    %16 = tpu.concatenate %11, %12, %13, %14, %15 in 1 : vector<16x128xf32>, vector<16x128xf32>, vector<16x128xf32>, vector<16x128xf32>, vector<16x128xf32> -> vector<16x640xf32>
    %17 = arith.truncf %16 : vector<16x640xf32> to vector<16x640xbf16>
    %c0_13 = arith.constant 0 : index
    %c0_14 = arith.constant 0 : index
    %18 = vector.load %arg31[%c0_13, %c0_14] : memref<640x128xbf16, #tpu.memory_space<vmem>>, vector<640x128xbf16>
    %cst = arith.constant dense<0.000000e+00> : vector<16x128xf32>
    %19 = tpu.matmul %17, %18, %cst {dimension_numbers = #tpu.dot_dimension_numbers<[1], [0], [0], [1], [0, 0, 1, 1], [], []>} : vector<16x640xbf16>, vector<640x128xbf16>, vector<16x128xf32> -> vector<16x128xf32>
    %c0_15 = arith.constant 0 : index
    %c0_16 = arith.constant 0 : index
    %20 = vector.load %arg28[%c0_15, %c0_16] : memref<1x128xf32, #tpu.memory_space<vmem>>, vector<1x128xf32>
    %21 = vector.broadcast %20 : vector<1x128xf32> to vector<16x128xf32>
    %22 = arith.addf %19, %21 : vector<16x128xf32>
    %cst_17 = arith.constant 0.000000e+00 : f32
    %23 = vector.broadcast %cst_17 : f32 to vector<16x128xf32>
    %24 = arith.cmpf oge, %22, %23 : vector<16x128xf32>
    %cst_18 = arith.constant 2.000000e-01 : f32
    %25 = vector.broadcast %cst_18 : f32 to vector<16x128xf32>
    %26 = arith.mulf %25, %22 : vector<16x128xf32>
    %27 = arith.select %24, %22, %26 : vector<16x128xi1>, vector<16x128xf32>
    %c0_19 = arith.constant 0 : index
    %c0_20 = arith.constant 0 : index
    %28 = vector.load %arg29[%c0_19, %c0_20] : memref<1x128xf32, #tpu.memory_space<vmem>>, vector<1x128xf32>
    %29 = vector.broadcast %28 : vector<1x128xf32> to vector<16x128xf32>
    %30 = arith.mulf %27, %29 : vector<16x128xf32>
    %c0_21 = arith.constant 0 : index
    %c0_22 = arith.constant 0 : index
    %31 = vector.load %arg30[%c0_21, %c0_22] : memref<1x128xf32, #tpu.memory_space<vmem>>, vector<1x128xf32>
    %32 = vector.broadcast %31 : vector<1x128xf32> to vector<16x128xf32>
    %33 = arith.addf %30, %32 : vector<16x128xf32>
    %c2_23 = arith.constant 2 : index
    %c0_24 = arith.constant 0 : index
    %34 = vector.load %arg58[%c2_23, %c0_24] : memref<20x128xf32, #tpu.memory_space<vmem>>, vector<16x128xf32>
    tpu.vector_store %arg58[%c2_23, %c0_24], %33 {strides = array<i32>} : memref<20x128xf32, #tpu.memory_space<vmem>>, vector<16x128xf32>,
    %35 = vector.extract_strided_slice %33 {offsets = [0, 0], sizes = [1, 128], strides = [1, 1]} : vector<16x128xf32> to vector<1x128xf32>
    %36 = vector.shape_cast %35 : vector<1x128xf32> to vector<1x128xf32>
    %37 = vector.broadcast %36 : vector<1x128xf32> to vector<2x128xf32>
    %c0_25 = arith.constant 0 : index
    %c0_26 = arith.constant 0 : index
    %38 = vector.load %arg58[%c0_25, %c0_26] : memref<20x128xf32, #tpu.memory_space<vmem>>, vector<2x128xf32>
    tpu.vector_store %arg58[%c0_25, %c0_26], %37 {strides = array<i32>} : memref<20x128xf32, #tpu.memory_space<vmem>>, vector<2x128xf32>,
    %39 = vector.extract_strided_slice %33 {offsets = [15, 0], sizes = [1, 128], strides = [1, 1]} : vector<16x128xf32> to vector<1x128xf32>
    %40 = vector.shape_cast %39 : vector<1x128xf32> to vector<1x128xf32>
    %41 = vector.broadcast %40 : vector<1x128xf32> to vector<2x128xf32>
    %c18 = arith.constant 18 : index
    %c0_27 = arith.constant 0 : index
    %42 = vector.load %arg58[%c18, %c0_27] : memref<20x128xf32, #tpu.memory_space<vmem>>, vector<2x128xf32>
    tpu.vector_store %arg58[%c18, %c0_27], %41 {strides = array<i32>} : memref<20x128xf32, #tpu.memory_space<vmem>>, vector<2x128xf32>,
    %c0_28 = arith.constant 0 : index
    %c0_29 = arith.constant 0 : index
    %43 = tpu.strided_load %arg58[%c0_28, %c0_29] {strides = array<i32: 2, 1>} : memref<20x128xf32, #tpu.memory_space<vmem>>, vector<8x128xf32>
    %c1_30 = arith.constant 1 : index
    %c0_31 = arith.constant 0 : index
    %44 = tpu.strided_load %arg58[%c1_30, %c0_31] {strides = array<i32: 2, 1>} : memref<20x128xf32, #tpu.memory_space<vmem>>, vector<8x128xf32>
    %c2_32 = arith.constant 2 : index
    %c0_33 = arith.constant 0 : index
    %45 = tpu.strided_load %arg58[%c2_32, %c0_33] {strides = array<i32: 2, 1>} : memref<20x128xf32, #tpu.memory_space<vmem>>, vector<8x128xf32>
    %c3_34 = arith.constant 3 : index
    %c0_35 = arith.constant 0 : index
    %46 = tpu.strided_load %arg58[%c3_34, %c0_35] {strides = array<i32: 2, 1>} : memref<20x128xf32, #tpu.memory_space<vmem>>, vector<8x128xf32>
    %c4_36 = arith.constant 4 : index
    %c0_37 = arith.constant 0 : index
    %47 = tpu.strided_load %arg58[%c4_36, %c0_37] {strides = array<i32: 2, 1>} : memref<20x128xf32, #tpu.memory_space<vmem>>, vector<8x128xf32>
    %48 = tpu.concatenate %43, %44, %45, %46, %47 in 1 : vector<8x128xf32>, vector<8x128xf32>, vector<8x128xf32>, vector<8x128xf32>, vector<8x128xf32> -> vector<8x640xf32>
    %49 = arith.truncf %48 : vector<8x640xf32> to vector<8x640xbf16>
    %c0_38 = arith.constant 0 : index
    %c0_39 = arith.constant 0 : index
    %50 = vector.load %arg35[%c0_38, %c0_39] : memref<640x128xbf16, #tpu.memory_space<vmem>>, vector<640x128xbf16>
    %cst_40 = arith.constant dense<0.000000e+00> : vector<8x128xf32>
    %51 = tpu.matmul %49, %50, %cst_40 {dimension_numbers = #tpu.dot_dimension_numbers<[1], [0], [0], [1], [0, 0, 1, 1], [], []>} : vector<8x640xbf16>, vector<640x128xbf16>, vector<8x128xf32> -> vector<8x128xf32>
    %c0_41 = arith.constant 0 : index
    %c0_42 = arith.constant 0 : index
    %52 = vector.load %arg32[%c0_41, %c0_42] : memref<1x128xf32, #tpu.memory_space<vmem>>, vector<1x128xf32>
    %53 = vector.broadcast %52 : vector<1x128xf32> to vector<8x128xf32>
    %54 = arith.addf %51, %53 : vector<8x128xf32>
    %cst_43 = arith.constant 0.000000e+00 : f32
    %55 = vector.broadcast %cst_43 : f32 to vector<8x128xf32>
    %56 = arith.cmpf oge, %54, %55 : vector<8x128xf32>
    %cst_44 = arith.constant 2.000000e-01 : f32
    %57 = vector.broadcast %cst_44 : f32 to vector<8x128xf32>
    %58 = arith.mulf %57, %54 : vector<8x128xf32>
    %59 = arith.select %56, %54, %58 : vector<8x128xi1>, vector<8x128xf32>
    %c0_45 = arith.constant 0 : index
    %c0_46 = arith.constant 0 : index
    %60 = vector.load %arg33[%c0_45, %c0_46] : memref<1x128xf32, #tpu.memory_space<vmem>>, vector<1x128xf32>
    %61 = vector.broadcast %60 : vector<1x128xf32> to vector<8x128xf32>
    %62 = arith.mulf %59, %61 : vector<8x128xf32>
    %c0_47 = arith.constant 0 : index
    %c0_48 = arith.constant 0 : index
    %63 = vector.load %arg34[%c0_47, %c0_48] : memref<1x128xf32, #tpu.memory_space<vmem>>, vector<1x128xf32>
    %64 = vector.broadcast %63 : vector<1x128xf32> to vector<8x128xf32>
    %65 = arith.addf %62, %64 : vector<8x128xf32>
    %c1_49 = arith.constant 1 : index
    %c0_50 = arith.constant 0 : index
    %66 = tpu.strided_load %arg58[%c1_49, %c0_50] {strides = array<i32: 2, 1>} : memref<20x128xf32, #tpu.memory_space<vmem>>, vector<8x128xf32>
    %c2_51 = arith.constant 2 : index
    %c0_52 = arith.constant 0 : index
    %67 = tpu.strided_load %arg58[%c2_51, %c0_52] {strides = array<i32: 2, 1>} : memref<20x128xf32, #tpu.memory_space<vmem>>, vector<8x128xf32>
    %c3_53 = arith.constant 3 : index
    %c0_54 = arith.constant 0 : index
    %68 = tpu.strided_load %arg58[%c3_53, %c0_54] {strides = array<i32: 2, 1>} : memref<20x128xf32, #tpu.memory_space<vmem>>, vector<8x128xf32>
    %c4_55 = arith.constant 4 : index
    %c0_56 = arith.constant 0 : index
    %69 = tpu.strided_load %arg58[%c4_55, %c0_56] {strides = array<i32: 2, 1>} : memref<20x128xf32, #tpu.memory_space<vmem>>, vector<8x128xf32>
    %c5 = arith.constant 5 : index
    %c0_57 = arith.constant 0 : index
    %70 = tpu.strided_load %arg58[%c5, %c0_57] {strides = array<i32: 2, 1>} : memref<20x128xf32, #tpu.memory_space<vmem>>, vector<8x128xf32>
    %71 = tpu.concatenate %66, %67, %68, %69, %70 in 1 : vector<8x128xf32>, vector<8x128xf32>, vector<8x128xf32>, vector<8x128xf32>, vector<8x128xf32> -> vector<8x640xf32>
    %72 = arith.truncf %71 : vector<8x640xf32> to vector<8x640xbf16>
    %c0_58 = arith.constant 0 : index
    %c0_59 = arith.constant 0 : index
    %73 = vector.load %arg35[%c0_58, %c0_59] : memref<640x128xbf16, #tpu.memory_space<vmem>>, vector<640x128xbf16>
    %cst_60 = arith.constant dense<0.000000e+00> : vector<8x128xf32>
    %74 = tpu.matmul %72, %73, %cst_60 {dimension_numbers = #tpu.dot_dimension_numbers<[1], [0], [0], [1], [0, 0, 1, 1], [], []>} : vector<8x640xbf16>, vector<640x128xbf16>, vector<8x128xf32> -> vector<8x128xf32>
    %c0_61 = arith.constant 0 : index
    %c0_62 = arith.constant 0 : index
    %75 = vector.load %arg32[%c0_61, %c0_62] : memref<1x128xf32, #tpu.memory_space<vmem>>, vector<1x128xf32>
    %76 = vector.broadcast %75 : vector<1x128xf32> to vector<8x128xf32>
    %77 = arith.addf %74, %76 : vector<8x128xf32>
    %cst_63 = arith.constant 0.000000e+00 : f32
    %78 = vector.broadcast %cst_63 : f32 to vector<8x128xf32>
    %79 = arith.cmpf oge, %77, %78 : vector<8x128xf32>
    %cst_64 = arith.constant 2.000000e-01 : f32
    %80 = vector.broadcast %cst_64 : f32 to vector<8x128xf32>
    %81 = arith.mulf %80, %77 : vector<8x128xf32>
    %82 = arith.select %79, %77, %81 : vector<8x128xi1>, vector<8x128xf32>
    %c0_65 = arith.constant 0 : index
    %c0_66 = arith.constant 0 : index
    %83 = vector.load %arg33[%c0_65, %c0_66] : memref<1x128xf32, #tpu.memory_space<vmem>>, vector<1x128xf32>
    %84 = vector.broadcast %83 : vector<1x128xf32> to vector<8x128xf32>
    %85 = arith.mulf %82, %84 : vector<8x128xf32>
    %c0_67 = arith.constant 0 : index
    %c0_68 = arith.constant 0 : index
    %86 = vector.load %arg34[%c0_67, %c0_68] : memref<1x128xf32, #tpu.memory_space<vmem>>, vector<1x128xf32>
    %87 = vector.broadcast %86 : vector<1x128xf32> to vector<8x128xf32>
    %88 = arith.addf %85, %87 : vector<8x128xf32>
    %89 = arith.maximumf %65, %88 : vector<8x128xf32>
    %90 = arith.truncf %89 : vector<8x128xf32> to vector<8x128xbf16>
    %c0_69 = arith.constant 0 : index
    %c0_70 = arith.constant 0 : index
    %91 = vector.load %arg37[%c0_69, %c0_70] : memref<128x128xbf16, #tpu.memory_space<vmem>>, vector<128x128xbf16>
    %cst_71 = arith.constant dense<0.000000e+00> : vector<8x128xf32>
    %92 = tpu.matmul %90, %91, %cst_71 {dimension_numbers = #tpu.dot_dimension_numbers<[1], [0], [0], [1], [0, 0, 1, 1], [], []>} : vector<8x128xbf16>, vector<128x128xbf16>, vector<8x128xf32> -> vector<8x128xf32>
    %c0_72 = arith.constant 0 : index
    %c0_73 = arith.constant 0 : index
    %93 = vector.load %arg36[%c0_72, %c0_73] : memref<1x128xf32, #tpu.memory_space<vmem>>, vector<1x128xf32>
    %94 = vector.broadcast %93 : vector<1x128xf32> to vector<8x128xf32>
    %95 = arith.addf %92, %94 : vector<8x128xf32>
    %96 = arith.truncf %95 : vector<8x128xf32> to vector<8x128xbf16>
    %c0_74 = arith.constant 0 : index
    %c0_75 = arith.constant 0 : index
    %97 = vector.load %arg47[%c0_74, %c0_75] : memref<128x384xbf16, #tpu.memory_space<vmem>>, vector<128x384xbf16>
    %cst_76 = arith.constant dense<0.000000e+00> : vector<8x384xf32>
    %98 = tpu.matmul %96, %97, %cst_76 {dimension_numbers = #tpu.dot_dimension_numbers<[1], [0], [0], [1], [0, 0, 1, 1], [], []>} : vector<8x128xbf16>, vector<128x384xbf16>, vector<8x384xf32> -> vector<8x384xf32>
    %c0_77 = arith.constant 0 : index
    %c0_78 = arith.constant 0 : index
    %99 = vector.load %arg46[%c0_77, %c0_78] : memref<1x384xf32, #tpu.memory_space<vmem>>, vector<1x384xf32>
    %100 = vector.broadcast %99 : vector<1x384xf32> to vector<8x384xf32>
    %101 = arith.addf %98, %100 : vector<8x384xf32>
    %cst_79 = arith.constant 0.000000e+00 : f32
    %102 = vector.broadcast %cst_79 : f32 to vector<8x128xf32>
    %103 = vector.extract_strided_slice %101 {offsets = [0, 0], sizes = [8, 32], strides = [1, 1]} : vector<8x384xf32> to vector<8x32xf32>
    %104 = arith.truncf %103 : vector<8x32xf32> to vector<8x32xbf16>
    %105 = vector.extract_strided_slice %101 {offsets = [0, 128], sizes = [8, 32], strides = [1, 1]} : vector<8x384xf32> to vector<8x32xf32>
    %106 = arith.truncf %105 : vector<8x32xf32> to vector<8x32xbf16>
    %107 = vector.extract_strided_slice %101 {offsets = [0, 256], sizes = [8, 32], strides = [1, 1]} : vector<8x384xf32> to vector<8x32xf32>
    %108 = arith.truncf %107 : vector<8x32xf32> to vector<8x32xbf16>
    %cst_80 = arith.constant dense<0.000000e+00> : vector<8x8xf32>
    %109 = tpu.matmul %104, %106, %cst_80 {dimension_numbers = #tpu.dot_dimension_numbers<[1], [1], [0], [0], [0, 0, 1, 0], [], []>} : vector<8x32xbf16>, vector<8x32xbf16>, vector<8x8xf32> -> vector<8x8xf32>
    %cst_81 = arith.constant 0.176776692 : f32
    %110 = vector.broadcast %cst_81 : f32 to vector<8x8xf32>
    %111 = arith.mulf %109, %110 : vector<8x8xf32>
    %cst_82 = arith.constant dense<0xFF800000> : vector<8xf32>
    %112 = vector.multi_reduction <maximumf>, %111, %cst_82 [1] : vector<8x8xf32> to vector<8xf32>
    %113 = vector.shape_cast %112 : vector<8xf32> to vector<8x1xf32>
    %114 = vector.broadcast %113 : vector<8x1xf32> to vector<8x8xf32>
    %115 = arith.subf %111, %114 : vector<8x8xf32>
    %116 = math.exp %115 : vector<8x8xf32>
    %cst_83 = arith.constant dense<0.000000e+00> : vector<8xf32>
    %117 = vector.multi_reduction <add>, %116, %cst_83 [1] : vector<8x8xf32> to vector<8xf32>
    %118 = vector.shape_cast %117 : vector<8xf32> to vector<8x1xf32>
    %119 = vector.broadcast %118 : vector<8x1xf32> to vector<8x8xf32>
    %120 = arith.divf %116, %119 : vector<8x8xf32>
    %121 = arith.truncf %120 : vector<8x8xf32> to vector<8x8xbf16>
    %cst_84 = arith.constant dense<0.000000e+00> : vector<8x32xf32>
    %122 = tpu.matmul %121, %108, %cst_84 {dimension_numbers = #tpu.dot_dimension_numbers<[1], [0], [0], [1], [0, 0, 1, 1], [], []>} : vector<8x8xbf16>, vector<8x32xbf16>, vector<8x32xf32> -> vector<8x32xf32>
    %123 = arith.truncf %122 : vector<8x32xf32> to vector<8x32xbf16>
    %c0_85 = arith.constant 0 : index
    %c0_86 = arith.constant 0 : index
    %124 = vector.load %arg45[%c0_85, %c0_86] : memref<128x128xbf16, #tpu.memory_space<vmem>>, vector<32x128xbf16>
    %cst_87 = arith.constant dense<0.000000e+00> : vector<8x128xf32>
    %125 = tpu.matmul %123, %124, %cst_87 {dimension_numbers = #tpu.dot_dimension_numbers<[1], [0], [0], [1], [0, 0, 1, 1], [], []>} : vector<8x32xbf16>, vector<32x128xbf16>, vector<8x128xf32> -> vector<8x128xf32>
    %126 = arith.addf %102, %125 : vector<8x128xf32>
    %127 = vector.extract_strided_slice %101 {offsets = [0, 32], sizes = [8, 32], strides = [1, 1]} : vector<8x384xf32> to vector<8x32xf32>
    %128 = arith.truncf %127 : vector<8x32xf32> to vector<8x32xbf16>
    %129 = vector.extract_strided_slice %101 {offsets = [0, 160], sizes = [8, 32], strides = [1, 1]} : vector<8x384xf32> to vector<8x32xf32>
    %130 = arith.truncf %129 : vector<8x32xf32> to vector<8x32xbf16>
    %131 = vector.extract_strided_slice %101 {offsets = [0, 288], sizes = [8, 32], strides = [1, 1]} : vector<8x384xf32> to vector<8x32xf32>
    %132 = arith.truncf %131 : vector<8x32xf32> to vector<8x32xbf16>
    %cst_88 = arith.constant dense<0.000000e+00> : vector<8x8xf32>
    %133 = tpu.matmul %128, %130, %cst_88 {dimension_numbers = #tpu.dot_dimension_numbers<[1], [1], [0], [0], [0, 0, 1, 0], [], []>} : vector<8x32xbf16>, vector<8x32xbf16>, vector<8x8xf32> -> vector<8x8xf32>
    %cst_89 = arith.constant 0.176776692 : f32
    %134 = vector.broadcast %cst_89 : f32 to vector<8x8xf32>
    %135 = arith.mulf %133, %134 : vector<8x8xf32>
    %cst_90 = arith.constant dense<0xFF800000> : vector<8xf32>
    %136 = vector.multi_reduction <maximumf>, %135, %cst_90 [1] : vector<8x8xf32> to vector<8xf32>
    %137 = vector.shape_cast %136 : vector<8xf32> to vector<8x1xf32>
    %138 = vector.broadcast %137 : vector<8x1xf32> to vector<8x8xf32>
    %139 = arith.subf %135, %138 : vector<8x8xf32>
    %140 = math.exp %139 : vector<8x8xf32>
    %cst_91 = arith.constant dense<0.000000e+00> : vector<8xf32>
    %141 = vector.multi_reduction <add>, %140, %cst_91 [1] : vector<8x8xf32> to vector<8xf32>
    %142 = vector.shape_cast %141 : vector<8xf32> to vector<8x1xf32>
    %143 = vector.broadcast %142 : vector<8x1xf32> to vector<8x8xf32>
    %144 = arith.divf %140, %143 : vector<8x8xf32>
    %145 = arith.truncf %144 : vector<8x8xf32> to vector<8x8xbf16>
    %cst_92 = arith.constant dense<0.000000e+00> : vector<8x32xf32>
    %146 = tpu.matmul %145, %132, %cst_92 {dimension_numbers = #tpu.dot_dimension_numbers<[1], [0], [0], [1], [0, 0, 1, 1], [], []>} : vector<8x8xbf16>, vector<8x32xbf16>, vector<8x32xf32> -> vector<8x32xf32>
    %147 = arith.truncf %146 : vector<8x32xf32> to vector<8x32xbf16>
    %c32 = arith.constant 32 : index
    %c0_93 = arith.constant 0 : index
    %148 = vector.load %arg45[%c32, %c0_93] : memref<128x128xbf16, #tpu.memory_space<vmem>>, vector<32x128xbf16>
    %cst_94 = arith.constant dense<0.000000e+00> : vector<8x128xf32>
    %149 = tpu.matmul %147, %148, %cst_94 {dimension_numbers = #tpu.dot_dimension_numbers<[1], [0], [0], [1], [0, 0, 1, 1], [], []>} : vector<8x32xbf16>, vector<32x128xbf16>, vector<8x128xf32> -> vector<8x128xf32>
    %150 = arith.addf %126, %149 : vector<8x128xf32>
    %151 = vector.extract_strided_slice %101 {offsets = [0, 64], sizes = [8, 32], strides = [1, 1]} : vector<8x384xf32> to vector<8x32xf32>
    %152 = arith.truncf %151 : vector<8x32xf32> to vector<8x32xbf16>
    %153 = vector.extract_strided_slice %101 {offsets = [0, 192], sizes = [8, 32], strides = [1, 1]} : vector<8x384xf32> to vector<8x32xf32>
    %154 = arith.truncf %153 : vector<8x32xf32> to vector<8x32xbf16>
    %155 = vector.extract_strided_slice %101 {offsets = [0, 320], sizes = [8, 32], strides = [1, 1]} : vector<8x384xf32> to vector<8x32xf32>
    %156 = arith.truncf %155 : vector<8x32xf32> to vector<8x32xbf16>
    %cst_95 = arith.constant dense<0.000000e+00> : vector<8x8xf32>
    %157 = tpu.matmul %152, %154, %cst_95 {dimension_numbers = #tpu.dot_dimension_numbers<[1], [1], [0], [0], [0, 0, 1, 0], [], []>} : vector<8x32xbf16>, vector<8x32xbf16>, vector<8x8xf32> -> vector<8x8xf32>
    %cst_96 = arith.constant 0.176776692 : f32
    %158 = vector.broadcast %cst_96 : f32 to vector<8x8xf32>
    %159 = arith.mulf %157, %158 : vector<8x8xf32>
    %cst_97 = arith.constant dense<0xFF800000> : vector<8xf32>
    %160 = vector.multi_reduction <maximumf>, %159, %cst_97 [1] : vector<8x8xf32> to vector<8xf32>
    %161 = vector.shape_cast %160 : vector<8xf32> to vector<8x1xf32>
    %162 = vector.broadcast %161 : vector<8x1xf32> to vector<8x8xf32>
    %163 = arith.subf %159, %162 : vector<8x8xf32>
    %164 = math.exp %163 : vector<8x8xf32>
    %cst_98 = arith.constant dense<0.000000e+00> : vector<8xf32>
    %165 = vector.multi_reduction <add>, %164, %cst_98 [1] : vector<8x8xf32> to vector<8xf32>
    %166 = vector.shape_cast %165 : vector<8xf32> to vector<8x1xf32>
    %167 = vector.broadcast %166 : vector<8x1xf32> to vector<8x8xf32>
    %168 = arith.divf %164, %167 : vector<8x8xf32>
    %169 = arith.truncf %168 : vector<8x8xf32> to vector<8x8xbf16>
    %cst_99 = arith.constant dense<0.000000e+00> : vector<8x32xf32>
    %170 = tpu.matmul %169, %156, %cst_99 {dimension_numbers = #tpu.dot_dimension_numbers<[1], [0], [0], [1], [0, 0, 1, 1], [], []>} : vector<8x8xbf16>, vector<8x32xbf16>, vector<8x32xf32> -> vector<8x32xf32>
    %171 = arith.truncf %170 : vector<8x32xf32> to vector<8x32xbf16>
    %c64 = arith.constant 64 : index
    %c0_100 = arith.constant 0 : index
    %172 = vector.load %arg45[%c64, %c0_100] : memref<128x128xbf16, #tpu.memory_space<vmem>>, vector<32x128xbf16>
    %cst_101 = arith.constant dense<0.000000e+00> : vector<8x128xf32>
    %173 = tpu.matmul %171, %172, %cst_101 {dimension_numbers = #tpu.dot_dimension_numbers<[1], [0], [0], [1], [0, 0, 1, 1], [], []>} : vector<8x32xbf16>, vector<32x128xbf16>, vector<8x128xf32> -> vector<8x128xf32>
    %174 = arith.addf %150, %173 : vector<8x128xf32>
    %175 = vector.extract_strided_slice %101 {offsets = [0, 96], sizes = [8, 32], strides = [1, 1]} : vector<8x384xf32> to vector<8x32xf32>
    %176 = arith.truncf %175 : vector<8x32xf32> to vector<8x32xbf16>
    %177 = vector.extract_strided_slice %101 {offsets = [0, 224], sizes = [8, 32], strides = [1, 1]} : vector<8x384xf32> to vector<8x32xf32>
    %178 = arith.truncf %177 : vector<8x32xf32> to vector<8x32xbf16>
    %179 = vector.extract_strided_slice %101 {offsets = [0, 352], sizes = [8, 32], strides = [1, 1]} : vector<8x384xf32> to vector<8x32xf32>
    %180 = arith.truncf %179 : vector<8x32xf32> to vector<8x32xbf16>
    %cst_102 = arith.constant dense<0.000000e+00> : vector<8x8xf32>
    %181 = tpu.matmul %176, %178, %cst_102 {dimension_numbers = #tpu.dot_dimension_numbers<[1], [1], [0], [0], [0, 0, 1, 0], [], []>} : vector<8x32xbf16>, vector<8x32xbf16>, vector<8x8xf32> -> vector<8x8xf32>
    %cst_103 = arith.constant 0.176776692 : f32
    %182 = vector.broadcast %cst_103 : f32 to vector<8x8xf32>
    %183 = arith.mulf %181, %182 : vector<8x8xf32>
    %cst_104 = arith.constant dense<0xFF800000> : vector<8xf32>
    %184 = vector.multi_reduction <maximumf>, %183, %cst_104 [1] : vector<8x8xf32> to vector<8xf32>
    %185 = vector.shape_cast %184 : vector<8xf32> to vector<8x1xf32>
    %186 = vector.broadcast %185 : vector<8x1xf32> to vector<8x8xf32>
    %187 = arith.subf %183, %186 : vector<8x8xf32>
    %188 = math.exp %187 : vector<8x8xf32>
    %cst_105 = arith.constant dense<0.000000e+00> : vector<8xf32>
    %189 = vector.multi_reduction <add>, %188, %cst_105 [1] : vector<8x8xf32> to vector<8xf32>
    %190 = vector.shape_cast %189 : vector<8xf32> to vector<8x1xf32>
    %191 = vector.broadcast %190 : vector<8x1xf32> to vector<8x8xf32>
    %192 = arith.divf %188, %191 : vector<8x8xf32>
    %193 = arith.truncf %192 : vector<8x8xf32> to vector<8x8xbf16>
    %cst_106 = arith.constant dense<0.000000e+00> : vector<8x32xf32>
    %194 = tpu.matmul %193, %180, %cst_106 {dimension_numbers = #tpu.dot_dimension_numbers<[1], [0], [0], [1], [0, 0, 1, 1], [], []>} : vector<8x8xbf16>, vector<8x32xbf16>, vector<8x32xf32> -> vector<8x32xf32>
    %195 = arith.truncf %194 : vector<8x32xf32> to vector<8x32xbf16>
    %c96 = arith.constant 96 : index
    %c0_107 = arith.constant 0 : index
    %196 = vector.load %arg45[%c96, %c0_107] : memref<128x128xbf16, #tpu.memory_space<vmem>>, vector<32x128xbf16>
    %cst_108 = arith.constant dense<0.000000e+00> : vector<8x128xf32>
    %197 = tpu.matmul %195, %196, %cst_108 {dimension_numbers = #tpu.dot_dimension_numbers<[1], [0], [0], [1], [0, 0, 1, 1], [], []>} : vector<8x32xbf16>, vector<32x128xbf16>, vector<8x128xf32> -> vector<8x128xf32>
    %198 = arith.addf %174, %197 : vector<8x128xf32>
    %c0_109 = arith.constant 0 : index
    %c0_110 = arith.constant 0 : index
    %199 = vector.load %arg44[%c0_109, %c0_110] : memref<1x128xf32, #tpu.memory_space<vmem>>, vector<1x128xf32>
    %200 = vector.broadcast %199 : vector<1x128xf32> to vector<8x128xf32>
    %201 = arith.addf %198, %200 : vector<8x128xf32>
    %202 = arith.addf %95, %201 : vector<8x128xf32>
    %c0_111 = arith.constant 0 : index
    %c0_112 = arith.constant 0 : index
    %203 = vector.load %arg41[%c0_111, %c0_112] : memref<1x128xf32, #tpu.memory_space<vmem>>, vector<1x128xf32>
    %c0_113 = arith.constant 0 : index
    %c0_114 = arith.constant 0 : index
    %204 = vector.load %arg40[%c0_113, %c0_114] : memref<1x128xf32, #tpu.memory_space<vmem>>, vector<1x128xf32>
    %cst_115 = arith.constant dense<0.000000e+00> : vector<8xf32>
    %205 = vector.multi_reduction <add>, %202, %cst_115 [1] : vector<8x128xf32> to vector<8xf32>
    %206 = vector.shape_cast %205 : vector<8xf32> to vector<8x1xf32>
    %cst_116 = arith.constant 1.280000e+02 : f32
    %207 = vector.broadcast %cst_116 : f32 to vector<8x1xf32>
    %208 = arith.divf %206, %207 : vector<8x1xf32>
    %209 = vector.broadcast %208 : vector<8x1xf32> to vector<8x128xf32>
    %210 = arith.subf %202, %209 : vector<8x128xf32>
    %211 = arith.mulf %210, %210 : vector<8x128xf32>
    %cst_117 = arith.constant dense<0.000000e+00> : vector<8xf32>
    %212 = vector.multi_reduction <add>, %211, %cst_117 [1] : vector<8x128xf32> to vector<8xf32>
    %213 = vector.shape_cast %212 : vector<8xf32> to vector<8x1xf32>
    %cst_118 = arith.constant 1.280000e+02 : f32
    %214 = vector.broadcast %cst_118 : f32 to vector<8x1xf32>
    %215 = arith.divf %213, %214 : vector<8x1xf32>
    %cst_119 = arith.constant 9.99999974E-6 : f32
    %216 = vector.broadcast %cst_119 : f32 to vector<8x1xf32>
    %217 = arith.addf %215, %216 : vector<8x1xf32>
    %218 = math.rsqrt %217 : vector<8x1xf32>
    %219 = vector.broadcast %218 : vector<8x1xf32> to vector<8x128xf32>
    %220 = arith.mulf %210, %219 : vector<8x128xf32>
    %221 = vector.broadcast %203 : vector<1x128xf32> to vector<8x128xf32>
    %222 = arith.mulf %220, %221 : vector<8x128xf32>
    %223 = vector.broadcast %204 : vector<1x128xf32> to vector<8x128xf32>
    %224 = arith.addf %222, %223 : vector<8x128xf32>
    %225 = arith.truncf %224 : vector<8x128xf32> to vector<8x128xbf16>
    %c0_120 = arith.constant 0 : index
    %c0_121 = arith.constant 0 : index
    %226 = vector.load %arg48[%c0_120, %c0_121] : memref<128x256xbf16, #tpu.memory_space<vmem>>, vector<128x256xbf16>
    %cst_122 = arith.constant dense<0.000000e+00> : vector<8x256xf32>
    %227 = tpu.matmul %225, %226, %cst_122 {dimension_numbers = #tpu.dot_dimension_numbers<[1], [0], [0], [1], [0, 0, 1, 1], [], []>} : vector<8x128xbf16>, vector<128x256xbf16>, vector<8x256xf32> -> vector<8x256xf32>
    %c0_123 = arith.constant 0 : index
    %c0_124 = arith.constant 0 : index
    %228 = vector.load %arg38[%c0_123, %c0_124] : memref<1x256xf32, #tpu.memory_space<vmem>>, vector<1x256xf32>
    %229 = vector.broadcast %228 : vector<1x256xf32> to vector<8x256xf32>
    %230 = arith.addf %227, %229 : vector<8x256xf32>
    %cst_125 = arith.constant 5.000000e-01 : f32
    %231 = vector.broadcast %cst_125 : f32 to vector<8x256xf32>
    %232 = arith.mulf %231, %230 : vector<8x256xf32>
    %cst_126 = arith.constant 4.471500e-02 : f32
    %233 = vector.broadcast %cst_126 : f32 to vector<8x256xf32>
    %234 = arith.mulf %233, %230 : vector<8x256xf32>
    %235 = arith.mulf %234, %230 : vector<8x256xf32>
    %236 = arith.mulf %235, %230 : vector<8x256xf32>
    %237 = arith.addf %230, %236 : vector<8x256xf32>
    %cst_127 = arith.constant 0.797884583 : f32
    %238 = vector.broadcast %cst_127 : f32 to vector<8x256xf32>
    %239 = arith.mulf %238, %237 : vector<8x256xf32>
    %240 = math.tanh %239 : vector<8x256xf32>
    %cst_128 = arith.constant 1.000000e+00 : f32
    %241 = vector.broadcast %cst_128 : f32 to vector<8x256xf32>
    %242 = arith.addf %241, %240 : vector<8x256xf32>
    %243 = arith.mulf %232, %242 : vector<8x256xf32>
    %244 = arith.truncf %243 : vector<8x256xf32> to vector<8x256xbf16>
    %c0_129 = arith.constant 0 : index
    %c0_130 = arith.constant 0 : index
    %245 = vector.load %arg49[%c0_129, %c0_130] : memref<256x128xbf16, #tpu.memory_space<vmem>>, vector<256x128xbf16>
    %cst_131 = arith.constant dense<0.000000e+00> : vector<8x128xf32>
    %246 = tpu.matmul %244, %245, %cst_131 {dimension_numbers = #tpu.dot_dimension_numbers<[1], [0], [0], [1], [0, 0, 1, 1], [], []>} : vector<8x256xbf16>, vector<256x128xbf16>, vector<8x128xf32> -> vector<8x128xf32>
    %c0_132 = arith.constant 0 : index
    %c0_133 = arith.constant 0 : index
    %247 = vector.load %arg39[%c0_132, %c0_133] : memref<1x128xf32, #tpu.memory_space<vmem>>, vector<1x128xf32>
    %248 = vector.broadcast %247 : vector<1x128xf32> to vector<8x128xf32>
    %249 = arith.addf %246, %248 : vector<8x128xf32>
    %250 = arith.addf %224, %249 : vector<8x128xf32>
    %c0_134 = arith.constant 0 : index
    %c0_135 = arith.constant 0 : index
    %251 = vector.load %arg43[%c0_134, %c0_135] : memref<1x128xf32, #tpu.memory_space<vmem>>, vector<1x128xf32>
    %c0_136 = arith.constant 0 : index
    %c0_137 = arith.constant 0 : index
    %252 = vector.load %arg42[%c0_136, %c0_137] : memref<1x128xf32, #tpu.memory_space<vmem>>, vector<1x128xf32>
    %cst_138 = arith.constant dense<0.000000e+00> : vector<8xf32>
    %253 = vector.multi_reduction <add>, %250, %cst_138 [1] : vector<8x128xf32> to vector<8xf32>
    %254 = vector.shape_cast %253 : vector<8xf32> to vector<8x1xf32>
    %cst_139 = arith.constant 1.280000e+02 : f32
    %255 = vector.broadcast %cst_139 : f32 to vector<8x1xf32>
    %256 = arith.divf %254, %255 : vector<8x1xf32>
    %257 = vector.broadcast %256 : vector<8x1xf32> to vector<8x128xf32>
    %258 = arith.subf %250, %257 : vector<8x128xf32>
    %259 = arith.mulf %258, %258 : vector<8x128xf32>
    %cst_140 = arith.constant dense<0.000000e+00> : vector<8xf32>
    %260 = vector.multi_reduction <add>, %259, %cst_140 [1] : vector<8x128xf32> to vector<8xf32>
    %261 = vector.shape_cast %260 : vector<8xf32> to vector<8x1xf32>
    %cst_141 = arith.constant 1.280000e+02 : f32
    %262 = vector.broadcast %cst_141 : f32 to vector<8x1xf32>
    %263 = arith.divf %261, %262 : vector<8x1xf32>
    %cst_142 = arith.constant 9.99999974E-6 : f32
    %264 = vector.broadcast %cst_142 : f32 to vector<8x1xf32>
    %265 = arith.addf %263, %264 : vector<8x1xf32>
    %266 = math.rsqrt %265 : vector<8x1xf32>
    %267 = vector.broadcast %266 : vector<8x1xf32> to vector<8x128xf32>
    %268 = arith.mulf %258, %267 : vector<8x128xf32>
    %269 = vector.broadcast %251 : vector<1x128xf32> to vector<8x128xf32>
    %270 = arith.mulf %268, %269 : vector<8x128xf32>
    %271 = vector.broadcast %252 : vector<1x128xf32> to vector<8x128xf32>
    %272 = arith.addf %270, %271 : vector<8x128xf32>
    %273 = arith.truncf %272 : vector<8x128xf32> to vector<8x128xbf16>
    %c0_143 = arith.constant 0 : index
    %c0_144 = arith.constant 0 : index
    %274 = vector.load %arg53[%c0_143, %c0_144] : memref<128x128xbf16, #tpu.memory_space<vmem>>, vector<128x128xbf16>
    %cst_145 = arith.constant dense<0.000000e+00> : vector<8x128xf32>
    %275 = tpu.matmul %273, %274, %cst_145 {dimension_numbers = #tpu.dot_dimension_numbers<[1], [0], [0], [1], [0, 0, 1, 1], [], []>} : vector<8x128xbf16>, vector<128x128xbf16>, vector<8x128xf32> -> vector<8x128xf32>
    %c0_146 = arith.constant 0 : index
    %c0_147 = arith.constant 0 : index
    %276 = vector.load %arg52[%c0_146, %c0_147] : memref<1x128xf32, #tpu.memory_space<vmem>>, vector<1x128xf32>
    %277 = vector.broadcast %276 : vector<1x128xf32> to vector<8x128xf32>
    %278 = arith.addf %275, %277 : vector<8x128xf32>
    %279 = arith.truncf %272 : vector<8x128xf32> to vector<8x128xbf16>
    %c0_148 = arith.constant 0 : index
    %c0_149 = arith.constant 0 : index
    %280 = vector.load %arg51[%c0_148, %c0_149] : memref<128x128xbf16, #tpu.memory_space<vmem>>, vector<128x128xbf16>
    %cst_150 = arith.constant dense<0.000000e+00> : vector<8x128xf32>
    %281 = tpu.matmul %279, %280, %cst_150 {dimension_numbers = #tpu.dot_dimension_numbers<[1], [0], [0], [1], [0, 0, 1, 1], [], []>} : vector<8x128xbf16>, vector<128x128xbf16>, vector<8x128xf32> -> vector<8x128xf32>
    %c0_151 = arith.constant 0 : index
    %c0_152 = arith.constant 0 : index
    %282 = vector.load %arg50[%c0_151, %c0_152] : memref<1x128xf32, #tpu.memory_space<vmem>>, vector<1x128xf32>
    %283 = vector.broadcast %282 : vector<1x128xf32> to vector<8x128xf32>
    %284 = arith.addf %281, %283 : vector<8x128xf32>
    %c0_153 = arith.constant 0 : index
    %c0_154 = arith.constant 0 : index
    %c0_155 = arith.constant 0 : index
    %285 = vector.load %arg55[%c0_153, %c0_154, %c0_155] : memref<1x8x128xf32, #tpu.memory_space<vmem>>, vector<1x8x128xf32>
    %286 = vector.shape_cast %285 : vector<1x8x128xf32> to vector<8x128xf32>
    %287 = vector.shape_cast %278 : vector<8x128xf32> to vector<1x8x128xf32>
    tpu.vector_store %arg55[%c0_153, %c0_154, %c0_155], %287 {strides = array<i32>} : memref<1x8x128xf32, #tpu.memory_space<vmem>>, vector<1x8x128xf32>,
    %c0_156 = arith.constant 0 : index
    %c0_157 = arith.constant 0 : index
    %c0_158 = arith.constant 0 : index
    %288 = vector.load %arg56[%c0_156, %c0_157, %c0_158] : memref<1x8x128xf32, #tpu.memory_space<vmem>>, vector<1x8x128xf32>
    %289 = vector.shape_cast %288 : vector<1x8x128xf32> to vector<8x128xf32>
    %290 = vector.shape_cast %284 : vector<8x128xf32> to vector<1x8x128xf32>
    tpu.vector_store %arg56[%c0_156, %c0_157, %c0_158], %290 {strides = array<i32>} : memref<1x8x128xf32, #tpu.memory_space<vmem>>, vector<1x8x128xf32>,
    %c0_159 = arith.constant 0 : index
    %c0_160 = arith.constant 0 : index
    %c0_161 = arith.constant 0 : index
    %291 = vector.load %arg2[%c0_159, %c0_160, %c0_161] : memref<1x8x128xf32, #tpu.memory_space<vmem>>, vector<1x8x128xf32>
    %292 = vector.shape_cast %291 : vector<1x8x128xf32> to vector<8x128xf32>
    %cst_162 = arith.constant 5.000000e-01 : f32
    %293 = vector.broadcast %cst_162 : f32 to vector<8x128xf32>
    %294 = arith.mulf %293, %284 : vector<8x128xf32>
    %295 = math.exp %294 : vector<8x128xf32>
    %296 = arith.mulf %292, %295 : vector<8x128xf32>
    %297 = arith.addf %278, %296 : vector<8x128xf32>
    %c1_163 = arith.constant 1 : index
    %c0_164 = arith.constant 0 : index
    %298 = vector.load %arg59[%c1_163, %c0_164] : memref<10x128xf32, #tpu.memory_space<vmem>>, vector<8x128xf32>
    tpu.vector_store %arg59[%c1_163, %c0_164], %297 {strides = array<i32>} : memref<10x128xf32, #tpu.memory_space<vmem>>, vector<8x128xf32>,
    %cst_165 = arith.constant 0.000000e+00 : f32
    %299 = vector.broadcast %cst_165 : f32 to vector<1x128xf32>
    %c0_166 = arith.constant 0 : index
    %c0_167 = arith.constant 0 : index
    %300 = vector.load %arg59[%c0_166, %c0_167] : memref<10x128xf32, #tpu.memory_space<vmem>>, vector<1x128xf32>
    tpu.vector_store %arg59[%c0_166, %c0_167], %299 {strides = array<i32>} : memref<10x128xf32, #tpu.memory_space<vmem>>, vector<1x128xf32>,
    %cst_168 = arith.constant 0.000000e+00 : f32
    %301 = vector.broadcast %cst_168 : f32 to vector<1x128xf32>
    %c9 = arith.constant 9 : index
    %c0_169 = arith.constant 0 : index
    %302 = vector.load %arg59[%c9, %c0_169] : memref<10x128xf32, #tpu.memory_space<vmem>>, vector<1x128xf32>
    tpu.vector_store %arg59[%c9, %c0_169], %301 {strides = array<i32>} : memref<10x128xf32, #tpu.memory_space<vmem>>, vector<1x128xf32>,
    %c2_170 = arith.constant 2 : index
    %c0_171 = arith.constant 0 : index
    %303 = vector.load %arg59[%c2_170, %c0_171] : memref<10x128xf32, #tpu.memory_space<vmem>>, vector<8x128xf32>
    %c1_172 = arith.constant 1 : index
    %c0_173 = arith.constant 0 : index
    %304 = vector.load %arg59[%c1_172, %c0_173] : memref<10x128xf32, #tpu.memory_space<vmem>>, vector<8x128xf32>
    %c0_174 = arith.constant 0 : index
    %c0_175 = arith.constant 0 : index
    %305 = vector.load %arg59[%c0_174, %c0_175] : memref<10x128xf32, #tpu.memory_space<vmem>>, vector<8x128xf32>
    %306 = tpu.concatenate %303, %304, %305 in 1 : vector<8x128xf32>, vector<8x128xf32>, vector<8x128xf32> -> vector<8x384xf32>
    %307 = arith.truncf %306 : vector<8x384xf32> to vector<8x384xbf16>
    %c0_176 = arith.constant 0 : index
    %c0_177 = arith.constant 0 : index
    %308 = vector.load %arg12[%c0_176, %c0_177] : memref<384x128xbf16, #tpu.memory_space<vmem>>, vector<384x128xbf16>
    %cst_178 = arith.constant dense<0.000000e+00> : vector<8x128xf32>
    %309 = tpu.matmul %307, %308, %cst_178 {dimension_numbers = #tpu.dot_dimension_numbers<[1], [0], [0], [1], [0, 0, 1, 1], [], []>} : vector<8x384xbf16>, vector<384x128xbf16>, vector<8x128xf32> -> vector<8x128xf32>
    %c0_179 = arith.constant 0 : index
    %c0_180 = arith.constant 0 : index
    %310 = vector.load %arg9[%c0_179, %c0_180] : memref<1x128xf32, #tpu.memory_space<vmem>>, vector<1x128xf32>
    %311 = vector.broadcast %310 : vector<1x128xf32> to vector<8x128xf32>
    %312 = arith.addf %309, %311 : vector<8x128xf32>
    %313 = tpu.concatenate %303, %304 in 1 : vector<8x128xf32>, vector<8x128xf32> -> vector<8x256xf32>
    %314 = arith.truncf %313 : vector<8x256xf32> to vector<8x256xbf16>
    %c0_181 = arith.constant 0 : index
    %c0_182 = arith.constant 0 : index
    %315 = vector.load %arg13[%c0_181, %c0_182] : memref<256x128xbf16, #tpu.memory_space<vmem>>, vector<256x128xbf16>
    %cst_183 = arith.constant dense<0.000000e+00> : vector<8x128xf32>
    %316 = tpu.matmul %314, %315, %cst_183 {dimension_numbers = #tpu.dot_dimension_numbers<[1], [0], [0], [1], [0, 0, 1, 1], [], []>} : vector<8x256xbf16>, vector<256x128xbf16>, vector<8x128xf32> -> vector<8x128xf32>
    %c0_184 = arith.constant 0 : index
    %c0_185 = arith.constant 0 : index
    %317 = vector.load %arg9[%c0_184, %c0_185] : memref<1x128xf32, #tpu.memory_space<vmem>>, vector<1x128xf32>
    %318 = vector.broadcast %317 : vector<1x128xf32> to vector<8x128xf32>
    %319 = arith.addf %316, %318 : vector<8x128xf32>
    %cst_186 = arith.constant 0.000000e+00 : f32
    %320 = vector.broadcast %cst_186 : f32 to vector<8x128xf32>
    %321 = arith.cmpf oge, %312, %320 : vector<8x128xf32>
    %cst_187 = arith.constant 2.000000e-01 : f32
    %322 = vector.broadcast %cst_187 : f32 to vector<8x128xf32>
    %323 = arith.mulf %322, %312 : vector<8x128xf32>
    %324 = arith.select %321, %312, %323 : vector<8x128xi1>, vector<8x128xf32>
    %c0_188 = arith.constant 0 : index
    %c0_189 = arith.constant 0 : index
    %325 = vector.load %arg10[%c0_188, %c0_189] : memref<1x128xf32, #tpu.memory_space<vmem>>, vector<1x128xf32>
    %326 = vector.broadcast %325 : vector<1x128xf32> to vector<8x128xf32>
    %327 = arith.mulf %324, %326 : vector<8x128xf32>
    %c0_190 = arith.constant 0 : index
    %c0_191 = arith.constant 0 : index
    %328 = vector.load %arg11[%c0_190, %c0_191] : memref<1x128xf32, #tpu.memory_space<vmem>>, vector<1x128xf32>
    %329 = vector.broadcast %328 : vector<1x128xf32> to vector<8x128xf32>
    %330 = arith.addf %327, %329 : vector<8x128xf32>
    %cst_192 = arith.constant 0.000000e+00 : f32
    %331 = vector.broadcast %cst_192 : f32 to vector<8x128xf32>
    %332 = arith.cmpf oge, %319, %331 : vector<8x128xf32>
    %cst_193 = arith.constant 2.000000e-01 : f32
    %333 = vector.broadcast %cst_193 : f32 to vector<8x128xf32>
    %334 = arith.mulf %333, %319 : vector<8x128xf32>
    %335 = arith.select %332, %319, %334 : vector<8x128xi1>, vector<8x128xf32>
    %c0_194 = arith.constant 0 : index
    %c0_195 = arith.constant 0 : index
    %336 = vector.load %arg10[%c0_194, %c0_195] : memref<1x128xf32, #tpu.memory_space<vmem>>, vector<1x128xf32>
    %337 = vector.broadcast %336 : vector<1x128xf32> to vector<8x128xf32>
    %338 = arith.mulf %335, %337 : vector<8x128xf32>
    %c0_196 = arith.constant 0 : index
    %c0_197 = arith.constant 0 : index
    %339 = vector.load %arg11[%c0_196, %c0_197] : memref<1x128xf32, #tpu.memory_space<vmem>>, vector<1x128xf32>
    %340 = vector.broadcast %339 : vector<1x128xf32> to vector<8x128xf32>
    %341 = arith.addf %338, %340 : vector<8x128xf32>
    %c1_198 = arith.constant 1 : index
    %c0_199 = arith.constant 0 : index
    %342 = vector.load %arg60[%c1_198, %c0_199] : memref<10x128xf32, #tpu.memory_space<vmem>>, vector<8x128xf32>
    tpu.vector_store %arg60[%c1_198, %c0_199], %330 {strides = array<i32>} : memref<10x128xf32, #tpu.memory_space<vmem>>, vector<8x128xf32>,
    %343 = vector.extract_strided_slice %330 {offsets = [0, 0], sizes = [1, 128], strides = [1, 1]} : vector<8x128xf32> to vector<1x128xf32>
    %c0_200 = arith.constant 0 : index
    %c0_201 = arith.constant 0 : index
    %344 = vector.load %arg60[%c0_200, %c0_201] : memref<10x128xf32, #tpu.memory_space<vmem>>, vector<1x128xf32>
    tpu.vector_store %arg60[%c0_200, %c0_201], %343 {strides = array<i32>} : memref<10x128xf32, #tpu.memory_space<vmem>>, vector<1x128xf32>,
    %345 = vector.extract_strided_slice %341 {offsets = [7, 0], sizes = [1, 128], strides = [1, 1]} : vector<8x128xf32> to vector<1x128xf32>
    %c9_202 = arith.constant 9 : index
    %c0_203 = arith.constant 0 : index
    %346 = vector.load %arg60[%c9_202, %c0_203] : memref<10x128xf32, #tpu.memory_space<vmem>>, vector<1x128xf32>
    tpu.vector_store %arg60[%c9_202, %c0_203], %345 {strides = array<i32>} : memref<10x128xf32, #tpu.memory_space<vmem>>, vector<1x128xf32>,
    %c1_204 = arith.constant 1 : index
    %c0_205 = arith.constant 0 : index
    %347 = vector.load %arg61[%c1_204, %c0_205] : memref<10x128xf32, #tpu.memory_space<vmem>>, vector<8x128xf32>
    tpu.vector_store %arg61[%c1_204, %c0_205], %341 {strides = array<i32>} : memref<10x128xf32, #tpu.memory_space<vmem>>, vector<8x128xf32>,
    %348 = vector.extract_strided_slice %330 {offsets = [0, 0], sizes = [1, 128], strides = [1, 1]} : vector<8x128xf32> to vector<1x128xf32>
    %c0_206 = arith.constant 0 : index
    %c0_207 = arith.constant 0 : index
    %349 = vector.load %arg61[%c0_206, %c0_207] : memref<10x128xf32, #tpu.memory_space<vmem>>, vector<1x128xf32>
    tpu.vector_store %arg61[%c0_206, %c0_207], %348 {strides = array<i32>} : memref<10x128xf32, #tpu.memory_space<vmem>>, vector<1x128xf32>,
    %350 = vector.extract_strided_slice %341 {offsets = [7, 0], sizes = [1, 128], strides = [1, 1]} : vector<8x128xf32> to vector<1x128xf32>
    %c9_208 = arith.constant 9 : index
    %c0_209 = arith.constant 0 : index
    %351 = vector.load %arg61[%c9_208, %c0_209] : memref<10x128xf32, #tpu.memory_space<vmem>>, vector<1x128xf32>
    tpu.vector_store %arg61[%c9_208, %c0_209], %350 {strides = array<i32>} : memref<10x128xf32, #tpu.memory_space<vmem>>, vector<1x128xf32>,
    %c0_210 = arith.constant 0 : index
    %c0_211 = arith.constant 0 : index
    %352 = vector.load %arg60[%c0_210, %c0_211] : memref<10x128xf32, #tpu.memory_space<vmem>>, vector<8x128xf32>
    %c1_212 = arith.constant 1 : index
    %c0_213 = arith.constant 0 : index
    %353 = vector.load %arg60[%c1_212, %c0_213] : memref<10x128xf32, #tpu.memory_space<vmem>>, vector<8x128xf32>
    %c2_214 = arith.constant 2 : index
    %c0_215 = arith.constant 0 : index
    %354 = vector.load %arg60[%c2_214, %c0_215] : memref<10x128xf32, #tpu.memory_space<vmem>>, vector<8x128xf32>
    %c0_216 = arith.constant 0 : index
    %c0_217 = arith.constant 0 : index
    %355 = vector.load %arg61[%c0_216, %c0_217] : memref<10x128xf32, #tpu.memory_space<vmem>>, vector<8x128xf32>
    %c1_218 = arith.constant 1 : index
    %c0_219 = arith.constant 0 : index
    %356 = vector.load %arg61[%c1_218, %c0_219] : memref<10x128xf32, #tpu.memory_space<vmem>>, vector<8x128xf32>
    %c2_220 = arith.constant 2 : index
    %c0_221 = arith.constant 0 : index
    %357 = vector.load %arg61[%c2_220, %c0_221] : memref<10x128xf32, #tpu.memory_space<vmem>>, vector<8x128xf32>
    %358 = tpu.concatenate %352, %355, %353, %356, %354 in 1 : vector<8x128xf32>, vector<8x128xf32>, vector<8x128xf32>, vector<8x128xf32>, vector<8x128xf32> -> vector<8x640xf32>
    %359 = arith.truncf %358 : vector<8x640xf32> to vector<8x640xbf16>
    %c0_222 = arith.constant 0 : index
    %c0_223 = arith.constant 0 : index
    %360 = vector.load %arg6[%c0_222, %c0_223] : memref<640x128xbf16, #tpu.memory_space<vmem>>, vector<640x128xbf16>
    %cst_224 = arith.constant dense<0.000000e+00> : vector<8x128xf32>
    %361 = tpu.matmul %359, %360, %cst_224 {dimension_numbers = #tpu.dot_dimension_numbers<[1], [0], [0], [1], [0, 0, 1, 1], [], []>} : vector<8x640xbf16>, vector<640x128xbf16>, vector<8x128xf32> -> vector<8x128xf32>
    %c0_225 = arith.constant 0 : index
    %c0_226 = arith.constant 0 : index
    %362 = vector.load %arg3[%c0_225, %c0_226] : memref<1x128xf32, #tpu.memory_space<vmem>>, vector<1x128xf32>
    %363 = vector.broadcast %362 : vector<1x128xf32> to vector<8x128xf32>
    %364 = arith.addf %361, %363 : vector<8x128xf32>
    %cst_227 = arith.constant 0.000000e+00 : f32
    %365 = vector.broadcast %cst_227 : f32 to vector<8x128xf32>
    %366 = arith.cmpf oge, %364, %365 : vector<8x128xf32>
    %cst_228 = arith.constant 2.000000e-01 : f32
    %367 = vector.broadcast %cst_228 : f32 to vector<8x128xf32>
    %368 = arith.mulf %367, %364 : vector<8x128xf32>
    %369 = arith.select %366, %364, %368 : vector<8x128xi1>, vector<8x128xf32>
    %c0_229 = arith.constant 0 : index
    %c0_230 = arith.constant 0 : index
    %370 = vector.load %arg4[%c0_229, %c0_230] : memref<1x128xf32, #tpu.memory_space<vmem>>, vector<1x128xf32>
    %371 = vector.broadcast %370 : vector<1x128xf32> to vector<8x128xf32>
    %372 = arith.mulf %369, %371 : vector<8x128xf32>
    %c0_231 = arith.constant 0 : index
    %c0_232 = arith.constant 0 : index
    %373 = vector.load %arg5[%c0_231, %c0_232] : memref<1x128xf32, #tpu.memory_space<vmem>>, vector<1x128xf32>
    %374 = vector.broadcast %373 : vector<1x128xf32> to vector<8x128xf32>
    %375 = arith.addf %372, %374 : vector<8x128xf32>
    %376 = tpu.concatenate %355, %353, %356, %354, %357 in 1 : vector<8x128xf32>, vector<8x128xf32>, vector<8x128xf32>, vector<8x128xf32>, vector<8x128xf32> -> vector<8x640xf32>
    %377 = arith.truncf %376 : vector<8x640xf32> to vector<8x640xbf16>
    %c0_233 = arith.constant 0 : index
    %c0_234 = arith.constant 0 : index
    %378 = vector.load %arg6[%c0_233, %c0_234] : memref<640x128xbf16, #tpu.memory_space<vmem>>, vector<640x128xbf16>
    %cst_235 = arith.constant dense<0.000000e+00> : vector<8x128xf32>
    %379 = tpu.matmul %377, %378, %cst_235 {dimension_numbers = #tpu.dot_dimension_numbers<[1], [0], [0], [1], [0, 0, 1, 1], [], []>} : vector<8x640xbf16>, vector<640x128xbf16>, vector<8x128xf32> -> vector<8x128xf32>
    %c0_236 = arith.constant 0 : index
    %c0_237 = arith.constant 0 : index
    %380 = vector.load %arg3[%c0_236, %c0_237] : memref<1x128xf32, #tpu.memory_space<vmem>>, vector<1x128xf32>
    %381 = vector.broadcast %380 : vector<1x128xf32> to vector<8x128xf32>
    %382 = arith.addf %379, %381 : vector<8x128xf32>
    %cst_238 = arith.constant 0.000000e+00 : f32
    %383 = vector.broadcast %cst_238 : f32 to vector<8x128xf32>
    %384 = arith.cmpf oge, %382, %383 : vector<8x128xf32>
    %cst_239 = arith.constant 2.000000e-01 : f32
    %385 = vector.broadcast %cst_239 : f32 to vector<8x128xf32>
    %386 = arith.mulf %385, %382 : vector<8x128xf32>
    %387 = arith.select %384, %382, %386 : vector<8x128xi1>, vector<8x128xf32>
    %c0_240 = arith.constant 0 : index
    %c0_241 = arith.constant 0 : index
    %388 = vector.load %arg4[%c0_240, %c0_241] : memref<1x128xf32, #tpu.memory_space<vmem>>, vector<1x128xf32>
    %389 = vector.broadcast %388 : vector<1x128xf32> to vector<8x128xf32>
    %390 = arith.mulf %387, %389 : vector<8x128xf32>
    %c0_242 = arith.constant 0 : index
    %c0_243 = arith.constant 0 : index
    %391 = vector.load %arg5[%c0_242, %c0_243] : memref<1x128xf32, #tpu.memory_space<vmem>>, vector<1x128xf32>
    %392 = vector.broadcast %391 : vector<1x128xf32> to vector<8x128xf32>
    %393 = arith.addf %390, %392 : vector<8x128xf32>
    %394 = vector.extract_strided_slice %375 {offsets = [0, 0], sizes = [1, 128], strides = [1, 1]} : vector<8x128xf32> to vector<1x128xf32>
    %395 = vector.shape_cast %394 : vector<1x128xf32> to vector<1x128xf32>
    %396 = vector.broadcast %395 : vector<1x128xf32> to vector<2x128xf32>
    %c0_244 = arith.constant 0 : index
    %c0_245 = arith.constant 0 : index
    %397 = vector.load %arg62[%c0_244, %c0_245] : memref<32x128xf32, #tpu.memory_space<vmem>>, vector<2x128xf32>
    tpu.vector_store %arg62[%c0_244, %c0_245], %396 {strides = array<i32>} : memref<32x128xf32, #tpu.memory_space<vmem>>, vector<2x128xf32>,
    %398 = vector.extract_strided_slice %393 {offsets = [0, 0], sizes = [1, 128], strides = [1, 1]} : vector<8x128xf32> to vector<1x128xf32>
    %399 = vector.shape_cast %398 : vector<1x128xf32> to vector<1x128xf32>
    %400 = vector.broadcast %399 : vector<1x128xf32> to vector<2x128xf32>
    %c2_246 = arith.constant 2 : index
    %c0_247 = arith.constant 0 : index
    %401 = vector.load %arg62[%c2_246, %c0_247] : memref<32x128xf32, #tpu.memory_space<vmem>>, vector<2x128xf32>
    tpu.vector_store %arg62[%c2_246, %c0_247], %400 {strides = array<i32>} : memref<32x128xf32, #tpu.memory_space<vmem>>, vector<2x128xf32>,
    %402 = vector.extract_strided_slice %375 {offsets = [1, 0], sizes = [1, 128], strides = [1, 1]} : vector<8x128xf32> to vector<1x128xf32>
    %403 = vector.shape_cast %402 : vector<1x128xf32> to vector<1x128xf32>
    %404 = vector.broadcast %403 : vector<1x128xf32> to vector<2x128xf32>
    %c4_248 = arith.constant 4 : index
    %c0_249 = arith.constant 0 : index
    %405 = vector.load %arg62[%c4_248, %c0_249] : memref<32x128xf32, #tpu.memory_space<vmem>>, vector<2x128xf32>
    tpu.vector_store %arg62[%c4_248, %c0_249], %404 {strides = array<i32>} : memref<32x128xf32, #tpu.memory_space<vmem>>, vector<2x128xf32>,
    %406 = vector.extract_strided_slice %393 {offsets = [1, 0], sizes = [1, 128], strides = [1, 1]} : vector<8x128xf32> to vector<1x128xf32>
    %407 = vector.shape_cast %406 : vector<1x128xf32> to vector<1x128xf32>
    %408 = vector.broadcast %407 : vector<1x128xf32> to vector<2x128xf32>
    %c6 = arith.constant 6 : index
    %c0_250 = arith.constant 0 : index
    %409 = vector.load %arg62[%c6, %c0_250] : memref<32x128xf32, #tpu.memory_space<vmem>>, vector<2x128xf32>
    tpu.vector_store %arg62[%c6, %c0_250], %408 {strides = array<i32>} : memref<32x128xf32, #tpu.memory_space<vmem>>, vector<2x128xf32>,
    %410 = vector.extract_strided_slice %375 {offsets = [2, 0], sizes = [1, 128], strides = [1, 1]} : vector<8x128xf32> to vector<1x128xf32>
    %411 = vector.shape_cast %410 : vector<1x128xf32> to vector<1x128xf32>
    %412 = vector.broadcast %411 : vector<1x128xf32> to vector<2x128xf32>
    %c8 = arith.constant 8 : index
    %c0_251 = arith.constant 0 : index
    %413 = vector.load %arg62[%c8, %c0_251] : memref<32x128xf32, #tpu.memory_space<vmem>>, vector<2x128xf32>
    tpu.vector_store %arg62[%c8, %c0_251], %412 {strides = array<i32>} : memref<32x128xf32, #tpu.memory_space<vmem>>, vector<2x128xf32>,
    %414 = vector.extract_strided_slice %393 {offsets = [2, 0], sizes = [1, 128], strides = [1, 1]} : vector<8x128xf32> to vector<1x128xf32>
    %415 = vector.shape_cast %414 : vector<1x128xf32> to vector<1x128xf32>
    %416 = vector.broadcast %415 : vector<1x128xf32> to vector<2x128xf32>
    %c10 = arith.constant 10 : index
    %c0_252 = arith.constant 0 : index
    %417 = vector.load %arg62[%c10, %c0_252] : memref<32x128xf32, #tpu.memory_space<vmem>>, vector<2x128xf32>
    tpu.vector_store %arg62[%c10, %c0_252], %416 {strides = array<i32>} : memref<32x128xf32, #tpu.memory_space<vmem>>, vector<2x128xf32>,
    %418 = vector.extract_strided_slice %375 {offsets = [3, 0], sizes = [1, 128], strides = [1, 1]} : vector<8x128xf32> to vector<1x128xf32>
    %419 = vector.shape_cast %418 : vector<1x128xf32> to vector<1x128xf32>
    %420 = vector.broadcast %419 : vector<1x128xf32> to vector<2x128xf32>
    %c12 = arith.constant 12 : index
    %c0_253 = arith.constant 0 : index
    %421 = vector.load %arg62[%c12, %c0_253] : memref<32x128xf32, #tpu.memory_space<vmem>>, vector<2x128xf32>
    tpu.vector_store %arg62[%c12, %c0_253], %420 {strides = array<i32>} : memref<32x128xf32, #tpu.memory_space<vmem>>, vector<2x128xf32>,
    %422 = vector.extract_strided_slice %393 {offsets = [3, 0], sizes = [1, 128], strides = [1, 1]} : vector<8x128xf32> to vector<1x128xf32>
    %423 = vector.shape_cast %422 : vector<1x128xf32> to vector<1x128xf32>
    %424 = vector.broadcast %423 : vector<1x128xf32> to vector<2x128xf32>
    %c14 = arith.constant 14 : index
    %c0_254 = arith.constant 0 : index
    %425 = vector.load %arg62[%c14, %c0_254] : memref<32x128xf32, #tpu.memory_space<vmem>>, vector<2x128xf32>
    tpu.vector_store %arg62[%c14, %c0_254], %424 {strides = array<i32>} : memref<32x128xf32, #tpu.memory_space<vmem>>, vector<2x128xf32>,
    %426 = vector.extract_strided_slice %375 {offsets = [4, 0], sizes = [1, 128], strides = [1, 1]} : vector<8x128xf32> to vector<1x128xf32>
    %427 = vector.shape_cast %426 : vector<1x128xf32> to vector<1x128xf32>
    %428 = vector.broadcast %427 : vector<1x128xf32> to vector<2x128xf32>
    %c16 = arith.constant 16 : index
    %c0_255 = arith.constant 0 : index
    %429 = vector.load %arg62[%c16, %c0_255] : memref<32x128xf32, #tpu.memory_space<vmem>>, vector<2x128xf32>
    tpu.vector_store %arg62[%c16, %c0_255], %428 {strides = array<i32>} : memref<32x128xf32, #tpu.memory_space<vmem>>, vector<2x128xf32>,
    %430 = vector.extract_strided_slice %393 {offsets = [4, 0], sizes = [1, 128], strides = [1, 1]} : vector<8x128xf32> to vector<1x128xf32>
    %431 = vector.shape_cast %430 : vector<1x128xf32> to vector<1x128xf32>
    %432 = vector.broadcast %431 : vector<1x128xf32> to vector<2x128xf32>
    %c18_256 = arith.constant 18 : index
    %c0_257 = arith.constant 0 : index
    %433 = vector.load %arg62[%c18_256, %c0_257] : memref<32x128xf32, #tpu.memory_space<vmem>>, vector<2x128xf32>
    tpu.vector_store %arg62[%c18_256, %c0_257], %432 {strides = array<i32>} : memref<32x128xf32, #tpu.memory_space<vmem>>, vector<2x128xf32>,
    %434 = vector.extract_strided_slice %375 {offsets = [5, 0], sizes = [1, 128], strides = [1, 1]} : vector<8x128xf32> to vector<1x128xf32>
    %435 = vector.shape_cast %434 : vector<1x128xf32> to vector<1x128xf32>
    %436 = vector.broadcast %435 : vector<1x128xf32> to vector<2x128xf32>
    %c20 = arith.constant 20 : index
    %c0_258 = arith.constant 0 : index
    %437 = vector.load %arg62[%c20, %c0_258] : memref<32x128xf32, #tpu.memory_space<vmem>>, vector<2x128xf32>
    tpu.vector_store %arg62[%c20, %c0_258], %436 {strides = array<i32>} : memref<32x128xf32, #tpu.memory_space<vmem>>, vector<2x128xf32>,
    %438 = vector.extract_strided_slice %393 {offsets = [5, 0], sizes = [1, 128], strides = [1, 1]} : vector<8x128xf32> to vector<1x128xf32>
    %439 = vector.shape_cast %438 : vector<1x128xf32> to vector<1x128xf32>
    %440 = vector.broadcast %439 : vector<1x128xf32> to vector<2x128xf32>
    %c22 = arith.constant 22 : index
    %c0_259 = arith.constant 0 : index
    %441 = vector.load %arg62[%c22, %c0_259] : memref<32x128xf32, #tpu.memory_space<vmem>>, vector<2x128xf32>
    tpu.vector_store %arg62[%c22, %c0_259], %440 {strides = array<i32>} : memref<32x128xf32, #tpu.memory_space<vmem>>, vector<2x128xf32>,
    %442 = vector.extract_strided_slice %375 {offsets = [6, 0], sizes = [1, 128], strides = [1, 1]} : vector<8x128xf32> to vector<1x128xf32>
    %443 = vector.shape_cast %442 : vector<1x128xf32> to vector<1x128xf32>
    %444 = vector.broadcast %443 : vector<1x128xf32> to vector<2x128xf32>
    %c24 = arith.constant 24 : index
    %c0_260 = arith.constant 0 : index
    %445 = vector.load %arg62[%c24, %c0_260] : memref<32x128xf32, #tpu.memory_space<vmem>>, vector<2x128xf32>
    tpu.vector_store %arg62[%c24, %c0_260], %444 {strides = array<i32>} : memref<32x128xf32, #tpu.memory_space<vmem>>, vector<2x128xf32>,
    %446 = vector.extract_strided_slice %393 {offsets = [6, 0], sizes = [1, 128], strides = [1, 1]} : vector<8x128xf32> to vector<1x128xf32>
    %447 = vector.shape_cast %446 : vector<1x128xf32> to vector<1x128xf32>
    %448 = vector.broadcast %447 : vector<1x128xf32> to vector<2x128xf32>
    %c26 = arith.constant 26 : index
    %c0_261 = arith.constant 0 : index
    %449 = vector.load %arg62[%c26, %c0_261] : memref<32x128xf32, #tpu.memory_space<vmem>>, vector<2x128xf32>
    tpu.vector_store %arg62[%c26, %c0_261], %448 {strides = array<i32>} : memref<32x128xf32, #tpu.memory_space<vmem>>, vector<2x128xf32>,
    %450 = vector.extract_strided_slice %375 {offsets = [7, 0], sizes = [1, 128], strides = [1, 1]} : vector<8x128xf32> to vector<1x128xf32>
    %451 = vector.shape_cast %450 : vector<1x128xf32> to vector<1x128xf32>
    %452 = vector.broadcast %451 : vector<1x128xf32> to vector<2x128xf32>
    %c28 = arith.constant 28 : index
    %c0_262 = arith.constant 0 : index
    %453 = vector.load %arg62[%c28, %c0_262] : memref<32x128xf32, #tpu.memory_space<vmem>>, vector<2x128xf32>
    tpu.vector_store %arg62[%c28, %c0_262], %452 {strides = array<i32>} : memref<32x128xf32, #tpu.memory_space<vmem>>, vector<2x128xf32>,
    %454 = vector.extract_strided_slice %393 {offsets = [7, 0], sizes = [1, 128], strides = [1, 1]} : vector<8x128xf32> to vector<1x128xf32>
    %455 = vector.shape_cast %454 : vector<1x128xf32> to vector<1x128xf32>
    %456 = vector.broadcast %455 : vector<1x128xf32> to vector<2x128xf32>
    %c30 = arith.constant 30 : index
    %c0_263 = arith.constant 0 : index
    %457 = vector.load %arg62[%c30, %c0_263] : memref<32x128xf32, #tpu.memory_space<vmem>>, vector<2x128xf32>
    tpu.vector_store %arg62[%c30, %c0_263], %456 {strides = array<i32>} : memref<32x128xf32, #tpu.memory_space<vmem>>, vector<2x128xf32>,
    %c0_264 = arith.constant 0 : index
    %c0_265 = arith.constant 0 : index
    %458 = vector.load %arg62[%c0_264, %c0_265] : memref<32x128xf32, #tpu.memory_space<vmem>>, vector<32x128xf32>
    %459 = arith.truncf %458 : vector<32x128xf32> to vector<32x128xbf16>
    %c0_266 = arith.constant 0 : index
    %c0_267 = arith.constant 0 : index
    %460 = vector.load %arg15[%c0_266, %c0_267] : memref<128x128xbf16, #tpu.memory_space<vmem>>, vector<128x128xbf16>
    %cst_268 = arith.constant dense<0.000000e+00> : vector<32x128xf32>
    %461 = tpu.matmul %459, %460, %cst_268 {dimension_numbers = #tpu.dot_dimension_numbers<[1], [0], [0], [1], [0, 0, 1, 1], [], []>} : vector<32x128xbf16>, vector<128x128xbf16>, vector<32x128xf32> -> vector<32x128xf32>
    %c0_269 = arith.constant 0 : index
    %c0_270 = arith.constant 0 : index
    %462 = vector.load %arg14[%c0_269, %c0_270] : memref<1x128xf32, #tpu.memory_space<vmem>>, vector<1x128xf32>
    %463 = vector.broadcast %462 : vector<1x128xf32> to vector<32x128xf32>
    %464 = arith.addf %461, %463 : vector<32x128xf32>
    %465 = arith.truncf %464 : vector<32x128xf32> to vector<32x128xbf16>
    %c0_271 = arith.constant 0 : index
    %c0_272 = arith.constant 0 : index
    %466 = vector.load %arg25[%c0_271, %c0_272] : memref<128x384xbf16, #tpu.memory_space<vmem>>, vector<128x384xbf16>
    %cst_273 = arith.constant dense<0.000000e+00> : vector<32x384xf32>
    %467 = tpu.matmul %465, %466, %cst_273 {dimension_numbers = #tpu.dot_dimension_numbers<[1], [0], [0], [1], [0, 0, 1, 1], [], []>} : vector<32x128xbf16>, vector<128x384xbf16>, vector<32x384xf32> -> vector<32x384xf32>
    %c0_274 = arith.constant 0 : index
    %c0_275 = arith.constant 0 : index
    %468 = vector.load %arg24[%c0_274, %c0_275] : memref<1x384xf32, #tpu.memory_space<vmem>>, vector<1x384xf32>
    %469 = vector.broadcast %468 : vector<1x384xf32> to vector<32x384xf32>
    %470 = arith.addf %467, %469 : vector<32x384xf32>
    %cst_276 = arith.constant 0.000000e+00 : f32
    %471 = vector.broadcast %cst_276 : f32 to vector<32x128xf32>
    %472 = vector.extract_strided_slice %470 {offsets = [0, 0], sizes = [32, 32], strides = [1, 1]} : vector<32x384xf32> to vector<32x32xf32>
    %473 = arith.truncf %472 : vector<32x32xf32> to vector<32x32xbf16>
    %474 = vector.extract_strided_slice %470 {offsets = [0, 128], sizes = [32, 32], strides = [1, 1]} : vector<32x384xf32> to vector<32x32xf32>
    %475 = arith.truncf %474 : vector<32x32xf32> to vector<32x32xbf16>
    %476 = vector.extract_strided_slice %470 {offsets = [0, 256], sizes = [32, 32], strides = [1, 1]} : vector<32x384xf32> to vector<32x32xf32>
    %477 = arith.truncf %476 : vector<32x32xf32> to vector<32x32xbf16>
    %cst_277 = arith.constant dense<0.000000e+00> : vector<32x32xf32>
    %478 = tpu.matmul %473, %475, %cst_277 {dimension_numbers = #tpu.dot_dimension_numbers<[1], [1], [0], [0], [0, 0, 1, 0], [], []>} : vector<32x32xbf16>, vector<32x32xbf16>, vector<32x32xf32> -> vector<32x32xf32>
    %cst_278 = arith.constant 0.176776692 : f32
    %479 = vector.broadcast %cst_278 : f32 to vector<32x32xf32>
    %480 = arith.mulf %478, %479 : vector<32x32xf32>
    %cst_279 = arith.constant dense<0xFF800000> : vector<32xf32>
    %481 = vector.multi_reduction <maximumf>, %480, %cst_279 [1] : vector<32x32xf32> to vector<32xf32>
    %482 = vector.shape_cast %481 : vector<32xf32> to vector<32x1xf32>
    %483 = vector.broadcast %482 : vector<32x1xf32> to vector<32x32xf32>
    %484 = arith.subf %480, %483 : vector<32x32xf32>
    %485 = math.exp %484 : vector<32x32xf32>
    %cst_280 = arith.constant dense<0.000000e+00> : vector<32xf32>
    %486 = vector.multi_reduction <add>, %485, %cst_280 [1] : vector<32x32xf32> to vector<32xf32>
    %487 = vector.shape_cast %486 : vector<32xf32> to vector<32x1xf32>
    %488 = vector.broadcast %487 : vector<32x1xf32> to vector<32x32xf32>
    %489 = arith.divf %485, %488 : vector<32x32xf32>
    %490 = arith.truncf %489 : vector<32x32xf32> to vector<32x32xbf16>
    %cst_281 = arith.constant dense<0.000000e+00> : vector<32x32xf32>
    %491 = tpu.matmul %490, %477, %cst_281 {dimension_numbers = #tpu.dot_dimension_numbers<[1], [0], [0], [1], [0, 0, 1, 1], [], []>} : vector<32x32xbf16>, vector<32x32xbf16>, vector<32x32xf32> -> vector<32x32xf32>
    %492 = arith.truncf %491 : vector<32x32xf32> to vector<32x32xbf16>
    %c0_282 = arith.constant 0 : index
    %c0_283 = arith.constant 0 : index
    %493 = vector.load %arg23[%c0_282, %c0_283] : memref<128x128xbf16, #tpu.memory_space<vmem>>, vector<32x128xbf16>
    %cst_284 = arith.constant dense<0.000000e+00> : vector<32x128xf32>
    %494 = tpu.matmul %492, %493, %cst_284 {dimension_numbers = #tpu.dot_dimension_numbers<[1], [0], [0], [1], [0, 0, 1, 1], [], []>} : vector<32x32xbf16>, vector<32x128xbf16>, vector<32x128xf32> -> vector<32x128xf32>
    %495 = arith.addf %471, %494 : vector<32x128xf32>
    %496 = vector.extract_strided_slice %470 {offsets = [0, 32], sizes = [32, 32], strides = [1, 1]} : vector<32x384xf32> to vector<32x32xf32>
    %497 = arith.truncf %496 : vector<32x32xf32> to vector<32x32xbf16>
    %498 = vector.extract_strided_slice %470 {offsets = [0, 160], sizes = [32, 32], strides = [1, 1]} : vector<32x384xf32> to vector<32x32xf32>
    %499 = arith.truncf %498 : vector<32x32xf32> to vector<32x32xbf16>
    %500 = vector.extract_strided_slice %470 {offsets = [0, 288], sizes = [32, 32], strides = [1, 1]} : vector<32x384xf32> to vector<32x32xf32>
    %501 = arith.truncf %500 : vector<32x32xf32> to vector<32x32xbf16>
    %cst_285 = arith.constant dense<0.000000e+00> : vector<32x32xf32>
    %502 = tpu.matmul %497, %499, %cst_285 {dimension_numbers = #tpu.dot_dimension_numbers<[1], [1], [0], [0], [0, 0, 1, 0], [], []>} : vector<32x32xbf16>, vector<32x32xbf16>, vector<32x32xf32> -> vector<32x32xf32>
    %cst_286 = arith.constant 0.176776692 : f32
    %503 = vector.broadcast %cst_286 : f32 to vector<32x32xf32>
    %504 = arith.mulf %502, %503 : vector<32x32xf32>
    %cst_287 = arith.constant dense<0xFF800000> : vector<32xf32>
    %505 = vector.multi_reduction <maximumf>, %504, %cst_287 [1] : vector<32x32xf32> to vector<32xf32>
    %506 = vector.shape_cast %505 : vector<32xf32> to vector<32x1xf32>
    %507 = vector.broadcast %506 : vector<32x1xf32> to vector<32x32xf32>
    %508 = arith.subf %504, %507 : vector<32x32xf32>
    %509 = math.exp %508 : vector<32x32xf32>
    %cst_288 = arith.constant dense<0.000000e+00> : vector<32xf32>
    %510 = vector.multi_reduction <add>, %509, %cst_288 [1] : vector<32x32xf32> to vector<32xf32>
    %511 = vector.shape_cast %510 : vector<32xf32> to vector<32x1xf32>
    %512 = vector.broadcast %511 : vector<32x1xf32> to vector<32x32xf32>
    %513 = arith.divf %509, %512 : vector<32x32xf32>
    %514 = arith.truncf %513 : vector<32x32xf32> to vector<32x32xbf16>
    %cst_289 = arith.constant dense<0.000000e+00> : vector<32x32xf32>
    %515 = tpu.matmul %514, %501, %cst_289 {dimension_numbers = #tpu.dot_dimension_numbers<[1], [0], [0], [1], [0, 0, 1, 1], [], []>} : vector<32x32xbf16>, vector<32x32xbf16>, vector<32x32xf32> -> vector<32x32xf32>
    %516 = arith.truncf %515 : vector<32x32xf32> to vector<32x32xbf16>
    %c32_290 = arith.constant 32 : index
    %c0_291 = arith.constant 0 : index
    %517 = vector.load %arg23[%c32_290, %c0_291] : memref<128x128xbf16, #tpu.memory_space<vmem>>, vector<32x128xbf16>
    %cst_292 = arith.constant dense<0.000000e+00> : vector<32x128xf32>
    %518 = tpu.matmul %516, %517, %cst_292 {dimension_numbers = #tpu.dot_dimension_numbers<[1], [0], [0], [1], [0, 0, 1, 1], [], []>} : vector<32x32xbf16>, vector<32x128xbf16>, vector<32x128xf32> -> vector<32x128xf32>
    %519 = arith.addf %495, %518 : vector<32x128xf32>
    %520 = vector.extract_strided_slice %470 {offsets = [0, 64], sizes = [32, 32], strides = [1, 1]} : vector<32x384xf32> to vector<32x32xf32>
    %521 = arith.truncf %520 : vector<32x32xf32> to vector<32x32xbf16>
    %522 = vector.extract_strided_slice %470 {offsets = [0, 192], sizes = [32, 32], strides = [1, 1]} : vector<32x384xf32> to vector<32x32xf32>
    %523 = arith.truncf %522 : vector<32x32xf32> to vector<32x32xbf16>
    %524 = vector.extract_strided_slice %470 {offsets = [0, 320], sizes = [32, 32], strides = [1, 1]} : vector<32x384xf32> to vector<32x32xf32>
    %525 = arith.truncf %524 : vector<32x32xf32> to vector<32x32xbf16>
    %cst_293 = arith.constant dense<0.000000e+00> : vector<32x32xf32>
    %526 = tpu.matmul %521, %523, %cst_293 {dimension_numbers = #tpu.dot_dimension_numbers<[1], [1], [0], [0], [0, 0, 1, 0], [], []>} : vector<32x32xbf16>, vector<32x32xbf16>, vector<32x32xf32> -> vector<32x32xf32>
    %cst_294 = arith.constant 0.176776692 : f32
    %527 = vector.broadcast %cst_294 : f32 to vector<32x32xf32>
    %528 = arith.mulf %526, %527 : vector<32x32xf32>
    %cst_295 = arith.constant dense<0xFF800000> : vector<32xf32>
    %529 = vector.multi_reduction <maximumf>, %528, %cst_295 [1] : vector<32x32xf32> to vector<32xf32>
    %530 = vector.shape_cast %529 : vector<32xf32> to vector<32x1xf32>
    %531 = vector.broadcast %530 : vector<32x1xf32> to vector<32x32xf32>
    %532 = arith.subf %528, %531 : vector<32x32xf32>
    %533 = math.exp %532 : vector<32x32xf32>
    %cst_296 = arith.constant dense<0.000000e+00> : vector<32xf32>
    %534 = vector.multi_reduction <add>, %533, %cst_296 [1] : vector<32x32xf32> to vector<32xf32>
    %535 = vector.shape_cast %534 : vector<32xf32> to vector<32x1xf32>
    %536 = vector.broadcast %535 : vector<32x1xf32> to vector<32x32xf32>
    %537 = arith.divf %533, %536 : vector<32x32xf32>
    %538 = arith.truncf %537 : vector<32x32xf32> to vector<32x32xbf16>
    %cst_297 = arith.constant dense<0.000000e+00> : vector<32x32xf32>
    %539 = tpu.matmul %538, %525, %cst_297 {dimension_numbers = #tpu.dot_dimension_numbers<[1], [0], [0], [1], [0, 0, 1, 1], [], []>} : vector<32x32xbf16>, vector<32x32xbf16>, vector<32x32xf32> -> vector<32x32xf32>
    %540 = arith.truncf %539 : vector<32x32xf32> to vector<32x32xbf16>
    %c64_298 = arith.constant 64 : index
    %c0_299 = arith.constant 0 : index
    %541 = vector.load %arg23[%c64_298, %c0_299] : memref<128x128xbf16, #tpu.memory_space<vmem>>, vector<32x128xbf16>
    %cst_300 = arith.constant dense<0.000000e+00> : vector<32x128xf32>
    %542 = tpu.matmul %540, %541, %cst_300 {dimension_numbers = #tpu.dot_dimension_numbers<[1], [0], [0], [1], [0, 0, 1, 1], [], []>} : vector<32x32xbf16>, vector<32x128xbf16>, vector<32x128xf32> -> vector<32x128xf32>
    %543 = arith.addf %519, %542 : vector<32x128xf32>
    %544 = vector.extract_strided_slice %470 {offsets = [0, 96], sizes = [32, 32], strides = [1, 1]} : vector<32x384xf32> to vector<32x32xf32>
    %545 = arith.truncf %544 : vector<32x32xf32> to vector<32x32xbf16>
    %546 = vector.extract_strided_slice %470 {offsets = [0, 224], sizes = [32, 32], strides = [1, 1]} : vector<32x384xf32> to vector<32x32xf32>
    %547 = arith.truncf %546 : vector<32x32xf32> to vector<32x32xbf16>
    %548 = vector.extract_strided_slice %470 {offsets = [0, 352], sizes = [32, 32], strides = [1, 1]} : vector<32x384xf32> to vector<32x32xf32>
    %549 = arith.truncf %548 : vector<32x32xf32> to vector<32x32xbf16>
    %cst_301 = arith.constant dense<0.000000e+00> : vector<32x32xf32>
    %550 = tpu.matmul %545, %547, %cst_301 {dimension_numbers = #tpu.dot_dimension_numbers<[1], [1], [0], [0], [0, 0, 1, 0], [], []>} : vector<32x32xbf16>, vector<32x32xbf16>, vector<32x32xf32> -> vector<32x32xf32>
    %cst_302 = arith.constant 0.176776692 : f32
    %551 = vector.broadcast %cst_302 : f32 to vector<32x32xf32>
    %552 = arith.mulf %550, %551 : vector<32x32xf32>
    %cst_303 = arith.constant dense<0xFF800000> : vector<32xf32>
    %553 = vector.multi_reduction <maximumf>, %552, %cst_303 [1] : vector<32x32xf32> to vector<32xf32>
    %554 = vector.shape_cast %553 : vector<32xf32> to vector<32x1xf32>
    %555 = vector.broadcast %554 : vector<32x1xf32> to vector<32x32xf32>
    %556 = arith.subf %552, %555 : vector<32x32xf32>
    %557 = math.exp %556 : vector<32x32xf32>
    %cst_304 = arith.constant dense<0.000000e+00> : vector<32xf32>
    %558 = vector.multi_reduction <add>, %557, %cst_304 [1] : vector<32x32xf32> to vector<32xf32>
    %559 = vector.shape_cast %558 : vector<32xf32> to vector<32x1xf32>
    %560 = vector.broadcast %559 : vector<32x1xf32> to vector<32x32xf32>
    %561 = arith.divf %557, %560 : vector<32x32xf32>
    %562 = arith.truncf %561 : vector<32x32xf32> to vector<32x32xbf16>
    %cst_305 = arith.constant dense<0.000000e+00> : vector<32x32xf32>
    %563 = tpu.matmul %562, %549, %cst_305 {dimension_numbers = #tpu.dot_dimension_numbers<[1], [0], [0], [1], [0, 0, 1, 1], [], []>} : vector<32x32xbf16>, vector<32x32xbf16>, vector<32x32xf32> -> vector<32x32xf32>
    %564 = arith.truncf %563 : vector<32x32xf32> to vector<32x32xbf16>
    %c96_306 = arith.constant 96 : index
    %c0_307 = arith.constant 0 : index
    %565 = vector.load %arg23[%c96_306, %c0_307] : memref<128x128xbf16, #tpu.memory_space<vmem>>, vector<32x128xbf16>
    %cst_308 = arith.constant dense<0.000000e+00> : vector<32x128xf32>
    %566 = tpu.matmul %564, %565, %cst_308 {dimension_numbers = #tpu.dot_dimension_numbers<[1], [0], [0], [1], [0, 0, 1, 1], [], []>} : vector<32x32xbf16>, vector<32x128xbf16>, vector<32x128xf32> -> vector<32x128xf32>
    %567 = arith.addf %543, %566 : vector<32x128xf32>
    %c0_309 = arith.constant 0 : index
    %c0_310 = arith.constant 0 : index
    %568 = vector.load %arg22[%c0_309, %c0_310] : memref<1x128xf32, #tpu.memory_space<vmem>>, vector<1x128xf32>
    %569 = vector.broadcast %568 : vector<1x128xf32> to vector<32x128xf32>
    %570 = arith.addf %567, %569 : vector<32x128xf32>
    %571 = arith.addf %464, %570 : vector<32x128xf32>
    %c0_311 = arith.constant 0 : index
    %c0_312 = arith.constant 0 : index
    %572 = vector.load %arg19[%c0_311, %c0_312] : memref<1x128xf32, #tpu.memory_space<vmem>>, vector<1x128xf32>
    %c0_313 = arith.constant 0 : index
    %c0_314 = arith.constant 0 : index
    %573 = vector.load %arg18[%c0_313, %c0_314] : memref<1x128xf32, #tpu.memory_space<vmem>>, vector<1x128xf32>
    %cst_315 = arith.constant dense<0.000000e+00> : vector<32xf32>
    %574 = vector.multi_reduction <add>, %571, %cst_315 [1] : vector<32x128xf32> to vector<32xf32>
    %575 = vector.shape_cast %574 : vector<32xf32> to vector<32x1xf32>
    %cst_316 = arith.constant 1.280000e+02 : f32
    %576 = vector.broadcast %cst_316 : f32 to vector<32x1xf32>
    %577 = arith.divf %575, %576 : vector<32x1xf32>
    %578 = vector.broadcast %577 : vector<32x1xf32> to vector<32x128xf32>
    %579 = arith.subf %571, %578 : vector<32x128xf32>
    %580 = arith.mulf %579, %579 : vector<32x128xf32>
    %cst_317 = arith.constant dense<0.000000e+00> : vector<32xf32>
    %581 = vector.multi_reduction <add>, %580, %cst_317 [1] : vector<32x128xf32> to vector<32xf32>
    %582 = vector.shape_cast %581 : vector<32xf32> to vector<32x1xf32>
    %cst_318 = arith.constant 1.280000e+02 : f32
    %583 = vector.broadcast %cst_318 : f32 to vector<32x1xf32>
    %584 = arith.divf %582, %583 : vector<32x1xf32>
    %cst_319 = arith.constant 9.99999974E-6 : f32
    %585 = vector.broadcast %cst_319 : f32 to vector<32x1xf32>
    %586 = arith.addf %584, %585 : vector<32x1xf32>
    %587 = math.rsqrt %586 : vector<32x1xf32>
    %588 = vector.broadcast %587 : vector<32x1xf32> to vector<32x128xf32>
    %589 = arith.mulf %579, %588 : vector<32x128xf32>
    %590 = vector.broadcast %572 : vector<1x128xf32> to vector<32x128xf32>
    %591 = arith.mulf %589, %590 : vector<32x128xf32>
    %592 = vector.broadcast %573 : vector<1x128xf32> to vector<32x128xf32>
    %593 = arith.addf %591, %592 : vector<32x128xf32>
    %594 = arith.truncf %593 : vector<32x128xf32> to vector<32x128xbf16>
    %c0_320 = arith.constant 0 : index
    %c0_321 = arith.constant 0 : index
    %595 = vector.load %arg26[%c0_320, %c0_321] : memref<128x256xbf16, #tpu.memory_space<vmem>>, vector<128x256xbf16>
    %cst_322 = arith.constant dense<0.000000e+00> : vector<32x256xf32>
    %596 = tpu.matmul %594, %595, %cst_322 {dimension_numbers = #tpu.dot_dimension_numbers<[1], [0], [0], [1], [0, 0, 1, 1], [], []>} : vector<32x128xbf16>, vector<128x256xbf16>, vector<32x256xf32> -> vector<32x256xf32>
    %c0_323 = arith.constant 0 : index
    %c0_324 = arith.constant 0 : index
    %597 = vector.load %arg16[%c0_323, %c0_324] : memref<1x256xf32, #tpu.memory_space<vmem>>, vector<1x256xf32>
    %598 = vector.broadcast %597 : vector<1x256xf32> to vector<32x256xf32>
    %599 = arith.addf %596, %598 : vector<32x256xf32>
    %cst_325 = arith.constant 5.000000e-01 : f32
    %600 = vector.broadcast %cst_325 : f32 to vector<32x256xf32>
    %601 = arith.mulf %600, %599 : vector<32x256xf32>
    %cst_326 = arith.constant 4.471500e-02 : f32
    %602 = vector.broadcast %cst_326 : f32 to vector<32x256xf32>
    %603 = arith.mulf %602, %599 : vector<32x256xf32>
    %604 = arith.mulf %603, %599 : vector<32x256xf32>
    %605 = arith.mulf %604, %599 : vector<32x256xf32>
    %606 = arith.addf %599, %605 : vector<32x256xf32>
    %cst_327 = arith.constant 0.797884583 : f32
    %607 = vector.broadcast %cst_327 : f32 to vector<32x256xf32>
    %608 = arith.mulf %607, %606 : vector<32x256xf32>
    %609 = math.tanh %608 : vector<32x256xf32>
    %cst_328 = arith.constant 1.000000e+00 : f32
    %610 = vector.broadcast %cst_328 : f32 to vector<32x256xf32>
    %611 = arith.addf %610, %609 : vector<32x256xf32>
    %612 = arith.mulf %601, %611 : vector<32x256xf32>
    %613 = arith.truncf %612 : vector<32x256xf32> to vector<32x256xbf16>
    %c0_329 = arith.constant 0 : index
    %c0_330 = arith.constant 0 : index
    %614 = vector.load %arg27[%c0_329, %c0_330] : memref<256x128xbf16, #tpu.memory_space<vmem>>, vector<256x128xbf16>
    %cst_331 = arith.constant dense<0.000000e+00> : vector<32x128xf32>
    %615 = tpu.matmul %613, %614, %cst_331 {dimension_numbers = #tpu.dot_dimension_numbers<[1], [0], [0], [1], [0, 0, 1, 1], [], []>} : vector<32x256xbf16>, vector<256x128xbf16>, vector<32x128xf32> -> vector<32x128xf32>
    %c0_332 = arith.constant 0 : index
    %c0_333 = arith.constant 0 : index
    %616 = vector.load %arg17[%c0_332, %c0_333] : memref<1x128xf32, #tpu.memory_space<vmem>>, vector<1x128xf32>
    %617 = vector.broadcast %616 : vector<1x128xf32> to vector<32x128xf32>
    %618 = arith.addf %615, %617 : vector<32x128xf32>
    %619 = arith.addf %593, %618 : vector<32x128xf32>
    %c0_334 = arith.constant 0 : index
    %c0_335 = arith.constant 0 : index
    %620 = vector.load %arg21[%c0_334, %c0_335] : memref<1x128xf32, #tpu.memory_space<vmem>>, vector<1x128xf32>
    %c0_336 = arith.constant 0 : index
    %c0_337 = arith.constant 0 : index
    %621 = vector.load %arg20[%c0_336, %c0_337] : memref<1x128xf32, #tpu.memory_space<vmem>>, vector<1x128xf32>
    %cst_338 = arith.constant dense<0.000000e+00> : vector<32xf32>
    %622 = vector.multi_reduction <add>, %619, %cst_338 [1] : vector<32x128xf32> to vector<32xf32>
    %623 = vector.shape_cast %622 : vector<32xf32> to vector<32x1xf32>
    %cst_339 = arith.constant 1.280000e+02 : f32
    %624 = vector.broadcast %cst_339 : f32 to vector<32x1xf32>
    %625 = arith.divf %623, %624 : vector<32x1xf32>
    %626 = vector.broadcast %625 : vector<32x1xf32> to vector<32x128xf32>
    %627 = arith.subf %619, %626 : vector<32x128xf32>
    %628 = arith.mulf %627, %627 : vector<32x128xf32>
    %cst_340 = arith.constant dense<0.000000e+00> : vector<32xf32>
    %629 = vector.multi_reduction <add>, %628, %cst_340 [1] : vector<32x128xf32> to vector<32xf32>
    %630 = vector.shape_cast %629 : vector<32xf32> to vector<32x1xf32>
    %cst_341 = arith.constant 1.280000e+02 : f32
    %631 = vector.broadcast %cst_341 : f32 to vector<32x1xf32>
    %632 = arith.divf %630, %631 : vector<32x1xf32>
    %cst_342 = arith.constant 9.99999974E-6 : f32
    %633 = vector.broadcast %cst_342 : f32 to vector<32x1xf32>
    %634 = arith.addf %632, %633 : vector<32x1xf32>
    %635 = math.rsqrt %634 : vector<32x1xf32>
    %636 = vector.broadcast %635 : vector<32x1xf32> to vector<32x128xf32>
    %637 = arith.mulf %627, %636 : vector<32x128xf32>
    %638 = vector.broadcast %620 : vector<1x128xf32> to vector<32x128xf32>
    %639 = arith.mulf %637, %638 : vector<32x128xf32>
    %640 = vector.broadcast %621 : vector<1x128xf32> to vector<32x128xf32>
    %641 = arith.addf %639, %640 : vector<32x128xf32>
    %c2_343 = arith.constant 2 : index
    %c0_344 = arith.constant 0 : index
    %642 = vector.load %arg63[%c2_343, %c0_344] : memref<36x128xf32, #tpu.memory_space<vmem>>, vector<32x128xf32>
    tpu.vector_store %arg63[%c2_343, %c0_344], %641 {strides = array<i32>} : memref<36x128xf32, #tpu.memory_space<vmem>>, vector<32x128xf32>,
    %cst_345 = arith.constant 0.000000e+00 : f32
    %643 = vector.broadcast %cst_345 : f32 to vector<2x128xf32>
    %c0_346 = arith.constant 0 : index
    %c0_347 = arith.constant 0 : index
    %644 = vector.load %arg63[%c0_346, %c0_347] : memref<36x128xf32, #tpu.memory_space<vmem>>, vector<2x128xf32>
    tpu.vector_store %arg63[%c0_346, %c0_347], %643 {strides = array<i32>} : memref<36x128xf32, #tpu.memory_space<vmem>>, vector<2x128xf32>,
    %cst_348 = arith.constant 0.000000e+00 : f32
    %645 = vector.broadcast %cst_348 : f32 to vector<2x128xf32>
    %c34_349 = arith.constant 34 : index
    %c0_350 = arith.constant 0 : index
    %646 = vector.load %arg63[%c34_349, %c0_350] : memref<36x128xf32, #tpu.memory_space<vmem>>, vector<2x128xf32>
    tpu.vector_store %arg63[%c34_349, %c0_350], %645 {strides = array<i32>} : memref<36x128xf32, #tpu.memory_space<vmem>>, vector<2x128xf32>,
    %c0_351 = arith.constant 0 : index
    %c0_352 = arith.constant 0 : index
    %647 = vector.load %arg63[%c0_351, %c0_352] : memref<36x128xf32, #tpu.memory_space<vmem>>, vector<32x128xf32>
    %c1_353 = arith.constant 1 : index
    %c0_354 = arith.constant 0 : index
    %648 = vector.load %arg63[%c1_353, %c0_354] : memref<36x128xf32, #tpu.memory_space<vmem>>, vector<32x128xf32>
    %c2_355 = arith.constant 2 : index
    %c0_356 = arith.constant 0 : index
    %649 = vector.load %arg63[%c2_355, %c0_356] : memref<36x128xf32, #tpu.memory_space<vmem>>, vector<32x128xf32>
    %c3_357 = arith.constant 3 : index
    %c0_358 = arith.constant 0 : index
    %650 = vector.load %arg63[%c3_357, %c0_358] : memref<36x128xf32, #tpu.memory_space<vmem>>, vector<32x128xf32>
    %c4_359 = arith.constant 4 : index
    %c0_360 = arith.constant 0 : index
    %651 = vector.load %arg63[%c4_359, %c0_360] : memref<36x128xf32, #tpu.memory_space<vmem>>, vector<32x128xf32>
    %652 = tpu.concatenate %647, %648, %649, %650, %651 in 1 : vector<32x128xf32>, vector<32x128xf32>, vector<32x128xf32>, vector<32x128xf32>, vector<32x128xf32> -> vector<32x640xf32>
    %653 = arith.truncf %652 : vector<32x640xf32> to vector<32x640xbf16>
    %c0_361 = arith.constant 0 : index
    %c0_362 = arith.constant 0 : index
    %654 = vector.load %arg8[%c0_361, %c0_362] : memref<640x128xbf16, #tpu.memory_space<vmem>>, vector<640x128xbf16>
    %cst_363 = arith.constant dense<0.000000e+00> : vector<32x128xf32>
    %655 = tpu.matmul %653, %654, %cst_363 {dimension_numbers = #tpu.dot_dimension_numbers<[1], [0], [0], [1], [0, 0, 1, 1], [], []>} : vector<32x640xbf16>, vector<640x128xbf16>, vector<32x128xf32> -> vector<32x128xf32>
    %c0_364 = arith.constant 0 : index
    %c0_365 = arith.constant 0 : index
    %656 = vector.load %arg7[%c0_364, %c0_365] : memref<1x128xf32, #tpu.memory_space<vmem>>, vector<1x128xf32>
    %657 = vector.broadcast %656 : vector<1x128xf32> to vector<32x128xf32>
    %658 = arith.addf %655, %657 : vector<32x128xf32>
    %c0_366 = arith.constant 0 : index
    %c0_367 = arith.constant 0 : index
    %c0_368 = arith.constant 0 : index
    %659 = vector.load %arg54[%c0_366, %c0_367, %c0_368] : memref<1x32x128xf32, #tpu.memory_space<vmem>>, vector<1x32x128xf32>
    %660 = vector.shape_cast %659 : vector<1x32x128xf32> to vector<32x128xf32>
    %661 = vector.shape_cast %658 : vector<32x128xf32> to vector<1x32x128xf32>
    tpu.vector_store %arg54[%c0_366, %c0_367, %c0_368], %661 {strides = array<i32>} : memref<1x32x128xf32, #tpu.memory_space<vmem>>, vector<1x32x128xf32>,
    return
  }
  func.func @transform_0(%arg0: i32) -> (i32, i32, i32) {
    %c0_i32 = arith.constant 0 : i32
    %c0_i32_0 = arith.constant 0 : i32
    %c0_i32_1 = arith.constant 0 : i32
    return %arg0, %c0_i32, %c0_i32_0 : i32, i32, i32
  }
  func.func @transform_1(%arg0: i32) -> (i32, i32, i32) {
    %c0_i32 = arith.constant 0 : i32
    %c0_i32_0 = arith.constant 0 : i32
    %c0_i32_1 = arith.constant 0 : i32
    return %arg0, %c0_i32, %c0_i32_0 : i32, i32, i32
  }
  func.func @transform_2(%arg0: i32) -> (i32, i32) {
    %c0_i32 = arith.constant 0 : i32
    %c0_i32_0 = arith.constant 0 : i32
    %c0_i32_1 = arith.constant 0 : i32
    return %c0_i32, %c0_i32_0 : i32, i32
  }
  func.func @transform_3(%arg0: i32) -> (i32, i32) {
    %c0_i32 = arith.constant 0 : i32
    %c0_i32_0 = arith.constant 0 : i32
    %c0_i32_1 = arith.constant 0 : i32
    return %c0_i32, %c0_i32_0 : i32, i32
  }
  func.func @transform_4(%arg0: i32) -> (i32, i32) {
    %c0_i32 = arith.constant 0 : i32
    %c0_i32_0 = arith.constant 0 : i32
    %c0_i32_1 = arith.constant 0 : i32
    return %c0_i32, %c0_i32_0 : i32, i32
  }
  func.func @transform_5(%arg0: i32) -> (i32, i32) {
    %c0_i32 = arith.constant 0 : i32
    %c0_i32_0 = arith.constant 0 : i32
    %c0_i32_1 = arith.constant 0 : i32
    return %c0_i32, %c0_i32_0 : i32, i32
  }
  func.func @transform_6(%arg0: i32) -> (i32, i32) {
    %c0_i32 = arith.constant 0 : i32
    %c0_i32_0 = arith.constant 0 : i32
    %c0_i32_1 = arith.constant 0 : i32
    return %c0_i32, %c0_i32_0 : i32, i32
  }
  func.func @transform_7(%arg0: i32) -> (i32, i32) {
    %c0_i32 = arith.constant 0 : i32
    %c0_i32_0 = arith.constant 0 : i32
    %c0_i32_1 = arith.constant 0 : i32
    return %c0_i32, %c0_i32_0 : i32, i32
  }
  func.func @transform_8(%arg0: i32) -> (i32, i32) {
    %c0_i32 = arith.constant 0 : i32
    %c0_i32_0 = arith.constant 0 : i32
    %c0_i32_1 = arith.constant 0 : i32
    return %c0_i32, %c0_i32_0 : i32, i32
  }
  func.func @transform_9(%arg0: i32) -> (i32, i32) {
    %c0_i32 = arith.constant 0 : i32
    %c0_i32_0 = arith.constant 0 : i32
    %c0_i32_1 = arith.constant 0 : i32
    return %c0_i32, %c0_i32_0 : i32, i32
  }
  func.func @transform_10(%arg0: i32) -> (i32, i32) {
    %c0_i32 = arith.constant 0 : i32
    %c0_i32_0 = arith.constant 0 : i32
    %c0_i32_1 = arith.constant 0 : i32
    return %c0_i32, %c0_i32_0 : i32, i32
  }
  func.func @transform_11(%arg0: i32) -> (i32, i32) {
    %c0_i32 = arith.constant 0 : i32
    %c0_i32_0 = arith.constant 0 : i32
    %c0_i32_1 = arith.constant 0 : i32
    return %c0_i32, %c0_i32_0 : i32, i32
  }
  func.func @transform_12(%arg0: i32) -> (i32, i32) {
    %c0_i32 = arith.constant 0 : i32
    %c0_i32_0 = arith.constant 0 : i32
    %c0_i32_1 = arith.constant 0 : i32
    return %c0_i32, %c0_i32_0 : i32, i32
  }
  func.func @transform_13(%arg0: i32) -> (i32, i32) {
    %c0_i32 = arith.constant 0 : i32
    %c0_i32_0 = arith.constant 0 : i32
    %c0_i32_1 = arith.constant 0 : i32
    return %c0_i32, %c0_i32_0 : i32, i32
  }
  func.func @transform_14(%arg0: i32) -> (i32, i32) {
    %c0_i32 = arith.constant 0 : i32
    %c0_i32_0 = arith.constant 0 : i32
    %c0_i32_1 = arith.constant 0 : i32
    return %c0_i32, %c0_i32_0 : i32, i32
  }
  func.func @transform_15(%arg0: i32) -> (i32, i32) {
    %c0_i32 = arith.constant 0 : i32
    %c0_i32_0 = arith.constant 0 : i32
    %c0_i32_1 = arith.constant 0 : i32
    return %c0_i32, %c0_i32_0 : i32, i32
  }
  func.func @transform_16(%arg0: i32) -> (i32, i32) {
    %c0_i32 = arith.constant 0 : i32
    %c0_i32_0 = arith.constant 0 : i32
    %c0_i32_1 = arith.constant 0 : i32
    return %c0_i32, %c0_i32_0 : i32, i32
  }
  func.func @transform_17(%arg0: i32) -> (i32, i32) {
    %c0_i32 = arith.constant 0 : i32
    %c0_i32_0 = arith.constant 0 : i32
    %c0_i32_1 = arith.constant 0 : i32
    return %c0_i32, %c0_i32_0 : i32, i32
  }
  func.func @transform_18(%arg0: i32) -> (i32, i32) {
    %c0_i32 = arith.constant 0 : i32
    %c0_i32_0 = arith.constant 0 : i32
    %c0_i32_1 = arith.constant 0 : i32
    return %c0_i32, %c0_i32_0 : i32, i32
  }
  func.func @transform_19(%arg0: i32) -> (i32, i32) {
    %c0_i32 = arith.constant 0 : i32
    %c0_i32_0 = arith.constant 0 : i32
    %c0_i32_1 = arith.constant 0 : i32
    return %c0_i32, %c0_i32_0 : i32, i32
  }
  func.func @transform_20(%arg0: i32) -> (i32, i32) {
    %c0_i32 = arith.constant 0 : i32
    %c0_i32_0 = arith.constant 0 : i32
    %c0_i32_1 = arith.constant 0 : i32
    return %c0_i32, %c0_i32_0 : i32, i32
  }
  func.func @transform_21(%arg0: i32) -> (i32, i32) {
    %c0_i32 = arith.constant 0 : i32
    %c0_i32_0 = arith.constant 0 : i32
    %c0_i32_1 = arith.constant 0 : i32
    return %c0_i32, %c0_i32_0 : i32, i32
  }
  func.func @transform_22(%arg0: i32) -> (i32, i32) {
    %c0_i32 = arith.constant 0 : i32
    %c0_i32_0 = arith.constant 0 : i32
    %c0_i32_1 = arith.constant 0 : i32
    return %c0_i32, %c0_i32_0 : i32, i32
  }
  func.func @transform_23(%arg0: i32) -> (i32, i32) {
    %c0_i32 = arith.constant 0 : i32
    %c0_i32_0 = arith.constant 0 : i32
    %c0_i32_1 = arith.constant 0 : i32
    return %c0_i32, %c0_i32_0 : i32, i32
  }
  func.func @transform_24(%arg0: i32) -> (i32, i32) {
    %c0_i32 = arith.constant 0 : i32
    %c0_i32_0 = arith.constant 0 : i32
    %c0_i32_1 = arith.constant 0 : i32
    return %c0_i32, %c0_i32_0 : i32, i32
  }
  func.func @transform_25(%arg0: i32) -> (i32, i32) {
    %c0_i32 = arith.constant 0 : i32
    %c0_i32_0 = arith.constant 0 : i32
    %c0_i32_1 = arith.constant 0 : i32
    return %c0_i32, %c0_i32_0 : i32, i32
  }
  func.func @transform_26(%arg0: i32) -> (i32, i32) {
    %c0_i32 = arith.constant 0 : i32
    %c0_i32_0 = arith.constant 0 : i32
    %c0_i32_1 = arith.constant 0 : i32
    return %c0_i32, %c0_i32_0 : i32, i32
  }
  func.func @transform_27(%arg0: i32) -> (i32, i32) {
    %c0_i32 = arith.constant 0 : i32
    %c0_i32_0 = arith.constant 0 : i32
    %c0_i32_1 = arith.constant 0 : i32
    return %c0_i32, %c0_i32_0 : i32, i32
  }
  func.func @transform_28(%arg0: i32) -> (i32, i32) {
    %c0_i32 = arith.constant 0 : i32
    %c0_i32_0 = arith.constant 0 : i32
    %c0_i32_1 = arith.constant 0 : i32
    return %c0_i32, %c0_i32_0 : i32, i32
  }
  func.func @transform_29(%arg0: i32) -> (i32, i32) {
    %c0_i32 = arith.constant 0 : i32
    %c0_i32_0 = arith.constant 0 : i32
    %c0_i32_1 = arith.constant 0 : i32
    return %c0_i32, %c0_i32_0 : i32, i32
  }
  func.func @transform_30(%arg0: i32) -> (i32, i32) {
    %c0_i32 = arith.constant 0 : i32
    %c0_i32_0 = arith.constant 0 : i32
    %c0_i32_1 = arith.constant 0 : i32
    return %c0_i32, %c0_i32_0 : i32, i32
  }
  func.func @transform_31(%arg0: i32) -> (i32, i32) {
    %c0_i32 = arith.constant 0 : i32
    %c0_i32_0 = arith.constant 0 : i32
    %c0_i32_1 = arith.constant 0 : i32
    return %c0_i32, %c0_i32_0 : i32, i32
  }
  func.func @transform_32(%arg0: i32) -> (i32, i32) {
    %c0_i32 = arith.constant 0 : i32
    %c0_i32_0 = arith.constant 0 : i32
    %c0_i32_1 = arith.constant 0 : i32
    return %c0_i32, %c0_i32_0 : i32, i32
  }
  func.func @transform_33(%arg0: i32) -> (i32, i32) {
    %c0_i32 = arith.constant 0 : i32
    %c0_i32_0 = arith.constant 0 : i32
    %c0_i32_1 = arith.constant 0 : i32
    return %c0_i32, %c0_i32_0 : i32, i32
  }
  func.func @transform_34(%arg0: i32) -> (i32, i32) {
    %c0_i32 = arith.constant 0 : i32
    %c0_i32_0 = arith.constant 0 : i32
    %c0_i32_1 = arith.constant 0 : i32
    return %c0_i32, %c0_i32_0 : i32, i32
  }
  func.func @transform_35(%arg0: i32) -> (i32, i32) {
    %c0_i32 = arith.constant 0 : i32
    %c0_i32_0 = arith.constant 0 : i32
    %c0_i32_1 = arith.constant 0 : i32
    return %c0_i32, %c0_i32_0 : i32, i32
  }
  func.func @transform_36(%arg0: i32) -> (i32, i32) {
    %c0_i32 = arith.constant 0 : i32
    %c0_i32_0 = arith.constant 0 : i32
    %c0_i32_1 = arith.constant 0 : i32
    return %c0_i32, %c0_i32_0 : i32, i32
  }
  func.func @transform_37(%arg0: i32) -> (i32, i32) {
    %c0_i32 = arith.constant 0 : i32
    %c0_i32_0 = arith.constant 0 : i32
    %c0_i32_1 = arith.constant 0 : i32
    return %c0_i32, %c0_i32_0 : i32, i32
  }
  func.func @transform_38(%arg0: i32) -> (i32, i32) {
    %c0_i32 = arith.constant 0 : i32
    %c0_i32_0 = arith.constant 0 : i32
    %c0_i32_1 = arith.constant 0 : i32
    return %c0_i32, %c0_i32_0 : i32, i32
  }
  func.func @transform_39(%arg0: i32) -> (i32, i32) {
    %c0_i32 = arith.constant 0 : i32
    %c0_i32_0 = arith.constant 0 : i32
    %c0_i32_1 = arith.constant 0 : i32
    return %c0_i32, %c0_i32_0 : i32, i32
  }
  func.func @transform_40(%arg0: i32) -> (i32, i32) {
    %c0_i32 = arith.constant 0 : i32
    %c0_i32_0 = arith.constant 0 : i32
    %c0_i32_1 = arith.constant 0 : i32
    return %c0_i32, %c0_i32_0 : i32, i32
  }
  func.func @transform_41(%arg0: i32) -> (i32, i32) {
    %c0_i32 = arith.constant 0 : i32
    %c0_i32_0 = arith.constant 0 : i32
    %c0_i32_1 = arith.constant 0 : i32
    return %c0_i32, %c0_i32_0 : i32, i32
  }
  func.func @transform_42(%arg0: i32) -> (i32, i32) {
    %c0_i32 = arith.constant 0 : i32
    %c0_i32_0 = arith.constant 0 : i32
    %c0_i32_1 = arith.constant 0 : i32
    return %c0_i32, %c0_i32_0 : i32, i32
  }
  func.func @transform_43(%arg0: i32) -> (i32, i32) {
    %c0_i32 = arith.constant 0 : i32
    %c0_i32_0 = arith.constant 0 : i32
    %c0_i32_1 = arith.constant 0 : i32
    return %c0_i32, %c0_i32_0 : i32, i32
  }
  func.func @transform_44(%arg0: i32) -> (i32, i32) {
    %c0_i32 = arith.constant 0 : i32
    %c0_i32_0 = arith.constant 0 : i32
    %c0_i32_1 = arith.constant 0 : i32
    return %c0_i32, %c0_i32_0 : i32, i32
  }
  func.func @transform_45(%arg0: i32) -> (i32, i32) {
    %c0_i32 = arith.constant 0 : i32
    %c0_i32_0 = arith.constant 0 : i32
    %c0_i32_1 = arith.constant 0 : i32
    return %c0_i32, %c0_i32_0 : i32, i32
  }
  func.func @transform_46(%arg0: i32) -> (i32, i32) {
    %c0_i32 = arith.constant 0 : i32
    %c0_i32_0 = arith.constant 0 : i32
    %c0_i32_1 = arith.constant 0 : i32
    return %c0_i32, %c0_i32_0 : i32, i32
  }
  func.func @transform_47(%arg0: i32) -> (i32, i32) {
    %c0_i32 = arith.constant 0 : i32
    %c0_i32_0 = arith.constant 0 : i32
    %c0_i32_1 = arith.constant 0 : i32
    return %c0_i32, %c0_i32_0 : i32, i32
  }
  func.func @transform_48(%arg0: i32) -> (i32, i32) {
    %c0_i32 = arith.constant 0 : i32
    %c0_i32_0 = arith.constant 0 : i32
    %c0_i32_1 = arith.constant 0 : i32
    return %c0_i32, %c0_i32_0 : i32, i32
  }
  func.func @transform_49(%arg0: i32) -> (i32, i32) {
    %c0_i32 = arith.constant 0 : i32
    %c0_i32_0 = arith.constant 0 : i32
    %c0_i32_1 = arith.constant 0 : i32
    return %c0_i32, %c0_i32_0 : i32, i32
  }
  func.func @transform_50(%arg0: i32) -> (i32, i32) {
    %c0_i32 = arith.constant 0 : i32
    %c0_i32_0 = arith.constant 0 : i32
    %c0_i32_1 = arith.constant 0 : i32
    return %c0_i32, %c0_i32_0 : i32, i32
  }
  func.func @transform_51(%arg0: i32) -> (i32, i32) {
    %c0_i32 = arith.constant 0 : i32
    %c0_i32_0 = arith.constant 0 : i32
    %c0_i32_1 = arith.constant 0 : i32
    return %c0_i32, %c0_i32_0 : i32, i32
  }
  func.func @transform_52(%arg0: i32) -> (i32, i32) {
    %c0_i32 = arith.constant 0 : i32
    %c0_i32_0 = arith.constant 0 : i32
    %c0_i32_1 = arith.constant 0 : i32
    return %c0_i32, %c0_i32_0 : i32, i32
  }
  func.func @transform_53(%arg0: i32) -> (i32, i32, i32) {
    %c0_i32 = arith.constant 0 : i32
    %c0_i32_0 = arith.constant 0 : i32
    %c0_i32_1 = arith.constant 0 : i32
    return %arg0, %c0_i32, %c0_i32_0 : i32, i32, i32
  }
  func.func @transform_54(%arg0: i32) -> (i32, i32, i32) {
    %c0_i32 = arith.constant 0 : i32
    %c0_i32_0 = arith.constant 0 : i32
    %c0_i32_1 = arith.constant 0 : i32
    return %arg0, %c0_i32, %c0_i32_0 : i32, i32, i32
  }
  func.func @transform_55(%arg0: i32) -> (i32, i32, i32) {
    %c0_i32 = arith.constant 0 : i32
    %c0_i32_0 = arith.constant 0 : i32
    %c0_i32_1 = arith.constant 0 : i32
    return %arg0, %c0_i32, %c0_i32_0 : i32, i32, i32
  }
}

</mosaic_0001>

<bundles_post_ra>
// kernel: _lambda_.1
= control target key start
LH: loop header
LB: loop body
LE: loop exit
PB: predicated region body
PF: predicated region fallthrough
CT: control target
= control target key end

     0   :  { %s12793_s6 = smov 1   ;;  %s12794_s10 = smov 2   ;;  %s14466_s0 = inlined_call_operand.smem [shape: u32[56], index: -1, kind: input, shape index: {}] }
   0x1   :  { %s12910_s5 = sld [smem:[%s14466_s0]]   ;;  %s12795_s14 = smov 3  }
   0x2   :  { %s12915_s9 = sld [smem:[%s14466_s0 + %s12793_s6]]   ;;  %s12796_s18 = smov 4  }
   0x3   :  { %s12920_s13 = sld [smem:[%s14466_s0 + %s12794_s10]]   ;;  %s12797_s22 = smov 5  }
   0x4   :  { %s12925_s17 = sld [smem:[%s14466_s0 + %s12795_s14]]   ;;  %s12798_s26 = smov 6  }
   0x5   :  { %s12930_s21 = sld [smem:[%s14466_s0 + %s12796_s18]]   ;;  %s12799_s30 = smov 7  }
   0x6   :  { %s12935_s25 = sld [smem:[%s14466_s0 + %s12797_s22]]   ;;  %s12800_s4 = smov 8  }
   0x7   :  { %14490 = sst [smem:[#allocation91_spill]] %s12910_s5  ;;  %s12801_s10 = smov 9  }
   0x8   :  { %14491 = sst [smem:[#allocation92_spill]] %s12915_s9  ;;  %s12802_s15 = smov 10  }
   0x9   :  { %14492 = sst [smem:[#allocation93_spill]] %s12920_s13  ;;  %s12803_s20 = smov 11  }
   0xa   :  { %14493 = sst [smem:[#allocation94_spill]] %s12925_s17  ;;  %s12805_s1 = smov 13  }
   0xb   :  { %s12940_s29 = sld [smem:[%s14466_s0 + %s12798_s26]]   ;;  %s12804_s26 = smov 12  }
   0xc   :  { %14494 = sst [smem:[#allocation95_spill]] %s12935_s25  ;;  %s12806_s7 = smov 14  }
   0xd   :  { %s12945_s3 = sld [smem:[%s14466_s0 + %s12799_s30]]   ;;  %s12808_s22 = smov 16  }
   0xe   :  { %s12950_s8 = sld [smem:[%s14466_s0 + %s12800_s4]]   ;;  %s12809_s28 = smov 17  }
   0xf   :  { %s12955_s14 = sld [smem:[%s14466_s0 + %s12801_s10]]  }
  0x10   :  { %s12960_s19 = sld [smem:[%s14466_s0 + %s12802_s15]]   ;;  %s12807_s15 = smov 15  }
  0x11   :  { %s12965_s24 = sld [smem:[%s14466_s0 + %s12803_s20]]  }
  0x12   :  { %s12970_s30 = sld [smem:[%s14466_s0 + %s12804_s26]]  }
  0x13   :  { %14495 = sst [smem:[#allocation96_spill]] %s12945_s3 }
  0x14   :  { %s12975_s6 = sld [smem:[%s14466_s0 + %s12805_s1]]  }
  0x15   :  { %14496 = sst [smem:[#allocation97_spill]] %s12955_s14 }
  0x16   :  { %s12980_s12 = sld [smem:[%s14466_s0 + %s12806_s7]]   ;;  %s12810_s7 = smov 18  }
  0x17   :  { %14497 = sst [smem:[#allocation98_spill]] %s12965_s24 }
  0x18   :  { %s12985_s20 = sld [smem:[%s14466_s0 + %s12807_s15]]   ;;  %s12811_s15 = smov 19  }
  0x19   :  { %s12990_s27 = sld [smem:[%s14466_s0 + %s12808_s22]]   ;;  %s12812_s22 = smov 20  }
  0x1a   :  { %14498 = sst [smem:[#allocation99_spill]] %s12975_s6 }
  0x1b   :  { %s12995_s4 = sld [smem:[%s14466_s0 + %s12809_s28]]   ;;  %s12813_s28 = smov 21  }
  0x1c   :  { %s13000_s5 = sld [smem:[%s14466_s0 + %s12810_s7]]   ;;  %s12814_s7 = smov 22  }
  0x1d   :  { %s13010_s9 = sld [smem:[%s14466_s0 + %s12812_s22]]   ;;  %s12816_s22 = smov 24  }
  0x1e   :  { %14499 = sst [smem:[#allocation100_spill]] %s12985_s20 }
  0x1f   :  { %14500 = sst [smem:[#allocation101_spill]] %s12990_s27 }
  0x20   :  { %s13005_s20 = sld [smem:[%s14466_s0 + %s12811_s15]]   ;;  %s12815_s15 = smov 23  }
  0x21   :  { %14501 = sst [smem:[#allocation102_spill]] %s12995_s4 }
  0x22   :  { %14502 = sst [smem:[#allocation103_spill]] %s13000_s5 }
  0x23   :  { %14504 = sst [smem:[#allocation105_spill]] %s13010_s9 }
  0x24   :  { %s13015_s4 = sld [smem:[%s14466_s0 + %s12813_s28]]   ;;  %s12817_s28 = smov 25  }
  0x25   :  { %s13020_s5 = sld [smem:[%s14466_s0 + %s12814_s7]]   ;;  %s12818_s7 = smov 26  }
  0x26   :  { %14503 = sst [smem:[#allocation104_spill]] %s13005_s20 }
  0x27   :  { %s13025_s20 = sld [smem:[%s14466_s0 + %s12815_s15]]   ;;  %s12819_s15 = smov 27  }
  0x28   :  { %s13030_s9 = sld [smem:[%s14466_s0 + %s12816_s22]]   ;;  %s12820_s22 = smov 28  }
  0x29   :  { %s13035_s27 = sld [smem:[%s14466_s0 + %s12817_s28]]   ;;  %s12821_s28 = smov 29  }
  0x2a   :  { %14505 = sst [smem:[#allocation106_spill]] %s13015_s4 }
  0x2b   :  { %14506 = sst [smem:[#allocation107_spill]] %s13020_s5 }
  0x2c   :  { %s13040_s5 = sld [smem:[%s14466_s0 + %s12818_s7]]   ;;  %s12822_s7 = smov 30  }
  0x2d   :  { %14507 = sst [smem:[#allocation108_spill]] %s13025_s20 }
  0x2e   :  { %s13045_s20 = sld [smem:[%s14466_s0 + %s12819_s15]]   ;;  %s12823_s15 = smov 31  }
  0x2f   :  { %14508 = sst [smem:[#allocation109_spill]] %s13035_s27 }
  0x30   :  { %s13050_s6 = sld [smem:[%s14466_s0 + %s12820_s22]]   ;;  %s12824_s22 = smov 32  }
  0x31   :  { %s13055_s27 = sld [smem:[%s14466_s0 + %s12821_s28]]   ;;  %s12825_s28 = smov 33  }
  0x32   :  { %14509 = sst [smem:[#allocation110_spill]] %s13040_s5 }
  0x33   :  { %s13060_s24 = sld [smem:[%s14466_s0 + %s12822_s7]]   ;;  %s12826_s7 = smov 34  }
  0x34   :  { %14510 = sst [smem:[#allocation111_spill]] %s13045_s20 }
  0x35   :  { %s13065_s20 = sld [smem:[%s14466_s0 + %s12823_s15]]   ;;  %s12827_s15 = smov 35  }
  0x36   :  { %14511 = sst [smem:[#allocation112_spill]] %s13050_s6 }
  0x37   :  { %14512 = sst [smem:[#allocation113_spill]] %s13055_s27 }
  0x38   :  { %s13070_s14 = sld [smem:[%s14466_s0 + %s12824_s22]]   ;;  %s12828_s22 = smov 36  }
  0x39   :  { %s13075_s27 = sld [smem:[%s14466_s0 + %s12825_s28]]   ;;  %s12829_s28 = smov 37  }
  0x3a   :  { %s13080_s3 = sld [smem:[%s14466_s0 + %s12826_s7]]   ;;  %s12830_s7 = smov 38  }
  0x3b   :  { %14513 = sst [smem:[#allocation114_spill]] %s13065_s20 }
  0x3c   :  { %s13085_s20 = sld [smem:[%s14466_s0 + %s12827_s15]]   ;;  %s12831_s15 = smov 39  }
  0x3d   :  { %s13090_s25 = sld [smem:[%s14466_s0 + %s12828_s22]]   ;;  %s12832_s22 = smov 40  }
  0x3e   :  { %s13100_s17 = sld [smem:[%s14466_s0 + %s12830_s7]]   ;;  %s12834_s7 = smov 42  }
  0x3f   :  { %14514 = sst [smem:[#allocation115_spill]] %s13075_s27 }
  0x40   :  { %14515 = sst [smem:[#allocation116_spill]] %s13080_s3 }
  0x41   :  { %s13095_s27 = sld [smem:[%s14466_s0 + %s12829_s28]]   ;;  %s12833_s28 = smov 41  }
  0x42   :  { %14516 = sst [smem:[#allocation117_spill]] %s13085_s20 }
  0x43   :  { %14517 = sst [smem:[#allocation118_spill]] %s13090_s25 }
  0x44   :  { %14519 = sst [smem:[#allocation120_spill]] %s13100_s17 }
  0x45   :  { %s13105_s20 = sld [smem:[%s14466_s0 + %s12831_s15]]   ;;  %s12835_s15 = smov 43  }
  0x46   :  { %s13110_s25 = sld [smem:[%s14466_s0 + %s12832_s22]]   ;;  %s12836_s22 = smov 44  }
  0x47   :  { %14518 = sst [smem:[#allocation119_spill]] %s13095_s27 }
  0x48   :  { %s13115_s27 = sld [smem:[%s14466_s0 + %s12833_s28]]   ;;  %s12837_s28 = smov 45  }
  0x49   :  { %s13120_s17 = sld [smem:[%s14466_s0 + %s12834_s7]]   ;;  %s12838_s7 = smov 46  }
  0x4b   :  { %14520 = sst [smem:[#allocation121_spill]] %s13105_s20 }
  0x4c   :  { %14521 = sst [smem:[#allocation122_spill]] %s13110_s25 }
  0x4d   :  { %s13125_s20 = sld [smem:[%s14466_s0 + %s12835_s15]]   ;;  %s12839_s15 = smov 47  }
  0x4e   :  { %14522 = sst [smem:[#allocation123_spill]] %s13115_s27 }
  0x4f   :  { %14523 = sst [smem:[#allocation124_spill]] %s13120_s17 }
  0x50   :  { %s13130_s25 = sld [smem:[%s14466_s0 + %s12836_s22]]   ;;  %s12840_s22 = smov 48  }
  0x51   :  { %s13135_s27 = sld [smem:[%s14466_s0 + %s12837_s28]]   ;;  %s12841_s28 = smov 49  }
  0x52   :  { %s13140_s17 = sld [smem:[%s14466_s0 + %s12838_s7]]   ;;  %s12842_s7 = smov 50  }
  0x53   :  { %14524 = sst [smem:[#allocation125_spill]] %s13125_s20 }
  0x54   :  { %s13145_s20 = sld [smem:[%s14466_s0 + %s12839_s15]]   ;;  %s12843_s15 = smov 51  }
  0x56   :  { %14525 = sst [smem:[#allocation126_spill]] %s13130_s25 }
  0x57   :  { %14526 = sst [smem:[#allocation127_spill]] %s13135_s27 }
  0x58   :  { %14527 = sst [smem:[#allocation128_spill]] %s13140_s17 }
  0x59   :  { %s13150_s25 = sld [smem:[%s14466_s0 + %s12840_s22]]   ;;  %s12844_s22 = smov 52  }
  0x5a   :  { %14528 = sst [smem:[#allocation129_spill]] %s13145_s20 }
  0x5b   :  { %s13155_s27 = sld [smem:[%s14466_s0 + %s12841_s28]]   ;;  %s12845_s28 = smov 53  }
  0x5c   :  { %s13160_s17 = sld [smem:[%s14466_s0 + %s12842_s7]]   ;;  %s12846_s7 = smov 54  }
  0x5d   :  { %s13165_s20 = sld [smem:[%s14466_s0 + %s12843_s15]]   ;;  %s12847_s15 = smov 55  }
  0x5f   :  { %14529 = sst [smem:[#allocation130_spill]] %s13150_s25 }
  0x60   :  { %s13170_s25 = sld [smem:[%s14466_s0 + %s12844_s22]]  }
  0x61   :  { %14530 = sst [smem:[#allocation131_spill]] %s13155_s27 }
  0x62   :  { %14531 = sst [smem:[#allocation132_spill]] %s13160_s17 }
  0x63   :  { %14532 = sst [smem:[#allocation133_spill]] %s13165_s20 }
  0x64   :  { %s13175_s27 = sld [smem:[%s14466_s0 + %s12845_s28]]  }
  0x65   :  { %s13180_s17 = sld [smem:[%s14466_s0 + %s12846_s7]]  }
  0x66   :  { %s13185_s20 = sld [smem:[%s14466_s0 + %s12847_s15]]  }
  0x6a   :  { %14533 = sst [smem:[#allocation134_spill]] %s13175_s27 }
  0x6c   :  { %14534 = sst [smem:[#allocation135_spill]] %s13185_s20 }
  0x6d   :  { %117 = vsyncpa [#allocation10], 0 }
  0x6e   :  { %119 = vsyncpa [#allocation10 + $0x1], 0 }
  0x6f   :  { %120 = vsyncpa [#allocation13], 0 }
  0x70   :  { %121 = vsyncpa [#allocation16], 0 }
  0x71   :  { %122 = vsyncpa [#allocation19], 0 }
  0x72   :  { %123 = vsyncpa [#allocation22], 0 }
  0x73   :  { %124 = vsyncpa [#allocation25], 0 }
  0x74   :  { %125 = vsyncpa [#allocation28], 0 }
  0x75   :  { %126 = vsyncpa [#allocation31], 0 }
  0x76   :  { %127 = vsyncpa [#allocation34], 0 }
  0x77   :  { %128 = vsyncpa [#allocation37], 0 }
  0x78   :  { %129 = vsyncpa [#allocation40], 0 }
  0x79   :  { %130 = vsyncpa [#allocation43], 0 }
  0x7a   :  { %131 = vsyncpa [#allocation46], 0 }
  0x7b   :  { %132 = vsyncpa [#allocation49], 0 }
  0x7c   :  { %133 = vsyncpa [#allocation52], 0 }
  0x7d   :  { %134 = vsyncpa [#allocation55], 0 }
  0x7e   :  { %135 = vsyncpa [#allocation58], 0 }
  0x7f   :  { %136 = vsyncpa [#allocation61], 0 }
  0x80   :  { %137 = vsyncpa [#allocation64], 0 }
  0x81   :  { %138 = vsyncpa [#allocation11], 0 }
  0x82   :  { %140 = vsyncpa [#allocation11 + $0x1], 0 }
  0x83   :  { %141 = vsyncpa [#allocation68], 0 }
  0x84   :  { %143 = vsyncpa [#allocation68 + $0x1], 0  ;;  %s13187_s0 = smov 0   ;;  %s13189_s22 = smov 0  }
  0x85   :  { %s13191_s23 = smov 0   ;;  %s13193_s26 = smov 0  }
  0x86 LB: > { %14535 = sst [smem:[#allocation136_spill]] %s12779_s0  ;;  %s13208_s28 = sadd.s32 4294967295, %s12791_s26   ;;  %s12791_s26 = sphi %s13193_s26, %s14639_s26   ;;  %s12787_s23 = sphi %s13191_s23, %s14643_s23   ;;  %s12783_s22 = sphi %s13189_s22, %s14642_s22   ;;  %s12779_s0 = sphi %s13187_s0, %s14641_s0  }
  0x87   : > { %s14469_s1 = sadd.s32 4294967294, %s12791_s26   ;;  %s13212_s2 = sadd.s32 1, %s12791_s26  }
  0x88   : > { %14536 = sst [smem:[#allocation137_spill]] %s13212_s2  ;;  %s182_s7 = sadd.s32 1, %s12787_s23 }
  0x89   : > { %s179_s10 = ssub.s32 %s12791_s26, %s13212_s2  ;;  %p189_p0 = scmp.ne.s32.totalorder %s12787_s23, %s12783_s22 }
  0x8a   : > { %p180_p1 = scmp.eq.s32.totalorder %s179_s10, 0  ;;  %p190_p2 = scmp.eq.s32.totalorder %s12791_s26, 0 }
  0x8b   : > { %p195_p3 = scmp.ne.s32.totalorder %s12783_s22, %s12779_s0  ;;  %p14487_p4 = scmp.eq.s32.totalorder %s13208_s28, 0 }
  0x8c   : > { %s13224_s11 = scalar_select %p180_p1, %s12787_s23, %s182_s7  }
  0x8d   : > { %p13226_p5 = por %p190_p2, %p189_p0  ;;  %p13232_p6 = por %p14487_p4, %p195_p3 }
  0x8e   : > { %14537 = sst [smem:[#allocation138_spill]] %s13224_s11  ;;  %p1290_p7 = scmp.eq.s32.totalorder %s13208_s28, 1 }
  0x8f   : > { %s14539_s16 = scalar_select %p13232_p6, 1, 0 }
  0x90   : > { %p1296_p8 = scmp.eq.s32.totalorder %s14469_s1, 1  ;;  %p9283_p9 = scmp.ge.s32.totalorder %s12791_s26, 1 }
  0x91   : > { %p1355_p10 = scmp.lt.s32.totalorder %s12791_s26, 3  ;;  %p13241_p11 = por %p1290_p7, %p189_p0 }
  0x92   : > { %p13245_p12 = por %p1296_p8, %p195_p3 }
  0x93   : > { %s14540_s18 = scalar_select %p13241_p11, 1, 0 }
  0x94   : > { %s14542_s7 = scalar_select %p13245_p12, 1, 0 }
  0x95   : > { %14541 = sst [smem:[#allocation139_spill]] %s14540_s18  ;;  %p13249_p13 = pnand %p9283_p9, %p1355_p10 }
  0x96   : > { %14543 = sst [smem:[#allocation140_spill]] %s14542_s7  ;;  %s12848_s11 = smov (!%p13249_p13), [#allocation12]  }
  0x97   : > { %s14544_s10 = scalar_select %p13249_p13, 1, 0 }
  0x98   : > { %1359 = sbr.rel (%p13249_p13) target bundleno = 565 (0x235), region = 12  ;;  %s1368_s1 = sshll.u32 (!%p13249_p13), %s12848_s11, 4  ;;  %s1369_s1 = int_to_ptr.vmem [resolvable:$true] %s1368_s1 }
  0x99   : > { %s12849_s2 = smov (!%p13249_p13), [#allocation15]   ;;  %s11717_s27 = scalar_lea.vmem (!%p13249_p13), %s1369_s1, 16 }
  0x9a   : > { %s1390_s0 = sshll.u32 (!%p13249_p13), %s12849_s2, 4  ;;  %p11718_p0 = scmp.ne.s32.totalorder (!%p13249_p13), %s1369_s1, %s11717_s27  ;;  %s1391_s0 = int_to_ptr.vmem [resolvable:$true] %s1390_s0 }
  0x9b   : > { %s11723_s20 = scalar_lea.vmem (!%p13249_p13), %s1369_s1, 32  ;;  %p11724_p3 = scmp.lt.s32.totalorder (!%p13249_p13), %s1369_s1, %s1369_s1 }
  0x9c   : > { %p11719_p1 = pnand (!%p13249_p13), %p11718_p0, %p14487_p4  ;;  %p11725_p7 = scmp.lt.s32.totalorder (!%p13249_p13), %s11723_s20, %s11717_s27 }
  0x9e   : > { %p11720_p2 = pneg %p11719_p1  ;;  %p11726_p8 = por %p11725_p7, %p11724_p3 }
  0xa0   : > { %p11727_p9 = pnand %p11726_p8, %p11720_p2 }
  0xa2   : > { %11730 = shalt.err (!%p11727_p9)
}
  0xa3   : > { %s14545_s13 = sld [smem:[#allocation93_spill]]  ;;  %s11741_s11 = scalar_lea.vmem %s1391_s0, 16 }
  0xa4   : > { %p11742_p10 = scmp.ne.s32.totalorder %s1391_s0, %s11741_s11  ;;  %s11747_s2 = scalar_lea.vmem %s1391_s0, 32 }
  0xa5   : > { %p11748_p0 = scmp.lt.s32.totalorder %s1391_s0, %s1391_s0  ;;  %p11749_p1 = scmp.lt.s32.totalorder %s11747_s2, %s11741_s11 }
  0xa6   : > { %p11743_p12 = pnand %p11742_p10, %p14487_p4 }
  0xa7   : > { %p11750_p6 = por %p11749_p1, %p11748_p0 }
  0xa8   : > { %p11744_p11 = pneg %p11743_p12 }
  0xa9   : > { %10813 = dma.hbm_to_vmem [thread:$0]  (%p14487_p4), %s14545_s13, 16, %s1369_s1, [#allocation13]  }
  0xaa   : > { %p11751_p13 = pnand %p11750_p6, %p11744_p11 }
  0xac   : > { %11754 = shalt.err (!%p11751_p13)
}
  0xad   : > { %10817 = dma.hbm_to_vmem [thread:$0]  (%p14487_p4), %s12930_s21, 16, %s1391_s0, [#allocation16]  }
  0xae   : > { %s12850_s20 = smov [#allocation18]   ;;  %s12851_s1 = smov [#allocation21]  }
  0xaf   : > { %s1414_s27 = sshll.u32 %s12850_s20, 4  ;;  %s1438_s13 = sshll.u32 %s12851_s1, 4  ;;  %s1415_s27 = int_to_ptr.vmem [resolvable:$true] %s1414_s27  ;;  %s1439_s13 = int_to_ptr.vmem [resolvable:$true] %s1438_s13 }
  0xb0   : > { %s11765_s7 = scalar_lea.vmem %s1415_s27, 16  ;;  %s11771_s18 = scalar_lea.vmem %s1415_s27, 32 }
  0xb1   : > { %p11766_p2 = scmp.ne.s32.totalorder %s1415_s27, %s11765_s7  ;;  %p11772_p7 = scmp.lt.s32.totalorder %s1415_s27, %s1415_s27 }
  0xb2   : > { %p11773_p8 = scmp.lt.s32.totalorder %s11771_s18, %s11765_s7 }
  0xb3   : > { %p11767_p12 = pnand %p11766_p2, %p14487_p4 }
  0xb4   : > { %p11774_p6 = por %p11773_p8, %p11772_p7 }
  0xb5   : > { %p11768_p3 = pneg %p11767_p12 }
  0xb7   : > { %p11775_p11 = pnand %p11774_p6, %p11768_p3 }
  0xb9   : > { %11778 = shalt.err (!%p11775_p11)
}
  0xba   : > { %10821 = dma.hbm_to_vmem [thread:$0]  (%p14487_p4), %s12940_s29, 16, %s1415_s27, [#allocation19]  }
  0xbb   : > { %s11789_s0 = scalar_lea.vmem %s1439_s13, 16  ;;  %s11795_s11 = scalar_lea.vmem %s1439_s13, 32 }
  0xbc   : > { %p11790_p13 = scmp.ne.s32.totalorder %s1439_s13, %s11789_s0  ;;  %p11796_p0 = scmp.lt.s32.totalorder %s1439_s13, %s1439_s13 }
  0xbd   : > { %p11797_p1 = scmp.lt.s32.totalorder %s11795_s11, %s11789_s0 }
  0xbe   : > { %p11791_p9 = pnand %p11790_p13, %p14487_p4 }
  0xbf   : > { %p11798_p2 = por %p11797_p1, %p11796_p0 }
  0xc0   : > { %p11792_p10 = pneg %p11791_p9 }
  0xc2   : > { %p11799_p12 = pnand %p11798_p2, %p11792_p10 }
  0xc4   : > { %11802 = shalt.err (!%p11799_p12)
}
  0xc5   : > { %10825 = dma.hbm_to_vmem [thread:$0]  (%p14487_p4), %s12950_s8, 16, %s1439_s13, [#allocation22]  }
  0xc6   : > { %s12852_s18 = smov [#allocation24]  }
  0xc7   : > { %s1460_s7 = sshll.u32 %s12852_s18, 4  ;;  %s1461_s7 = int_to_ptr.vmem [resolvable:$true] %s1460_s7 }
  0xc8   : > { %s11813_s2 = scalar_lea.vmem %s1461_s7, 16  ;;  %s11819_s20 = scalar_lea.vmem %s1461_s7, 32 }
  0xc9   : > { %p11814_p3 = scmp.ne.s32.totalorder %s1461_s7, %s11813_s2  ;;  %p11820_p6 = scmp.lt.s32.totalorder %s1461_s7, %s1461_s7 }
  0xca   : > { %p11821_p11 = scmp.lt.s32.totalorder %s11819_s20, %s11813_s2 }
  0xcb   : > { %p11815_p7 = pnand %p11814_p3, %p14487_p4 }
  0xcc   : > { %p11822_p13 = por %p11821_p11, %p11820_p6 }
  0xcd   : > { %p11816_p8 = pneg %p11815_p7 }
  0xcf   : > { %p11823_p9 = pnand %p11822_p13, %p11816_p8 }
  0xd1   : > { %11826 = shalt.err (!%p11823_p9)
}
  0xd2   : > { %10829 = dma.hbm_to_vmem [thread:$0]  (%p14487_p4), %s12960_s19, 16, %s1461_s7, [#allocation25]  }
  0xd3   : > { %s12853_s13 = smov [#allocation27]   ;;  %s12854_s1 = smov [#allocation30]  }
  0xd4   : > { %s1483_s27 = sshll.u32 %s12853_s13, 4  ;;  %s1507_s0 = sshll.u32 %s12854_s1, 4  ;;  %s1484_s27 = int_to_ptr.vmem [resolvable:$true] %s1483_s27  ;;  %s1508_s0 = int_to_ptr.vmem [resolvable:$true] %s1507_s0 }
  0xd5   : > { %s11837_s11 = scalar_lea.vmem %s1484_s27, 2048  ;;  %p11844_p2 = scmp.lt.s32.totalorder %s1484_s27, %s1484_s27 }
  0xd6   : > { %p11838_p10 = scmp.ne.s32.totalorder %s1484_s27, %s11837_s11  ;;  %p11845_p12 = scmp.lt.s32.totalorder %s11837_s11, %s11837_s11 }
  0xd8   : > { %p11839_p0 = pnand %p11838_p10, %p14487_p4  ;;  %p11846_p3 = por %p11845_p12, %p11844_p2 }
  0xda   : > { %p11840_p1 = pneg %p11839_p0 }
  0xdc   : > { %p11847_p7 = pnand %p11846_p3, %p11840_p1 }
  0xde   : > { %11850 = shalt.err (!%p11847_p7)
}
  0xdf   : > { %s14481_s18 = smov 64   ;;  %s14483_s7 = smov 4  }
  0xe0   : > { %10833 = dma.hbm_to_vmem [thread:$0]  (%p14487_p4), %s12970_s30, 2048, %s1484_s27, [#allocation28], %s14481_s18, %s14481_s18, %s14483_s7  }
  0xe1   : > { %s11861_s2 = scalar_lea.vmem %s1508_s0, 1024  ;;  %p11868_p13 = scmp.lt.s32.totalorder %s1508_s0, %s1508_s0 }
  0xe2   : > { %p11862_p8 = scmp.ne.s32.totalorder %s1508_s0, %s11861_s2  ;;  %p11869_p9 = scmp.lt.s32.totalorder %s11861_s2, %s11861_s2 }
  0xe4   : > { %p11863_p6 = pnand %p11862_p8, %p14487_p4  ;;  %p11870_p10 = por %p11869_p9, %p11868_p13 }
  0xe6   : > { %p11864_p11 = pneg %p11863_p6 }
  0xe8   : > { %p11871_p0 = pnand %p11870_p10, %p11864_p11 }
  0xea   : > { %11874 = shalt.err (!%p11871_p0)
}
  0xeb   : > { %10837 = dma.hbm_to_vmem [thread:$0]  (%p14487_p4), %s12980_s12, 1024, %s1508_s0, [#allocation31], %s14481_s18, %s14481_s18, %s14483_s7  }
  0xec   : > { %s12857_s20 = smov [#allocation33]   ;;  %s12858_s27 = smov [#allocation36]  }
  0xed   : > { %s1547_s13 = sshll.u32 %s12857_s20, 4  ;;  %s1573_s1 = sshll.u32 %s12858_s27, 4  ;;  %s1548_s13 = int_to_ptr.vmem [resolvable:$true] %s1547_s13  ;;  %s1574_s1 = int_to_ptr.vmem [resolvable:$true] %s1573_s1 }
  0xee   : > { %s11885_s11 = scalar_lea.vmem %s1548_s13, 16  ;;  %s11891_s2 = scalar_lea.vmem %s1548_s13, 32 }
  0xef   : > { %p11886_p1 = scmp.ne.s32.totalorder %s1548_s13, %s11885_s11  ;;  %p11892_p3 = scmp.lt.s32.totalorder %s1548_s13, %s1548_s13 }
  0xf0   : > { %p11893_p7 = scmp.lt.s32.totalorder %s11891_s2, %s11885_s11 }
  0xf1   : > { %p11887_p2 = pnand %p11886_p1, %p14487_p4 }
  0xf2   : > { %p11894_p8 = por %p11893_p7, %p11892_p3 }
  0xf3   : > { %p11888_p12 = pneg %p11887_p2 }
  0xf5   : > { %p11895_p6 = pnand %p11894_p8, %p11888_p12 }
  0xf7   : > { %11898 = shalt.err (!%p11895_p6)
}
  0xf8   : > { %s14546_s4 = sld [smem:[#allocation106_spill]]  ;;  %s11909_s0 = scalar_lea.vmem %s1574_s1, 3072 }
  0xf9   : > { %p11910_p11 = scmp.ne.s32.totalorder %s1574_s1, %s11909_s0  ;;  %p11916_p10 = scmp.lt.s32.totalorder %s1574_s1, %s1574_s1 }
  0xfa   : > { %p11917_p0 = scmp.lt.s32.totalorder %s11909_s0, %s11909_s0 }
  0xfb   : > { %p11911_p13 = pnand %p11910_p11, %p14487_p4 }
  0xfc   : > { %p11918_p1 = por %p11917_p0, %p11916_p10 }
  0xfd   : > { %p11912_p9 = pneg %p11911_p13 }
  0xfe   : > { %10841 = dma.hbm_to_vmem [thread:$0]  (%p14487_p4), %s14546_s4, 16, %s1548_s13, [#allocation34]  }
  0xff   : > { %p11919_p2 = pnand %p11918_p1, %p11912_p9 }
 0x101   : > { %11922 = shalt.err (!%p11919_p2)
}
 0x102   : > { %s12859_s20 = smov 192   ;;  %s12860_s27 = smov 12  }
 0x103   : > { %10845 = dma.hbm_to_vmem [thread:$0]  (%p14487_p4), %s13030_s9, 3072, %s1574_s1, [#allocation37], %s12859_s20, %s12859_s20, %s12860_s27  }
 0x104   : > { %s12861_s11 = smov [#allocation39]   ;;  %s12862_s13 = smov [#allocation42]  }
 0x105   : > { %s1599_s2 = sshll.u32 %s12861_s11, 4  ;;  %s1624_s18 = sshll.u32 %s12862_s13, 4  ;;  %s1600_s2 = int_to_ptr.vmem [resolvable:$true] %s1599_s2  ;;  %s1625_s18 = int_to_ptr.vmem [resolvable:$true] %s1624_s18 }
 0x106   : > { %s11933_s7 = scalar_lea.vmem %s1600_s2, 2048  ;;  %p11940_p8 = scmp.lt.s32.totalorder %s1600_s2, %s1600_s2 }
 0x107   : > { %p11934_p12 = scmp.ne.s32.totalorder %s1600_s2, %s11933_s7  ;;  %p11941_p6 = scmp.lt.s32.totalorder %s11933_s7, %s11933_s7 }
 0x109   : > { %p11935_p3 = pnand %p11934_p12, %p14487_p4  ;;  %p11942_p11 = por %p11941_p6, %p11940_p8 }
 0x10b   : > { %p11936_p7 = pneg %p11935_p3 }
 0x10d   : > { %p11943_p13 = pnand %p11942_p11, %p11936_p7 }
 0x10f   : > { %11946 = shalt.err (!%p11943_p13)
}
 0x110   : > { %s14547_s0 = smov 4   ;;  %s14548_s1 = smov 64  }
 0x111   : > { %s14549_s5 = sld [smem:[#allocation110_spill]]  ;;  %s11957_s20 = scalar_lea.vmem %s1625_s18, 16 }
 0x112   : > { %p11958_p9 = scmp.ne.s32.totalorder %s1625_s18, %s11957_s20  ;;  %s11963_s27 = scalar_lea.vmem %s1625_s18, 32 }
 0x113   : > { %p11964_p1 = scmp.lt.s32.totalorder %s1625_s18, %s1625_s18  ;;  %p11965_p2 = scmp.lt.s32.totalorder %s11963_s27, %s11957_s20 }
 0x114   : > { %p11959_p10 = pnand %p11958_p9, %p14487_p4 }
 0x115   : > { %p11966_p12 = por %p11965_p2, %p11964_p1 }
 0x116   : > { %p11960_p0 = pneg %p11959_p10 }
 0x117   : > { %10849 = dma.hbm_to_vmem [thread:$0]  (%p14487_p4), %s14549_s5, 2048, %s1600_s2, [#allocation40], %s14548_s1, %s14548_s1, %s14547_s0  }
 0x118   : > { %p11967_p3 = pnand %p11966_p12, %p11960_p0 }
 0x11a   : > { %11970 = shalt.err (!%p11967_p3)
}
 0x11b   : > { %s14550_s6 = sld [smem:[#allocation112_spill]]  ;;  %s12863_s7 = smov [#allocation45]  }
 0x11c   : > { %s1645_s11 = sshll.u32 %s12863_s7, 4  ;;  %s12864_s13 = smov [#allocation48]   ;;  %s1646_s11 = int_to_ptr.vmem [resolvable:$true] %s1645_s11 }
 0x11d   : > { %s1670_s2 = sshll.u32 %s12864_s13, 4  ;;  %s11981_s4 = scalar_lea.vmem %s1646_s11, 5120  ;;  %s1671_s2 = int_to_ptr.vmem [resolvable:$true] %s1670_s2 }
 0x11e   : > { %p11982_p7 = scmp.ne.s32.totalorder %s1646_s11, %s11981_s4  ;;  %p11988_p11 = scmp.lt.s32.totalorder %s1646_s11, %s1646_s11 }
 0x11f   : > { %p11989_p13 = scmp.lt.s32.totalorder %s11981_s4, %s11981_s4 }
 0x120   : > { %p11983_p8 = pnand %p11982_p7, %p14487_p4 }
 0x121   : > { %10853 = dma.hbm_to_vmem [thread:$0]  (%p14487_p4), %s14550_s6, 16, %s1625_s18, [#allocation43]  }
 0x122   : > { %p11984_p6 = pneg %p11983_p8  ;;  %p11990_p9 = por %p11989_p13, %p11988_p11 }
 0x124   : > { %p11991_p10 = pnand %p11990_p9, %p11984_p6 }
 0x126   : > { %11994 = shalt.err (!%p11991_p10)
}
 0x127   : > { %10857 = dma.hbm_to_vmem [thread:$0]  (%p14487_p4), %s13060_s24, 5120, %s1646_s11, [#allocation46], %s14548_s1, %s14548_s1, %s14547_s0  }
 0x128   : > { %s12005_s18 = scalar_lea.vmem %s1671_s2, 16  ;;  %s12011_s20 = scalar_lea.vmem %s1671_s2, 32 }
 0x129   : > { %p12006_p0 = scmp.ne.s32.totalorder %s1671_s2, %s12005_s18  ;;  %p12012_p12 = scmp.lt.s32.totalorder %s1671_s2, %s1671_s2 }
 0x12a   : > { %p12013_p3 = scmp.lt.s32.totalorder %s12011_s20, %s12005_s18 }
 0x12b   : > { %p12007_p1 = pnand %p12006_p0, %p14487_p4 }
 0x12c   : > { %p12014_p7 = por %p12013_p3, %p12012_p12 }
 0x12d   : > { %p12008_p2 = pneg %p12007_p1 }
 0x12f   : > { %p12015_p8 = pnand %p12014_p7, %p12008_p2 }
 0x131   : > { %12018 = shalt.err (!%p12015_p8)
}
 0x132   : > { %10861 = dma.hbm_to_vmem [thread:$0]  (%p14487_p4), %s13070_s14, 16, %s1671_s2, [#allocation49]  }
 0x133   : > { %s12865_s4 = smov [#allocation51]   ;;  %s12866_s7 = smov [#allocation54]  }
 0x134   : > { %s1691_s27 = sshll.u32 %s12865_s4, 4  ;;  %s1715_s11 = sshll.u32 %s12866_s7, 4  ;;  %s1692_s27 = int_to_ptr.vmem [resolvable:$true] %s1691_s27  ;;  %s1716_s11 = int_to_ptr.vmem [resolvable:$true] %s1715_s11 }
 0x135   : > { %s12029_s13 = scalar_lea.vmem %s1692_s27, 5120  ;;  %p12036_p9 = scmp.lt.s32.totalorder %s1692_s27, %s1692_s27 }
 0x136   : > { %p12030_p6 = scmp.ne.s32.totalorder %s1692_s27, %s12029_s13  ;;  %p12037_p10 = scmp.lt.s32.totalorder %s12029_s13, %s12029_s13 }
 0x138   : > { %p12031_p11 = pnand %p12030_p6, %p14487_p4  ;;  %p12038_p0 = por %p12037_p10, %p12036_p9 }
 0x13a   : > { %p12032_p13 = pneg %p12031_p11 }
 0x13c   : > { %p12039_p1 = pnand %p12038_p0, %p12032_p13 }
 0x13e   : > { %12042 = shalt.err (!%p12039_p1)
}
 0x13f   : > { %s14551_s3 = sld [smem:[#allocation116_spill]]  ;;  %s12053_s2 = scalar_lea.vmem %s1716_s11, 1024 }
 0x140   : > { %p12054_p2 = scmp.ne.s32.totalorder %s1716_s11, %s12053_s2  ;;  %p12060_p7 = scmp.lt.s32.totalorder %s1716_s11, %s1716_s11 }
 0x141   : > { %p12061_p8 = scmp.lt.s32.totalorder %s12053_s2, %s12053_s2 }
 0x142   : > { %p12055_p12 = pnand %p12054_p2, %p14487_p4 }
 0x143   : > { %p12062_p6 = por %p12061_p8, %p12060_p7 }
 0x144   : > { %p12056_p3 = pneg %p12055_p12 }
 0x145   : > { %10865 = dma.hbm_to_vmem [thread:$0]  (%p14487_p4), %s14551_s3, 5120, %s1692_s27, [#allocation52], %s14548_s1, %s14548_s1, %s14547_s0  }
 0x146   : > { %p12063_p11 = pnand %p12062_p6, %p12056_p3 }
 0x148   : > { %12066 = shalt.err (!%p12063_p11)
}
 0x149   : > { %s14552_s18 = sld [smem:[#allocation118_spill]]  ;;  %s12867_s20 = smov [#allocation57]  }
 0x14a   : > { %s1755_s4 = sshll.u32 %s12867_s20, 4  ;;  %s1756_s4 = int_to_ptr.vmem [resolvable:$true] %s1755_s4 }
 0x14b   : > { %s12077_s27 = scalar_lea.vmem %s1756_s4, 16  ;;  %s12083_s7 = scalar_lea.vmem %s1756_s4, 32 }
 0x14c   : > { %p12078_p13 = scmp.ne.s32.totalorder %s1756_s4, %s12077_s27  ;;  %p12084_p0 = scmp.lt.s32.totalorder %s1756_s4, %s1756_s4 }
 0x14d   : > { %p12085_p1 = scmp.lt.s32.totalorder %s12083_s7, %s12077_s27 }
 0x14e   : > { %p12079_p9 = pnand %p12078_p13, %p14487_p4 }
 0x14f   : > { %10869 = dma.hbm_to_vmem [thread:$0]  (%p14487_p4), %s14552_s18, 1024, %s1716_s11, [#allocation55], %s14548_s1, %s14548_s1, %s14547_s0  }
 0x150   : > { %p12080_p10 = pneg %p12079_p9  ;;  %p12086_p2 = por %p12085_p1, %p12084_p0 }
 0x152   : > { %p12087_p12 = pnand %p12086_p2, %p12080_p10 }
 0x154   : > { %12090 = shalt.err (!%p12087_p12)
}
 0x155   : > { %s14553_s13 = sld [smem:[#allocation125_spill]]  ;;  %s12868_s11 = smov [#allocation60]  }
 0x156   : > { %s1784_s2 = sshll.u32 %s12868_s11, 4  ;;  %s12869_s18 = smov [#allocation63]   ;;  %s1785_s2 = int_to_ptr.vmem [resolvable:$true] %s1784_s2 }
 0x157   : > { %s1813_s20 = sshll.u32 %s12869_s18, 4  ;;  %s12101_s3 = scalar_lea.vmem %s1785_s2, 2048  ;;  %s1814_s20 = int_to_ptr.vmem [resolvable:$true] %s1813_s20 }
 0x158   : > { %p12102_p3 = scmp.ne.s32.totalorder %s1785_s2, %s12101_s3  ;;  %p12108_p6 = scmp.lt.s32.totalorder %s1785_s2, %s1785_s2 }
 0x159   : > { %p12109_p11 = scmp.lt.s32.totalorder %s12101_s3, %s12101_s3 }
 0x15a   : > { %p12103_p7 = pnand %p12102_p3, %p14487_p4 }
 0x15b   : > { %10873 = dma.hbm_to_vmem [thread:$0]  (%p14487_p4), %s14553_s13, 16, %s1756_s4, [#allocation58]  }
 0x15c   : > { %p12104_p8 = pneg %p12103_p7  ;;  %p12110_p13 = por %p12109_p11, %p12108_p6 }
 0x15e   : > { %p12111_p9 = pnand %p12110_p13, %p12104_p8 }
 0x160   : > { %12114 = shalt.err (!%p12111_p9)
}
 0x161   : > { %s14485_s27 = smov 128   ;;  %s14554_s7 = sld [smem:[#allocation129_spill]] }
 0x162   : > { %s14486_s4 = smov 8   ;;  %s12125_s13 = scalar_lea.vmem %s1814_s20, 1024 }
 0x163   : > { %p12126_p10 = scmp.ne.s32.totalorder %s1814_s20, %s12125_s13  ;;  %p12132_p2 = scmp.lt.s32.totalorder %s1814_s20, %s1814_s20 }
 0x164   : > { %p12133_p12 = scmp.lt.s32.totalorder %s12125_s13, %s12125_s13 }
 0x165   : > { %p12127_p0 = pnand %p12126_p10, %p14487_p4 }
 0x166   : > { %p12134_p3 = por %p12133_p12, %p12132_p2 }
 0x167   : > { %10877 = dma.hbm_to_vmem [thread:$0]  (%p14487_p4), %s14554_s7, 2048, %s1785_s2, [#allocation61], %s14485_s27, %s14485_s27, %s14486_s4  }
 0x168   : > { %p12128_p1 = pneg %p12127_p0 }
 0x16a   : > { %p12135_p7 = pnand %p12134_p3, %p12128_p1 }
 0x16c   : > { %12138 = shalt.err (!%p12135_p7)
}
 0x16d   : > { %s14555_s3 = sld [smem:[#allocation132_spill]]  ;;  %s12872_s11 = smov [#allocation14]  }
 0x16e   : > { %s1379_s2 = sshll.u32 %s12872_s11, 4  ;;  %s12873_s18 = smov [#allocation17]   ;;  %s1380_s2 = int_to_ptr.vmem [resolvable:$true] %s1379_s2 }
 0x16f   : > { %s1400_s7 = sshll.u32 %s12873_s18, 4  ;;  %s12149_s27 = scalar_lea.vmem %s1380_s2, 16  ;;  %s1401_s7 = int_to_ptr.vmem [resolvable:$true] %s1400_s7 }
 0x170   : > { %p12150_p8 = scmp.ne.s32.totalorder %s1380_s2, %s12149_s27  ;;  %s12155_s13 = scalar_lea.vmem %s1380_s2, 32 }
 0x171   : > { %p12156_p13 = scmp.lt.s32.totalorder %s1380_s2, %s1380_s2  ;;  %p12157_p9 = scmp.lt.s32.totalorder %s12155_s13, %s12149_s27 }
 0x172   : > { %p12151_p6 = pnand %p12150_p8, %p14487_p4 }
 0x173   : > { %10881 = dma.hbm_to_vmem [thread:$0]  (%p14487_p4), %s14555_s3, 1024, %s1814_s20, [#allocation64], %s14548_s1, %s14548_s1, %s14547_s0  }
 0x174   : > { %p12152_p11 = pneg %p12151_p6  ;;  %p12158_p10 = por %p12157_p9, %p12156_p13 }
 0x176   : > { %p12159_p0 = pnand %p12158_p10, %p12152_p11 }
 0x178   : > { %12162 = shalt.err (!%p12159_p0)
}
 0x179   : > { %s14556_s4 = sld [smem:[#allocation94_spill]]  ;;  %s12173_s20 = scalar_lea.vmem %s1401_s7, 5120 }
 0x17a   : > { %p12174_p1 = scmp.ne.s32.totalorder %s1401_s7, %s12173_s20  ;;  %p12180_p3 = scmp.lt.s32.totalorder %s1401_s7, %s1401_s7 }
 0x17b   : > { %p12181_p7 = scmp.lt.s32.totalorder %s12173_s20, %s12173_s20 }
 0x17c   : > { %p12175_p2 = pnand %p12174_p1, %p14487_p4 }
 0x17d   : > { %p12182_p8 = por %p12181_p7, %p12180_p3 }
 0x17e   : > { %p12176_p12 = pneg %p12175_p2 }
 0x17f   : > { %10815 = dma.hbm_to_vmem [thread:$0]  (%p14487_p4), %s14556_s4, 16, %s1380_s2, [#allocation13]  }
 0x180   : > { %p12183_p6 = pnand %p12182_p8, %p12176_p12 }
 0x182   : > { %12186 = shalt.err (!%p12183_p6)
}
 0x183   : > { %s14557_s27 = sld [smem:[#allocation95_spill]]  ;;  %s12874_s4 = smov [#allocation20]  }
 0x184   : > { %s1424_s3 = sshll.u32 %s12874_s4, 4  ;;  %s12875_s11 = smov [#allocation23]   ;;  %s1425_s3 = int_to_ptr.vmem [resolvable:$true] %s1424_s3 }
 0x185   : > { %s1449_s2 = sshll.u32 %s12875_s11, 4  ;;  %s12197_s18 = scalar_lea.vmem %s1425_s3, 5120  ;;  %s1450_s2 = int_to_ptr.vmem [resolvable:$true] %s1449_s2 }
 0x186   : > { %p12198_p11 = scmp.ne.s32.totalorder %s1425_s3, %s12197_s18  ;;  %p12204_p10 = scmp.lt.s32.totalorder %s1425_s3, %s1425_s3 }
 0x187   : > { %p12205_p0 = scmp.lt.s32.totalorder %s12197_s18, %s12197_s18 }
 0x188   : > { %p12199_p13 = pnand %p12198_p11, %p14487_p4 }
 0x189   : > { %10819 = dma.hbm_to_vmem [thread:$0]  (%p14487_p4), %s14557_s27, 5120, %s1401_s7, [#allocation16], %s14548_s1, %s14548_s1, %s14547_s0  }
 0x18a   : > { %p12200_p9 = pneg %p12199_p13  ;;  %p12206_p1 = por %p12205_p0, %p12204_p10 }
 0x18c   : > { %p12207_p2 = pnand %p12206_p1, %p12200_p9 }
 0x18e   : > { %12210 = shalt.err (!%p12207_p2)
}
 0x18f   : > { %s14558_s7 = sld [smem:[#allocation96_spill]]  ;;  %s12221_s13 = scalar_lea.vmem %s1450_s2, 16 }
 0x190   : > { %p12222_p12 = scmp.ne.s32.totalorder %s1450_s2, %s12221_s13  ;;  %s12227_s20 = scalar_lea.vmem %s1450_s2, 32 }
 0x191   : > { %p12228_p8 = scmp.lt.s32.totalorder %s1450_s2, %s1450_s2  ;;  %p12229_p6 = scmp.lt.s32.totalorder %s12227_s20, %s12221_s13 }
 0x192   : > { %p12223_p3 = pnand %p12222_p12, %p14487_p4 }
 0x193   : > { %p12230_p11 = por %p12229_p6, %p12228_p8 }
 0x194   : > { %p12224_p7 = pneg %p12223_p3 }
 0x195   : > { %10823 = dma.hbm_to_vmem [thread:$0]  (%p14487_p4), %s14558_s7, 5120, %s1425_s3, [#allocation19], %s14548_s1, %s14548_s1, %s14547_s0  }
 0x196   : > { %p12231_p13 = pnand %p12230_p11, %p12224_p7 }
 0x198   : > { %12234 = shalt.err (!%p12231_p13)
}
 0x199   : > { %s14559_s27 = sld [smem:[#allocation97_spill]]  ;;  %s12876_s4 = smov [#allocation26]  }
 0x19a   : > { %s1470_s11 = sshll.u32 %s12876_s4, 4  ;;  %s12877_s3 = smov [#allocation29]   ;;  %s1471_s11 = int_to_ptr.vmem [resolvable:$true] %s1470_s11 }
 0x19b   : > { %s1497_s18 = sshll.u32 %s12877_s3, 4  ;;  %s12245_s7 = scalar_lea.vmem %s1471_s11, 3072  ;;  %s1498_s18 = int_to_ptr.vmem [resolvable:$true] %s1497_s18 }
 0x19c   : > { %p12246_p9 = scmp.ne.s32.totalorder %s1471_s11, %s12245_s7  ;;  %p12252_p1 = scmp.lt.s32.totalorder %s1471_s11, %s1471_s11 }
 0x19d   : > { %p12253_p2 = scmp.lt.s32.totalorder %s12245_s7, %s12245_s7 }
 0x19e   : > { %p12247_p10 = pnand %p12246_p9, %p14487_p4 }
 0x19f   : > { %10827 = dma.hbm_to_vmem [thread:$0]  (%p14487_p4), %s14559_s27, 16, %s1450_s2, [#allocation22]  }
 0x1a0   : > { %p12248_p0 = pneg %p12247_p10  ;;  %p12254_p12 = por %p12253_p2, %p12252_p1 }
 0x1a2   : > { %p12255_p3 = pnand %p12254_p12, %p12248_p0 }
 0x1a4   : > { %12258 = shalt.err (!%p12255_p3)
}
 0x1a5   : > { %s14560_s2 = sld [smem:[#allocation98_spill]]  ;;  %s12269_s13 = scalar_lea.vmem %s1498_s18, 16 }
 0x1a6   : > { %p12270_p7 = scmp.ne.s32.totalorder %s1498_s18, %s12269_s13  ;;  %s12275_s20 = scalar_lea.vmem %s1498_s18, 32 }
 0x1a7   : > { %p12276_p11 = scmp.lt.s32.totalorder %s1498_s18, %s1498_s18  ;;  %p12277_p13 = scmp.lt.s32.totalorder %s12275_s20, %s12269_s13 }
 0x1a8   : > { %p12271_p8 = pnand %p12270_p7, %p14487_p4 }
 0x1a9   : > { %p12278_p9 = por %p12277_p13, %p12276_p11 }
 0x1aa   : > { %p12272_p6 = pneg %p12271_p8 }
 0x1ab   : > { %10831 = dma.hbm_to_vmem [thread:$0]  (%p14487_p4), %s14560_s2, 3072, %s1471_s11, [#allocation25], %s14548_s1, %s14548_s1, %s14547_s0  }
 0x1ac   : > { %p12279_p10 = pnand %p12278_p9, %p12272_p6 }
 0x1ae   : > { %12282 = shalt.err (!%p12279_p10)
}
 0x1af   : > { %s14561_s27 = sld [smem:[#allocation99_spill]]  ;;  %s12878_s4 = smov [#allocation32]  }
 0x1b0   : > { %s1524_s3 = sshll.u32 %s12878_s4, 4  ;;  %s12879_s11 = smov [#allocation35]   ;;  %s1525_s3 = int_to_ptr.vmem [resolvable:$true] %s1524_s3 }
 0x1b1   : > { %s1557_s7 = sshll.u32 %s12879_s11, 4  ;;  %s12293_s2 = scalar_lea.vmem %s1525_s3, 16  ;;  %s1558_s7 = int_to_ptr.vmem [resolvable:$true] %s1557_s7 }
 0x1b2   : > { %p12294_p0 = scmp.ne.s32.totalorder %s1525_s3, %s12293_s2  ;;  %s12299_s5 = scalar_lea.vmem %s1525_s3, 32 }
 0x1b3   : > { %p12300_p12 = scmp.lt.s32.totalorder %s1525_s3, %s1525_s3  ;;  %p12301_p3 = scmp.lt.s32.totalorder %s12299_s5, %s12293_s2 }
 0x1b4   : > { %p12295_p1 = pnand %p12294_p0, %p14487_p4 }
 0x1b5   : > { %10835 = dma.hbm_to_vmem [thread:$0]  (%p14487_p4), %s14561_s27, 16, %s1498_s18, [#allocation28]  }
 0x1b6   : > { %p12296_p2 = pneg %p12295_p1  ;;  %p12302_p7 = por %p12301_p3, %p12300_p12 }
 0x1b8   : > { %p12303_p8 = pnand %p12302_p7, %p12296_p2 }
 0x1ba   : > { %12306 = shalt.err (!%p12303_p8)
}
 0x1bb   : > { %s14562_s13 = sld [smem:[#allocation101_spill]]  ;;  %s12317_s18 = scalar_lea.vmem %s1558_s7, 1024 }
 0x1bc   : > { %p12318_p6 = scmp.ne.s32.totalorder %s1558_s7, %s12317_s18  ;;  %p12324_p9 = scmp.lt.s32.totalorder %s1558_s7, %s1558_s7 }
 0x1bd   : > { %p12325_p10 = scmp.lt.s32.totalorder %s12317_s18, %s12317_s18 }
 0x1be   : > { %p12319_p11 = pnand %p12318_p6, %p14487_p4 }
 0x1bf   : > { %p12326_p0 = por %p12325_p10, %p12324_p9 }
 0x1c0   : > { %p12320_p13 = pneg %p12319_p11 }
 0x1c1   : > { %10839 = dma.hbm_to_vmem [thread:$0]  (%p14487_p4), %s14562_s13, 16, %s1525_s3, [#allocation31]  }
 0x1c2   : > { %p12327_p1 = pnand %p12326_p0, %p12320_p13 }
 0x1c4   : > { %12330 = shalt.err (!%p12327_p1)
}
 0x1c5   : > { %s14563_s5 = sld [smem:[#allocation107_spill]]  ;;  %s12880_s20 = smov [#allocation38]  }
 0x1c6   : > { %s1586_s27 = sshll.u32 %s12880_s20, 4  ;;  %s12881_s4 = smov [#allocation41]   ;;  %s1587_s27 = int_to_ptr.vmem [resolvable:$true] %s1586_s27 }
 0x1c7   : > { %s1613_s3 = sshll.u32 %s12881_s4, 4  ;;  %s12341_s11 = scalar_lea.vmem %s1587_s27, 2048  ;;  %s1614_s3 = int_to_ptr.vmem [resolvable:$true] %s1613_s3 }
 0x1c8   : > { %p12342_p2 = scmp.ne.s32.totalorder %s1587_s27, %s12341_s11  ;;  %p12348_p7 = scmp.lt.s32.totalorder %s1587_s27, %s1587_s27 }
 0x1c9   : > { %p12349_p8 = scmp.lt.s32.totalorder %s12341_s11, %s12341_s11 }
 0x1ca   : > { %p12343_p12 = pnand %p12342_p2, %p14487_p4 }
 0x1cb   : > { %10843 = dma.hbm_to_vmem [thread:$0]  (%p14487_p4), %s14563_s5, 1024, %s1558_s7, [#allocation34], %s14548_s1, %s14548_s1, %s14547_s0  }
 0x1cc   : > { %p12344_p3 = pneg %p12343_p12  ;;  %p12350_p6 = por %p12349_p8, %p12348_p7 }
 0x1ce   : > { %p12351_p11 = pnand %p12350_p6, %p12344_p3 }
 0x1d0   : > { %12354 = shalt.err (!%p12351_p11)
}
 0x1d1   : > { %s14564_s2 = smov 8   ;;  %s14565_s13 = smov 128  }
 0x1d2   : > { %s14566_s7 = sld [smem:[#allocation109_spill]]  ;;  %s12365_s18 = scalar_lea.vmem %s1614_s3, 16 }
 0x1d3   : > { %p12366_p13 = scmp.ne.s32.totalorder %s1614_s3, %s12365_s18  ;;  %s12371_s5 = scalar_lea.vmem %s1614_s3, 32 }
 0x1d4   : > { %p12372_p0 = scmp.lt.s32.totalorder %s1614_s3, %s1614_s3  ;;  %p12373_p1 = scmp.lt.s32.totalorder %s12371_s5, %s12365_s18 }
 0x1d5   : > { %p12367_p9 = pnand %p12366_p13, %p14487_p4 }
 0x1d6   : > { %p12374_p2 = por %p12373_p1, %p12372_p0 }
 0x1d7   : > { %p12368_p10 = pneg %p12367_p9 }
 0x1d8   : > { %10847 = dma.hbm_to_vmem [thread:$0]  (%p14487_p4), %s14566_s7, 2048, %s1587_s27, [#allocation37], %s14565_s13, %s14565_s13, %s14564_s2  }
 0x1d9   : > { %p12375_p12 = pnand %p12374_p2, %p12368_p10 }
 0x1db   : > { %12378 = shalt.err (!%p12375_p12)
}
 0x1dc   : > { %s14567_s20 = sld [smem:[#allocation111_spill]]  ;;  %s12882_s4 = smov [#allocation44]  }
 0x1dd   : > { %s1635_s11 = sshll.u32 %s12882_s4, 4  ;;  %s12883_s27 = smov [#allocation47]   ;;  %s1636_s11 = int_to_ptr.vmem [resolvable:$true] %s1635_s11 }
 0x1de   : > { %s1659_s2 = sshll.u32 %s12883_s27, 4  ;;  %s12389_s13 = scalar_lea.vmem %s1636_s11, 16  ;;  %s1660_s2 = int_to_ptr.vmem [resolvable:$true] %s1659_s2 }
 0x1df   : > { %p12390_p3 = scmp.ne.s32.totalorder %s1636_s11, %s12389_s13  ;;  %s12395_s7 = scalar_lea.vmem %s1636_s11, 32 }
 0x1e0   : > { %p12396_p6 = scmp.lt.s32.totalorder %s1636_s11, %s1636_s11  ;;  %p12397_p11 = scmp.lt.s32.totalorder %s12395_s7, %s12389_s13 }
 0x1e1   : > { %p12391_p7 = pnand %p12390_p3, %p14487_p4 }
 0x1e2   : > { %10851 = dma.hbm_to_vmem [thread:$0]  (%p14487_p4), %s14567_s20, 16, %s1614_s3, [#allocation40]  }
 0x1e3   : > { %p12392_p8 = pneg %p12391_p7  ;;  %p12398_p13 = por %p12397_p11, %p12396_p6 }
 0x1e5   : > { %p12399_p9 = pnand %p12398_p13, %p12392_p8 }
 0x1e7   : > { %12402 = shalt.err (!%p12399_p9)
}
 0x1e8   : > { %s14568_s18 = sld [smem:[#allocation113_spill]]  ;;  %s12413_s3 = scalar_lea.vmem %s1660_s2, 16 }
 0x1e9   : > { %p12414_p10 = scmp.ne.s32.totalorder %s1660_s2, %s12413_s3  ;;  %s12419_s5 = scalar_lea.vmem %s1660_s2, 32 }
 0x1ea   : > { %p12420_p2 = scmp.lt.s32.totalorder %s1660_s2, %s1660_s2  ;;  %p12421_p12 = scmp.lt.s32.totalorder %s12419_s5, %s12413_s3 }
 0x1eb   : > { %p12415_p0 = pnand %p12414_p10, %p14487_p4 }
 0x1ec   : > { %p12422_p3 = por %p12421_p12, %p12420_p2 }
 0x1ed   : > { %p12416_p1 = pneg %p12415_p0 }
 0x1ee   : > { %10855 = dma.hbm_to_vmem [thread:$0]  (%p14487_p4), %s14568_s18, 16, %s1636_s11, [#allocation43]  }
 0x1ef   : > { %p12423_p7 = pnand %p12422_p3, %p12416_p1 }
 0x1f1   : > { %12426 = shalt.err (!%p12423_p7)
}
 0x1f2   : > { %s14569_s20 = sld [smem:[#allocation114_spill]]  ;;  %s12884_s4 = smov [#allocation50]  }
 0x1f3   : > { %s1681_s27 = sshll.u32 %s12884_s4, 4  ;;  %s12885_s11 = smov [#allocation53]   ;;  %s1682_s27 = int_to_ptr.vmem [resolvable:$true] %s1681_s27 }
 0x1f4   : > { %s1705_s13 = sshll.u32 %s12885_s11, 4  ;;  %s12437_s7 = scalar_lea.vmem %s1682_s27, 16  ;;  %s1706_s13 = int_to_ptr.vmem [resolvable:$true] %s1705_s13 }
 0x1f5   : > { %p12438_p8 = scmp.ne.s32.totalorder %s1682_s27, %s12437_s7  ;;  %s12443_s18 = scalar_lea.vmem %s1682_s27, 32 }
 0x1f6   : > { %p12444_p13 = scmp.lt.s32.totalorder %s1682_s27, %s1682_s27  ;;  %p12445_p9 = scmp.lt.s32.totalorder %s12443_s18, %s12437_s7 }
 0x1f7   : > { %p12439_p6 = pnand %p12438_p8, %p14487_p4 }
 0x1f8   : > { %10859 = dma.hbm_to_vmem [thread:$0]  (%p14487_p4), %s14569_s20, 16, %s1660_s2, [#allocation46]  }
 0x1f9   : > { %p12440_p11 = pneg %p12439_p6  ;;  %p12446_p10 = por %p12445_p9, %p12444_p13 }
 0x1fb   : > { %p12447_p0 = pnand %p12446_p10, %p12440_p11 }
 0x1fd   : > { %12450 = shalt.err (!%p12447_p0)
}
 0x1fe   : > { %s14570_s3 = sld [smem:[#allocation115_spill]]  ;;  %s12461_s2 = scalar_lea.vmem %s1706_s13, 16 }
 0x1ff   : > { %p12462_p1 = scmp.ne.s32.totalorder %s1706_s13, %s12461_s2  ;;  %s12467_s5 = scalar_lea.vmem %s1706_s13, 32 }
 0x200   : > { %p12468_p3 = scmp.lt.s32.totalorder %s1706_s13, %s1706_s13  ;;  %p12469_p7 = scmp.lt.s32.totalorder %s12467_s5, %s12461_s2 }
 0x201   : > { %p12463_p2 = pnand %p12462_p1, %p14487_p4 }
 0x202   : > { %p12470_p8 = por %p12469_p7, %p12468_p3 }
 0x203   : > { %p12464_p12 = pneg %p12463_p2 }
 0x204   : > { %10863 = dma.hbm_to_vmem [thread:$0]  (%p14487_p4), %s14570_s3, 16, %s1682_s27, [#allocation49]  }
 0x205   : > { %p12471_p6 = pnand %p12470_p8, %p12464_p12 }
 0x207   : > { %12474 = shalt.err (!%p12471_p6)
}
 0x208   : > { %s14571_s20 = sld [smem:[#allocation117_spill]]  ;;  %s12886_s4 = smov [#allocation56]  }
 0x209   : > { %s1732_s11 = sshll.u32 %s12886_s4, 4  ;;  %s12887_s27 = smov [#allocation59]   ;;  %s1733_s11 = int_to_ptr.vmem [resolvable:$true] %s1732_s11 }
 0x20a   : > { %s1765_s7 = sshll.u32 %s12887_s27, 4  ;;  %s12485_s18 = scalar_lea.vmem %s1733_s11, 16  ;;  %s1766_s7 = int_to_ptr.vmem [resolvable:$true] %s1765_s7 }
 0x20b   : > { %p12486_p11 = scmp.ne.s32.totalorder %s1733_s11, %s12485_s18  ;;  %s12491_s3 = scalar_lea.vmem %s1733_s11, 32 }
 0x20c   : > { %p12492_p10 = scmp.lt.s32.totalorder %s1733_s11, %s1733_s11  ;;  %p12493_p0 = scmp.lt.s32.totalorder %s12491_s3, %s12485_s18 }
 0x20d   : > { %p12487_p13 = pnand %p12486_p11, %p14487_p4 }
 0x20e   : > { %10867 = dma.hbm_to_vmem [thread:$0]  (%p14487_p4), %s14571_s20, 16, %s1706_s13, [#allocation52]  }
 0x20f   : > { %p12488_p9 = pneg %p12487_p13  ;;  %p12494_p1 = por %p12493_p0, %p12492_p10 }
 0x211   : > { %p12495_p2 = pnand %p12494_p1, %p12488_p9 }
 0x213   : > { %12498 = shalt.err (!%p12495_p2)
}
 0x214   : > { %s14572_s2 = sld [smem:[#allocation120_spill]]  ;;  %s12509_s13 = scalar_lea.vmem %s1766_s7, 1024 }
 0x215   : > { %p12510_p12 = scmp.ne.s32.totalorder %s1766_s7, %s12509_s13  ;;  %p12516_p8 = scmp.lt.s32.totalorder %s1766_s7, %s1766_s7 }
 0x216   : > { %p12517_p6 = scmp.lt.s32.totalorder %s12509_s13, %s12509_s13 }
 0x217   : > { %p12511_p3 = pnand %p12510_p12, %p14487_p4 }
 0x218   : > { %p12518_p11 = por %p12517_p6, %p12516_p8 }
 0x219   : > { %p12512_p7 = pneg %p12511_p3 }
 0x21a   : > { %10871 = dma.hbm_to_vmem [thread:$0]  (%p14487_p4), %s14572_s2, 16, %s1733_s11, [#allocation55]  }
 0x21b   : > { %p12519_p13 = pnand %p12518_p11, %p12512_p7 }
 0x21d   : > { %12522 = shalt.err (!%p12519_p13)
}
 0x21e   : > { %s14573_s5 = sld [smem:[#allocation126_spill]]  ;;  %s12888_s20 = smov [#allocation62]  }
 0x21f   : > { %s1797_s4 = sshll.u32 %s12888_s20, 4  ;;  %s12889_s11 = smov [#allocation65]   ;;  %s1798_s4 = int_to_ptr.vmem [resolvable:$true] %s1797_s4 }
 0x220   : > { %s1829_s27 = sshll.u32 %s12889_s11, 4  ;;  %s12533_s18 = scalar_lea.vmem %s1798_s4, 2048  ;;  %s1830_s27 = int_to_ptr.vmem [resolvable:$true] %s1829_s27 }
 0x221   : > { %p12534_p9 = scmp.ne.s32.totalorder %s1798_s4, %s12533_s18  ;;  %p12540_p1 = scmp.lt.s32.totalorder %s1798_s4, %s1798_s4 }
 0x222   : > { %p12541_p2 = scmp.lt.s32.totalorder %s12533_s18, %s12533_s18 }
 0x223   : > { %p12535_p10 = pnand %p12534_p9, %p14487_p4 }
 0x224   : > { %10875 = dma.hbm_to_vmem [thread:$0]  (%p14487_p4), %s14573_s5, 1024, %s1766_s7, [#allocation58], %s14548_s1, %s14548_s1, %s14547_s0  }
 0x225   : > { %p12536_p0 = pneg %p12535_p10  ;;  %p12542_p12 = por %p12541_p2, %p12540_p1 }
 0x227   : > { %p12543_p3 = pnand %p12542_p12, %p12536_p0 }
 0x229   : > { %12546 = shalt.err (!%p12543_p3)
}
 0x22a   : > { %s14574_s7 = sld [smem:[#allocation130_spill]]  ;;  %s12557_s3 = scalar_lea.vmem %s1830_s27, 1024 }
 0x22b   : > { %p12558_p7 = scmp.ne.s32.totalorder %s1830_s27, %s12557_s3  ;;  %p12564_p11 = scmp.lt.s32.totalorder %s1830_s27, %s1830_s27 }
 0x22c   : > { %p12565_p13 = scmp.lt.s32.totalorder %s12557_s3, %s12557_s3 }
 0x22d   : > { %p12559_p8 = pnand %p12558_p7, %p14487_p4 }
 0x22e   : > { %p12566_p9 = por %p12565_p13, %p12564_p11 }
 0x22f   : > { %p12560_p6 = pneg %p12559_p8 }
 0x230   : > { %10879 = dma.hbm_to_vmem [thread:$0]  (%p14487_p4), %s14574_s7, 2048, %s1798_s4, [#allocation61], %s14548_s1, %s14548_s1, %s14547_s0  }
 0x231   : > { %p12567_p10 = pnand %p12566_p9, %p12560_p6 }
 0x233   : > { %12570 = shalt.err (!%p12567_p10)
}
 0x234   : > { %10883 = dma.hbm_to_vmem [thread:$0]  (%p14487_p4), %s13170_s25, 1024, %s1830_s27, [#allocation64], %s14548_s1, %s14548_s1, %s14547_s0  }
 0x235 PF: > { %s14575_s2 = sld [smem:[#allocation92_spill]]  ;;  %p11014_p1 = scmp.lt.s32.totalorder %s12791_s26, 2 }
 0x236   : > { %s1851_s13 = sand.u32 1, %s12787_s23   ;;  %s9322_s5 = sshll.u32 %s12791_s26, 7 }
 0x237   : > { %s9321_s20 = sshll.u32 %s1851_s13, 3  ;;  %p13492_p2 = pnand %p11014_p1, %p13226_p5 }
 0x238   : > { %s1855_s0 = scalar_lea.vmem [#allocation9], %s9321_s20  ;;  %s1852_s27 = scalar_lea.sflag [#allocation10], %s1851_s13 }
 0x239   : > { %s1862_s1 = sshll.u32 %s1855_s0, 4  ;;  %p12573_p3 = pneg %p13492_p2  ;;  %s1863_s1 = int_to_ptr.vmem [resolvable:$true] %s1862_s1 }
 0x23a   : > { %s14576_s11 = scalar_select %p13492_p2, 1, 0 }
 0x23b   : > { %s13488_s4 = scalar_lea.hbm %s14575_s2, %s9322_s5  ;;  %s12576_s7 = scalar_lea.hbm %s14575_s2, 256 }
 0x23c   : > { %s12571_s18 = scalar_lea.hbm %s13488_s4, 128  ;;  %p12577_p6 = scmp.lt.s32.totalorder %s13488_s4, %s14575_s2 }
 0x23d   : > { %p12572_p12 = scmp.ne.s32.totalorder %s13488_s4, %s12571_s18  ;;  %p12578_p11 = scmp.lt.s32.totalorder %s12576_s7, %s12571_s18 }
 0x23f   : > { %p12574_p7 = pnand %p12573_p3, %p12572_p12  ;;  %p12579_p13 = por %p12578_p11, %p12577_p6 }
 0x241   : > { %p12575_p8 = pneg %p12574_p7 }
 0x243   : > { %p12580_p9 = pnand %p12579_p13, %p12575_p8 }
 0x245   : > { %12583 = shalt.err (!%p12580_p9)
}
 0x246   : > { %s12584_s15 = scalar_lea.vmem %s1863_s1, 128  ;;  %s12890_s3 = smov [#allocation9]  }
 0x247   : > { %p12585_p5 = scmp.ne.s32.totalorder %s1863_s1, %s12584_s15  ;;  %s12589_s5 = sshll.u32 %s12890_s3, 4  ;;  %s12590_s5 = int_to_ptr.vmem [resolvable:$false] %s12589_s5 }
 0x248   : > { %s12591_s13 = scalar_lea.vmem %s12590_s5, 256  ;;  %p12592_p0 = scmp.lt.s32.totalorder %s1863_s1, %s12590_s5 }
 0x249   : > { %p12587_p10 = pnand %p12585_p5, %p12573_p3  ;;  %p12593_p4 = scmp.lt.s32.totalorder %s12591_s13, %s12584_s15 }
 0x24b   : > { %p12588_p1 = pneg %p12587_p10  ;;  %p12594_p2 = por %p12593_p4, %p12592_p0 }
 0x24d   : > { %p12595_p12 = pnand %p12594_p2, %p12588_p1 }
 0x24f   : > { %12598 = shalt.err (!%p12595_p12)
}
 0x250   : > { %p14577_p7 = scmp.ne.s32.totalorder %s14576_s11, 0  ;;  %p14578_p8 = scmp.ne.s32.totalorder %s14544_s10, 0 }
 0x251   : > { %s13509_s20 = sand.u32 (!%p14578_p8), 1, %s12783_s22   ;;  %p14579_p4 = scmp.ne.s32.totalorder (!%p14578_p8), %s14539_s16, 0 }
 0x252   : > { %10967 = dma.hbm_to_vmem [thread:$0]  (!%p14577_p7), %s13488_s4, 128, %s1863_s1, %s1852_s27  }
 0x253   : > { %1871 = sbr.rel (%p14578_p8) target bundleno = 9842 (0x2672), region = 232  ;;  %s13512_s0 = sshll.u32 (!%p14578_p8), %s13509_s20, 3 }
 0x254   : > { %s1874_s18 = scalar_lea.sflag (!%p14578_p8), [#allocation10], %s13509_s20  ;;  %s1877_s7 = scalar_lea.vmem (!%p14578_p8), [#allocation9], %s13512_s0 }
 0x258   : > { %12694 = dma.done.wait (%p14579_p4), %s1874_s18, 128  }
 0x259   : > { %12696 = vsyncadd (%p14579_p4), %s1874_s18, 4294967168  ;;  %p14580_p0 = scmp.eq.s32.totalorder %s13208_s28, 0 }
 0x25b   : > { %12698 = dma.done.wait (%p14580_p0), [#allocation13], 32   ;;  %p14581_p2 = pmov %p14580_p0 }
 0x25c   : > { %p14582_p3 = pmov %p14580_p0 }
 0x25d   : > { %12700 = vsyncadd (%p14581_p2), [#allocation13], 4294967264 }
 0x25e   : > { %12702 = dma.done.wait (%p14582_p3), [#allocation16], 5136   ;;  %p14583_p6 = pmov %p14580_p0 }
 0x25f   : > { %p14584_p11 = pmov %p14580_p0 }
 0x260   : > { %12704 = vsyncadd (%p14583_p6), [#allocation16], 4294962160 }
 0x261   : > { %12706 = dma.done.wait (%p14584_p11), [#allocation19], 5136   ;;  %p14585_p13 = pmov %p14580_p0 }
 0x262   : > { %p14586_p9 = pmov %p14580_p0 }
 0x263   : > { %12708 = vsyncadd (%p14585_p13), [#allocation19], 4294962160 }
 0x264   : > { %12710 = dma.done.wait (%p14586_p9), [#allocation22], 32   ;;  %p14587_p5 = pmov %p14580_p0 }
 0x265   : > { %p14588_p10 = pmov %p14580_p0 }
 0x266   : > { %12712 = vsyncadd (%p14587_p5), [#allocation22], 4294967264 }
 0x267   : > { %12714 = dma.done.wait (%p14588_p10), [#allocation25], 3088   ;;  %p14589_p1 = pmov %p14580_p0 }
 0x268   : > { %p14590_p12 = pmov %p14580_p0 }
 0x269   : > { %12716 = vsyncadd (%p14589_p1), [#allocation25], 4294964208 }
 0x26a   : > { %12718 = dma.done.wait (%p14590_p12), [#allocation28], 2064   ;;  %p14591_p7 = pmov %p14580_p0 }
 0x26b   : > { %p14592_p8 = pmov %p14580_p0 }
 0x26c   : > { %12720 = vsyncadd (%p14591_p7), [#allocation28], 4294965232 }
 0x26d   : > { %12722 = dma.done.wait (%p14592_p8), [#allocation31], 1040   ;;  %p14593_p4 = pmov %p14580_p0 }
 0x26f   : > { %12724 = vsyncadd (%p14593_p4), [#allocation31], 4294966256 }
 0x270   : > { %12726 = dma.done.wait (%p14580_p0), [#allocation34], 1040   ;;  %p14594_p2 = pmov %p14580_p0 }
 0x271   : > { %p14595_p3 = pmov %p14580_p0 }
 0x272   : > { %12728 = vsyncadd (%p14594_p2), [#allocation34], 4294966256 }
 0x273   : > { %12730 = dma.done.wait (%p14595_p3), [#allocation37], 5120   ;;  %p14596_p6 = pmov %p14580_p0 }
 0x274   : > { %p14597_p11 = pmov %p14580_p0 }
 0x275   : > { %12732 = vsyncadd (%p14596_p6), [#allocation37], 4294962176 }
 0x276   : > { %12734 = dma.done.wait (%p14597_p11), [#allocation40], 2064   ;;  %p14598_p13 = pmov %p14580_p0 }
 0x277   : > { %p14599_p9 = pmov %p14580_p0 }
 0x278   : > { %12736 = vsyncadd (%p14598_p13), [#allocation40], 4294965232 }
 0x279   : > { %12738 = dma.done.wait (%p14599_p9), [#allocation43], 32   ;;  %p14600_p5 = pmov %p14580_p0 }
 0x27a   : > { %p14601_p10 = pmov %p14580_p0 }
 0x27b   : > { %12740 = vsyncadd (%p14600_p5), [#allocation43], 4294967264 }
 0x27c   : > { %12742 = dma.done.wait (%p14601_p10), [#allocation46], 5136   ;;  %p14602_p1 = pmov %p14580_p0 }
 0x27d   : > { %p14603_p12 = pmov %p14580_p0 }
 0x27e   : > { %12744 = vsyncadd (%p14602_p1), [#allocation46], 4294962160 }
 0x27f   : > { %12746 = dma.done.wait (%p14603_p12), [#allocation49], 32   ;;  %p14604_p7 = pmov %p14580_p0 }
 0x280   : > { %p14605_p8 = pmov %p14580_p0 }
 0x281   : > { %12748 = vsyncadd (%p14604_p7), [#allocation49], 4294967264 }
 0x282   : > { %12750 = dma.done.wait (%p14605_p8), [#allocation52], 5136   ;;  %p14606_p4 = pmov %p14580_p0 }
 0x284   : > { %12752 = vsyncadd (%p14606_p4), [#allocation52], 4294962160 }
 0x285   : > { %12754 = dma.done.wait (%p14580_p0), [#allocation55], 1040   ;;  %p14607_p2 = pmov %p14580_p0 }
 0x286   : > { %p14608_p3 = pmov %p14580_p0 }
 0x287   : > { %12756 = vsyncadd (%p14607_p2), [#allocation55], 4294966256 }
 0x288   : > { %12758 = dma.done.wait (%p14608_p3), [#allocation58], 1040   ;;  %p14609_p6 = pmov %p14580_p0 }
 0x289   : > { %p14610_p11 = pmov %p14580_p0 }
 0x28a   : > { %12760 = vsyncadd (%p14609_p6), [#allocation58], 4294966256 }
 0x28b   : > { %12762 = dma.done.wait (%p14610_p11), [#allocation61], 4096   ;;  %p14611_p13 = pmov %p14580_p0 }
 0x28c   : > { %p14612_p9 = pmov %p14580_p0 }
 0x28d   : > { %12764 = vsyncadd (%p14611_p13), [#allocation61], 4294963200 }
 0x28e   : > { %12766 = dma.done.wait (%p14612_p9), [#allocation64], 2048   ;;  %p14613_p5 = pmov %p14580_p0 }
 0x28f   : > { %v12891_v0 = vmov 0.0   ;;  %v11189_v1 = vld [vmem:[#allocation45 + $0x78] sm:$0xff]   ;;  %v11193_v5 = vld [vmem:[#allocation45 + $0x70] sm:$0xff]   ;;  %v11197_v9 = vld [vmem:[#allocation45 + $0x68] sm:$0xff]   ;;  %p2163_p10 = scmp.lt.s32.totalorder %s13208_s28, 1  ;;  %v2177_v22 = vlaneseq  ;;  %s14614_s10 = sld [smem:[#allocation91_spill]] }
 0x290   : > { %12768 = vsyncadd (%p14613_p5), [#allocation64], 4294965248  ;;  %5008 = vst [vmem:[#allocation4] sm:$0x1] %v12891_v0  ;;  %v11190_v2 = vld [vmem:[#allocation45 + $0x38] sm:$0xff]   ;;  %9802 = vmatprep.subr.bf16.mxu0 %v11189_v1  ;;  %v11194_v6 = vld [vmem:[#allocation45 + $0x30] sm:$0xff]  }
 0x291   : > { %5009 = vst [vmem:[#allocation4 + $0x9] sm:$0x1] %v12891_v0  ;;  %8179 = vst [vmem:[#allocation8] sm:$0x3] %v12891_v0  ;;  %v11191_v3 = vld [vmem:[#allocation45 + $0xf8] sm:$0xff]   ;;  %9803 = vmatpush3.bf16.msra.mxu0 %v11190_v2  ;;  %v11195_v7 = vld [vmem:[#allocation45 + $0xf0] sm:$0xff]  }
 0x292   : > { %8180 = vst [vmem:[#allocation8 + $0x22] sm:$0x3] %v12891_v0  ;;  %v11192_v4 = vld [vmem:[#allocation45 + $0xb8] sm:$0xff]   ;;  %9824 = vmatprep.subr.bf16.mxu1 %v11191_v3  ;;  %9804 = vmatprep.subr.bf16.mxu0 %v11193_v5  ;;  %v11196_v8 = vld [vmem:[#allocation45 + $0xb0] sm:$0xff]   ;;  %v11198_v10 = vld [vmem:[#allocation45 + $0x28] sm:$0xff]   ;;  %s2164_s16 = scalar_select %p2163_p10, %s13208_s28, 1 }
 0x293   : > { %9825 = vmatpush3.bf16.msra.mxu1 %v11192_v4  ;;  %v11199_v11 = vld [vmem:[#allocation45 + $0xe8] sm:$0xff]   ;;  %v11201_v13 = vld [vmem:[#allocation45 + $0x60] sm:$0xff]   ;;  %v11205_v17 = vld [vmem:[#allocation45 + $0x58] sm:$0xff]   ;;  %v13598_v27 = vshrl.u32 %v2177_v22, 7  ;;  %vm12892_vm0 = vmmov 0   ;;  %s14615_s11 = sld [smem:[#allocation128_spill]] }
 0x294   : > { %9826 = vmatprep.subr.bf16.mxu1 %v11195_v7  ;;  %v11200_v12 = vld [vmem:[#allocation45 + $0xa8] sm:$0xff]   ;;  %v11202_v14 = vld [vmem:[#allocation45 + $0x20] sm:$0xff]   ;;  %v11206_v18 = vld [vmem:[#allocation45 + $0x18] sm:$0xff]   ;;  %s9800_s4 = sshll.u32 %s2164_s16, 5  ;;  %s14616_s27 = sld [smem:[#allocation127_spill]]  ;;  %vm3680_vm5 = vcmask 261120  }
 0x295   : > { %9805 = vmatpush3.bf16.msra.mxu0 %v11194_v6  ;;  %v11203_v15 = vld [vmem:[#allocation45 + $0xe0] sm:$0xff]   ;;  %v11207_v19 = vld [vmem:[#allocation45 + $0xd8] sm:$0xff]   ;;  %v11209_v21 = vld [vmem:[#allocation45 + $0x50] sm:$0xff]   ;;  %s2167_s1 = scalar_lea.vmem %s14614_s10, %s9800_s4  ;;  %v13602_v32 = vsub.s32 0, %v13598_v27  ;;  %v13605_v34 = vsub.s32 7, %v13598_v27  ;;  %s12894_s15 = smov 96  }
 0x296   : > { %9806 = vmatprep.subr.bf16.mxu0 %v11197_v9  ;;  %v11204_v16 = vld [vmem:[#allocation45 + $0xa0] sm:$0xff]   ;;  %v11208_v20 = vld [vmem:[#allocation45 + $0x98] sm:$0xff]   ;;  %v11210_v23 = vld [vmem:[#allocation45 + $0x10] sm:$0xff]   ;;  %vm3744_vm6 = vcmask 1043456   ;;  %vm3728_vm7 = vcmask 64512   ;;  %s12895_s3 = smov 64  }
 0x297   : > { %9827 = vmatpush3.bf16.msra.mxu1 %v11196_v8  ;;  %v11211_v24 = vld [vmem:[#allocation45 + $0xd0] sm:$0xff]   ;;  %v11213_v26 = vld [vmem:[#allocation45 + $0x48] sm:$0xff]   ;;  %v11217_v31 = vld [vmem:[#allocation45 + $0x40] sm:$0xff]   ;;  %s12896_s5 = smov 32   ;;  %s14617_s13 = sld [smem:[#allocation122_spill]] }
 0x298   : > { %9828 = vmatprep.subr.bf16.mxu1 %v11199_v11  ;;  %v11212_v25 = vld [vmem:[#allocation45 + $0x90] sm:$0xff]   ;;  %v11214_v28 = vld [vmem:[#allocation45 + $0x8] sm:$0xff]   ;;  %v11218_v33 = vld [vmem:[#allocation45] sm:$0xff]   ;;  %s14618_s18 = sld [smem:[#allocation121_spill]] }
 0x299   : > { %9807 = vmatpush3.bf16.msra.mxu0 %v11198_v10  ;;  %v11215_v29 = vld [vmem:[#allocation45 + $0xc8] sm:$0xff]   ;;  %v11219_v35 = vld [vmem:[#allocation45 + $0xc0] sm:$0xff]   ;;  %v2172_v39 = vld [vmem:[%s2167_s1 + $0x18] sm:$0xff]  ;;  %s14619_s16 = sld [smem:[#allocation119_spill]] }
 0x29a   : > { %9808 = vmatprep.subr.bf16.mxu0 %v11201_v13  ;;  %v11216_v30 = vld [vmem:[#allocation45 + $0x88] sm:$0xff]   ;;  %v2169_v36 = vld [vmem:[%s2167_s1] sm:$0xff]  ;;  %2176 = vst [vmem:[#allocation2 + $0x1a] sm:$0xff] %v2172_v39  ;;  %v2185_v41 = vrot.slane %v2172_v39, %v13605_v34  ;;  %v11222_v56 = vld [vmem:[#allocation45 + $0x130] sm:$0xff]   ;;  %s14620_s10 = sld [smem:[#allocation124_spill]] }
 0x29b   : > { %9829 = vmatpush3.bf16.msra.mxu1 %v11200_v12  ;;  %v2170_v37 = vld [vmem:[%s2167_s1 + $0x8] sm:$0xff]  ;;  %v2171_v38 = vld [vmem:[%s2167_s1 + $0x10] sm:$0xff]  ;;  %2173 = vst [vmem:[#allocation2 + $0x2] sm:$0xff] %v2169_v36  ;;  %v2180_v40 = vrot.slane %v2169_v36, %v13602_v32  ;;  %v11221_v54 = vld [vmem:[#allocation45 + $0x138] sm:$0xff]   ;;  %s14621_s4 = sld [smem:[#allocation123_spill]] }
 0x29c   : > { %9830 = vmatprep.subr.bf16.mxu1 %v11203_v15  ;;  %2174 = vst [vmem:[#allocation2 + $0xa] sm:$0xff] %v2170_v37  ;;  %2175 = vst [vmem:[#allocation2 + $0x12] sm:$0xff] %v2171_v38  ;;  %v11220_v42 = vld [vmem:[#allocation45 + $0x80] sm:$0xff]   ;;  %v11223_v57 = vld [vmem:[#allocation45 + $0x128] sm:$0xff]   ;;  %s14622_s1 = sld [smem:[#allocation133_spill]] }
 0x29d   : > { %9809 = vmatpush3.bf16.msra.mxu0 %v11202_v14  ;;  %2181 = vst [vmem:[#allocation2] sm:$0x3] %v2180_v40  ;;  %2186 = vst [vmem:[#allocation2 + $0x22] sm:$0x3] %v2185_v41  ;;  %v11224_v58 = vld [vmem:[#allocation45 + $0x120] sm:$0xff]   ;;  %v11225_v59 = vld [vmem:[#allocation45 + $0x118] sm:$0xff]  }
 0x29e   : > { %9810 = vmatprep.subr.bf16.mxu0 %v11205_v17  ;;  %v11226_v60 = vld [vmem:[#allocation45 + $0x110] sm:$0xff]   ;;  %v11227_v61 = vld [vmem:[#allocation45 + $0x108] sm:$0xff]   ;;  %v11228_v62 = vld [vmem:[#allocation45 + $0x100] sm:$0xff]  }
 0x29f   : > { %9831 = vmatpush3.bf16.msra.mxu1 %v11204_v16  ;;  %v13619_v3 = vld [vmem:[#allocation51 + $0x78] sm:$0xff]   ;;  %v13623_v7 = vld [vmem:[#allocation51 + $0x70] sm:$0xff]   ;;  %v13631_v11 = vld [vmem:[#allocation51 + $0x68] sm:$0xff]  }
 0x2a0   : > { %9832 = vmatprep.subr.bf16.mxu1 %v11207_v19  ;;  %v11230_v4 = vld [vmem:[#allocation51 + $0xf8] sm:$0xff]   ;;  %v11234_v8 = vld [vmem:[#allocation51 + $0xf0] sm:$0xff]   ;;  %v13633_v12 = vld [vmem:[#allocation51 + $0xe8] sm:$0xff]  }
 0x2a1   : > { %9811 = vmatpush3.bf16.msra.mxu0 %v11206_v18  ;;  %v13621_v5 = vld [vmem:[#allocation51 + $0x38] sm:$0xff]   ;;  %v13626_v9 = vld [vmem:[#allocation51 + $0x30] sm:$0xff]   ;;  %v13635_v13 = vld [vmem:[#allocation51 + $0x28] sm:$0xff]  }
 0x2a2   : > { %9812 = vmatprep.subr.bf16.mxu0 %v11209_v21  ;;  %v11232_v6 = vld [vmem:[#allocation51 + $0xb8] sm:$0xff]   ;;  %v11236_v10 = vld [vmem:[#allocation51 + $0xb0] sm:$0xff]   ;;  %v13637_v14 = vld [vmem:[#allocation51 + $0xa8] sm:$0xff]  }
 0x2a3   : > { %9833 = vmatpush3.bf16.msra.mxu1 %v11208_v20  ;;  %v2199_v43 = vld [vmem:[#allocation2 + $0x3] ss:$2 sm:$0xff]  ;;  %v2195_v44 = vld [vmem:[#allocation2 + $0x2] ss:$2 sm:$0xff]  ;;  %v2201_v47 = vld [vmem:[#allocation2 + $0x13] ss:$2 sm:$0xff] }
 0x2a4   : > { %9834 = vmatprep.subr.bf16.mxu1 %v11211_v24  ;;  %v2193_v45 = vld [vmem:[#allocation2 + $0x11] ss:$2 sm:$0xff]  ;;  %v2189_v46 = vld [vmem:[#allocation2 + $0x10] ss:$2 sm:$0xff]  ;;  %v2191_v48 = vld [vmem:[#allocation2 + $0x1] ss:$2 sm:$0xff]  ;;  %v2209_v50 = vpack.c.bf16 %v2201_v47, %v2199_v43 }
 0x2a5   : > { %9813 = vmatpush3.bf16.msra.mxu0 %v11210_v23  ;;  %v2187_v49 = vld [vmem:[#allocation2] ss:$2 sm:$0xff]  ;;  %v2207_v52 = vpack.c.bf16 %v2193_v45, %v2191_v48  ;;  %v13667_v23 = vld [vmem:[#allocation51 + $0x50] sm:$0xff]  }
 0x2a6   : > { %9814 = vmatprep.subr.bf16.mxu0 %v11213_v26  ;;  %v2197_v51 = vld [vmem:[#allocation2 + $0x12] ss:$2 sm:$0xff]  ;;  %v2206_v53 = vpack.c.bf16 %v2189_v46, %v2187_v49  ;;  %2611 = vmatprep.mubr.bf16.mxu1 %v2209_v50  ;;  %v13643_v15 = vld [vmem:[#allocation51 + $0x60] sm:$0xff]  }
 0x2a7   : > { %9835 = vmatpush3.bf16.msra.mxu1 %v11212_v25  ;;  %v2208_v55 = vpack.c.bf16 %v2197_v51, %v2195_v44  ;;  %2570 = vmatprep.mubr.bf16.mxu0 %v2207_v52  ;;  %v2203_v63 = vld [vmem:[#allocation2 + $0x4] ss:$2 sm:$0xff]  ;;  %v2205_v1 = vld [vmem:[#allocation2 + $0x14] ss:$2 sm:$0xff] }
 0x2a8   : > { %9836 = vmatprep.subr.bf16.mxu1 %v11215_v29  ;;  %v2210_v2 = vpack.c.bf16 %v2205_v1, %v2203_v63  ;;  %v13645_v16 = vld [vmem:[#allocation51 + $0xe0] sm:$0xff]   ;;  %v13655_v19 = vld [vmem:[#allocation51 + $0x58] sm:$0xff]   ;;  %v13669_v24 = vld [vmem:[#allocation51 + $0xd0] sm:$0xff]  }
 0x2a9   : > { %9815 = vmatpush3.bf16.msra.mxu0 %v11214_v28  ;;  %v13647_v17 = vld [vmem:[#allocation51 + $0x20] sm:$0xff]   ;;  %v13657_v20 = vld [vmem:[#allocation51 + $0xd8] sm:$0xff]   ;;  %v13671_v25 = vld [vmem:[#allocation51 + $0x10] sm:$0xff]  }
 0x2aa   : > { %9816 = vmatprep.subr.bf16.mxu0 %v11217_v31  ;;  %v13649_v18 = vld [vmem:[#allocation51 + $0xa0] sm:$0xff]   ;;  %v13659_v21 = vld [vmem:[#allocation51 + $0x18] sm:$0xff]   ;;  %v13673_v26 = vld [vmem:[#allocation51 + $0x90] sm:$0xff]  }
 0x2ab   : > { %9837 = vmatpush3.bf16.msra.mxu1 %v11216_v30  ;;  %v13661_v22 = vld [vmem:[#allocation51 + $0x98] sm:$0xff]   ;;  %v13679_v28 = vld [vmem:[#allocation51 + $0x48] sm:$0xff]   ;;  %v13693_v36 = vld [vmem:[#allocation51] sm:$0xff]  }
 0x2ac   : > { %9838 = vmatprep.subr.bf16.mxu1 %v11219_v35  ;;  %v13681_v29 = vld [vmem:[#allocation51 + $0xc8] sm:$0xff]   ;;  %v13691_v35 = vld [vmem:[#allocation51 + $0xc0] sm:$0xff]   ;;  %v9366_v44 = vld [vmem:[#allocation41] ss:$0 sm:$0xff] }
 0x2ad   : > { %9817 = vmatpush3.bf16.msra.mxu0 %v11218_v33  ;;  %v13683_v30 = vld [vmem:[#allocation51 + $0x8] sm:$0xff]   ;;  %v13689_v33 = vld [vmem:[#allocation51 + $0x40] sm:$0xff]  }
 0x2ae   : > { %10368 = vmatprep.subr.bf16.mxu0 %v12891_v0  ;;  %v13685_v31 = vld [vmem:[#allocation51 + $0x88] sm:$0xff]   ;;  %v13697_v37 = vld [vmem:[#allocation51 + $0x80] sm:$0xff]  }
 0x2af   : > { %9839 = vmatpush3.bf16.msra.mxu1 %v11220_v42 }
 0x2b0   : > { %2571 = vmatmul.mubr.bf16.vlgmr.msra.gmra.mxu0 %v2206_v53  ;;  %9855 = vmatprep.subr.bf16.mxu1 %v13619_v3 }
 0x2b1   : > { %10369 = vmatpush3.bf16.msra.mxu0 %v11221_v54  ;;  %10384 = vmatprep.mubr.msk.bf16.mxu0 %vm12892_vm0, %v12891_v0 }
 0x2b2   : > { %2612 = vmatmul.mubr.bf16.vlgmr.msra.gmra.mxu1 %v2208_v55  ;;  %10370 = vmatprep.subr.bf16.mxu0 %v12891_v0 }
 0x2b3   : > { %9856 = vmatpush3.bf16.msra.mxu1 %v13621_v5 }
 0x2b4   : > { %9857 = vmatprep.subr.bf16.mxu1 %v13623_v7 }
 0x2b5   : > { %10371 = vmatpush3.bf16.msra.mxu0 %v11222_v56 }
 0x2b6   : > { %10372 = vmatprep.subr.bf16.mxu0 %v12891_v0 }
 0x2b7   : > { %9858 = vmatpush3.bf16.msra.mxu1 %v13626_v9 }
 0x2b8   : > { %9859 = vmatprep.subr.bf16.mxu1 %v13631_v11 }
 0x2b9   : > { %10373 = vmatpush3.bf16.msra.mxu0 %v11223_v57 }
 0x2ba   : > { %10374 = vmatprep.subr.bf16.mxu0 %v12891_v0 }
 0x2bb   : > { %9860 = vmatpush3.bf16.msra.mxu1 %v13635_v13 }
 0x2bc   : > { %9861 = vmatprep.subr.bf16.mxu1 %v13643_v15 }
 0x2bd   : > { %10375 = vmatpush3.bf16.msra.mxu0 %v11224_v58  ;;  %v9407_v58 = vld [vmem:[#allocation42] ss:$0 sm:$0xff] }
 0x2be   : > { %10376 = vmatprep.subr.bf16.mxu0 %v12891_v0 }
 0x2bf   : > { %9862 = vmatpush3.bf16.msra.mxu1 %v13647_v17 }
 0x2c0   : > { %9863 = vmatprep.subr.bf16.mxu1 %v13655_v19 }
 0x2c1   : > { %10377 = vmatpush3.bf16.msra.mxu0 %v11225_v59 }
 0x2c2   : > { %10378 = vmatprep.subr.bf16.mxu0 %v12891_v0 }
 0x2c3   : > { %9864 = vmatpush3.bf16.msra.mxu1 %v13659_v21 }
 0x2c4   : > { %9865 = vmatprep.subr.bf16.mxu1 %v13667_v23 }
 0x2c5   : > { %10379 = vmatpush3.bf16.msra.mxu0 %v11226_v60 }
 0x2c6   : > { %10380 = vmatprep.subr.bf16.mxu0 %v12891_v0 }
 0x2c7   : > { %9866 = vmatpush3.bf16.msra.mxu1 %v13671_v25 }
 0x2c8   : > { %9867 = vmatprep.subr.bf16.mxu1 %v13679_v28 }
 0x2c9   : > { %10381 = vmatpush3.bf16.msra.mxu0 %v11227_v61 }
 0x2ca   : > { %10382 = vmatprep.subr.bf16.mxu0 %v12891_v0 }
 0x2cb   : > { %9868 = vmatpush3.bf16.msra.mxu1 %v13683_v30 }
 0x2cc   : > { %9869 = vmatprep.subr.bf16.mxu1 %v13689_v33 }
 0x2cd   : > { %10383 = vmatpush3.bf16.msra.mxu0 %v11228_v62  ;;  %v9408_v62 = vld [vmem:[#allocation44] ss:$0 sm:$0xff] }
 0x2ce   : > { %9877 = vmatprep.subr.bf16.mxu0 %v11230_v4 }
 0x2cf   : > { %9870 = vmatpush3.bf16.msra.mxu1 %v13693_v36 }
 0x2d0   : > { %10385 = vmatmul.mubr.bf16.vlgmr.msra.gmra.mxu0 %v2210_v2  ;;  %10388 = vmatprep.subr.bf16.mxu1 %v12891_v0 }
 0x2d1   : > { %9878 = vmatpush3.bf16.msra.mxu0 %v11232_v6 }
 0x2d2   : > { %9879 = vmatprep.subr.bf16.mxu0 %v11234_v8 }
 0x2d5   : > { %9880 = vmatpush3.bf16.msra.mxu0 %v11236_v10 }
 0x2d6   : > { %9881 = vmatprep.subr.bf16.mxu0 %v13633_v12 }
 0x2d9   : > { %9882 = vmatpush3.bf16.msra.mxu0 %v13637_v14 }
 0x2da   : > { %9883 = vmatprep.subr.bf16.mxu0 %v13645_v16 }
 0x2dd   : > { %9884 = vmatpush3.bf16.msra.mxu0 %v13649_v18 }
 0x2de   : > { %9885 = vmatprep.subr.bf16.mxu0 %v13657_v20 }
 0x2e1   : > { %9886 = vmatpush3.bf16.msra.mxu0 %v13661_v22 }
 0x2e2   : > { %9887 = vmatprep.subr.bf16.mxu0 %v13669_v24 }
 0x2e5   : > { %9888 = vmatpush3.bf16.msra.mxu0 %v13673_v26 }
 0x2e6   : > { %9889 = vmatprep.subr.bf16.mxu0 %v13681_v29 }
 0x2e9   : > { %9890 = vmatpush3.bf16.msra.mxu0 %v13685_v31 }
 0x2ea   : > { %9891 = vmatprep.subr.bf16.mxu0 %v13691_v35 }
 0x2ed   : > { %9892 = vmatpush3.bf16.msra.mxu0 %v13697_v37 }
 0x2ee   : > { %9908 = vmatprep.subr.bf16.mxu0 %v13619_v3 }
 0x370   : > { %v9818_v38 = vpop.f32.mrf.mxu0 }
 0x372   : > { %v9819_v39 = vpop.f32.mrf.mxu0  ;;  %v9840_v40 = vpop.f32.mrf.mxu1 }
 0x373   : > { %v9820_v43 = vadd.f32 %v9819_v39, %v9818_v38 }
 0x374   : > { %v9821_v41 = vpop.f32.mrf.mxu0  ;;  %v9841_v42 = vpop.f32.mrf.mxu1 }
 0x375   : > { %v2573_v47 = vadd.f32 %v9820_v43, %v9366_v44  ;;  %v9842_v48 = vadd.f32 %v9841_v42, %v9840_v40 }
 0x376   : > { %v9822_v45 = vpop.f32.mrf.mxu0  ;;  %v9843_v46 = vpop.f32.mrf.mxu1 }
 0x377   : > { %v9823_v49 = vadd.f32 %v9822_v45, %v9821_v41  ;;  %v2614_v53 = vadd.f32 %v9842_v48, %v2573_v47  ;;  %v11261_v47 = vld [vmem:[#allocation51 + $0x138] sm:$0xff]  }
 0x378   : > { %v9844_v50 = vpop.f32.mrf.mxu1 }
 0x379   : > { %v2576_v51 = vadd.f32 %v9823_v49, %v9366_v44  ;;  %v9845_v52 = vadd.f32 %v9844_v50, %v9843_v46  ;;  %v11262_v49 = vld [vmem:[#allocation51 + $0x130] sm:$0xff]   ;;  %v11263_v50 = vld [vmem:[#allocation51 + $0x128] sm:$0xff]  }
 0x37b   : > { %v2617_v59 = vadd.f32 %v9845_v52, %v2576_v51  ;;  %v11291_v51 = vld [vmem:[%s14615_s11 + $0x64] ss:$12 sps:$4 sm:$0xff]   ;;  %v11289_v52 = vld [vmem:[%s14615_s11 + $0x60] ss:$12 sps:$4 sm:$0xff]  }
 0x390   : > { %v2654_v54 = vpop.f32.mrf.mxu0 }
 0x391   : > { %v2655_v55 = vadd.f32 %v2654_v54, %v2614_v53  ;;  %v11295_v53 = vld [vmem:[%s14615_s11 + $0x4c] ss:$12 sps:$4 sm:$0xff]   ;;  %v11293_v54 = vld [vmem:[%s14615_s11 + $0x48] ss:$12 sps:$4 sm:$0xff]  }
 0x392   : > { %v10386_v56 = vpop.f32.mrf.mxu0 }
 0x393   : > { %vm2661_vm1 = vcmp.ge.f32.partialorder %v2655_v55, 0.0  ;;  %v2663_v57 = vmul.f32 0.2, %v2655_v55  ;;  %v11297_v56 = vld [vmem:[%s14615_s11 + $0x30] ss:$12 sps:$4 sm:$0xff]  }
 0x394   : > { %v2657_v60 = vpop.f32.mrf.mxu0 }
 0x395   : > { %v2665_v61 = vsel %vm2661_vm1, %v2655_v55, %v2663_v57  ;;  %v2658_v63 = vadd.f32 %v2657_v60, %v2617_v59  ;;  %v11299_v55 = vld [vmem:[%s14615_s11 + $0x34] ss:$12 sps:$4 sm:$0xff]   ;;  %v11303_v57 = vld [vmem:[%s14615_s11 + $0x1c] ss:$12 sps:$4 sm:$0xff]  }
 0x396   : > { %v2674_v1 = vmul.f32 %v9407_v58, %v2665_v61  ;;  %v10387_v2 = vpop.f32.mrf.mxu0  ;;  %v9409_v61 = vld [vmem:[#allocation47] ss:$0 sm:$0xff] }
 0x397   : > { %vm2662_vm2 = vcmp.ge.f32.partialorder %v2658_v63, 0.0  ;;  %v2664_v3 = vmul.f32 0.2, %v2658_v63 }
 0x398   : > { %v2683_v4 = vadd.f32 %v9408_v62, %v2674_v1 }
 0x399   : > { %v2666_v6 = vsel %vm2662_vm2, %v2658_v63, %v2664_v3 }
 0x39a   : > { %2685 = vst [vmem:[#allocation3 + $0x2] sm:$0xff] %v2683_v4  ;;  %v2690_v8 = vrot.slane %v2683_v4, %v13602_v32  ;;  %v2675_v10 = vmul.f32 %v9407_v58, %v2666_v6  ;;  %v11301_v58 = vld [vmem:[%s14615_s11 + $0x18] ss:$12 sps:$4 sm:$0xff]  }
 0x39c   : > { %2691 = vst [vmem:[#allocation3] sm:$0x3] %v2690_v8  ;;  %v2684_v38 = vadd.f32 %v9408_v62, %v2675_v10 }
 0x39e   : > { %2686 = vst [vmem:[#allocation3 + $0xa] sm:$0xff] %v2684_v38  ;;  %v2695_v39 = vrot.slane %v2684_v38, %v13605_v34 }
 0x3a0   : > { %2696 = vst [vmem:[#allocation3 + $0x12] sm:$0x3] %v2695_v39 }
 0x3a5   : > { %v2699_v40 = vld [vmem:[#allocation3 + $0x1] ss:$2 sm:$0xff]  ;;  %v2697_v42 = vld [vmem:[#allocation3] ss:$2 sm:$0xff] }
 0x3a6   : > { %v2703_v41 = vld [vmem:[#allocation3 + $0x3] ss:$2 sm:$0xff]  ;;  %v2707_v43 = vpack.c.bf16 %v2699_v40, %v2699_v40  ;;  %v2706_v45 = vpack.c.bf16 %v2697_v42, %v2697_v42  ;;  %v2701_v46 = vld [vmem:[#allocation3 + $0x2] ss:$2 sm:$0xff] }
 0x3a7   : > { %v13707_v44 = vpack.c.bf16 %v2703_v41, %v2703_v41  ;;  %v2708_v48 = vpack.c.bf16 %v2701_v46, %v2701_v46 }
 0x3a8   : > { %3070 = vmatprep.mubr.bf16.mxu1 %v2707_v43 }
 0x3a9   : > { %3110 = vmatprep.mubr.bf16.mxu0 %v13707_v44  ;;  %3071 = vmatmul.mubr.bf16.vlgmr.msra.gmra.mxu1 %v2706_v45 }
 0x3aa   : > { %3111 = vmatmul.mubr.bf16.vlgmr.msra.gmra.mxu0 %v2708_v48  ;;  %10389 = vmatpush3.bf16.msra.mxu1 %v11261_v47 }
 0x3ab   : > { %9909 = vmatpush3.bf16.msra.mxu0 %v13621_v5  ;;  %3212 = vmatprep.mubr.bf16.mxu0 %v2708_v48  ;;  %v11264_v5 = vld [vmem:[#allocation51 + $0x120] sm:$0xff]  }
 0x3ac   : > { %10390 = vmatprep.subr.bf16.mxu1 %v12891_v0  ;;  %9910 = vmatprep.subr.bf16.mxu0 %v13623_v7  ;;  %v11265_v7 = vld [vmem:[#allocation51 + $0x118] sm:$0xff]  }
 0x3ad   : > { %10404 = vmatprep.mubr.msk.bf16.mxu1 %vm12892_vm0, %v12891_v0 }
 0x3ae   : > { %10391 = vmatpush3.bf16.msra.mxu1 %v11262_v49 }
 0x3af   : > { %9911 = vmatpush3.bf16.msra.mxu0 %v13626_v9  ;;  %10392 = vmatprep.subr.bf16.mxu1 %v12891_v0  ;;  %v11266_v9 = vld [vmem:[#allocation51 + $0x110] sm:$0xff]  }
 0x3b0   : > { %9912 = vmatprep.subr.bf16.mxu0 %v13631_v11  ;;  %v11267_v11 = vld [vmem:[#allocation51 + $0x108] sm:$0xff]  }
 0x3b2   : > { %10393 = vmatpush3.bf16.msra.mxu1 %v11263_v50 }
 0x3b3   : > { %9913 = vmatpush3.bf16.msra.mxu0 %v13635_v13  ;;  %10394 = vmatprep.subr.bf16.mxu1 %v12891_v0  ;;  %v11268_v13 = vld [vmem:[#allocation51 + $0x100] sm:$0xff]  }
 0x3b4   : > { %9914 = vmatprep.subr.bf16.mxu0 %v13643_v15  ;;  %v2705_v15 = vld [vmem:[#allocation3 + $0x4] ss:$2 sm:$0xff] }
 0x3b6   : > { %10395 = vmatpush3.bf16.msra.mxu1 %v11264_v5 }
 0x3b7   : > { %9915 = vmatpush3.bf16.msra.mxu0 %v13647_v17  ;;  %10396 = vmatprep.subr.bf16.mxu1 %v12891_v0  ;;  %v2710_v17 = vpack.c.bf16 %v2705_v15, %v2705_v15 }
 0x3b8   : > { %9916 = vmatprep.subr.bf16.mxu0 %v13655_v19  ;;  %v11703_v19 = vld [vmem:[#allocation51 + $0xf8] sm:$0xff]  }
 0x3ba   : > { %10397 = vmatpush3.bf16.msra.mxu1 %v11265_v7 }
 0x3bb   : > { %9917 = vmatpush3.bf16.msra.mxu0 %v13659_v21  ;;  %10398 = vmatprep.subr.bf16.mxu1 %v12891_v0  ;;  %v11704_v21 = vld [vmem:[#allocation51 + $0xb8] sm:$0xff]  }
 0x3bc   : > { %9918 = vmatprep.subr.bf16.mxu0 %v13667_v23  ;;  %v11705_v23 = vld [vmem:[#allocation51 + $0xf0] sm:$0xff]  }
 0x3be   : > { %10399 = vmatpush3.bf16.msra.mxu1 %v11266_v9 }
 0x3bf   : > { %9919 = vmatpush3.bf16.msra.mxu0 %v13671_v25  ;;  %10400 = vmatprep.subr.bf16.mxu1 %v12891_v0  ;;  %v11706_v25 = vld [vmem:[#allocation51 + $0xb0] sm:$0xff]  }
 0x3c0   : > { %9920 = vmatprep.subr.bf16.mxu0 %v13679_v28  ;;  %v11275_v28 = vld [vmem:[#allocation54 + $0x8] sm:$0xff]  }
 0x3c2   : > { %10401 = vmatpush3.bf16.msra.mxu1 %v11267_v11 }
 0x3c3   : > { %9921 = vmatpush3.bf16.msra.mxu0 %v13683_v30  ;;  %10402 = vmatprep.subr.bf16.mxu1 %v12891_v0  ;;  %v11277_v30 = vld [vmem:[%s14615_s11 + $0xa8] ss:$12 sps:$4 sm:$0xff]  }
 0x3c4   : > { %9922 = vmatprep.subr.bf16.mxu0 %v13689_v33  ;;  %v11283_v33 = vld [vmem:[%s14615_s11 + $0x94] ss:$12 sps:$4 sm:$0xff]  }
 0x3c6   : > { %10403 = vmatpush3.bf16.msra.mxu1 %v11268_v13 }
 0x3c7   : > { %9923 = vmatpush3.bf16.msra.mxu0 %v13693_v36  ;;  %9930 = vmatprep.subr.bf16.mxu1 %v11703_v19  ;;  %v11287_v36 = vld [vmem:[%s14615_s11 + $0x7c] ss:$12 sps:$4 sm:$0xff]  }
 0x3c8   : > { %10408 = vmatprep.subr.bf16.mxu0 %v12891_v0 }
 0x3c9   : > { %10405 = vmatmul.mubr.bf16.vlgmr.msra.gmra.mxu1 %v2710_v17 }
 0x3ca   : > { %3213 = vmatmul.mubr.bf16.vlgmr.msra.gmra.mxu0 %v2707_v43  ;;  %9931 = vmatpush3.bf16.msra.mxu1 %v11704_v21 }
 0x3cb   : > { %3252 = vmatprep.mubr.bf16.mxu1 %v2710_v17  ;;  %10409 = vmatpush3.bf16.msra.mxu0 %v11261_v47 }
 0x3cc   : > { %9932 = vmatprep.subr.bf16.mxu1 %v11705_v23  ;;  %10410 = vmatprep.subr.bf16.mxu0 %v12891_v0 }
 0x3cd   : > { %10424 = vmatprep.mubr.msk.bf16.mxu0 %vm12892_vm0, %v12891_v0 }
 0x3ce   : > { %9933 = vmatpush3.bf16.msra.mxu1 %v11706_v25  ;;  %v9450_v25 = vld [vmem:[#allocation48] ss:$0 sm:$0xff] }
 0x3cf   : > { %10411 = vmatpush3.bf16.msra.mxu0 %v11262_v49  ;;  %9934 = vmatprep.subr.bf16.mxu1 %v13633_v12  ;;  %v3178_v12 = vld [vmem:[#allocation3 + $0x5] ss:$2 sm:$0xff] }
 0x3d0   : > { %10412 = vmatprep.subr.bf16.mxu0 %v12891_v0 }
 0x3d2   : > { %9935 = vmatpush3.bf16.msra.mxu1 %v13637_v14  ;;  %v3179_v14 = vpack.c.bf16 %v3178_v12, %v3178_v12 }
 0x3d3   : > { %10413 = vmatpush3.bf16.msra.mxu0 %v11263_v50  ;;  %9936 = vmatprep.subr.bf16.mxu1 %v13645_v16  ;;  %v11269_v16 = vld [vmem:[#allocation54 + $0x38] sm:$0xff]  }
 0x3d4   : > { %10414 = vmatprep.subr.bf16.mxu0 %v12891_v0 }
 0x3d6   : > { %9937 = vmatpush3.bf16.msra.mxu1 %v13649_v18  ;;  %v11270_v18 = vld [vmem:[#allocation54 + $0x30] sm:$0xff]  }
 0x3d7   : > { %10415 = vmatpush3.bf16.msra.mxu0 %v11264_v5  ;;  %9938 = vmatprep.subr.bf16.mxu1 %v13657_v20  ;;  %v11271_v20 = vld [vmem:[#allocation54 + $0x28] sm:$0xff]  }
 0x3d8   : > { %10416 = vmatprep.subr.bf16.mxu0 %v12891_v0 }
 0x3da   : > { %9939 = vmatpush3.bf16.msra.mxu1 %v13661_v22  ;;  %v11272_v22 = vld [vmem:[#allocation54 + $0x20] sm:$0xff]  }
 0x3db   : > { %10417 = vmatpush3.bf16.msra.mxu0 %v11265_v7  ;;  %9940 = vmatprep.subr.bf16.mxu1 %v13669_v24  ;;  %v11273_v24 = vld [vmem:[#allocation54 + $0x18] sm:$0xff]  }
 0x3dc   : > { %10418 = vmatprep.subr.bf16.mxu0 %v12891_v0 }
 0x3de   : > { %9941 = vmatpush3.bf16.msra.mxu1 %v13673_v26  ;;  %v11274_v26 = vld [vmem:[#allocation54 + $0x10] sm:$0xff]  }
 0x3df   : > { %10419 = vmatpush3.bf16.msra.mxu0 %v11266_v9  ;;  %9942 = vmatprep.subr.bf16.mxu1 %v13681_v29  ;;  %v11276_v29 = vld [vmem:[#allocation54] sm:$0xff]  }
 0x3e0   : > { %10420 = vmatprep.subr.bf16.mxu0 %v12891_v0 }
 0x3e2   : > { %9943 = vmatpush3.bf16.msra.mxu1 %v13685_v31  ;;  %v11279_v31 = vld [vmem:[%s14615_s11 + $0xac] ss:$12 sps:$4 sm:$0xff]  }
 0x3e3   : > { %10421 = vmatpush3.bf16.msra.mxu0 %v11267_v11  ;;  %9944 = vmatprep.subr.bf16.mxu1 %v13691_v35  ;;  %v11281_v35 = vld [vmem:[%s14615_s11 + $0x90] ss:$12 sps:$4 sm:$0xff]  }
 0x3e4   : > { %10422 = vmatprep.subr.bf16.mxu0 %v12891_v0 }
 0x3e6   : > { %9945 = vmatpush3.bf16.msra.mxu1 %v13697_v37  ;;  %v11285_v37 = vld [vmem:[%s14615_s11 + $0x78] ss:$12 sps:$4 sm:$0xff]  }
 0x3e7   : > { %10423 = vmatpush3.bf16.msra.mxu0 %v11268_v13  ;;  %10428 = vmatprep.subr.bf16.mxu1 %v12891_v0 }
 0x3e8   : > { %3596 = vmatprep.subr.bf16.mxu0 %v11279_v31 }
 0x3e9   : > { %3253 = vmatmul.mubr.bf16.vlgmr.msra.gmra.mxu1 %v13707_v44 }
 0x3ea   : > { %10425 = vmatmul.mubr.bf16.vlgmr.msra.gmra.mxu0 %v3179_v14  ;;  %10444 = vmatprep.mubr.msk.bf16.mxu1 %vm12892_vm0, %v12891_v0 }
 0x3eb   : > { %10429 = vmatpush3.bf16.msra.mxu1 %v11269_v16  ;;  %3597 = vmatpush1.bf16.msra.mxu0 %v11277_v30  ;;  %v11280_v30 = vld [vmem:[%s14615_s11 + $0xb0] ss:$12 sps:$4 sm:$0xff]  }
 0x3ec   : > { %10430 = vmatprep.subr.bf16.mxu1 %v12891_v0  ;;  %3598 = vmatprep.subr.bf16.mxu0 %v11283_v33  ;;  %v11284_v33 = vld [vmem:[%s14615_s11 + $0x98] ss:$12 sps:$4 sm:$0xff]  }
 0x3ef   : > { %10431 = vmatpush3.bf16.msra.mxu1 %v11270_v18  ;;  %3599 = vmatpush1.bf16.msra.mxu0 %v11281_v35  ;;  %v11288_v35 = vld [vmem:[%s14615_s11 + $0x80] ss:$12 sps:$4 sm:$0xff]  }
 0x3f0   : > { %10432 = vmatprep.subr.bf16.mxu1 %v12891_v0  ;;  %3600 = vmatprep.subr.bf16.mxu0 %v11287_v36  ;;  %v11292_v36 = vld [vmem:[%s14615_s11 + $0x68] ss:$12 sps:$4 sm:$0xff]  }
 0x3f3   : > { %10433 = vmatpush3.bf16.msra.mxu1 %v11271_v20  ;;  %3601 = vmatpush1.bf16.msra.mxu0 %v11285_v37  ;;  %v9451_v20 = vld [vmem:[#allocation50] ss:$0 sm:$0xff]  ;;  %v11296_v37 = vld [vmem:[%s14615_s11 + $0x50] ss:$12 sps:$4 sm:$0xff]  }
 0x3f4   : > { %10434 = vmatprep.subr.bf16.mxu1 %v12891_v0  ;;  %3602 = vmatprep.subr.bf16.mxu0 %v11291_v51  ;;  %v11300_v51 = vld [vmem:[%s14615_s11 + $0x38] ss:$12 sps:$4 sm:$0xff]  }
 0x3f7   : > { %10435 = vmatpush3.bf16.msra.mxu1 %v11272_v22  ;;  %3603 = vmatpush1.bf16.msra.mxu0 %v11289_v52  ;;  %v11304_v52 = vld [vmem:[%s14615_s11 + $0x20] ss:$12 sps:$4 sm:$0xff]  }
 0x3f8   : > { %10436 = vmatprep.subr.bf16.mxu1 %v12891_v0  ;;  %3604 = vmatprep.subr.bf16.mxu0 %v11295_v53  ;;  %v11307_v53 = vld [vmem:[%s14615_s11 + $0x4] ss:$12 sps:$4 sm:$0xff]  }
 0x3fb   : > { %10437 = vmatpush3.bf16.msra.mxu1 %v11273_v24  ;;  %3605 = vmatpush1.bf16.msra.mxu0 %v11293_v54  ;;  %v11305_v54 = vld [vmem:[%s14615_s11] ss:$12 sps:$4 sm:$0xff]  }
 0x3fc   : > { %10438 = vmatprep.subr.bf16.mxu1 %v12891_v0  ;;  %3606 = vmatprep.subr.bf16.mxu0 %v11299_v55  ;;  %v11308_v55 = vld [vmem:[%s14615_s11 + $0x8] ss:$12 sps:$4 sm:$0xff]  }
 0x3ff   : > { %10439 = vmatpush3.bf16.msra.mxu1 %v11274_v26  ;;  %3607 = vmatpush1.bf16.msra.mxu0 %v11297_v56  ;;  %v12893_v56 = vmov 0  }
 0x400   : > { %10440 = vmatprep.subr.bf16.mxu1 %v12891_v0  ;;  %3608 = vmatprep.subr.bf16.mxu0 %v11303_v57  ;;  %v9452_v57 = vld [vmem:[#allocation53] ss:$0 sm:$0xff] }
 0x401   : > { %3628 = vmatprep.mubr.bf16.mxu0 %v12893_v56 }
 0x403   : > { %10441 = vmatpush3.bf16.msra.mxu1 %v11275_v28  ;;  %3609 = vmatpush1.bf16.msra.mxu0 %v11301_v58 }
 0x404   : > { %10442 = vmatprep.subr.bf16.mxu1 %v12891_v0  ;;  %3610 = vmatprep.subr.bf16.mxu0 %v11307_v53 }
 0x407   : > { %10443 = vmatpush3.bf16.msra.mxu1 %v11276_v29  ;;  %3611 = vmatpush1.bf16.msra.mxu0 %v11305_v54 }
 0x408   : > { %10448 = vmatprep.subr.bf16.mxu1 %v12891_v0  ;;  %10480 = vmatprep.subr.bf16.mxu0 %v12891_v0 }
 0x469   : > { %v9871_v59 = vpop.f32.mrf.mxu1 }
 0x46a   : > { %v9893_v60 = vpop.f32.mrf.mxu0 }
 0x46b   : > { %v9872_v62 = vpop.f32.mrf.mxu1 }
 0x46c   : > { %v9894_v63 = vpop.f32.mrf.mxu0  ;;  %v9873_v1 = vadd.f32 %v9872_v62, %v9871_v59 }
 0x46d   : > { %v9895_v2 = vadd.f32 %v9894_v63, %v9893_v60  ;;  %v9874_v3 = vpop.f32.mrf.mxu1 }
 0x46e   : > { %v9896_v4 = vpop.f32.mrf.mxu0  ;;  %v3073_v6 = vadd.f32 %v9873_v1, %v9409_v61  ;;  %v13813_v1 = vsub.s32 1, %v13598_v27  ;;  %v13817_v3 = vsub.s32 2, %v13598_v27 }
 0x46f   : > { %v9875_v8 = vpop.f32.mrf.mxu1 }
 0x470   : > { %v9897_v10 = vpop.f32.mrf.mxu0  ;;  %v3113_v38 = vadd.f32 %v9895_v2, %v3073_v6  ;;  %v3451_v2 = vld [vmem:[%s14616_s27] sm:$0x7]  ;;  %s14623_s27 = sld [smem:[#allocation131_spill]] }
 0x471   : > { %v3460_v4 = vrot.slane %v3451_v2, %v13813_v1  ;;  %v3456_v10 = vrot.slane %v3451_v2, %v13602_v32 }
 0x489   : > { %v3152_v39 = vpop.f32.mrf.mxu1 }
 0x48a   : > { %v9924_v40 = vpop.f32.mrf.mxu0  ;;  %v3153_v47 = vadd.f32 %v3152_v39, %v3113_v38 }
 0x48b   : > { %v10406_v41 = vpop.f32.mrf.mxu1 }
 0x48c   : > { %v9925_v42 = vpop.f32.mrf.mxu0  ;;  %v3159_v7 = vmul.f32 0.2, %v3153_v47  ;;  %vm3158_vm3 = vcmp.ge.f32.partialorder %v3153_v47, 0.0 }
 0x48d   : > { %v3155_v43 = vpop.f32.mrf.mxu1  ;;  %v9926_v48 = vadd.f32 %v9925_v42, %v9924_v40  ;;  %v3464_v40 = vrot.slane %v3451_v2, %v13817_v3  ;;  %v11309_v2 = vld [vmem:[#allocation59 + $0x8] sm:$0xff]  }
 0x48e   : > { %v9927_v44 = vpop.f32.mrf.mxu0  ;;  %v3160_v23 = vsel %vm3158_vm3, %v3153_v47, %v3159_v7 }
 0x48f   : > { %v10407_v45 = vpop.f32.mrf.mxu1  ;;  %v3215_v9 = vadd.f32 %v9926_v48, %v9409_v61  ;;  %v3168_v18 = vmul.f32 %v9450_v25, %v3160_v23 }
 0x490   : > { %v9928_v46 = vpop.f32.mrf.mxu0 }
 0x491   : > { %v3176_v26 = vadd.f32 %v9451_v20, %v3168_v18 }
 0x4a9   : > { %v9946_v49 = vpop.f32.mrf.mxu1 }
 0x4aa   : > { %v3294_v50 = vpop.f32.mrf.mxu0 }
 0x4ab   : > { %v9947_v5 = vpop.f32.mrf.mxu1 }
 0x4ac   : > { %v9948_v11 = vadd.f32 %v9947_v5, %v9946_v49  ;;  %v10426_v13 = vpop.f32.mrf.mxu0 }
 0x4ad   : > { %v9949_v15 = vpop.f32.mrf.mxu1 }
 0x4ae   : > { %v3255_v17 = vadd.f32 %v9948_v11, %v3215_v9  ;;  %v3297_v19 = vpop.f32.mrf.mxu0 }
 0x4af   : > { %v9950_v21 = vpop.f32.mrf.mxu1 }
 0x4b0   : > { %v3295_v12 = vadd.f32 %v3294_v50, %v3255_v17  ;;  %v10427_v14 = vpop.f32.mrf.mxu0 }
 0x4b2   : > { %vm3300_vm4 = vcmp.ge.f32.partialorder %v3295_v12, 0.0  ;;  %v3301_v16 = vmul.f32 0.2, %v3295_v12 }
 0x4b4   : > { %v3302_v22 = vsel %vm3300_vm4, %v3295_v12, %v3301_v16 }
 0x4b5   : > { %v3303_v24 = vmul.f32 %v9450_v25, %v3302_v22 }
 0x4b7   : > { %v3304_v28 = vadd.f32 %v9451_v20, %v3303_v24 }
 0x4b9   : > { %v3305_v29 = vmax.f32 %v3176_v26, %v3304_v28 }
 0x4bb   : > { %v3306_v31 = vpack.c.bf16 %v3305_v29, %v3305_v29 }
 0x4bd   : > { %10445 = vmatmul.mubr.bf16.vlgmr.msra.gmra.mxu1 %v3306_v31 }
 0x4be   : > { %10449 = vmatpush3.bf16.msra.mxu1 %v11280_v30  ;;  %10464 = vmatprep.mubr.msk.bf16.mxu1 %vm12892_vm0, %v12891_v0 }
 0x4bf   : > { %10450 = vmatprep.subr.bf16.mxu1 %v12891_v0 }
 0x4c2   : > { %10451 = vmatpush3.bf16.msra.mxu1 %v11284_v33 }
 0x4c3   : > { %10452 = vmatprep.subr.bf16.mxu1 %v12891_v0 }
 0x4c6   : > { %10453 = vmatpush3.bf16.msra.mxu1 %v11288_v35 }
 0x4c7   : > { %10454 = vmatprep.subr.bf16.mxu1 %v12891_v0 }
 0x4ca   : > { %10455 = vmatpush3.bf16.msra.mxu1 %v11292_v36 }
 0x4cb   : > { %10456 = vmatprep.subr.bf16.mxu1 %v12891_v0 }
 0x4ce   : > { %10457 = vmatpush3.bf16.msra.mxu1 %v11296_v37 }
 0x4cf   : > { %10458 = vmatprep.subr.bf16.mxu1 %v12891_v0 }
 0x4d2   : > { %10459 = vmatpush3.bf16.msra.mxu1 %v11300_v51 }
 0x4d3   : > { %10460 = vmatprep.subr.bf16.mxu1 %v12891_v0 }
 0x4d6   : > { %10461 = vmatpush3.bf16.msra.mxu1 %v11304_v52 }
 0x4d7   : > { %10462 = vmatprep.subr.bf16.mxu1 %v12891_v0 }
 0x4da   : > { %10463 = vmatpush3.bf16.msra.mxu1 %v11308_v55  ;;  %v11311_v55 = vld [vmem:[#allocation59 + $0x18] sm:$0xff]  }
 0x4db   : > { %10468 = vmatprep.subr.bf16.mxu1 %v12891_v0 }
 0x57d   : > { %v3412_v58 = vpop.f32.mrf.mxu1 }
 0x57e   : > { %v13804_v59 = vadd.f32 %v9452_v57, %v3412_v58  ;;  %v11312_v57 = vld [vmem:[#allocation59 + $0x10] sm:$0xff]  }
 0x57f   : > { %v10446_v60 = vpop.f32.mrf.mxu1 }
 0x580   : > { %v3418_v61 = vpack.c.bf16 %v13804_v59, %v13804_v59 }
 0x581   : > { %v3415_v62 = vpop.f32.mrf.mxu1 }
 0x582   : > { %3629 = vmatmul.mubr.bf16.vlgmr.msra.gmra.mxu0 %v3418_v61  ;;  %10465 = vmatmul.mubr.bf16.vlgmr.msra.gmra.mxu1 %v3418_v61 }
 0x583   : > { %v10447_v63 = vpop.f32.mrf.mxu1  ;;  %10470 = vmatprep.mubr.msk.bf16.mxu1 %vm12892_vm0, %v12891_v0  ;;  %10482 = vmatprep.mubr.msk.bf16.mxu0 %vm12892_vm0, %v12891_v0 }
 0x642   : > { %v3630_v6 = vpop.f32.mrf.mxu0  ;;  %v3671_v8 = vpop.f32.mrf.mxu1 }
 0x643   : > { %v3631_v44 = vadd.f32 %v3630_v6, %v3456_v10  ;;  %v3672_v48 = vadd.f32 %v3671_v8, %v3464_v40  ;;  %v11310_v6 = vld [vmem:[#allocation59] sm:$0xff]  }
 0x644   : > { %v3632_v38 = vpop.f32.mrf.mxu0  ;;  %v10466_v39 = vpop.f32.mrf.mxu1 }
 0x645   : > { %v3633_v41 = vadd.f32 %v3632_v38, %v3460_v4  ;;  %v13828_v50 = vpack.c.bf16 %v3631_v44, %v3631_v44  ;;  %v13831_v5 = vpack.c.bf16 %v3672_v48, %v3672_v48 }
 0x646   : > { %v3634_v42 = vpop.f32.mrf.mxu0  ;;  %v3674_v43 = vpop.f32.mrf.mxu1 }
 0x647   : > { %v13822_v45 = vpack.c.bf16 %v3633_v41, %v3633_v41  ;;  %v3746_v7 = vsel %vm3744_vm6, %v13831_v5, 0 }
 0x648   : > { %v3635_v46 = vpop.f32.mrf.mxu0  ;;  %v10467_v47 = vpop.f32.mrf.mxu1 }
 0x649   : > { %3797 = vrot.lane.b32.xlu0 %v13822_v45, %s12894_s15  ;;  %v3685_v49 = vsel %vm3680_vm5, %v13822_v45, 0 }
 0x64a   : > { %10469 = vmatpush3.bf16.xpose.msra.mxu1 %v3685_v49 }
 0x64b   : > { %10474 = vmatprep.subr.bf16.mxu1 %v12891_v0 }
 0x64d   : > { %3794 = vrot.lane.b32.xlu0 %v13828_v50, %s12894_s15 }
 0x651   : > { %10471 = vmatmul.mubr.msk.bf16.vlgmr.msra.gmra.mxu1 %vm3680_vm5, %v13828_v50 }
 0x652   : > { %10475 = vmatpush3.bf16.msra.mxu1 %v3746_v7  ;;  %10476 = vmatprep.mubr.msk.bf16.mxu1 %vm12892_vm0, %v12891_v0 }
 0x653   : > { %10486 = vmatprep.subr.bf16.mxu1 %v12891_v0 }
 0x6bb   : > { %v3798_v9 = vpop.permute.xlu0 %3797 }
 0x6bc   : > { %v3803_v11 = vsel %vm3680_vm5, %v3798_v9, 0 }
 0x6bd   : > { %10481 = vmatpush3.bf16.xpose.msra.mxu0 %v3803_v11 }
 0x6be   : > { %10492 = vmatprep.subr.bf16.mxu0 %v12891_v0 }
 0x6bf   : > { %v3795_v13 = vpop.permute.xlu0 %3794 }
 0x6c4   : > { %10483 = vmatmul.mubr.msk.bf16.vlgmr.msra.gmra.mxu0 %vm3680_vm5, %v3795_v13 }
 0x6c5   : > { %10496 = vmatprep.mubr.msk.bf16.mxu0 %vm12892_vm0, %v12891_v0  ;;  %10493 = vmatpush3.bf16.msra.mxu0 %v11311_v55 }
 0x6c6   : > { %10494 = vmatprep.subr.bf16.mxu0 %v12891_v0 }
 0x6c9   : > { %10495 = vmatpush3.bf16.msra.mxu0 %v11312_v57 }
 0x6ca   : > { %10508 = vmatprep.subr.bf16.mxu0 %v12891_v0 }
 0x711   : > { %v3721_v15 = vpop.f32.mrf.mxu1 }
 0x712   : > { %v3727_v17 = vmul.f32 0.17677669, %v3721_v15 }
 0x713   : > { %v10472_v19 = vpop.f32.mrf.mxu1 }
 0x714   : > { %v3729_v21 = vsel %vm3728_vm7, %v3727_v17, -inf }
 0x715   : > { %3730 = vmax.xlane.f32.xlu1 %v3729_v21  ;;  %v3724_v23 = vpop.f32.mrf.mxu1 }
 0x717   : > { %v10473_v25 = vpop.f32.mrf.mxu1 }
 0x784   : > { %v3839_v12 = vpop.f32.mrf.mxu0 }
 0x785   : > { %v3845_v14 = vmul.f32 0.17677669, %v3839_v12 }
 0x786   : > { %v10484_v16 = vpop.f32.mrf.mxu0 }
 0x787   : > { %v3846_v18 = vsel %vm3728_vm7, %v3845_v14, -inf }
 0x788   : > { %v3842_v20 = vpop.f32.mrf.mxu0  ;;  %3847 = vmax.xlane.f32.xlu1 %v3846_v18 }
 0x78a   : > { %v10485_v22 = vpop.f32.mrf.mxu0 }
 0x79e   : > { %v3731_v24 = vpop.xlane.xlu1 %3730 }
 0x79f   : > { %v3732_v26 = vsub.f32 %v3727_v17, %v3731_v24 }
 0x7a1   : > { %v3733_v28 = vmul.f32 1.442695, %v3732_v26 }
 0x7a3   : > { %11581 = vpow2.f32 %v3733_v28 }
 0x7b0   : > { %v11582_v29 = vpop.eup %11581 }
 0x7b1   : > { %v3735_v30 = vsel %vm3728_vm7, %v11582_v29, 0.0 }
 0x7b2   : > { %3736 = vadd.xlane.f32.xlu0 %v3735_v30 }
 0x7c8   : > { %4085 = vrot.lane.b32.xlu0 %v13831_v5, %s12895_s3 }
 0x811   : > { %v3848_v31 = vpop.xlane.xlu1 %3847 }
 0x812   : > { %v3849_v33 = vsub.f32 %v3845_v14, %v3848_v31  ;;  %v11313_v31 = vld [vmem:[#allocation59 + $0x28] sm:$0xff]  }
 0x814   : > { %v3850_v35 = vmul.f32 1.442695, %v3849_v33 }
 0x816   : > { %11583 = vpow2.f32 %v3850_v35 }
 0x823   : > { %v11584_v36 = vpop.eup %11583 }
 0x824   : > { %v3852_v37 = vsel %vm3728_vm7, %v11584_v36, 0.0 }
 0x825   : > { %3853 = vadd.xlane.f32.xlu1 %v3852_v37 }
 0x836   : > { %3859 = vrot.lane.b32.xlu1 %v13831_v5, %s12894_s15 }
 0x83a   : > { %4024 = vrot.lane.b32.xlu1 %v13822_v45, %s12895_s3 }
 0x83b   : > { %v3737_v51 = vpop.xlane.xlu0 %3736 }
 0x83c   : > { %11585 = vrcp.f32 %v3737_v51 }
 0x83e   : > { %4022 = vrot.lane.b32.xlu1 %v13828_v50, %s12895_s3 }
 0x83f   : > { %v4086_v8 = vpop.permute.xlu0 %4085 }
 0x840   : > { %v4091_v40 = vsel %vm3744_vm6, %v4086_v8, 0 }
 0x849   : > { %v11586_v52 = vpop.eup %11585 }
 0x84a   : > { %v3739_v53 = vmul.f32 %v11586_v52, %v11582_v29 }
 0x84c   : > { %v3740_v54 = vpack.c.bf16 %v3739_v53, %v3739_v53 }
 0x84e   : > { %10477 = vmatmul.mubr.msk.bf16.vlgmr.msra.gmra.mxu1 %vm3728_vm7, %v3740_v54 }
 0x84f   : > { %10488 = vmatprep.mubr.msk.bf16.mxu1 %vm12892_vm0, %v12891_v0 }
 0x8ae   : > { %v3854_v58 = vpop.xlane.xlu1 %3853 }
 0x8af   : > { %11587 = vrcp.f32 %v3854_v58 }
 0x8b2   : > { %v3860_v60 = vpop.permute.xlu1 %3859 }
 0x8b3   : > { %v3865_v61 = vsel %vm3744_vm6, %v3860_v60, 0 }
 0x8b4   : > { %10487 = vmatpush3.bf16.msra.mxu1 %v3865_v61 }
 0x8b5   : > { %10500 = vmatprep.subr.bf16.mxu1 %v12891_v0 }
 0x8b6   : > { %v4025_v43 = vpop.permute.xlu1 %4024 }
 0x8b7   : > { %v4030_v48 = vsel %vm3680_vm5, %v4025_v43, 0 }
 0x8ba   : > { %v4023_v9 = vpop.permute.xlu1 %4022 }
 0x8bc   : > { %v11588_v62 = vpop.eup %11587 }
 0x8bd   : > { %v3856_v63 = vmul.f32 %v11588_v62, %v11584_v36 }
 0x8bf   : > { %v3857_v4 = vpack.c.bf16 %v3856_v63, %v3856_v63 }
 0x8c1   : > { %10489 = vmatmul.mubr.msk.bf16.vlgmr.msra.gmra.mxu1 %vm3728_vm7, %v3857_v4 }
 0x8c2   : > { %10501 = vmatpush3.bf16.msra.mxu1 %v11309_v2  ;;  %10504 = vmatprep.mubr.msk.bf16.mxu1 %vm12892_vm0, %v12891_v0 }
 0x8c3   : > { %10502 = vmatprep.subr.bf16.mxu1 %v12891_v0 }
 0x8c6   : > { %10503 = vmatpush3.bf16.msra.mxu1 %v11310_v6 }
 0x8c7   : > { %10514 = vmatprep.subr.bf16.mxu1 %v12891_v0 }
 0x90e   : > { %v3782_v10 = vpop.f32.mrf.mxu1 }
 0x90f   : > { %v3788_v38 = vpack.c.bf16 %v3782_v10, %v3782_v10 }
 0x910   : > { %v10478_v39 = vpop.f32.mrf.mxu1 }
 0x911   : > { %10505 = vmatmul.mubr.msk.bf16.vlgmr.msra.gmra.mxu1 %vm3680_vm5, %v3788_v38 }
 0x912   : > { %10515 = vmatpush3.bf16.msra.mxu1 %v4091_v40  ;;  %v3785_v41 = vpop.f32.mrf.mxu1  ;;  %10516 = vmatprep.mubr.msk.bf16.mxu1 %vm12892_vm0, %v12891_v0 }
 0x913   : > { %10528 = vmatprep.subr.bf16.mxu1 %v12891_v0 }
 0x914   : > { %v10479_v42 = vpop.f32.mrf.mxu1 }
 0x981   : > { %v3901_v44 = vpop.f32.mrf.mxu1 }
 0x982   : > { %v3907_v46 = vpack.c.bf16 %v3901_v44, %v3901_v44  ;;  %v11315_v44 = vld [vmem:[#allocation59 + $0x38] sm:$0xff]  }
 0x983   : > { %v10490_v47 = vpop.f32.mrf.mxu1 }
 0x984   : > { %10497 = vmatmul.mubr.msk.bf16.vlgmr.msra.gmra.mxu0 %vm3680_vm5, %v3907_v46 }
 0x985   : > { %10509 = vmatpush3.bf16.xpose.msra.mxu0 %v4030_v48  ;;  %v3904_v49 = vpop.f32.mrf.mxu1  ;;  %10510 = vmatprep.mubr.msk.bf16.mxu0 %vm12892_vm0, %v12891_v0 }
 0x986   : > { %10520 = vmatprep.subr.bf16.mxu0 %v12891_v0 }
 0x987   : > { %v10491_v7 = vpop.f32.mrf.mxu1 }
 0x98c   : > { %10511 = vmatmul.mubr.msk.bf16.vlgmr.msra.gmra.mxu0 %vm3680_vm5, %v4023_v9 }
 0x98d   : > { %10524 = vmatprep.mubr.msk.bf16.mxu0 %vm12892_vm0, %v12891_v0  ;;  %10521 = vmatpush3.bf16.msra.mxu0 %v11313_v31 }
 0x98e   : > { %10522 = vmatprep.subr.bf16.mxu0 %v12891_v0 }
 0x9d1   : > { %v13884_v11 = vpop.f32.mrf.mxu1 }
 0x9d3   : > { %v10506_v13 = vpop.f32.mrf.mxu1 }
 0x9d5   : > { %v4019_v15 = vpop.f32.mrf.mxu1 }
 0x9d7   : > { %v10507_v17 = vpop.f32.mrf.mxu1 }
 0xa44   : > { %v13886_v19 = vpop.f32.mrf.mxu0 }
 0xa45   : > { %v4017_v40 = vadd.f32 %v13884_v11, %v13886_v19  ;;  %v11316_v11 = vld [vmem:[#allocation59 + $0x30] sm:$0xff]  }
 0xa46   : > { %v10498_v21 = vpop.f32.mrf.mxu0 }
 0xa48   : > { %v3964_v23 = vpop.f32.mrf.mxu0 }
 0xa4a   : > { %v10499_v25 = vpop.f32.mrf.mxu0 }
 0xa4c   : > { %v4066_v12 = vpop.f32.mrf.mxu0 }
 0xa4d   : > { %v4072_v14 = vmul.f32 0.17677669, %v4066_v12  ;;  %v9505_v12 = vld [vmem:[#allocation57] ss:$0 sm:$0xff] }
 0xa4e   : > { %v10512_v16 = vpop.f32.mrf.mxu0 }
 0xa4f   : > { %v4073_v18 = vsel %vm3728_vm7, %v4072_v14, -inf }
 0xa50   : > { %4074 = vmax.xlane.f32.xlu1 %v4073_v18  ;;  %v4069_v20 = vpop.f32.mrf.mxu0 }
 0xa52   : > { %v10513_v22 = vpop.f32.mrf.mxu0 }
 0xad9   : > { %v4075_v24 = vpop.xlane.xlu1 %4074 }
 0xada   : > { %v4076_v26 = vsub.f32 %v4072_v14, %v4075_v24 }
 0xadc   : > { %v4077_v28 = vmul.f32 1.442695, %v4076_v26  ;;  %v11317_v26 = vld [vmem:[#allocation60 + $0x70] ss:$8 sps:$4 sm:$0xff]  }
 0xade   : > { %11589 = vpow2.f32 %v4077_v28  ;;  %v11319_v28 = vld [vmem:[#allocation60 + $0x74] ss:$8 sps:$4 sm:$0xff]  }
 0xaeb   : > { %v11590_v29 = vpop.eup %11589 }
 0xaec   : > { %v4079_v30 = vsel %vm3728_vm7, %v11590_v29, 0.0 }
 0xaed   : > { %4080 = vadd.xlane.f32.xlu0 %v4079_v30  ;;  %v11320_v30 = vld [vmem:[#allocation60 + $0x60] ss:$8 sps:$4 sm:$0xff]  }
 0xb03   : > { %4196 = vrot.lane.b32.xlu0 %v13822_v45, %s12896_s5 }
 0xb07   : > { %4194 = vrot.lane.b32.xlu0 %v13828_v50, %s12896_s5  ;;  %v11314_v50 = vld [vmem:[#allocation59 + $0x20] sm:$0xff]  }
 0xb08   : > { %10523 = vmatpush3.bf16.msra.mxu0 %v11314_v50  ;;  %v11329_v50 = vld [vmem:[#allocation60 + $0x30] ss:$8 sps:$4 sm:$0xff]  }
 0xb09   : > { %10534 = vmatprep.subr.bf16.mxu0 %v12891_v0 }
 0xb76   : > { %v4081_v33 = vpop.xlane.xlu0 %4080 }
 0xb77   : > { %11591 = vrcp.f32 %v4081_v33 }
 0xb7a   : > { %v4197_v37 = vpop.permute.xlu0 %4196 }
 0xb7b   : > { %v4202_v52 = vsel %vm3680_vm5, %v4197_v37, 0  ;;  %v11325_v37 = vld [vmem:[#allocation60 + $0x54] ss:$8 sps:$4 sm:$0xff]  }
 0xb7e   : > { %v4195_v45 = vpop.permute.xlu0 %4194 }
 0xb84   : > { %v11592_v35 = vpop.eup %11591 }
 0xb85   : > { %v4083_v36 = vmul.f32 %v11592_v35, %v11590_v29  ;;  %v11322_v29 = vld [vmem:[#allocation60 + $0x64] ss:$8 sps:$4 sm:$0xff]  }
 0xb87   : > { %v4084_v51 = vpack.c.bf16 %v4083_v36, %v4083_v36 }
 0xb89   : > { %10517 = vmatmul.mubr.msk.bf16.vlgmr.msra.gmra.mxu1 %vm3728_vm7, %v4084_v51  ;;  %v11323_v51 = vld [vmem:[#allocation60 + $0x50] ss:$8 sps:$4 sm:$0xff]  }
 0xb8a   : > { %10529 = vmatpush3.bf16.xpose.msra.mxu1 %v4202_v52  ;;  %10530 = vmatprep.mubr.msk.bf16.mxu1 %vm12892_vm0, %v12891_v0  ;;  %v11328_v52 = vld [vmem:[#allocation60 + $0x44] ss:$8 sps:$4 sm:$0xff]  }
 0xb8b   : > { %10540 = vmatprep.subr.bf16.mxu1 %v12891_v0 }
 0xb91   : > { %10531 = vmatmul.mubr.msk.bf16.vlgmr.msra.gmra.mxu1 %vm3680_vm5, %v4195_v45  ;;  %v11331_v45 = vld [vmem:[#allocation60 + $0x34] ss:$8 sps:$4 sm:$0xff]  }
 0xb92   : > { %10544 = vmatprep.mubr.msk.bf16.mxu1 %vm12892_vm0, %v12891_v0  ;;  %10541 = vmatpush3.bf16.msra.mxu1 %v11315_v44  ;;  %v11345_v44 = vld [vmem:[#allocation62 + $0x68] sm:$0xff]  }
 0xb93   : > { %10542 = vmatprep.subr.bf16.mxu1 %v12891_v0 }
 0xb96   : > { %10543 = vmatpush3.bf16.msra.mxu1 %v11316_v11  ;;  %v11354_v11 = vld [vmem:[#allocation62 + $0x8] sm:$0xff]  }
 0xc49   : > { %v4127_v53 = vpop.f32.mrf.mxu1 }
 0xc4a   : > { %v4133_v54 = vpack.c.bf16 %v4127_v53, %v4127_v53  ;;  %v11334_v53 = vld [vmem:[#allocation60 + $0x24] ss:$8 sps:$4 sm:$0xff]  }
 0xc4b   : > { %v10518_v55 = vpop.f32.mrf.mxu1 }
 0xc4c   : > { %10525 = vmatmul.mubr.msk.bf16.vlgmr.msra.gmra.mxu0 %vm3680_vm5, %v4133_v54  ;;  %v11332_v54 = vld [vmem:[#allocation60 + $0x20] ss:$8 sps:$4 sm:$0xff]   ;;  %v11337_v55 = vld [vmem:[#allocation60 + $0x14] ss:$8 sps:$4 sm:$0xff]  }
 0xc4d   : > { %v4130_v57 = vpop.f32.mrf.mxu1  ;;  %10536 = vmatprep.mubr.msk.bf16.mxu0 %vm12892_vm0, %v12891_v0 }
 0xc4e   : > { %v11335_v57 = vld [vmem:[#allocation60 + $0x10] ss:$8 sps:$4 sm:$0xff]  }
 0xc4f   : > { %v10519_v58 = vpop.f32.mrf.mxu1 }
 0xc50   : > { %v11340_v58 = vld [vmem:[#allocation60 + $0x4] ss:$8 sps:$4 sm:$0xff]  }
 0xc51   : > { %v4238_v60 = vpop.f32.mrf.mxu1 }
 0xc52   : > { %v4244_v61 = vmul.f32 0.17677669, %v4238_v60  ;;  %v11338_v60 = vld [vmem:[#allocation60] ss:$8 sps:$4 sm:$0xff]  }
 0xc53   : > { %v10532_v62 = vpop.f32.mrf.mxu1 }
 0xc54   : > { %v4245_v63 = vsel %vm3728_vm7, %v4244_v61, -inf }
 0xc55   : > { %4246 = vmax.xlane.f32.xlu0 %v4245_v63  ;;  %v4241_v2 = vpop.f32.mrf.mxu1 }
 0xc57   : > { %v10533_v4 = vpop.f32.mrf.mxu1 }
 0xc58   : > { %v9506_v4 = vld [vmem:[%s14617_s13] ss:$0 sm:$0xff]  ;;  %s2155_s13 = scalar_lea.vmem [#allocation67], %s13512_s0 }
 0xcde   : > { %v4247_v6 = vpop.xlane.xlu0 %4246 }
 0xcdf   : > { %v4248_v8 = vsub.f32 %v4244_v61, %v4247_v6 }
 0xce1   : > { %v4249_v10 = vmul.f32 1.442695, %v4248_v8  ;;  %v9507_v8 = vld [vmem:[%s14618_s18] ss:$0 sm:$0xff]  ;;  %s2162_s18 = scalar_lea.vmem [#allocation69], %s13512_s0 }
 0xce3   : > { %11593 = vpow2.f32 %v4249_v10 }
 0xcf0   : > { %v11594_v38 = vpop.eup %11593 }
 0xcf1   : > { %v4251_v39 = vsel %vm3728_vm7, %v11594_v38, 0.0 }
 0xcf2   : > { %4252 = vadd.xlane.f32.xlu1 %v4251_v39 }
 0xd03   : > { %4257 = vrot.lane.b32.xlu1 %v13831_v5, %s12896_s5 }
 0xd0c   : > { %v4187_v41 = vpop.f32.mrf.mxu0 }
 0xd0d   : > { %v4193_v42 = vadd.f32 %v4187_v41, %v4017_v40  ;;  %v11341_v40 = vld [vmem:[#allocation62 + $0x78] sm:$0xff]  }
 0xd0e   : > { %v10526_v43 = vpop.f32.mrf.mxu0  ;;  %v11342_v41 = vld [vmem:[#allocation62 + $0x38] sm:$0xff]   ;;  %10007 = vmatprep.subr.bf16.mxu1 %v11341_v40  ;;  %v11360_v40 = vld [vmem:[#allocation63 + $0x30] sm:$0xff]  }
 0xd0f   : > { %v11344_v43 = vld [vmem:[#allocation62 + $0x30] sm:$0xff]  }
 0xd10   : > { %v4190_v46 = vpop.f32.mrf.mxu0 }
 0xd11   : > { %v11346_v46 = vld [vmem:[#allocation62 + $0x28] sm:$0xff]  }
 0xd12   : > { %v10527_v47 = vpop.f32.mrf.mxu0 }
 0xd13   : > { %v11347_v47 = vld [vmem:[#allocation62 + $0x60] sm:$0xff]  }
 0xd7b   : > { %v4253_v48 = vpop.xlane.xlu1 %4252 }
 0xd7c   : > { %11595 = vrcp.f32 %v4253_v48  ;;  %v11348_v48 = vld [vmem:[#allocation62 + $0x20] sm:$0xff]  }
 0xd7f   : > { %v4258_v49 = vpop.permute.xlu1 %4257 }
 0xd80   : > { %v4263_v7 = vsel %vm3744_vm6, %v4258_v49, 0  ;;  %v11349_v49 = vld [vmem:[#allocation62 + $0x58] sm:$0xff]  }
 0xd81   : > { %10535 = vmatpush3.bf16.msra.mxu0 %v4263_v7  ;;  %v11350_v7 = vld [vmem:[#allocation62 + $0x18] sm:$0xff]  }
 0xd82   : > { %4512 = vmatprep.subr.bf16.mxu0 %v11319_v28 }
 0xd89   : > { %v11596_v9 = vpop.eup %11595 }
 0xd8a   : > { %v4255_v5 = vmul.f32 %v11596_v9, %v11594_v38  ;;  %v11351_v9 = vld [vmem:[#allocation62 + $0x50] sm:$0xff]  }
 0xd8c   : > { %v4256_v13 = vpack.c.bf16 %v4255_v5, %v4255_v5  ;;  %v11352_v5 = vld [vmem:[#allocation62 + $0x10] sm:$0xff]  }
 0xd8e   : > { %10537 = vmatmul.mubr.msk.bf16.vlgmr.msra.gmra.mxu0 %vm3728_vm7, %v4256_v13  ;;  %v11353_v13 = vld [vmem:[#allocation62 + $0x48] sm:$0xff]  }
 0xd8f   : > { %4544 = vmatprep.mubr.bf16.mxu0 %v12893_v56  ;;  %4513 = vmatpush1.bf16.msra.mxu0 %v11317_v26 }
 0xd90   : > { %4514 = vmatprep.subr.bf16.mxu0 %v11322_v29 }
 0xd93   : > { %4515 = vmatpush1.bf16.msra.mxu0 %v11320_v30 }
 0xd94   : > { %4516 = vmatprep.subr.bf16.mxu0 %v11325_v37 }
 0xd97   : > { %4517 = vmatpush1.bf16.msra.mxu0 %v11323_v51 }
 0xd98   : > { %4518 = vmatprep.subr.bf16.mxu0 %v11328_v52 }
 0xe4e   : > { %v4299_v15 = vpop.f32.mrf.mxu0 }
 0xe4f   : > { %v4305_v17 = vpack.c.bf16 %v4299_v15, %v4299_v15  ;;  %v11355_v15 = vld [vmem:[#allocation62 + $0x40] sm:$0xff]  }
 0xe50   : > { %v10538_v19 = vpop.f32.mrf.mxu0 }
 0xe51   : > { %10545 = vmatmul.mubr.msk.bf16.vlgmr.msra.gmra.mxu1 %vm3680_vm5, %v4305_v17  ;;  %v11356_v17 = vld [vmem:[#allocation62] sm:$0xff]   ;;  %v4420_v19 = vld [vmem:[%s14619_s16] sm:$0x3]  ;;  %s14628_s16 = sld [smem:[#allocation105_spill]] }
 0xe52   : > { %v4302_v21 = vpop.f32.mrf.mxu0  ;;  %10008 = vmatpush3.bf16.msra.mxu1 %v11342_v41 }
 0xe53   : > { %v4425_v21 = vrot.slane %v4420_v19, %v13602_v32 }
 0xe54   : > { %v10539_v23 = vpop.f32.mrf.mxu0 }
 0xe55   : > { %v4429_v23 = vrot.slane %v4420_v19, %v13813_v1 }
 0xf11   : > { %v4359_v25 = vpop.f32.mrf.mxu1 }
 0xf12   : > { %v4365_v14 = vadd.f32 %v4359_v25, %v4193_v42  ;;  %v11343_v42 = vld [vmem:[#allocation62 + $0x70] sm:$0xff]  }
 0xf13   : > { %v10546_v16 = vpop.f32.mrf.mxu1  ;;  %10009 = vmatprep.subr.bf16.mxu1 %v11343_v42 }
 0xf14   : > { %v4373_v18 = vadd.f32 %v9505_v12, %v4365_v14  ;;  %10010 = vmatpush3.bf16.msra.mxu1 %v11344_v43 }
 0xf15   : > { %v4362_v20 = vpop.f32.mrf.mxu1  ;;  %10011 = vmatprep.subr.bf16.mxu1 %v11345_v44  ;;  %v11361_v44 = vld [vmem:[#allocation65 + $0x28] sm:$0xff]  }
 0xf16   : > { %v4374_v22 = vadd.f32 %v4373_v18, %v13804_v59  ;;  %v11326_v59 = vld [vmem:[#allocation60 + $0x40] ss:$8 sps:$4 sm:$0xff]  }
 0xf17   : > { %v10547_v24 = vpop.f32.mrf.mxu1  ;;  %4519 = vmatpush1.bf16.msra.mxu0 %v11326_v59 }
 0xf18   : > { %4377 = vadd.xlane.f32.xlu1 %v4374_v22  ;;  %4520 = vmatprep.subr.bf16.mxu0 %v11331_v45 }
 0xf19   : > { %10012 = vmatpush3.bf16.msra.mxu1 %v11346_v46  ;;  %v11362_v46 = vld [vmem:[#allocation63 + $0x28] sm:$0xff]  }
 0xf1a   : > { %10013 = vmatprep.subr.bf16.mxu1 %v11347_v47  ;;  %v11363_v47 = vld [vmem:[#allocation65 + $0x20] sm:$0xff]  }
 0xf1b   : > { %4521 = vmatpush1.bf16.msra.mxu0 %v11329_v50 }
 0xf1c   : > { %4522 = vmatprep.subr.bf16.mxu0 %v11334_v53 }
 0xf1d   : > { %10014 = vmatpush3.bf16.msra.mxu1 %v11348_v48  ;;  %v11364_v48 = vld [vmem:[#allocation63 + $0x20] sm:$0xff]  }
 0xf1e   : > { %10015 = vmatprep.subr.bf16.mxu1 %v11349_v49  ;;  %v11365_v49 = vld [vmem:[#allocation65 + $0x18] sm:$0xff]  }
 0xf1f   : > { %4523 = vmatpush1.bf16.msra.mxu0 %v11332_v54 }
 0xf20   : > { %4524 = vmatprep.subr.bf16.mxu0 %v11337_v55 }
 0xf21   : > { %10016 = vmatpush3.bf16.msra.mxu1 %v11350_v7  ;;  %v11366_v7 = vld [vmem:[#allocation63 + $0x18] sm:$0xff]  }
 0xf22   : > { %10017 = vmatprep.subr.bf16.mxu1 %v11351_v9  ;;  %v11367_v9 = vld [vmem:[#allocation65 + $0x10] sm:$0xff]  }
 0xf23   : > { %4525 = vmatpush1.bf16.msra.mxu0 %v11335_v57 }
 0xf24   : > { %4526 = vmatprep.subr.bf16.mxu0 %v11340_v58 }
 0xf25   : > { %10018 = vmatpush3.bf16.msra.mxu1 %v11352_v5  ;;  %v11368_v5 = vld [vmem:[#allocation63 + $0x10] sm:$0xff]  }
 0xf26   : > { %10019 = vmatprep.subr.bf16.mxu1 %v11353_v13  ;;  %v11369_v13 = vld [vmem:[#allocation65 + $0x8] sm:$0xff]  }
 0xf27   : > { %4527 = vmatpush1.bf16.msra.mxu0 %v11338_v60  ;;  %v9524_v60 = vld [vmem:[#allocation56] ss:$0 sm:$0xff] }
 0xf28   : > { %10548 = vmatprep.subr.bf16.mxu0 %v12891_v0 }
 0xf29   : > { %10020 = vmatpush3.bf16.msra.mxu1 %v11354_v11  ;;  %v11370_v11 = vld [vmem:[#allocation63 + $0x8] sm:$0xff]  }
 0xf2a   : > { %10021 = vmatprep.subr.bf16.mxu1 %v11355_v15  ;;  %v11371_v15 = vld [vmem:[#allocation65] sm:$0xff]  }
 0xf2d   : > { %10022 = vmatpush3.bf16.msra.mxu1 %v11356_v17  ;;  %v11372_v17 = vld [vmem:[#allocation63] sm:$0xff]  }
 0xf2e   : > { %10568 = vmatprep.subr.bf16.mxu1 %v12891_v0 }
 0xfa1   : > { %v4378_v31 = vpop.xlane.xlu1 %4377 }
 0xfa2   : > { %v4380_v33 = vmul.f32 0.0078125, %v4378_v31 }
 0xfa4   : > { %v4381_v35 = vsub.f32 %v4374_v22, %v4380_v33 }
 0xfa6   : > { %v4382_v36 = vmul.f32 %v4381_v35, %v4381_v35 }
 0xfa8   : > { %4383 = vadd.xlane.f32.xlu0 %v4382_v36 }
0x1031   : > { %v4384_v61 = vpop.xlane.xlu0 %4383 }
0x1032   : > { %v4385_v62 = vmul.f32 0.0078125, %v4384_v61 }
0x1034   : > { %v4386_v63 = vadd.f32 1e-05, %v4385_v62 }
0x1036   : > { %11597 = vrsqrt.f32 %v4386_v63 }
0x1043   : > { %v11598_v2 = vpop.eup %11597 }
0x1044   : > { %v4388_v6 = vmul.f32 %v11598_v2, %v4381_v35 }
0x1046   : > { %v4395_v10 = vmul.f32 %v9506_v4, %v4388_v6 }
0x1048   : > { %v13922_v38 = vadd.f32 %v9507_v8, %v4395_v10  ;;  %v11357_v8 = vld [vmem:[#allocation65 + $0x38] sm:$0xff]  }
0x1049   : > { %v11358_v10 = vld [vmem:[#allocation63 + $0x38] sm:$0xff]  }
0x104a   : > { %v4403_v39 = vpack.c.bf16 %v13922_v38, %v13922_v38 }
0x104c   : > { %4545 = vmatmul.mubr.bf16.vlgmr.msra.gmra.mxu0 %v4403_v39  ;;  %v11359_v39 = vld [vmem:[#allocation65 + $0x30] sm:$0xff]  }
0x104d   : > { %10564 = vmatprep.mubr.msk.bf16.mxu0 %vm12892_vm0, %v12891_v0  ;;  %10549 = vmatpush3.bf16.msra.mxu0 %v11357_v8 }
0x104e   : > { %10550 = vmatprep.subr.bf16.mxu0 %v12891_v0 }
0x1051   : > { %10551 = vmatpush3.bf16.msra.mxu0 %v11359_v39 }
0x1052   : > { %10552 = vmatprep.subr.bf16.mxu0 %v12891_v0 }
0x1055   : > { %10553 = vmatpush3.bf16.msra.mxu0 %v11361_v44 }
0x1056   : > { %10554 = vmatprep.subr.bf16.mxu0 %v12891_v0 }
0x1059   : > { %10555 = vmatpush3.bf16.msra.mxu0 %v11363_v47 }
0x105a   : > { %10556 = vmatprep.subr.bf16.mxu0 %v12891_v0 }
0x105d   : > { %10557 = vmatpush3.bf16.msra.mxu0 %v11365_v49  ;;  %v5001_v49 = vld [vmem:[%s1877_s7] sm:$0xff]  ;;  %s14624_s7 = sld [smem:[#allocation108_spill]] }
0x105e   : > { %10558 = vmatprep.subr.bf16.mxu0 %v12891_v0 }
0x1061   : > { %10559 = vmatpush3.bf16.msra.mxu0 %v11367_v9 }
0x1062   : > { %10560 = vmatprep.subr.bf16.mxu0 %v12891_v0 }
0x1065   : > { %10561 = vmatpush3.bf16.msra.mxu0 %v11369_v13 }
0x1066   : > { %10562 = vmatprep.subr.bf16.mxu0 %v12891_v0 }
0x1069   : > { %10563 = vmatpush3.bf16.msra.mxu0 %v11371_v15 }
0x110c   : > { %v4546_v25 = vpop.f32.mrf.mxu0 }
0x110d   : > { %v4547_v12 = vadd.f32 %v4546_v25, %v4425_v21 }
0x110e   : > { %v4548_v14 = vpop.f32.mrf.mxu0 }
0x110f   : > { %v4555_v16 = vmul.f32 0.044715, %v4547_v12  ;;  %v4549_v18 = vadd.f32 %v4548_v14, %v4429_v23  ;;  %v4553_v52 = vmul.f32 0.5, %v4547_v12 }
0x1110   : > { %v4550_v20 = vpop.f32.mrf.mxu0 }
0x1111   : > { %v4557_v22 = vmul.f32 %v4555_v16, %v4547_v12  ;;  %v4556_v24 = vmul.f32 0.044715, %v4549_v18  ;;  %v4554_v45 = vmul.f32 0.5, %v4549_v18  ;;  %v9542_v16 = vld [vmem:[%s14621_s4] ss:$0 sm:$0xff]  ;;  %s14630_s4 = sld [smem:[#allocation139_spill]] }
0x1112   : > { %v4551_v26 = vpop.f32.mrf.mxu0 }
0x1113   : > { %v4559_v28 = vmul.f32 %v4557_v22, %v4547_v12  ;;  %v4558_v29 = vmul.f32 %v4556_v24, %v4549_v18  ;;  %v11373_v24 = vld [vmem:[#allocation26 + $0x78] sm:$0xff]  }
0x1114   : > { %v11374_v26 = vld [vmem:[#allocation26 + $0x38] sm:$0xff]   ;;  %10047 = vmatprep.subr.bf16.mxu0 %v11373_v24  ;;  %v11407_v24 = vld [vmem:[#allocation27 + $0x50] sm:$0xff]  }
0x1115   : > { %v4561_v30 = vadd.f32 %v4559_v28, %v4547_v12  ;;  %v4560_v31 = vmul.f32 %v4558_v29, %v4549_v18  ;;  %v9541_v12 = vld [vmem:[%s14620_s10] ss:$0 sm:$0xff]  ;;  %v11375_v28 = vld [vmem:[#allocation26 + $0xb8] sm:$0xff]   ;;  %v11376_v29 = vld [vmem:[#allocation26 + $0x70] sm:$0xff]   ;;  %s14629_s10 = sld [smem:[#allocation104_spill]] }
0x1117   : > { %v4563_v33 = vmul.f32 0.7978846, %v4561_v30  ;;  %v4562_v35 = vadd.f32 %v4560_v31, %v4549_v18  ;;  %v11377_v30 = vld [vmem:[#allocation26 + $0x30] sm:$0xff]   ;;  %p14631_p12 = scmp.ne.s32.totalorder %s14630_s4, 0 }
0x1118   : > { %v11378_v31 = vld [vmem:[#allocation26 + $0xb0] sm:$0xff]  }
0x1119   : > { %v4564_v36 = vmul.f32 0.7978846, %v4562_v35  ;;  %11599 = vtanh.f32 %v4563_v33  ;;  %v11379_v33 = vld [vmem:[#allocation26 + $0x68] sm:$0xff]  }
0x111a   : > { %v11380_v35 = vld [vmem:[#allocation26 + $0x28] sm:$0xff]  }
0x111b   : > { %11601 = vtanh.f32 %v4564_v36  ;;  %v11381_v36 = vld [vmem:[#allocation26 + $0xa8] sm:$0xff]  }
0x1126   : > { %v11600_v37 = vpop.eup %11599 }
0x1127   : > { %v4567_v51 = vadd.f32 1.0, %v11600_v37  ;;  %v11382_v37 = vld [vmem:[#allocation26 + $0x60] sm:$0xff]  }
0x1128   : > { %v11602_v59 = vpop.eup %11601 }
0x1129   : > { %v4568_v50 = vadd.f32 1.0, %v11602_v59  ;;  %v4569_v53 = vmul.f32 %v4567_v51, %v4553_v52  ;;  %v11383_v51 = vld [vmem:[#allocation26 + $0x20] sm:$0xff]   ;;  %v11385_v52 = vld [vmem:[#allocation26 + $0x58] sm:$0xff]  }
0x112a   : > { %v11384_v59 = vld [vmem:[#allocation26 + $0xa0] sm:$0xff]  }
0x112b   : > { %v4570_v54 = vmul.f32 %v4568_v50, %v4554_v45  ;;  %v4571_v57 = vpack.c.bf16 %v4569_v53, %v4569_v53  ;;  %v11386_v45 = vld [vmem:[#allocation26 + $0x18] sm:$0xff]   ;;  %v11388_v53 = vld [vmem:[#allocation26 + $0x50] sm:$0xff]  }
0x112c   : > { %v11387_v50 = vld [vmem:[#allocation26 + $0x98] sm:$0xff]  }
0x112d   : > { %v4572_v55 = vpack.c.bf16 %v4570_v54, %v4570_v54  ;;  %v11389_v54 = vld [vmem:[#allocation26 + $0x10] sm:$0xff]  }
0x112f   : > { %4740 = vmatprep.mubr.bf16.mxu1 %v4572_v55  ;;  %v11390_v55 = vld [vmem:[#allocation26 + $0x90] sm:$0xff]  }
0x1130   : > { %4741 = vmatmul.mubr.bf16.vlgmr.msra.gmra.mxu1 %v4571_v57  ;;  %v11391_v57 = vld [vmem:[#allocation26 + $0x48] sm:$0xff]  }
0x1131   : > { %10584 = vmatprep.mubr.msk.bf16.mxu1 %vm12892_vm0, %v12891_v0  ;;  %10569 = vmatpush3.bf16.msra.mxu1 %v11358_v10 }
0x1132   : > { %10570 = vmatprep.subr.bf16.mxu1 %v12891_v0 }
0x1135   : > { %10571 = vmatpush3.bf16.msra.mxu1 %v11360_v40 }
0x1136   : > { %10572 = vmatprep.subr.bf16.mxu1 %v12891_v0 }
0x1139   : > { %10573 = vmatpush3.bf16.msra.mxu1 %v11362_v46 }
0x113a   : > { %10574 = vmatprep.subr.bf16.mxu1 %v12891_v0 }
0x113d   : > { %10575 = vmatpush3.bf16.msra.mxu1 %v11364_v48 }
0x113e   : > { %10576 = vmatprep.subr.bf16.mxu1 %v12891_v0 }
0x1141   : > { %10577 = vmatpush3.bf16.msra.mxu1 %v11366_v7 }
0x1142   : > { %10578 = vmatprep.subr.bf16.mxu1 %v12891_v0 }
0x1145   : > { %10579 = vmatpush3.bf16.msra.mxu1 %v11368_v5 }
0x1146   : > { %10580 = vmatprep.subr.bf16.mxu1 %v12891_v0 }
0x1149   : > { %10581 = vmatpush3.bf16.msra.mxu1 %v11370_v11 }
0x114a   : > { %10582 = vmatprep.subr.bf16.mxu1 %v12891_v0 }
0x114d   : > { %10583 = vmatpush3.bf16.msra.mxu1 %v11372_v17  ;;  %v11398_v17 = vld [vmem:[#allocation27 + $0x38] sm:$0xff]  }
0x114e   : > { %10588 = vmatprep.subr.bf16.mxu1 %v12891_v0 }
0x11f0   : > { %v10023_v58 = vpop.f32.mrf.mxu1 }
0x11f2   : > { %v10024_v61 = vpop.f32.mrf.mxu1 }
0x11f3   : > { %v10025_v62 = vadd.f32 %v10024_v61, %v10023_v58  ;;  %v11392_v58 = vld [vmem:[#allocation26 + $0x8] sm:$0xff]   ;;  %v11394_v61 = vld [vmem:[#allocation26 + $0x40] sm:$0xff]  }
0x11f4   : > { %v10026_v63 = vpop.f32.mrf.mxu1 }
0x11f5   : > { %v4743_v2 = vadd.f32 %v10025_v62, %v9524_v60  ;;  %v11393_v60 = vld [vmem:[#allocation26 + $0x88] sm:$0xff]   ;;  %v11395_v62 = vld [vmem:[#allocation26] sm:$0xff]  }
0x11f6   : > { %v10027_v4 = vpop.f32.mrf.mxu1  ;;  %v11396_v63 = vld [vmem:[#allocation26 + $0x80] sm:$0xff]  }
0x11f7   : > { %v4748_v6 = vadd.f32 %v4743_v2, %v13922_v38  ;;  %v11397_v2 = vld [vmem:[#allocation27 + $0x78] sm:$0xff]   ;;  %v9543_v4 = vld [vmem:[%s14622_s1] ss:$0 sm:$0xff]  ;;  %s8694_s1 = sand.u32 1, %s13208_s28  }
0x11f9   : > { %4751 = vadd.xlane.f32.xlu0 %v4748_v6 }
0x1282   : > { %v4752_v41 = vpop.xlane.xlu0 %4751 }
0x1283   : > { %v4753_v42 = vmul.f32 0.0078125, %v4752_v41 }
0x1285   : > { %v4754_v38 = vsub.f32 %v4748_v6, %v4753_v42  ;;  %v9552_v6 = vld [vmem:[%s14623_s27] ss:$0 sm:$0xff]  ;;  %s9796_s27 = sshll.u32 %s13208_s28, 7 }
0x1287   : > { %v4755_v43 = vmul.f32 %v4754_v38, %v4754_v38 }
0x1289   : > { %4756 = vadd.xlane.f32.xlu0 %v4755_v43 }
0x1312   : > { %v4757_v19 = vpop.xlane.xlu0 %4756 }
0x1313   : > { %v4758_v21 = vmul.f32 0.0078125, %v4757_v19 }
0x1315   : > { %v4759_v23 = vadd.f32 1e-05, %v4758_v21 }
0x1317   : > { %11603 = vrsqrt.f32 %v4759_v23  ;;  %v11399_v23 = vld [vmem:[#allocation27 + $0x70] sm:$0xff]  }
0x1324   : > { %v11604_v25 = vpop.eup %11603 }
0x1325   : > { %v4761_v14 = vmul.f32 %v11604_v25, %v4754_v38  ;;  %v11400_v25 = vld [vmem:[#allocation27 + $0x30] sm:$0xff]  }
0x1327   : > { %v4768_v18 = vmul.f32 %v9541_v12, %v4761_v14  ;;  %v11401_v12 = vld [vmem:[#allocation27 + $0x68] sm:$0xff]  }
0x1328   : > { %v11402_v14 = vld [vmem:[#allocation27 + $0x28] sm:$0xff]  }
0x1329   : > { %v4775_v20 = vadd.f32 %v9542_v16, %v4768_v18  ;;  %v11403_v16 = vld [vmem:[#allocation27 + $0x60] sm:$0xff]  }
0x132a   : > { %v11404_v18 = vld [vmem:[#allocation27 + $0x20] sm:$0xff]  }
0x132b   : > { %v4776_v22 = vpack.c.bf16 %v4775_v20, %v4775_v20  ;;  %v11405_v20 = vld [vmem:[#allocation27 + $0x58] sm:$0xff]  }
0x132d   : > { %10565 = vmatmul.mubr.bf16.vlgmr.msra.gmra.mxu0 %v4776_v22  ;;  %10585 = vmatmul.mubr.bf16.vlgmr.msra.gmra.mxu1 %v4776_v22  ;;  %v11406_v22 = vld [vmem:[#allocation27 + $0x18] sm:$0xff]  }
0x132e   : > { %10604 = vmatprep.mubr.msk.bf16.mxu1 %vm12892_vm0, %v12891_v0  ;;  %10048 = vmatpush3.bf16.msra.mxu0 %v11374_v26  ;;  %v11408_v26 = vld [vmem:[#allocation27 + $0x10] sm:$0xff]  }
0x132f   : > { %10589 = vmatpush3.bf16.msra.mxu1 %v11375_v28  ;;  %10049 = vmatprep.subr.bf16.mxu0 %v11376_v29  ;;  %v11409_v28 = vld [vmem:[#allocation27 + $0x48] sm:$0xff]  }
0x1330   : > { %10590 = vmatprep.subr.bf16.mxu1 %v12891_v0  ;;  %v11410_v29 = vld [vmem:[#allocation27 + $0x8] sm:$0xff]  }
0x1332   : > { %10050 = vmatpush3.bf16.msra.mxu0 %v11377_v30  ;;  %v11411_v30 = vld [vmem:[#allocation27 + $0x40] sm:$0xff]  }
0x1333   : > { %10591 = vmatpush3.bf16.msra.mxu1 %v11378_v31  ;;  %10051 = vmatprep.subr.bf16.mxu0 %v11379_v33  ;;  %v11412_v31 = vld [vmem:[#allocation27] sm:$0xff]   ;;  %v11413_v33 = vld [vmem:[#allocation17 + $0x78] sm:$0xff]  }
0x1334   : > { %10592 = vmatprep.subr.bf16.mxu1 %v12891_v0 }
0x1336   : > { %10052 = vmatpush3.bf16.msra.mxu0 %v11380_v35  ;;  %v13971_v35 = vld [vmem:[#allocation17 + $0xf8] sm:$0xff]  }
0x1337   : > { %10593 = vmatpush3.bf16.msra.mxu1 %v11381_v36  ;;  %10053 = vmatprep.subr.bf16.mxu0 %v11382_v37  ;;  %v13973_v36 = vld [vmem:[#allocation17 + $0x38] sm:$0xff]  }
0x1338   : > { %10594 = vmatprep.subr.bf16.mxu1 %v12891_v0  ;;  %v13975_v37 = vld [vmem:[#allocation17 + $0xb8] sm:$0xff]  }
0x133a   : > { %10054 = vmatpush3.bf16.msra.mxu0 %v11383_v51  ;;  %v13977_v51 = vld [vmem:[#allocation17 + $0x70] sm:$0xff]  }
0x133b   : > { %10595 = vmatpush3.bf16.msra.mxu1 %v11384_v59  ;;  %10055 = vmatprep.subr.bf16.mxu0 %v11385_v52  ;;  %v13979_v59 = vld [vmem:[#allocation17 + $0xf0] sm:$0xff]  }
0x133c   : > { %10596 = vmatprep.subr.bf16.mxu1 %v12891_v0  ;;  %v13984_v52 = vld [vmem:[#allocation17 + $0x30] sm:$0xff]  }
0x133e   : > { %10056 = vmatpush3.bf16.msra.mxu0 %v11386_v45  ;;  %v13986_v45 = vld [vmem:[#allocation17 + $0xb0] sm:$0xff]  }
0x133f   : > { %10597 = vmatpush3.bf16.msra.mxu1 %v11387_v50  ;;  %10057 = vmatprep.subr.bf16.mxu0 %v11388_v53  ;;  %v13992_v50 = vld [vmem:[#allocation17 + $0xe8] sm:$0xff]  }
0x1340   : > { %10598 = vmatprep.subr.bf16.mxu1 %v12891_v0  ;;  %v13994_v53 = vld [vmem:[#allocation17 + $0xa8] sm:$0xff]  }
0x1342   : > { %10058 = vmatpush3.bf16.msra.mxu0 %v11389_v54  ;;  %v13998_v54 = vld [vmem:[#allocation17 + $0xe0] sm:$0xff]  }
0x1343   : > { %10599 = vmatpush3.bf16.msra.mxu1 %v11390_v55  ;;  %10059 = vmatprep.subr.bf16.mxu0 %v11391_v57  ;;  %v14000_v55 = vld [vmem:[#allocation17 + $0xa0] sm:$0xff]   ;;  %v14004_v57 = vld [vmem:[#allocation17 + $0x68] sm:$0xff]  }
0x1344   : > { %10600 = vmatprep.subr.bf16.mxu1 %v12891_v0 }
0x1346   : > { %10060 = vmatpush3.bf16.msra.mxu0 %v11392_v58  ;;  %v14006_v58 = vld [vmem:[#allocation17 + $0xd8] sm:$0xff]  }
0x1347   : > { %10601 = vmatpush3.bf16.msra.mxu1 %v11393_v60  ;;  %10061 = vmatprep.subr.bf16.mxu0 %v11394_v61  ;;  %v14008_v60 = vld [vmem:[#allocation17 + $0x28] sm:$0xff]   ;;  %v14010_v61 = vld [vmem:[#allocation17 + $0x98] sm:$0xff]  }
0x1348   : > { %10602 = vmatprep.subr.bf16.mxu1 %v12891_v0 }
0x134a   : > { %10062 = vmatpush3.bf16.msra.mxu0 %v11395_v62  ;;  %v14016_v62 = vld [vmem:[#allocation17 + $0x60] sm:$0xff]  }
0x134b   : > { %10603 = vmatpush3.bf16.msra.mxu1 %v11396_v63  ;;  %10078 = vmatprep.subr.bf16.mxu0 %v11397_v2  ;;  %v14018_v63 = vld [vmem:[#allocation17 + $0xd0] sm:$0xff]   ;;  %v14020_v2 = vld [vmem:[#allocation17 + $0x20] sm:$0xff]  }
0x134c   : > { %10100 = vmatprep.subr.bf16.mxu1 %v11413_v33 }
0x13ed   : > { %v4882_v8 = vpop.f32.mrf.mxu0  ;;  %v4993_v10 = vpop.f32.mrf.mxu1 }
0x13ee   : > { %v4883_v39 = vadd.f32 %v9543_v4, %v4882_v8  ;;  %v4994_v40 = vadd.f32 %v9552_v6, %v4993_v10  ;;  %v14022_v4 = vld [vmem:[#allocation17 + $0x90] sm:$0xff]   ;;  %v14028_v6 = vld [vmem:[#allocation17 + $0x58] sm:$0xff]   ;;  %v14030_v8 = vld [vmem:[#allocation17 + $0xc8] sm:$0xff]  }
0x13ef   : > { %v10566_v41 = vpop.f32.mrf.mxu0  ;;  %v10586_v42 = vpop.f32.mrf.mxu1  ;;  %v14032_v10 = vld [vmem:[#allocation17 + $0x18] sm:$0xff]  }
0x13f0   : > { %4999 = vst [vmem:[%s2155_s13] sm:$0xff] %v4883_v39  ;;  %5000 = vst [vmem:[%s2162_s18] sm:$0xff] %v4994_v40  ;;  %v5002_v38 = vmul.f32 0.5, %v4994_v40  ;;  %v14040_v40 = vld [vmem:[#allocation17 + $0x50] sm:$0xff]   ;;  %v14042_v41 = vld [vmem:[#allocation17 + $0xc0] sm:$0xff]  }
0x13f1   : > { %v4885_v43 = vpop.f32.mrf.mxu0  ;;  %v4996_v44 = vpop.f32.mrf.mxu1  ;;  %v14044_v42 = vld [vmem:[#allocation17 + $0x10] sm:$0xff]  }
0x13f2   : > { %v5003_v46 = vmul.f32 1.442695, %v5002_v38  ;;  %v14046_v38 = vld [vmem:[#allocation17 + $0x80] sm:$0xff]   ;;  %v14052_v43 = vld [vmem:[#allocation17 + $0x48] sm:$0xff]  }
0x13f3   : > { %v10567_v47 = vpop.f32.mrf.mxu0  ;;  %v10587_v48 = vpop.f32.mrf.mxu1  ;;  %v14054_v44 = vld [vmem:[#allocation17 + $0x8] sm:$0xff]  }
0x13f4   : > { %11605 = vpow2.f32 %v5003_v46  ;;  %v14056_v46 = vld [vmem:[#allocation17 + $0x40] sm:$0xff]  }
0x13f5   : > { %v14060_v47 = vld [vmem:[#allocation17] sm:$0xff]  }
0x1401   : > { %v11606_v7 = vpop.eup %11605 }
0x1402   : > { %v5005_v9 = vmul.f32 %v11606_v7, %v5001_v49 }
0x1404   : > { %v5006_v5 = vadd.f32 %v5005_v9, %v4883_v39  ;;  %v14034_v39 = vld [vmem:[#allocation17 + $0x88] sm:$0xff]   ;;  %v9561_v9 = vld [vmem:[#allocation21] ss:$0 sm:$0xff] }
0x1406   : > { %5007 = vst [vmem:[#allocation4 + $0x1] sm:$0xff] %v5006_v5  ;;  %v5014_v13 = vpack.c.bf16 %v5006_v5, %v5006_v5 }
0x1408   : > { %5247 = vmatprep.mubr.bf16.mxu0 %v5014_v13 }
0x140d   : > { %v5012_v11 = vld [vmem:[#allocation4] sm:$0xff] }
0x140e   : > { %v5010_v15 = vld [vmem:[#allocation4 + $0x2] sm:$0xff]  ;;  %v5015_v19 = vpack.c.bf16 %v5012_v11, %v5012_v11 }
0x140f   : > { %v5013_v21 = vpack.c.bf16 %v5010_v15, %v5010_v15 }
0x1410   : > { %10605 = vmatmul.mubr.bf16.vlgmr.msra.gmra.mxu1 %v5015_v19 }
0x1411   : > { %5248 = vmatmul.mubr.bf16.vlgmr.msra.gmra.mxu0 %v5013_v21  ;;  %10101 = vmatpush3.bf16.msra.mxu1 %v13973_v36 }
0x1412   : > { %10079 = vmatpush3.bf16.msra.mxu0 %v11398_v17  ;;  %5455 = vmatprep.mubr.bf16.mxu0 %v5014_v13 }
0x1413   : > { %10080 = vmatprep.subr.bf16.mxu0 %v11399_v23  ;;  %10102 = vmatprep.subr.bf16.mxu1 %v13977_v51 }
0x1415   : > { %10103 = vmatpush3.bf16.msra.mxu1 %v13984_v52 }
0x1416   : > { %10081 = vmatpush3.bf16.msra.mxu0 %v11400_v25  ;;  %10104 = vmatprep.subr.bf16.mxu1 %v14004_v57 }
0x1417   : > { %10082 = vmatprep.subr.bf16.mxu0 %v11401_v12  ;;  %v9602_v12 = vld [vmem:[#allocation23] ss:$0 sm:$0xff] }
0x1419   : > { %10105 = vmatpush3.bf16.msra.mxu1 %v14008_v60 }
0x141a   : > { %10083 = vmatpush3.bf16.msra.mxu0 %v11402_v14  ;;  %10106 = vmatprep.subr.bf16.mxu1 %v14016_v62 }
0x141b   : > { %10084 = vmatprep.subr.bf16.mxu0 %v11403_v16  ;;  %v9603_v16 = vld [vmem:[#allocation24] ss:$0 sm:$0xff] }
0x141d   : > { %10107 = vmatpush3.bf16.msra.mxu1 %v14020_v2 }
0x141e   : > { %10085 = vmatpush3.bf16.msra.mxu0 %v11404_v18  ;;  %10108 = vmatprep.subr.bf16.mxu1 %v14028_v6 }
0x141f   : > { %10086 = vmatprep.subr.bf16.mxu0 %v11405_v20 }
0x1421   : > { %10109 = vmatpush3.bf16.msra.mxu1 %v14032_v10 }
0x1422   : > { %10087 = vmatpush3.bf16.msra.mxu0 %v11406_v22  ;;  %10110 = vmatprep.subr.bf16.mxu1 %v14040_v40 }
0x1423   : > { %10088 = vmatprep.subr.bf16.mxu0 %v11407_v24 }
0x1425   : > { %10111 = vmatpush3.bf16.msra.mxu1 %v14044_v42 }
0x1426   : > { %10089 = vmatpush3.bf16.msra.mxu0 %v11408_v26  ;;  %10112 = vmatprep.subr.bf16.mxu1 %v14052_v43 }
0x1427   : > { %10090 = vmatprep.subr.bf16.mxu0 %v11409_v28 }
0x1429   : > { %10113 = vmatpush3.bf16.msra.mxu1 %v14054_v44 }
0x142a   : > { %10091 = vmatpush3.bf16.msra.mxu0 %v11410_v29  ;;  %10114 = vmatprep.subr.bf16.mxu1 %v14056_v46 }
0x142b   : > { %10092 = vmatprep.subr.bf16.mxu0 %v11411_v30 }
0x142d   : > { %10115 = vmatpush3.bf16.msra.mxu1 %v14060_v47 }
0x142e   : > { %10093 = vmatpush3.bf16.msra.mxu0 %v11412_v31  ;;  %10608 = vmatprep.subr.bf16.mxu1 %v12891_v0 }
0x142f   : > { %10122 = vmatprep.subr.bf16.mxu0 %v13971_v35 }
0x1431   : > { %5456 = vmatmul.mubr.bf16.vlgmr.msra.gmra.mxu0 %v5013_v21 }
0x1432   : > { %10123 = vmatpush3.bf16.msra.mxu0 %v13975_v37 }
0x1433   : > { %10124 = vmatprep.subr.bf16.mxu0 %v13979_v59 }
0x1436   : > { %10125 = vmatpush3.bf16.msra.mxu0 %v13986_v45 }
0x1437   : > { %10126 = vmatprep.subr.bf16.mxu0 %v13992_v50 }
0x143a   : > { %10127 = vmatpush3.bf16.msra.mxu0 %v13994_v53 }
0x143b   : > { %10128 = vmatprep.subr.bf16.mxu0 %v13998_v54 }
0x143e   : > { %10129 = vmatpush3.bf16.msra.mxu0 %v14000_v55 }
0x143f   : > { %10130 = vmatprep.subr.bf16.mxu0 %v14006_v58 }
0x1442   : > { %10131 = vmatpush3.bf16.msra.mxu0 %v14010_v61 }
0x1443   : > { %10132 = vmatprep.subr.bf16.mxu0 %v14018_v63 }
0x1446   : > { %10133 = vmatpush3.bf16.msra.mxu0 %v14022_v4 }
0x1447   : > { %10134 = vmatprep.subr.bf16.mxu0 %v14030_v8 }
0x144a   : > { %10135 = vmatpush3.bf16.msra.mxu0 %v14034_v39 }
0x144b   : > { %10136 = vmatprep.subr.bf16.mxu0 %v14042_v41 }
0x144e   : > { %10137 = vmatpush3.bf16.msra.mxu0 %v14046_v38 }
0x144f   : > { %10153 = vmatprep.subr.bf16.mxu0 %v11413_v33 }
0x14d0   : > { %v5289_v48 = vpop.f32.mrf.mxu1 }
0x14d1   : > { %v10063_v49 = vpop.f32.mrf.mxu0 }
0x14d2   : > { %v10606_v7 = vpop.f32.mrf.mxu1 }
0x14d3   : > { %v10064_v5 = vpop.f32.mrf.mxu0 }
0x14d4   : > { %v10065_v13 = vadd.f32 %v10064_v5, %v10063_v49  ;;  %v5292_v11 = vpop.f32.mrf.mxu1 }
0x14d5   : > { %v10066_v15 = vpop.f32.mrf.mxu0 }
0x14d6   : > { %v5250_v17 = vadd.f32 %v10065_v13, %v9561_v9  ;;  %v10607_v19 = vpop.f32.mrf.mxu1  ;;  %v11445_v15 = vld [vmem:[#allocation17 + $0x138] sm:$0xff]  }
0x14d7   : > { %v10067_v21 = vpop.f32.mrf.mxu0  ;;  %v11446_v19 = vld [vmem:[#allocation17 + $0x130] sm:$0xff]  }
0x14d8   : > { %v5290_v23 = vadd.f32 %v5289_v48, %v5250_v17 }
0x14da   : > { %vm5463_vm8 = vcmp.ge.f32.partialorder %v5290_v23, 0.0  ;;  %v5464_v25 = vmul.f32 0.2, %v5290_v23 }
0x14dc   : > { %v5465_v14 = vsel %vm5463_vm8, %v5290_v23, %v5464_v25 }
0x14dd   : > { %v5473_v18 = vmul.f32 %v9602_v12, %v5465_v14 }
0x14df   : > { %v5481_v20 = vadd.f32 %v9603_v16, %v5473_v18 }
0x14e1   : > { %5487 = vst [vmem:[#allocation5 + $0x1] sm:$0xff] %v5481_v20  ;;  %5488 = vst [vmem:[#allocation5] sm:$0x1] %v5481_v20  ;;  %v5501_v5 = vpack.c.bf16 %v5481_v20, %v5481_v20 }
0x14e2   : > { %5491 = vst [vmem:[#allocation6] sm:$0x1] %v5481_v20 }
0x14f1   : > { %v10094_v22 = vpop.f32.mrf.mxu0 }
0x14f3   : > { %v10095_v24 = vpop.f32.mrf.mxu0 }
0x14f4   : > { %v10096_v26 = vadd.f32 %v10095_v24, %v10094_v22  ;;  %v9604_v22 = vld [vmem:[#allocation12] ss:$0 sm:$0xff] }
0x14f5   : > { %v10097_v28 = vpop.f32.mrf.mxu0 }
0x14f6   : > { %v5458_v29 = vadd.f32 %v10096_v26, %v9561_v9  ;;  %v5493_v9 = vld [vmem:[#allocation5] sm:$0xff] }
0x14f7   : > { %v10098_v30 = vpop.f32.mrf.mxu0  ;;  %v5499_v17 = vpack.c.bf16 %v5493_v9, %v5493_v9  ;;  %v9645_v9 = vld [vmem:[#allocation14] ss:$0 sm:$0xff] }
0x14f8   : > { %vm5482_vm9 = vcmp.ge.f32.partialorder %v5458_v29, 0.0  ;;  %v5483_v31 = vmul.f32 0.2, %v5458_v29 }
0x14fa   : > { %v5484_v33 = vsel %vm5482_vm9, %v5458_v29, %v5483_v31 }
0x14fb   : > { %v5485_v48 = vmul.f32 %v9602_v12, %v5484_v33 }
0x14fd   : > { %v5486_v49 = vadd.f32 %v9603_v16, %v5485_v48 }
0x14ff   : > { %5489 = vst [vmem:[#allocation5 + $0x2] sm:$0x80] %v5486_v49  ;;  %5490 = vst [vmem:[#allocation6 + $0x1] sm:$0xff] %v5486_v49  ;;  %v14065_v7 = vpack.c.bf16 %v5486_v49, %v5486_v49 }
0x1500   : > { %5492 = vst [vmem:[#allocation6 + $0x2] sm:$0x80] %v5486_v49 }
0x1501   : > { %5903 = vmatprep.mubr.bf16.mxu0 %v14065_v7 }
0x1502   : > { %5904 = vmatmul.mubr.bf16.vlgmr.msra.gmra.mxu0 %v5501_v5 }
0x1503   : > { %10154 = vmatpush3.bf16.msra.mxu0 %v13973_v36  ;;  %6003 = vmatprep.mubr.bf16.mxu0 %v5501_v5  ;;  %v11447_v36 = vld [vmem:[#allocation17 + $0x128] sm:$0xff]  }
0x1504   : > { %10155 = vmatprep.subr.bf16.mxu0 %v13977_v51  ;;  %v11448_v51 = vld [vmem:[#allocation17 + $0x120] sm:$0xff]  }
0x1506   : > { %v5496_v13 = vld [vmem:[#allocation6] sm:$0xff] }
0x1507   : > { %v5500_v11 = vpack.c.bf16 %v5496_v13, %v5496_v13  ;;  %10156 = vmatpush3.bf16.msra.mxu0 %v13984_v52  ;;  %v11449_v52 = vld [vmem:[#allocation17 + $0x118] sm:$0xff]  }
0x1508   : > { %10157 = vmatprep.subr.bf16.mxu0 %v14004_v57  ;;  %v11450_v57 = vld [vmem:[#allocation17 + $0x110] sm:$0xff]  }
0x1509   : > { %5863 = vmatprep.mubr.bf16.mxu1 %v5500_v11 }
0x150a   : > { %5864 = vmatmul.mubr.bf16.vlgmr.msra.gmra.mxu1 %v5499_v17 }
0x150b   : > { %10609 = vmatpush3.bf16.msra.mxu1 %v11445_v15  ;;  %10158 = vmatpush3.bf16.msra.mxu0 %v14008_v60  ;;  %v11451_v60 = vld [vmem:[#allocation17 + $0x108] sm:$0xff]  }
0x150c   : > { %10610 = vmatprep.subr.bf16.mxu1 %v12891_v0  ;;  %10159 = vmatprep.subr.bf16.mxu0 %v14016_v62  ;;  %v11452_v62 = vld [vmem:[#allocation17 + $0x100] sm:$0xff]  }
0x150d   : > { %10624 = vmatprep.mubr.msk.bf16.mxu1 %vm12892_vm0, %v12891_v0 }
0x150f   : > { %10611 = vmatpush3.bf16.msra.mxu1 %v11446_v19  ;;  %10160 = vmatpush3.bf16.msra.mxu0 %v14020_v2  ;;  %v5495_v2 = vld [vmem:[#allocation5 + $0x2] sm:$0xff] }
0x1510   : > { %10612 = vmatprep.subr.bf16.mxu1 %v12891_v0  ;;  %10161 = vmatprep.subr.bf16.mxu0 %v14028_v6  ;;  %v5503_v6 = vpack.c.bf16 %v5495_v2, %v5495_v2 }
0x1513   : > { %10613 = vmatpush3.bf16.msra.mxu1 %v11447_v36  ;;  %10162 = vmatpush3.bf16.msra.mxu0 %v14032_v10  ;;  %v11465_v10 = vld [vmem:[#allocation36 + $0x90] ss:$12 sps:$4 sm:$0xff]  }
0x1514   : > { %10614 = vmatprep.subr.bf16.mxu1 %v12891_v0  ;;  %10163 = vmatprep.subr.bf16.mxu0 %v14040_v40  ;;  %v11469_v40 = vld [vmem:[#allocation36 + $0x78] ss:$12 sps:$4 sm:$0xff]  }
0x1517   : > { %10615 = vmatpush3.bf16.msra.mxu1 %v11448_v51  ;;  %10164 = vmatpush3.bf16.msra.mxu0 %v14044_v42  ;;  %v11473_v42 = vld [vmem:[#allocation36 + $0x60] ss:$12 sps:$4 sm:$0xff]  }
0x1518   : > { %10616 = vmatprep.subr.bf16.mxu1 %v12891_v0  ;;  %10165 = vmatprep.subr.bf16.mxu0 %v14052_v43  ;;  %v11477_v43 = vld [vmem:[#allocation36 + $0x48] ss:$12 sps:$4 sm:$0xff]  }
0x151b   : > { %10617 = vmatpush3.bf16.msra.mxu1 %v11449_v52  ;;  %10166 = vmatpush3.bf16.msra.mxu0 %v14054_v44  ;;  %v11483_v44 = vld [vmem:[#allocation36 + $0x34] ss:$12 sps:$4 sm:$0xff]  }
0x151c   : > { %10618 = vmatprep.subr.bf16.mxu1 %v12891_v0  ;;  %10167 = vmatprep.subr.bf16.mxu0 %v14056_v46  ;;  %v11481_v46 = vld [vmem:[#allocation36 + $0x30] ss:$12 sps:$4 sm:$0xff]  }
0x151f   : > { %10619 = vmatpush3.bf16.msra.mxu1 %v11450_v57  ;;  %10168 = vmatpush3.bf16.msra.mxu0 %v14060_v47 }
0x1520   : > { %10620 = vmatprep.subr.bf16.mxu1 %v12891_v0  ;;  %10628 = vmatprep.subr.bf16.mxu0 %v12891_v0 }
0x1522   : > { %6004 = vmatmul.mubr.bf16.vlgmr.msra.gmra.mxu0 %v5500_v11 }
0x1523   : > { %10621 = vmatpush3.bf16.msra.mxu1 %v11451_v60  ;;  %10629 = vmatpush3.bf16.msra.mxu0 %v11445_v15  ;;  %v9646_v15 = vld [vmem:[#allocation15] ss:$0 sm:$0xff] }
0x1524   : > { %10622 = vmatprep.subr.bf16.mxu1 %v12891_v0  ;;  %10630 = vmatprep.subr.bf16.mxu0 %v12891_v0 }
0x1525   : > { %10644 = vmatprep.mubr.msk.bf16.mxu0 %vm12892_vm0, %v12891_v0 }
0x1527   : > { %10623 = vmatpush3.bf16.msra.mxu1 %v11452_v62  ;;  %10631 = vmatpush3.bf16.msra.mxu0 %v11446_v19  ;;  %v6138_v19 = vsub.s32 4, %v13598_v27 }
0x1528   : > { %10175 = vmatprep.subr.bf16.mxu1 %v13971_v35  ;;  %10632 = vmatprep.subr.bf16.mxu0 %v12891_v0  ;;  %v5498_v35 = vld [vmem:[#allocation6 + $0x2] sm:$0xff] }
0x152a   : > { %10625 = vmatmul.mubr.bf16.vlgmr.msra.gmra.mxu1 %v5503_v6 }
0x152b   : > { %10176 = vmatpush3.bf16.msra.mxu1 %v13975_v37  ;;  %6043 = vmatprep.mubr.bf16.mxu1 %v5503_v6  ;;  %v5970_v37 = vpack.c.bf16 %v5498_v35, %v5498_v35 }
0x152c   : > { %10177 = vmatprep.subr.bf16.mxu1 %v13979_v59  ;;  %10633 = vmatpush3.bf16.msra.mxu0 %v11447_v36  ;;  %v11453_v59 = vld [vmem:[#allocation30 + $0x38] sm:$0xff]   ;;  %v6148_v36 = vsub.s32 5, %v13598_v27 }
0x152d   : > { %10634 = vmatprep.subr.bf16.mxu0 %v12891_v0 }
0x152f   : > { %10178 = vmatpush3.bf16.msra.mxu1 %v13986_v45  ;;  %v11455_v45 = vld [vmem:[#allocation30 + $0x28] sm:$0xff]  }
0x1530   : > { %10179 = vmatprep.subr.bf16.mxu1 %v13992_v50  ;;  %10635 = vmatpush3.bf16.msra.mxu0 %v11448_v51  ;;  %v11456_v50 = vld [vmem:[#allocation30 + $0x20] sm:$0xff]   ;;  %v6158_v51 = vsub.s32 6, %v13598_v27 }
0x1531   : > { %10636 = vmatprep.subr.bf16.mxu0 %v12891_v0 }
0x1533   : > { %10180 = vmatpush3.bf16.msra.mxu1 %v13994_v53  ;;  %v11457_v53 = vld [vmem:[#allocation30 + $0x18] sm:$0xff]  }
0x1534   : > { %10181 = vmatprep.subr.bf16.mxu1 %v13998_v54  ;;  %10637 = vmatpush3.bf16.msra.mxu0 %v11449_v52  ;;  %v11458_v54 = vld [vmem:[#allocation30 + $0x10] sm:$0xff]  }
0x1535   : > { %10638 = vmatprep.subr.bf16.mxu0 %v12891_v0 }
0x1537   : > { %10182 = vmatpush3.bf16.msra.mxu1 %v14000_v55  ;;  %v11459_v55 = vld [vmem:[#allocation30 + $0x8] sm:$0xff]  }
0x1538   : > { %10183 = vmatprep.subr.bf16.mxu1 %v14006_v58  ;;  %10639 = vmatpush3.bf16.msra.mxu0 %v11450_v57  ;;  %v11460_v58 = vld [vmem:[#allocation30] sm:$0xff]   ;;  %v6128_v57 = vsub.s32 3, %v13598_v27 }
0x1539   : > { %10640 = vmatprep.subr.bf16.mxu0 %v12891_v0 }
0x153b   : > { %10184 = vmatpush3.bf16.msra.mxu1 %v14010_v61  ;;  %v11461_v61 = vld [vmem:[#allocation36 + $0xa8] ss:$12 sps:$4 sm:$0xff]  }
0x153c   : > { %10185 = vmatprep.subr.bf16.mxu1 %v14018_v63  ;;  %10641 = vmatpush3.bf16.msra.mxu0 %v11451_v60  ;;  %v11463_v63 = vld [vmem:[#allocation36 + $0xac] ss:$12 sps:$4 sm:$0xff]  }
0x153d   : > { %10642 = vmatprep.subr.bf16.mxu0 %v12891_v0  ;;  %v11454_v0 = vld [vmem:[#allocation30 + $0x30] sm:$0xff]  }
0x153f   : > { %10186 = vmatpush3.bf16.msra.mxu1 %v14022_v4  ;;  %v14120_v4 = vld [vmem:[#allocation36 + $0xb0] ss:$12 sps:$4 sm:$0xff]  }
0x1540   : > { %10187 = vmatprep.subr.bf16.mxu1 %v14030_v8  ;;  %10643 = vmatpush3.bf16.msra.mxu0 %v11452_v62  ;;  %v11467_v8 = vld [vmem:[#allocation36 + $0x94] ss:$12 sps:$4 sm:$0xff]  }
0x1541   : > { %6481 = vmatprep.subr.bf16.mxu0 %v11463_v63 }
0x1543   : > { %10188 = vmatpush3.bf16.msra.mxu1 %v14034_v39  ;;  %10645 = vmatmul.mubr.bf16.vlgmr.msra.gmra.mxu0 %v5970_v37  ;;  %v11471_v39 = vld [vmem:[#allocation36 + $0x7c] ss:$12 sps:$4 sm:$0xff]  }
0x1544   : > { %10189 = vmatprep.subr.bf16.mxu1 %v14042_v41  ;;  %6513 = vmatprep.mubr.bf16.mxu0 %v12893_v56  ;;  %v11475_v41 = vld [vmem:[#allocation36 + $0x64] ss:$12 sps:$4 sm:$0xff]  }
0x1545   : > { %6482 = vmatpush1.bf16.msra.mxu0 %v11461_v61 }
0x1546   : > { %6483 = vmatprep.subr.bf16.mxu0 %v11467_v8 }
0x1547   : > { %10190 = vmatpush3.bf16.msra.mxu1 %v14046_v38  ;;  %v11479_v38 = vld [vmem:[#allocation36 + $0x4c] ss:$12 sps:$4 sm:$0xff]  }
0x1548   : > { %10648 = vmatprep.subr.bf16.mxu1 %v11453_v59 }
0x1549   : > { %6484 = vmatpush1.bf16.msra.mxu0 %v11465_v10 }
0x154a   : > { %6044 = vmatmul.mubr.bf16.vlgmr.msra.gmra.mxu1 %v14065_v7  ;;  %6485 = vmatprep.subr.bf16.mxu0 %v11471_v39 }
0x154b   : > { %10649 = vmatpush3.bf16.msra.mxu1 %v11453_v59 }
0x154c   : > { %10650 = vmatprep.subr.bf16.mxu1 %v11454_v0 }
0x154d   : > { %6486 = vmatpush1.bf16.msra.mxu0 %v11469_v40 }
0x154e   : > { %6487 = vmatprep.subr.bf16.mxu0 %v11475_v41 }
0x154f   : > { %10651 = vmatpush3.bf16.msra.mxu1 %v11454_v0 }
0x1550   : > { %10652 = vmatprep.subr.bf16.mxu1 %v11455_v45 }
0x1551   : > { %6488 = vmatpush1.bf16.msra.mxu0 %v11473_v42 }
0x1552   : > { %6489 = vmatprep.subr.bf16.mxu0 %v11479_v38 }
0x1553   : > { %10653 = vmatpush3.bf16.msra.mxu1 %v11455_v45 }
0x1554   : > { %10654 = vmatprep.subr.bf16.mxu1 %v11456_v50 }
0x1555   : > { %6490 = vmatpush1.bf16.msra.mxu0 %v11477_v43 }
0x1556   : > { %6491 = vmatprep.subr.bf16.mxu0 %v11483_v44 }
0x1557   : > { %10655 = vmatpush3.bf16.msra.mxu1 %v11456_v50 }
0x1558   : > { %10656 = vmatprep.subr.bf16.mxu1 %v11457_v53 }
0x1559   : > { %6492 = vmatpush1.bf16.msra.mxu0 %v11481_v46 }
0x155b   : > { %10657 = vmatpush3.bf16.msra.mxu1 %v11457_v53 }
0x155c   : > { %10658 = vmatprep.subr.bf16.mxu1 %v11458_v54 }
0x155f   : > { %10659 = vmatpush3.bf16.msra.mxu1 %v11458_v54 }
0x1560   : > { %10660 = vmatprep.subr.bf16.mxu1 %v11459_v55 }
0x1563   : > { %10661 = vmatpush3.bf16.msra.mxu1 %v11459_v55 }
0x1564   : > { %10662 = vmatprep.subr.bf16.mxu1 %v11460_v58 }
0x1567   : > { %10663 = vmatpush3.bf16.msra.mxu1 %v11460_v58 }
0x1568   : > { %10668 = vmatprep.subr.bf16.mxu1 %v14120_v4 }
0x15c2   : > { %v10138_v47 = vpop.f32.mrf.mxu0 }
0x15c4   : > { %v10139_v21 = vpop.f32.mrf.mxu0 }
0x15c5   : > { %v10140_v30 = vadd.f32 %v10139_v21, %v10138_v47 }
0x15c6   : > { %v10141_v23 = vpop.f32.mrf.mxu0 }
0x15c8   : > { %v10142_v25 = vpop.f32.mrf.mxu0 }
0x15ca   : > { %v10116_v12 = vpop.f32.mrf.mxu1 }
0x15cc   : > { %v10117_v14 = vpop.f32.mrf.mxu1 }
0x15cd   : > { %v10118_v20 = vadd.f32 %v10117_v14, %v10116_v12 }
0x15ce   : > { %v10119_v16 = vpop.f32.mrf.mxu1 }
0x15cf   : > { %v5866_v28 = vadd.f32 %v10118_v20, %v9604_v22 }
0x15d0   : > { %v10120_v18 = vpop.f32.mrf.mxu1 }
0x15d1   : > { %v5906_v33 = vadd.f32 %v10140_v30, %v5866_v28  ;;  %v11476_v30 = vld [vmem:[#allocation36 + $0x68] ss:$12 sps:$4 sm:$0xff]  }
0x15e2   : > { %v10169_v24 = vpop.f32.mrf.mxu0 }
0x15e4   : > { %v10170_v26 = vpop.f32.mrf.mxu0 }
0x15e5   : > { %v10171_v54 = vadd.f32 %v10170_v26, %v10169_v24 }
0x15e6   : > { %v10172_v29 = vpop.f32.mrf.mxu0 }
0x15e7   : > { %v6006_v63 = vadd.f32 %v10171_v54, %v9604_v22  ;;  %v11468_v29 = vld [vmem:[#allocation36 + $0x98] ss:$12 sps:$4 sm:$0xff]  }
0x15e8   : > { %v10173_v31 = vpop.f32.mrf.mxu0 }
0x15e9   : > { %v11480_v31 = vld [vmem:[#allocation36 + $0x50] ss:$12 sps:$4 sm:$0xff]  }
0x15ea   : > { %v5945_v48 = vpop.f32.mrf.mxu1 }
0x15eb   : > { %v5946_v49 = vadd.f32 %v5945_v48, %v5906_v33  ;;  %v11484_v33 = vld [vmem:[#allocation36 + $0x38] ss:$12 sps:$4 sm:$0xff]   ;;  %v11487_v48 = vld [vmem:[#allocation36 + $0x1c] ss:$12 sps:$4 sm:$0xff]  }
0x15ec   : > { %v10626_v7 = vpop.f32.mrf.mxu1  ;;  %6493 = vmatprep.subr.bf16.mxu0 %v11487_v48 }
0x15ed   : > { %vm5951_vm10 = vcmp.ge.f32.partialorder %v5946_v49, 0.0  ;;  %v5952_v5 = vmul.f32 0.2, %v5946_v49  ;;  %v11488_v7 = vld [vmem:[#allocation36 + $0x20] ss:$12 sps:$4 sm:$0xff]  }
0x15ee   : > { %v5948_v13 = vpop.f32.mrf.mxu1 }
0x15ef   : > { %v5953_v11 = vsel %vm5951_vm10, %v5946_v49, %v5952_v5  ;;  %v11485_v49 = vld [vmem:[#allocation36 + $0x18] ss:$12 sps:$4 sm:$0xff]   ;;  %v11489_v5 = vld [vmem:[#allocation36] ss:$12 sps:$4 sm:$0xff]  }
0x15f0   : > { %v5961_v17 = vmul.f32 %v9645_v9, %v5953_v11  ;;  %v10627_v52 = vpop.f32.mrf.mxu1  ;;  %6494 = vmatpush1.bf16.msra.mxu0 %v11485_v49 }
0x15f2   : > { %v5969_v60 = vadd.f32 %v9646_v15, %v5961_v17  ;;  %v9647_v17 = vld [vmem:[#allocation29] ss:$0 sm:$0xff] }
0x15f4   : > { %v6139_v62 = vrot.slane %v5969_v60, %v6138_v19  ;;  %v6149_v2 = vrot.slane %v5969_v60, %v6148_v36  ;;  %v6159_v6 = vrot.slane %v5969_v60, %v6158_v51  ;;  %v6169_v35 = vrot.slane %v5969_v60, %v13605_v34 }
0x15f5   : > { %v6099_v37 = vrot.slane %v5969_v60, %v13602_v32  ;;  %v6109_v59 = vrot.slane %v5969_v60, %v13813_v1  ;;  %v6119_v0 = vrot.slane %v5969_v60, %v13817_v3  ;;  %v6129_v45 = vrot.slane %v5969_v60, %v6128_v57 }
0x15f6   : > { %6140 = vst [vmem:[#allocation7 + $0x10] sm:$0x3] %v6139_v62  ;;  %6150 = vst [vmem:[#allocation7 + $0x14] sm:$0x3] %v6149_v2  ;;  %v6336_v2 = vld [vmem:[%s14624_s7] sm:$0x7]  ;;  %s14387_s7 = scalar_lea.hbm %s13180_s17, %s9796_s27 }
0x15f7   : > { %6160 = vst [vmem:[#allocation7 + $0x18] sm:$0x3] %v6159_v6  ;;  %6170 = vst [vmem:[#allocation7 + $0x1c] sm:$0x3] %v6169_v35  ;;  %v6341_v35 = vrot.slane %v6336_v2, %v13602_v32 }
0x15f8   : > { %6100 = vst [vmem:[#allocation7] sm:$0x3] %v6099_v37  ;;  %6110 = vst [vmem:[#allocation7 + $0x4] sm:$0x3] %v6109_v59  ;;  %v6349_v59 = vrot.slane %v6336_v2, %v13817_v3 }
0x15f9   : > { %6120 = vst [vmem:[#allocation7 + $0x8] sm:$0x3] %v6119_v0  ;;  %6130 = vst [vmem:[#allocation7 + $0xc] sm:$0x3] %v6129_v45 }
0x1603   : > { %v6085_v27 = vpop.f32.mrf.mxu0 }
0x1605   : > { %v10646_v50 = vpop.f32.mrf.mxu0 }
0x1607   : > { %v6088_v53 = vpop.f32.mrf.mxu0 }
0x1609   : > { %v10647_v55 = vpop.f32.mrf.mxu0 }
0x160a   : > { %v10191_v58 = vpop.f32.mrf.mxu1 }
0x160c   : > { %v10192_v61 = vpop.f32.mrf.mxu1 }
0x160d   : > { %v10193_v8 = vadd.f32 %v10192_v61, %v10191_v58 }
0x160e   : > { %v10194_v10 = vpop.f32.mrf.mxu1 }
0x160f   : > { %v6046_v39 = vadd.f32 %v10193_v8, %v6006_v63 }
0x1610   : > { %v10195_v40 = vpop.f32.mrf.mxu1 }
0x1611   : > { %v6086_v41 = vadd.f32 %v6085_v27, %v6046_v39 }
0x1613   : > { %vm6091_vm11 = vcmp.ge.f32.partialorder %v6086_v41, 0.0  ;;  %v6092_v42 = vmul.f32 0.2, %v6086_v41 }
0x1615   : > { %v6093_v38 = vsel %vm6091_vm11, %v6086_v41, %v6092_v42 }
0x1616   : > { %v6094_v43 = vmul.f32 %v9645_v9, %v6093_v38  ;;  %v11492_v9 = vld [vmem:[#allocation36 + $0x8] ss:$12 sps:$4 sm:$0xff]  }
0x1618   : > { %v6095_v44 = vadd.f32 %v9646_v15, %v6094_v43  ;;  %v6345_v43 = vrot.slane %v6336_v2, %v13813_v1 }
0x161a   : > { %v6104_v46 = vrot.slane %v6095_v44, %v13602_v32  ;;  %v6114_v47 = vrot.slane %v6095_v44, %v13813_v1  ;;  %v6124_v21 = vrot.slane %v6095_v44, %v13817_v3  ;;  %v6134_v23 = vrot.slane %v6095_v44, %v6128_v57 }
0x161b   : > { %v6144_v25 = vrot.slane %v6095_v44, %v6138_v19  ;;  %v6154_v12 = vrot.slane %v6095_v44, %v6148_v36  ;;  %v6164_v14 = vrot.slane %v6095_v44, %v6158_v51  ;;  %v6174_v16 = vrot.slane %v6095_v44, %v13605_v34  ;;  %v11472_v34 = vld [vmem:[#allocation36 + $0x80] ss:$12 sps:$4 sm:$0xff]  }
0x161c   : > { %6105 = vst [vmem:[#allocation7 + $0x2] sm:$0x3] %v6104_v46  ;;  %6115 = vst [vmem:[#allocation7 + $0x6] sm:$0x3] %v6114_v47 }
0x161d   : > { %6125 = vst [vmem:[#allocation7 + $0xa] sm:$0x3] %v6124_v21  ;;  %6135 = vst [vmem:[#allocation7 + $0xe] sm:$0x3] %v6134_v23 }
0x161e   : > { %6145 = vst [vmem:[#allocation7 + $0x12] sm:$0x3] %v6144_v25  ;;  %6155 = vst [vmem:[#allocation7 + $0x16] sm:$0x3] %v6154_v12 }
0x161f   : > { %6165 = vst [vmem:[#allocation7 + $0x1a] sm:$0x3] %v6164_v14  ;;  %6175 = vst [vmem:[#allocation7 + $0x1e] sm:$0x3] %v6174_v16 }
0x1623   : > { %v6176_v18 = vld [vmem:[#allocation7] sm:$0xff] }
0x1624   : > { %v6177_v20 = vld [vmem:[#allocation7 + $0x8] sm:$0xff] }
0x1625   : > { %v6180_v22 = vpack.c.bf16 %v6177_v20, %v6176_v18  ;;  %v6178_v24 = vld [vmem:[#allocation7 + $0x10] sm:$0xff] }
0x1626   : > { %v6179_v26 = vld [vmem:[#allocation7 + $0x18] sm:$0xff] }
0x1627   : > { %v6181_v28 = vpack.c.bf16 %v6179_v26, %v6178_v24  ;;  %10664 = vmatprep.mubr.bf16.mxu1 %v6180_v22 }
0x1629   : > { %10665 = vmatmul.mubr.bf16.vlgmr.msra.gmra.mxu1 %v6181_v28 }
0x162a   : > { %10669 = vmatpush3.bf16.msra.mxu1 %v14120_v4  ;;  %v11491_v4 = vld [vmem:[#allocation36 + $0x4] ss:$12 sps:$4 sm:$0xff]  }
0x162b   : > { %10670 = vmatprep.subr.bf16.mxu1 %v11468_v29  ;;  %6495 = vmatprep.subr.bf16.mxu0 %v11491_v4 }
0x162c   : > { %6496 = vmatpush1.bf16.msra.mxu0 %v11489_v5 }
0x162e   : > { %10671 = vmatpush3.bf16.msra.mxu1 %v11468_v29 }
0x162f   : > { %10672 = vmatprep.subr.bf16.mxu1 %v11472_v34 }
0x1632   : > { %10673 = vmatpush3.bf16.msra.mxu1 %v11472_v34 }
0x1633   : > { %10674 = vmatprep.subr.bf16.mxu1 %v11476_v30 }
0x1636   : > { %10675 = vmatpush3.bf16.msra.mxu1 %v11476_v30 }
0x1637   : > { %10676 = vmatprep.subr.bf16.mxu1 %v11480_v31 }
0x163a   : > { %10677 = vmatpush3.bf16.msra.mxu1 %v11480_v31 }
0x163b   : > { %10678 = vmatprep.subr.bf16.mxu1 %v11484_v33 }
0x163e   : > { %10679 = vmatpush3.bf16.msra.mxu1 %v11484_v33 }
0x163f   : > { %10680 = vmatprep.subr.bf16.mxu1 %v11488_v7 }
0x1642   : > { %10681 = vmatpush3.bf16.msra.mxu1 %v11488_v7 }
0x1643   : > { %10682 = vmatprep.subr.bf16.mxu1 %v11492_v9 }
0x1646   : > { %10683 = vmatpush3.bf16.msra.mxu1 %v11492_v9 }
0x16e9   : > { %v10666_v13 = vpop.f32.mrf.mxu1 }
0x16ea   : > { %v14142_v57 = vadd.f32 %v10666_v13, %v9647_v17 }
0x16eb   : > { %v6287_v11 = vpop.f32.mrf.mxu1 }
0x16ec   : > { %v14138_v51 = vadd.f32 %v9647_v17, %v6287_v11 }
0x16ed   : > { %v10667_v15 = vpop.f32.mrf.mxu1 }
0x16ee   : > { %v14136_v19 = vadd.f32 %v10667_v15, %v9647_v17 }
0x16ef   : > { %v6290_v36 = vpop.f32.mrf.mxu1 }
0x16f0   : > { %v14140_v52 = vadd.f32 %v9647_v17, %v6290_v36  ;;  %v6303_v62 = vpack.c.bf16 %v14136_v19, %v14142_v57 }
0x16f2   : > { %v6302_v60 = vpack.c.bf16 %v14140_v52, %v14138_v51 }
0x16f4   : > { %6514 = vmatmul.mubr.bf16.vlgmr.msra.gmra.mxu0 %v6302_v60  ;;  %10684 = vmatprep.mubr.bf16.mxu1 %v6302_v60 }
0x16f5   : > { %10685 = vmatmul.mubr.bf16.vlgmr.msra.gmra.mxu1 %v6303_v62  ;;  %6523 = vmatprep.mubr.bf16.mxu0 %v12893_v56 }
0x16fc   : > { %6524 = vmatmul.mubr.bf16.gmra.mxu0 %v6303_v62 }
0x17b4   : > { %v6515_v6 = vpop.f32.mrf.mxu0 }
0x17b5   : > { %v10686_v37 = vpop.f32.mrf.mxu1  ;;  %v6516_v50 = vadd.f32 %v6515_v6, %v6341_v35 }
0x17b6   : > { %v6517_v0 = vpop.f32.mrf.mxu0  ;;  %v6577_v55 = vadd.f32 %v10686_v37, %v6349_v59 }
0x17b7   : > { %v6568_v45 = vpop.f32.mrf.mxu1  ;;  %v6518_v23 = vadd.f32 %v6517_v0, %v6345_v43 }
0x17b8   : > { %v6519_v27 = vpop.f32.mrf.mxu0  ;;  %v6569_v10 = vadd.f32 %v6568_v45, %v6349_v59 }
0x17b9   : > { %v6520_v53 = vadd.f32 %v6519_v27, %v6341_v35  ;;  %v10687_v54 = vpop.f32.mrf.mxu1 }
0x17ba   : > { %v6580_v58 = vadd.f32 %v10687_v54, %v6349_v59  ;;  %v6521_v61 = vpop.f32.mrf.mxu0 }
0x17bb   : > { %v14152_v63 = vpack.c.bf16 %v6520_v53, %v6516_v50  ;;  %v6571_v8 = vpop.f32.mrf.mxu1  ;;  %v6522_v46 = vadd.f32 %v6521_v61, %v6345_v43 }
0x17bc   : > { %v14154_v39 = vpack.c.bf16 %v6580_v58, %v6577_v55  ;;  %v6572_v40 = vadd.f32 %v6571_v8, %v6349_v59  ;;  %v6525_v41 = vpop.f32.mrf.mxu0 }
0x17bd   : > { %10692 = vmatprep.mubr.msk.bf16.mxu0 %vm3680_vm5, %v14152_v63  ;;  %v14167_v12 = vpack.c.bf16 %v6522_v46, %v6518_v23  ;;  %v6526_v20 = vadd.f32 %v6525_v41, %v6341_v35 }
0x17be   : > { %v14158_v3 = vpack.c.bf16 %v6572_v40, %v6569_v10  ;;  %v6527_v42 = vpop.f32.mrf.mxu0  ;;  %10696 = vmatprep.subr.bf16.mxu1 %v14154_v39 }
0x17bf   : > { %10697 = vmatpush3.bf16.msra.mxu1 %v14154_v39  ;;  %v6528_v47 = vadd.f32 %v6527_v42, %v6345_v43  ;;  %v6596_v16 = vsel %vm3680_vm5, %v14167_v12, 0 }
0x17c0   : > { %v6529_v38 = vpop.f32.mrf.mxu0  ;;  %10698 = vmatprep.subr.bf16.mxu1 %v14158_v3 }
0x17c1   : > { %v6530_v18 = vadd.f32 %v6529_v38, %v6341_v35 }
0x17c2   : > { %v6531_v44 = vpop.f32.mrf.mxu0 }
0x17c3   : > { %v6532_v21 = vadd.f32 %v6531_v44, %v6345_v43  ;;  %10699 = vmatpush3.bf16.msra.mxu1 %v14158_v3  ;;  %v14177_v22 = vpack.c.bf16 %v6530_v18, %v6526_v20 }
0x17c5   : > { %v14165_v25 = vpack.c.bf16 %v6532_v21, %v6528_v47 }
0x17c7   : > { %10804 = vmatprep.subr.msk.bf16.mxu0 %vm3680_vm5, %v14165_v25  ;;  %v6599_v14 = vsel %vm3680_vm5, %v14165_v25, 0 }
0x17c8   : > { %10689 = vmatpush3.bf16.xpose.msra.mxu0 %v6599_v14 }
0x17c9   : > { %10805 = vmatprep.subr.msk.bf16.mxu0 %vm3680_vm5, %v14167_v12 }
0x17d0   : > { %10691 = vmatpush3.bf16.xpose.msra.mxu0 %v6596_v16 }
0x17d7   : > { %10693 = vmatmul.mubr.msk.bf16.vlgmr.msra.gmra.mxu0 %vm3680_vm5, %v14177_v22 }
0x1897   : > { %v10694_v24 = vpop.f32.mrf.mxu0 }
0x1898   : > { %v6652_v26 = vmul.f32 0.17677669, %v10694_v24 }
0x1899   : > { %v6635_v28 = vpop.f32.mrf.mxu0 }
0x189a   : > { %v6650_v29 = vmul.f32 0.17677669, %v6635_v28  ;;  %v6660_v34 = vsel %vm3680_vm5, %v6652_v26, -inf  ;;  %v11494_v28 = vld [vmem:[#allocation35] sm:$0xff]  }
0x189b   : > { %6661 = vmax.xlane.f32.xlu0 %v6660_v34  ;;  %v10695_v30 = vpop.f32.mrf.mxu0 }
0x189c   : > { %v6654_v48 = vsel %vm3680_vm5, %v6650_v29, -inf  ;;  %v6653_v49 = vmul.f32 0.17677669, %v10695_v30 }
0x189d   : > { %v6638_v31 = vpop.f32.mrf.mxu0 }
0x189e   : > { %v6651_v33 = vmul.f32 0.17677669, %v6638_v31  ;;  %v6663_v4 = vsel %vm3680_vm5, %v6653_v49, -inf }
0x189f   : > { %6655 = vmax.xlane.f32.xlu0 %v6654_v48 }
0x18a0   : > { %v6657_v7 = vsel %vm3680_vm5, %v6651_v33, -inf }
0x18a3   : > { %6658 = vmax.xlane.f32.xlu0 %v6657_v7 }
0x18a7   : > { %6664 = vmax.xlane.f32.xlu0 %v6663_v4 }
0x1924   : > { %v6662_v5 = vpop.xlane.xlu0 %6661 }
0x1925   : > { %v6668_v9 = vsub.f32 %v6652_v26, %v6662_v5  ;;  %v11493_v26 = vld [vmem:[#allocation35 + $0x8] sm:$0xff]  }
0x1927   : > { %v6674_v13 = vmul.f32 1.442695, %v6668_v9 }
0x1928   : > { %v6656_v11 = vpop.xlane.xlu0 %6655 }
0x1929   : > { %11607 = vpow2.f32 %v6674_v13  ;;  %v6666_v15 = vsub.f32 %v6650_v29, %v6656_v11 }
0x192b   : > { %v6670_v17 = vmul.f32 1.442695, %v6666_v15 }
0x192c   : > { %v6659_v36 = vpop.xlane.xlu0 %6658 }
0x192d   : > { %11609 = vpow2.f32 %v6670_v17  ;;  %v6667_v60 = vsub.f32 %v6651_v33, %v6659_v36 }
0x192f   : > { %v6672_v62 = vmul.f32 1.442695, %v6667_v60 }
0x1930   : > { %v6665_v2 = vpop.xlane.xlu0 %6664 }
0x1931   : > { %11611 = vpow2.f32 %v6672_v62  ;;  %v6669_v6 = vsub.f32 %v6653_v49, %v6665_v2 }
0x1933   : > { %v6676_v35 = vmul.f32 1.442695, %v6669_v6 }
0x1935   : > { %11613 = vpow2.f32 %v6676_v35 }
0x1936   : > { %v11608_v37 = vpop.eup %11607 }
0x1937   : > { %v6684_v59 = vsel %vm3680_vm5, %v11608_v37, 0.0 }
0x1938   : > { %6685 = vadd.xlane.f32.xlu1 %v6684_v59 }
0x193a   : > { %v11610_v0 = vpop.eup %11609 }
0x193b   : > { %v6678_v45 = vsel %vm3680_vm5, %v11610_v0, 0.0 }
0x193c   : > { %6679 = vadd.xlane.f32.xlu1 %v6678_v45 }
0x193e   : > { %v11612_v27 = vpop.eup %11611 }
0x193f   : > { %v6681_v50 = vsel %vm3680_vm5, %v11612_v27, 0.0 }
0x1940   : > { %6682 = vadd.xlane.f32.xlu0 %v6681_v50 }
0x1942   : > { %v11614_v53 = vpop.eup %11613 }
0x1943   : > { %v6687_v54 = vsel %vm3680_vm5, %v11614_v53, 0.0 }
0x1944   : > { %6688 = vadd.xlane.f32.xlu0 %v6687_v54 }
0x194d   : > { %6771 = vrot.lane.b32.xlu1 %v14165_v25, %s12894_s15 }
0x1951   : > { %6763 = vrot.lane.b32.xlu1 %v14152_v63, %s12894_s15 }
0x1955   : > { %6765 = vrot.lane.b32.xlu1 %v14177_v22, %s12894_s15 }
0x195a   : > { %6769 = vrot.lane.b32.xlu0 %v14167_v12, %s12894_s15 }
0x19c1   : > { %v6686_v55 = vpop.xlane.xlu1 %6685 }
0x19c5   : > { %v6680_v58 = vpop.xlane.xlu1 %6679 }
0x19c6   : > { %11615 = vrcp.f32 %v6680_v58 }
0x19c9   : > { %v6772_v61 = vpop.permute.xlu1 %6771  ;;  %v6683_v8 = vpop.xlane.xlu0 %6682 }
0x19ca   : > { %11617 = vrcp.f32 %v6683_v8  ;;  %10806 = vmatprep.subr.msk.bf16.mxu1 %vm3680_vm5, %v6772_v61  ;;  %v6783_v14 = vsel %vm3680_vm5, %v6772_v61, 0 }
0x19cb   : > { %11619 = vrcp.f32 %v6686_v55 }
0x19cd   : > { %v6689_v10 = vpop.xlane.xlu0 %6688  ;;  %v6764_v16 = vpop.permute.xlu1 %6763 }
0x19ce   : > { %11621 = vrcp.f32 %v6689_v10 }
0x19d1   : > { %v6770_v18 = vpop.permute.xlu0 %6769  ;;  %v6766_v24 = vpop.permute.xlu1 %6765 }
0x19d2   : > { %v6780_v20 = vsel %vm3680_vm5, %v6770_v18, 0 }
0x19d3   : > { %v11616_v40 = vpop.eup %11615 }
0x19d4   : > { %v6691_v42 = vmul.f32 %v11616_v40, %v11610_v0 }
0x19d7   : > { %v11618_v41 = vpop.eup %11617 }
0x19d8   : > { %v6693_v38 = vmul.f32 %v11618_v41, %v11612_v27  ;;  %v11620_v43 = vpop.eup %11619 }
0x19d9   : > { %v6695_v47 = vmul.f32 %v11620_v43, %v11608_v37 }
0x19da   : > { %v6698_v44 = vpack.c.bf16 %v6693_v38, %v6691_v42 }
0x19db   : > { %v11622_v46 = vpop.eup %11621 }
0x19dc   : > { %10700 = vmatprep.mubr.msk.bf16.mxu1 %vm3680_vm5, %v6698_v44  ;;  %v6697_v21 = vmul.f32 %v11622_v46, %v11614_v53 }
0x19de   : > { %v6699_v23 = vpack.c.bf16 %v6697_v21, %v6695_v47 }
0x19e0   : > { %10701 = vmatmul.mubr.msk.bf16.vlgmr.msra.gmra.mxu1 %vm3680_vm5, %v6699_v23 }
0x19e1   : > { %10705 = vmatpush3.bf16.xpose.msra.mxu1 %v6783_v14  ;;  %10708 = vmatprep.mubr.msk.bf16.mxu1 %vm3680_vm5, %v6764_v16 }
0x19e2   : > { %10807 = vmatprep.subr.msk.bf16.mxu1 %vm3680_vm5, %v6770_v18 }
0x19e9   : > { %10707 = vmatpush3.bf16.xpose.msra.mxu1 %v6780_v20 }
0x19ea   : > { %10728 = vmatprep.subr.bf16.mxu1 %v11493_v26 }
0x19f0   : > { %10709 = vmatmul.mubr.msk.bf16.vlgmr.msra.gmra.mxu1 %vm3680_vm5, %v6766_v24 }
0x19f1   : > { %10729 = vmatpush3.bf16.msra.mxu1 %v11493_v26 }
0x19f2   : > { %10730 = vmatprep.subr.bf16.mxu1 %v11494_v28 }
0x19f5   : > { %10731 = vmatpush3.bf16.msra.mxu1 %v11494_v28 }
0x1aa0   : > { %v10702_v29 = vpop.f32.mrf.mxu1 }
0x1aa2   : > { %v6740_v34 = vpop.f32.mrf.mxu1 }
0x1aa4   : > { %v10703_v30 = vpop.f32.mrf.mxu1 }
0x1aa5   : > { %v6756_v48 = vpack.c.bf16 %v10703_v30, %v10702_v29  ;;  %v11496_v29 = vld [vmem:[#allocation35 + $0x10] sm:$0xff]  }
0x1aa6   : > { %v6743_v31 = vpop.f32.mrf.mxu1 }
0x1aa7   : > { %v6755_v33 = vpack.c.bf16 %v6743_v31, %v6740_v34 }
0x1aa9   : > { %10732 = vmatprep.mubr.msk.bf16.mxu1 %vm3680_vm5, %v6755_v33 }
0x1aaa   : > { %10733 = vmatmul.mubr.msk.bf16.vlgmr.msra.gmra.mxu1 %vm3680_vm5, %v6756_v48 }
0x1ab0   : > { %v10710_v49 = vpop.f32.mrf.mxu1 }
0x1ab1   : > { %v6836_v9 = vmul.f32 0.17677669, %v10710_v49 }
0x1ab2   : > { %v6819_v7 = vpop.f32.mrf.mxu1 }
0x1ab3   : > { %v6834_v4 = vmul.f32 0.17677669, %v6819_v7  ;;  %v6844_v36 = vsel %vm3680_vm5, %v6836_v9, -inf }
0x1ab4   : > { %v10711_v5 = vpop.f32.mrf.mxu1 }
0x1ab5   : > { %v6838_v13 = vsel %vm3680_vm5, %v6834_v4, -inf  ;;  %v6837_v17 = vmul.f32 0.17677669, %v10711_v5 }
0x1ab6   : > { %6839 = vmax.xlane.f32.xlu0 %v6838_v13  ;;  %v6822_v11 = vpop.f32.mrf.mxu1 }
0x1ab7   : > { %v6835_v15 = vmul.f32 0.17677669, %v6822_v11  ;;  %v6847_v62 = vsel %vm3680_vm5, %v6837_v17, -inf }
0x1ab9   : > { %v6841_v60 = vsel %vm3680_vm5, %v6835_v15, -inf }
0x1aba   : > { %6845 = vmax.xlane.f32.xlu0 %v6844_v36  ;;  %6842 = vmax.xlane.f32.xlu1 %v6841_v60 }
0x1abe   : > { %6848 = vmax.xlane.f32.xlu0 %v6847_v62 }
0x1b3f   : > { %v6840_v2 = vpop.xlane.xlu0 %6839 }
0x1b40   : > { %v6850_v6 = vsub.f32 %v6834_v4, %v6840_v2 }
0x1b42   : > { %v6854_v0 = vmul.f32 1.442695, %v6850_v6 }
0x1b43   : > { %v6846_v35 = vpop.xlane.xlu0 %6845  ;;  %v6843_v37 = vpop.xlane.xlu1 %6842 }
0x1b44   : > { %v6852_v59 = vsub.f32 %v6836_v9, %v6846_v35  ;;  %v6851_v27 = vsub.f32 %v6835_v15, %v6843_v37 }
0x1b46   : > { %v6858_v45 = vmul.f32 1.442695, %v6852_v59  ;;  %v6856_v54 = vmul.f32 1.442695, %v6851_v27 }
0x1b47   : > { %v6849_v50 = vpop.xlane.xlu0 %6848 }
0x1b48   : > { %11623 = vpow2.f32 %v6858_v45  ;;  %v6853_v53 = vsub.f32 %v6837_v17, %v6849_v50 }
0x1b49   : > { %11625 = vpow2.f32 %v6854_v0 }
0x1b4a   : > { %v6860_v55 = vmul.f32 1.442695, %v6853_v53 }
0x1b4c   : > { %11627 = vpow2.f32 %v6860_v55 }
0x1b4d   : > { %11629 = vpow2.f32 %v6856_v54 }
0x1b55   : > { %v11624_v58 = vpop.eup %11623 }
0x1b56   : > { %v6868_v61 = vsel %vm3680_vm5, %v11624_v58, 0.0  ;;  %v11626_v8 = vpop.eup %11625 }
0x1b57   : > { %6869 = vadd.xlane.f32.xlu1 %v6868_v61  ;;  %v6862_v41 = vsel %vm3680_vm5, %v11626_v8, 0.0 }
0x1b59   : > { %v11628_v10 = vpop.eup %11627 }
0x1b5a   : > { %v6871_v40 = vsel %vm3680_vm5, %v11628_v10, 0.0  ;;  %v11630_v42 = vpop.eup %11629 }
0x1b5b   : > { %6872 = vadd.xlane.f32.xlu0 %v6871_v40  ;;  %6863 = vadd.xlane.f32.xlu1 %v6862_v41  ;;  %v6865_v38 = vsel %vm3680_vm5, %v11630_v42, 0.0 }
0x1b5f   : > { %6866 = vadd.xlane.f32.xlu0 %v6865_v38 }
0x1b6c   : > { %6888 = vrot.lane.b32.xlu1 %v14154_v39, %s12894_s15 }
0x1b70   : > { %7093 = vrot.lane.b32.xlu1 %v14165_v25, %s12895_s3 }
0x1b74   : > { %7091 = vrot.lane.b32.xlu1 %v14167_v12, %s12895_s3 }
0x1b75   : > { %6886 = vrot.lane.b32.xlu0 %v14158_v3, %s12894_s15  ;;  %s14625_s15 = sld [smem:[#allocation103_spill]] }
0x1b78   : > { %7089 = vrot.lane.b32.xlu1 %v14177_v22, %s12895_s3 }
0x1b79   : > { %7087 = vrot.lane.b32.xlu0 %v14152_v63, %s12895_s3 }
0x1b7c   : > { %7348 = vrot.lane.b32.xlu1 %v14167_v12, %s12896_s5  ;;  %v11495_v12 = vld [vmem:[#allocation35 + $0x18] sm:$0xff]  }
0x1b7d   : > { %7350 = vrot.lane.b32.xlu0 %v14165_v25, %s12896_s5 }
0x1b80   : > { %7346 = vrot.lane.b32.xlu1 %v14177_v22, %s12896_s5 }
0x1b81   : > { %7344 = vrot.lane.b32.xlu0 %v14152_v63, %s12896_s5 }
0x1be0   : > { %v6870_v43 = vpop.xlane.xlu1 %6869 }
0x1be4   : > { %v6873_v44 = vpop.xlane.xlu0 %6872  ;;  %v6864_v46 = vpop.xlane.xlu1 %6863 }
0x1be5   : > { %11631 = vrcp.f32 %v6873_v44 }
0x1be6   : > { %11633 = vrcp.f32 %v6864_v46 }
0x1be7   : > { %11635 = vrcp.f32 %v6870_v43 }
0x1be8   : > { %v6867_v47 = vpop.xlane.xlu0 %6866  ;;  %v6889_v21 = vpop.permute.xlu1 %6888 }
0x1be9   : > { %11637 = vrcp.f32 %v6867_v47  ;;  %10712 = vmatprep.subr.bf16.mxu0 %v6889_v21 }
0x1bea   : > { %10713 = vmatpush3.bf16.msra.mxu0 %v6889_v21 }
0x1bec   : > { %v6887_v23 = vpop.permute.xlu0 %6886  ;;  %v7094_v34 = vpop.permute.xlu1 %7093 }
0x1bed   : > { %10714 = vmatprep.subr.bf16.mxu0 %v6887_v23  ;;  %v7105_v4 = vsel %vm3680_vm5, %v7094_v34, 0 }
0x1bee   : > { %10715 = vmatpush3.bf16.msra.mxu0 %v6887_v23 }
0x1bef   : > { %10720 = vmatprep.subr.bf16.mxu0 %v11495_v12 }
0x1bf0   : > { %v7088_v5 = vpop.permute.xlu0 %7087  ;;  %v7092_v9 = vpop.permute.xlu1 %7091 }
0x1bf1   : > { %v7102_v13 = vsel %vm3680_vm5, %v7092_v9, 0 }
0x1bf2   : > { %v11632_v25 = vpop.eup %11631 }
0x1bf3   : > { %v11634_v22 = vpop.eup %11633  ;;  %v6881_v16 = vmul.f32 %v11632_v25, %v11628_v10 }
0x1bf4   : > { %v11636_v14 = vpop.eup %11635  ;;  %v6875_v18 = vmul.f32 %v11634_v22, %v11626_v8  ;;  %v7351_v11 = vpop.permute.xlu0 %7350 }
0x1bf5   : > { %v6879_v24 = vmul.f32 %v11636_v14, %v11624_v58  ;;  %v7090_v15 = vpop.permute.xlu1 %7089  ;;  %v7362_v17 = vsel %vm3680_vm5, %v7351_v11, 0 }
0x1bf6   : > { %v11638_v63 = vpop.eup %11637 }
0x1bf7   : > { %v6877_v20 = vmul.f32 %v11638_v63, %v11630_v42  ;;  %v6883_v28 = vpack.c.bf16 %v6881_v16, %v6879_v24 }
0x1bf8   : > { %v7345_v36 = vpop.permute.xlu0 %7344 }
0x1bf9   : > { %v6882_v26 = vpack.c.bf16 %v6877_v20, %v6875_v18  ;;  %v7349_v60 = vpop.permute.xlu1 %7348 }
0x1bfa   : > { %v7359_v62 = vsel %vm3680_vm5, %v7349_v60, 0 }
0x1bfb   : > { %10716 = vmatprep.mubr.msk.bf16.mxu0 %vm3680_vm5, %v6882_v26 }
0x1bfc   : > { %10717 = vmatmul.mubr.msk.bf16.vlgmr.msra.gmra.mxu0 %vm3680_vm5, %v6883_v28 }
0x1bfd   : > { %10721 = vmatpush3.bf16.msra.mxu0 %v11495_v12  ;;  %v7347_v2 = vpop.permute.xlu1 %7346 }
0x1bfe   : > { %10722 = vmatprep.subr.bf16.mxu0 %v11496_v29 }
0x1c01   : > { %10723 = vmatpush3.bf16.msra.mxu0 %v11496_v29 }
0x1c02   : > { %10808 = vmatprep.subr.msk.bf16.mxu0 %vm3680_vm5, %v7094_v34 }
0x1cbc   : > { %v10718_v30 = vpop.f32.mrf.mxu0 }
0x1cbe   : > { %v6932_v31 = vpop.f32.mrf.mxu0 }
0x1cc0   : > { %v10719_v33 = vpop.f32.mrf.mxu0 }
0x1cc1   : > { %v6948_v7 = vpack.c.bf16 %v10719_v33, %v10718_v30 }
0x1cc2   : > { %v6935_v48 = vpop.f32.mrf.mxu0 }
0x1cc3   : > { %v6947_v49 = vpack.c.bf16 %v6935_v48, %v6932_v31 }
0x1cc5   : > { %10724 = vmatprep.mubr.msk.bf16.mxu0 %vm3680_vm5, %v6947_v49 }
0x1cc6   : > { %10725 = vmatmul.mubr.msk.bf16.vlgmr.msra.gmra.mxu0 %vm3680_vm5, %v6948_v7 }
0x1cc7   : > { %10737 = vmatpush3.bf16.xpose.msra.mxu0 %v7105_v4  ;;  %10740 = vmatprep.mubr.msk.bf16.mxu0 %vm3680_vm5, %v7088_v5 }
0x1cc8   : > { %10809 = vmatprep.subr.msk.bf16.mxu0 %vm3680_vm5, %v7092_v9 }
0x1ccf   : > { %10739 = vmatpush3.bf16.xpose.msra.mxu0 %v7102_v13 }
0x1cd0   : > { %10810 = vmatprep.subr.msk.bf16.mxu0 %vm3680_vm5, %v7351_v11 }
0x1cd6   : > { %10741 = vmatmul.mubr.msk.bf16.vlgmr.msra.gmra.mxu0 %vm3680_vm5, %v7090_v15 }
0x1cd7   : > { %10761 = vmatpush3.bf16.xpose.msra.mxu0 %v7362_v17  ;;  %10764 = vmatprep.mubr.msk.bf16.mxu0 %vm3680_vm5, %v7345_v36 }
0x1cd8   : > { %10811 = vmatprep.subr.msk.bf16.mxu0 %vm3680_vm5, %v7349_v60 }
0x1cdf   : > { %10763 = vmatpush3.bf16.xpose.msra.mxu0 %v7359_v62 }
0x1ce6   : > { %10765 = vmatmul.mubr.msk.bf16.vlgmr.msra.gmra.mxu0 %vm3680_vm5, %v7347_v2 }
0x1ce7   : > { %7824 = vmatprep.mubr.bf16.mxu0 %v12893_v56 }
0x1d86   : > { %v14252_v6 = vpop.f32.mrf.mxu0 }
0x1d88   : > { %v14254_v35 = vpop.f32.mrf.mxu0 }
0x1d8a   : > { %v14256_v37 = vpop.f32.mrf.mxu0 }
0x1d8c   : > { %v14258_v59 = vpop.f32.mrf.mxu0 }
0x1d96   : > { %v10742_v0 = vpop.f32.mrf.mxu0 }
0x1d97   : > { %v7158_v53 = vmul.f32 0.17677669, %v10742_v0 }
0x1d98   : > { %v7141_v45 = vpop.f32.mrf.mxu0 }
0x1d99   : > { %v7156_v27 = vmul.f32 0.17677669, %v7141_v45  ;;  %v7166_v8 = vsel %vm3680_vm5, %v7158_v53, -inf }
0x1d9a   : > { %v10743_v50 = vpop.f32.mrf.mxu0 }
0x1d9b   : > { %v7160_v54 = vsel %vm3680_vm5, %v7156_v27, -inf  ;;  %v7159_v61 = vmul.f32 0.17677669, %v10743_v50 }
0x1d9c   : > { %7161 = vmax.xlane.f32.xlu0 %v7160_v54  ;;  %v7144_v55 = vpop.f32.mrf.mxu0 }
0x1d9d   : > { %v7157_v58 = vmul.f32 0.17677669, %v7144_v55  ;;  %v7169_v40 = vsel %vm3680_vm5, %v7159_v61, -inf }
0x1d9f   : > { %v7163_v10 = vsel %vm3680_vm5, %v7157_v58, -inf }
0x1da0   : > { %7167 = vmax.xlane.f32.xlu0 %v7166_v8  ;;  %7164 = vmax.xlane.f32.xlu1 %v7163_v10 }
0x1da4   : > { %7170 = vmax.xlane.f32.xlu0 %v7169_v40 }
0x1da6   : > { %v10766_v29 = vpop.f32.mrf.mxu0 }
0x1da7   : > { %v7415_v48 = vmul.f32 0.17677669, %v10766_v29 }
0x1da8   : > { %v7398_v34 = vpop.f32.mrf.mxu0 }
0x1da9   : > { %v7413_v31 = vmul.f32 0.17677669, %v7398_v34  ;;  %v7423_v5 = vsel %vm3680_vm5, %v7415_v48, -inf }
0x1daa   : > { %v10767_v30 = vpop.f32.mrf.mxu0 }
0x1dab   : > { %v7417_v7 = vsel %vm3680_vm5, %v7413_v31, -inf  ;;  %v7416_v4 = vmul.f32 0.17677669, %v10767_v30 }
0x1dac   : > { %v7401_v33 = vpop.f32.mrf.mxu0 }
0x1dad   : > { %v7414_v49 = vmul.f32 0.17677669, %v7401_v33  ;;  %v7426_v13 = vsel %vm3680_vm5, %v7416_v4, -inf }
0x1daf   : > { %v7420_v9 = vsel %vm3680_vm5, %v7414_v49, -inf }
0x1e25   : > { %v7162_v41 = vpop.xlane.xlu0 %7161 }
0x1e26   : > { %v7172_v42 = vsub.f32 %v7156_v27, %v7162_v41 }
0x1e28   : > { %v7176_v46 = vmul.f32 1.442695, %v7172_v42 }
0x1e29   : > { %v7168_v38 = vpop.xlane.xlu0 %7167  ;;  %v7165_v43 = vpop.xlane.xlu1 %7164 }
0x1e2a   : > { %v7174_v44 = vsub.f32 %v7158_v53, %v7168_v38  ;;  %v7173_v21 = vsub.f32 %v7157_v58, %v7165_v43 }
0x1e2c   : > { %v7180_v47 = vmul.f32 1.442695, %v7174_v44  ;;  %v7178_v25 = vmul.f32 1.442695, %v7173_v21 }
0x1e2d   : > { %v7171_v12 = vpop.xlane.xlu0 %7170 }
0x1e2e   : > { %11639 = vpow2.f32 %v7180_v47  ;;  %v7175_v23 = vsub.f32 %v7159_v61, %v7171_v12 }
0x1e2f   : > { %11641 = vpow2.f32 %v7176_v46 }
0x1e30   : > { %v7182_v22 = vmul.f32 1.442695, %v7175_v23 }
0x1e32   : > { %11643 = vpow2.f32 %v7182_v22 }
0x1e33   : > { %11645 = vpow2.f32 %v7178_v25 }
0x1e3b   : > { %v11640_v14 = vpop.eup %11639 }
0x1e3c   : > { %v7190_v63 = vsel %vm3680_vm5, %v11640_v14, 0.0  ;;  %v11642_v16 = vpop.eup %11641 }
0x1e3d   : > { %7191 = vadd.xlane.f32.xlu1 %v7190_v63  ;;  %v7184_v24 = vsel %vm3680_vm5, %v11642_v16, 0.0 }
0x1e3f   : > { %v11644_v18 = vpop.eup %11643 }
0x1e40   : > { %v7193_v20 = vsel %vm3680_vm5, %v11644_v18, 0.0  ;;  %v11646_v26 = vpop.eup %11645 }
0x1e41   : > { %7194 = vadd.xlane.f32.xlu0 %v7193_v20  ;;  %7185 = vadd.xlane.f32.xlu1 %v7184_v24  ;;  %v7187_v28 = vsel %vm3680_vm5, %v11646_v26, 0.0  ;;  %v11497_v24 = vld [vmem:[#allocation35 + $0x28] sm:$0xff]  }
0x1e45   : > { %7188 = vadd.xlane.f32.xlu0 %v7187_v28  ;;  %v10734_v28 = vpop.f32.mrf.mxu1 }
0x1e47   : > { %v7072_v29 = vpop.f32.mrf.mxu1 }
0x1e49   : > { %v10735_v34 = vpop.f32.mrf.mxu1 }
0x1e4b   : > { %v7075_v30 = vpop.f32.mrf.mxu1 }
0x1e52   : > { %7208 = vrot.lane.b32.xlu1 %v14154_v39, %s12895_s3 }
0x1e5b   : > { %7206 = vrot.lane.b32.xlu0 %v14158_v3, %s12895_s3  ;;  %s14626_s3 = sld [smem:[#allocation102_spill]] }
0x1e76   : > { %7418 = vmax.xlane.f32.xlu1 %v7417_v7 }
0x1e7a   : > { %7424 = vmax.xlane.f32.xlu1 %v7423_v5  ;;  %7421 = vmax.xlane.f32.xlu0 %v7420_v9 }
0x1e7e   : > { %7427 = vmax.xlane.f32.xlu0 %v7426_v13 }
0x1ec6   : > { %v7192_v11 = vpop.xlane.xlu1 %7191 }
0x1eca   : > { %v7195_v15 = vpop.xlane.xlu0 %7194  ;;  %v7186_v17 = vpop.xlane.xlu1 %7185 }
0x1ecb   : > { %11647 = vrcp.f32 %v7195_v15 }
0x1ecc   : > { %11649 = vrcp.f32 %v7186_v17 }
0x1ecd   : > { %11651 = vrcp.f32 %v7192_v11 }
0x1ece   : > { %v7189_v36 = vpop.xlane.xlu0 %7188  ;;  %v7209_v60 = vpop.permute.xlu1 %7208 }
0x1ecf   : > { %11653 = vrcp.f32 %v7189_v36  ;;  %10744 = vmatprep.subr.bf16.mxu1 %v7209_v60 }
0x1ed0   : > { %10745 = vmatpush3.bf16.msra.mxu1 %v7209_v60 }
0x1ed2   : > { %v7207_v62 = vpop.permute.xlu0 %7206 }
0x1ed3   : > { %10746 = vmatprep.subr.bf16.mxu1 %v7207_v62 }
0x1ed4   : > { %10747 = vmatpush3.bf16.msra.mxu1 %v7207_v62 }
0x1ed5   : > { %10752 = vmatprep.subr.bf16.mxu1 %v11497_v24 }
0x1ed8   : > { %v11648_v2 = vpop.eup %11647 }
0x1ed9   : > { %v11650_v0 = vpop.eup %11649  ;;  %v7203_v50 = vmul.f32 %v11648_v2, %v11644_v18 }
0x1eda   : > { %v11652_v45 = vpop.eup %11651  ;;  %v7197_v53 = vmul.f32 %v11650_v0, %v11642_v16 }
0x1edb   : > { %v7201_v55 = vmul.f32 %v11652_v45, %v11640_v14 }
0x1edc   : > { %v11654_v27 = vpop.eup %11653 }
0x1edd   : > { %v7199_v54 = vmul.f32 %v11654_v27, %v11646_v26  ;;  %v7205_v61 = vpack.c.bf16 %v7203_v50, %v7201_v55  ;;  %v11498_v26 = vld [vmem:[#allocation35 + $0x20] sm:$0xff]   ;;  %v7081_v55 = vadd.f32 %v10734_v28, %v14252_v6 }
0x1edf   : > { %v7204_v58 = vpack.c.bf16 %v7199_v54, %v7197_v53  ;;  %v11499_v53 = vld [vmem:[#allocation35 + $0x38] sm:$0xff]   ;;  %v11500_v54 = vld [vmem:[#allocation35 + $0x30] sm:$0xff]  }
0x1ee1   : > { %10748 = vmatprep.mubr.msk.bf16.mxu1 %vm3680_vm5, %v7204_v58 }
0x1ee2   : > { %10749 = vmatmul.mubr.msk.bf16.vlgmr.msra.gmra.mxu1 %vm3680_vm5, %v7205_v61  ;;  %v7073_v61 = vadd.f32 %v7072_v29, %v14254_v35 }
0x1ee3   : > { %10753 = vmatpush3.bf16.msra.mxu1 %v11497_v24 }
0x1ee4   : > { %10754 = vmatprep.subr.bf16.mxu1 %v11498_v26 }
0x1ee7   : > { %10755 = vmatpush3.bf16.msra.mxu1 %v11498_v26 }
0x1eff   : > { %v7419_v8 = vpop.xlane.xlu1 %7418 }
0x1f00   : > { %v7429_v10 = vsub.f32 %v7413_v31, %v7419_v8 }
0x1f02   : > { %v7433_v44 = vmul.f32 1.442695, %v7429_v10 }
0x1f03   : > { %v7422_v40 = vpop.xlane.xlu0 %7421  ;;  %v7425_v41 = vpop.xlane.xlu1 %7424 }
0x1f04   : > { %v7431_v42 = vsub.f32 %v7415_v48, %v7425_v41  ;;  %v7430_v38 = vsub.f32 %v7414_v49, %v7422_v40  ;;  %v7084_v40 = vadd.f32 %v10735_v34, %v14256_v37 }
0x1f06   : > { %v7437_v43 = vmul.f32 1.442695, %v7431_v42  ;;  %v7435_v21 = vmul.f32 1.442695, %v7430_v38  ;;  %v7076_v38 = vadd.f32 %v7075_v30, %v14258_v59 }
0x1f07   : > { %v7428_v46 = vpop.xlane.xlu0 %7427 }
0x1f08   : > { %v7432_v47 = vsub.f32 %v7416_v4, %v7428_v46  ;;  %11655 = vpow2.f32 %v7437_v43 }
0x1f09   : > { %11657 = vpow2.f32 %v7433_v44 }
0x1f0a   : > { %v7439_v12 = vmul.f32 1.442695, %v7432_v47 }
0x1f0c   : > { %11659 = vpow2.f32 %v7439_v12 }
0x1f0d   : > { %11661 = vpow2.f32 %v7435_v21 }
0x1f15   : > { %v11656_v23 = vpop.eup %11655 }
0x1f16   : > { %v7447_v25 = vsel %vm3680_vm5, %v11656_v23, 0.0  ;;  %v11658_v22 = vpop.eup %11657 }
0x1f17   : > { %7448 = vadd.xlane.f32.xlu1 %v7447_v25  ;;  %v7441_v18 = vsel %vm3680_vm5, %v11658_v22, 0.0 }
0x1f19   : > { %v11660_v14 = vpop.eup %11659 }
0x1f1a   : > { %v7450_v63 = vsel %vm3680_vm5, %v11660_v14, 0.0  ;;  %v11662_v16 = vpop.eup %11661 }
0x1f1b   : > { %7451 = vadd.xlane.f32.xlu0 %v7450_v63  ;;  %7442 = vadd.xlane.f32.xlu1 %v7441_v18  ;;  %v7444_v20 = vsel %vm3680_vm5, %v11662_v16, 0.0  ;;  %v9712_v63 = vld [vmem:[#allocation33] ss:$0 sm:$0xff] }
0x1f1f   : > { %7445 = vadd.xlane.f32.xlu0 %v7444_v20 }
0x1f2c   : > { %7465 = vrot.lane.b32.xlu1 %v14154_v39, %s12896_s5 }
0x1f35   : > { %7463 = vrot.lane.b32.xlu0 %v14158_v3, %s12896_s5  ;;  %s14627_s5 = sld [smem:[#allocation100_spill]] }
0x1fa0   : > { %v7449_v31 = vpop.xlane.xlu1 %7448 }
0x1fa2   : > { %v10750_v33 = vpop.f32.mrf.mxu1 }
0x1fa4   : > { %v7452_v48 = vpop.xlane.xlu0 %7451  ;;  %v7252_v49 = vpop.f32.mrf.mxu1 }
0x1fa5   : > { %v7443_v7 = vpop.xlane.xlu1 %7442  ;;  %11663 = vrcp.f32 %v7452_v48  ;;  %v11501_v48 = vld [vmem:[#allocation38 + $0x70] ss:$8 sps:$4 sm:$0xff]  }
0x1fa6   : > { %v10751_v4 = vpop.f32.mrf.mxu1  ;;  %11665 = vrcp.f32 %v7443_v7 }
0x1fa7   : > { %11667 = vrcp.f32 %v7449_v31  ;;  %v7268_v11 = vpack.c.bf16 %v10751_v4, %v10750_v33 }
0x1fa8   : > { %v7446_v5 = vpop.xlane.xlu0 %7445  ;;  %v7255_v9 = vpop.f32.mrf.mxu1 }
0x1fa9   : > { %11669 = vrcp.f32 %v7446_v5  ;;  %v7267_v39 = vpack.c.bf16 %v7255_v9, %v7252_v49  ;;  %v7466_v13 = vpop.permute.xlu1 %7465  ;;  %v11503_v49 = vld [vmem:[#allocation38 + $0x74] ss:$8 sps:$4 sm:$0xff]  }
0x1faa   : > { %10768 = vmatprep.subr.bf16.mxu1 %v7466_v13  ;;  %7792 = vmatprep.subr.bf16.mxu0 %v11503_v49 }
0x1fab   : > { %10756 = vmatprep.mubr.msk.bf16.mxu1 %vm3680_vm5, %v7267_v39  ;;  %7793 = vmatpush1.bf16.msra.mxu0 %v11501_v48 }
0x1fac   : > { %v7464_v3 = vpop.permute.xlu0 %7463  ;;  %10757 = vmatmul.mubr.msk.bf16.vlgmr.msra.gmra.mxu1 %vm3680_vm5, %v7268_v11 }
0x1fad   : > { %10769 = vmatpush3.bf16.msra.mxu1 %v7466_v13 }
0x1fae   : > { %10770 = vmatprep.subr.bf16.mxu1 %v7464_v3 }
0x1fb1   : > { %10771 = vmatpush3.bf16.msra.mxu1 %v7464_v3 }
0x1fb2   : > { %v11664_v15 = vpop.eup %11663  ;;  %10776 = vmatprep.subr.bf16.mxu1 %v11499_v53 }
0x1fb3   : > { %v11666_v17 = vpop.eup %11665  ;;  %v7460_v62 = vmul.f32 %v11664_v15, %v11660_v14 }
0x1fb4   : > { %v11668_v36 = vpop.eup %11667  ;;  %v7454_v2 = vmul.f32 %v11666_v17, %v11658_v22 }
0x1fb5   : > { %v7458_v45 = vmul.f32 %v11668_v36, %v11656_v23 }
0x1fb6   : > { %v11670_v60 = vpop.eup %11669 }
0x1fb7   : > { %v7456_v0 = vmul.f32 %v11670_v60, %v11662_v16  ;;  %v7462_v50 = vpack.c.bf16 %v7460_v62, %v7458_v45  ;;  %v11506_v62 = vld [vmem:[#allocation38 + $0x64] ss:$8 sps:$4 sm:$0xff]   ;;  %v11507_v45 = vld [vmem:[#allocation38 + $0x50] ss:$8 sps:$4 sm:$0xff]  }
0x1fb8   : > { %7794 = vmatprep.subr.bf16.mxu0 %v11506_v62  ;;  %v7700_v62 = vld [vmem:[%s14627_s5] sm:$0x3]  ;;  %s14393_s5 = scalar_lea.sflag [#allocation68], %s8694_s1 }
0x1fb9   : > { %v7461_v27 = vpack.c.bf16 %v7456_v0, %v7454_v2  ;;  %v11504_v2 = vld [vmem:[#allocation38 + $0x60] ss:$8 sps:$4 sm:$0xff]   ;;  %v11509_v0 = vld [vmem:[#allocation38 + $0x54] ss:$8 sps:$4 sm:$0xff]  }
0x1fba   : > { %7795 = vmatpush1.bf16.msra.mxu0 %v11504_v2  ;;  %v7705_v2 = vrot.slane %v7700_v62, %v13602_v32 }
0x1fbb   : > { %10772 = vmatprep.mubr.msk.bf16.mxu1 %vm3680_vm5, %v7461_v27  ;;  %7796 = vmatprep.subr.bf16.mxu0 %v11509_v0  ;;  %v11512_v27 = vld [vmem:[#allocation38 + $0x44] ss:$8 sps:$4 sm:$0xff]   ;;  %v7709_v0 = vrot.slane %v7700_v62, %v13813_v1 }
0x1fbc   : > { %10773 = vmatmul.mubr.msk.bf16.vlgmr.msra.gmra.mxu1 %vm3680_vm5, %v7462_v50  ;;  %v11510_v50 = vld [vmem:[#allocation38 + $0x40] ss:$8 sps:$4 sm:$0xff]  }
0x1fbd   : > { %10777 = vmatpush3.bf16.msra.mxu1 %v11499_v53  ;;  %v11513_v53 = vld [vmem:[#allocation38 + $0x30] ss:$8 sps:$4 sm:$0xff]  }
0x1fbe   : > { %10778 = vmatprep.subr.bf16.mxu1 %v11500_v54  ;;  %7797 = vmatpush1.bf16.msra.mxu0 %v11507_v45 }
0x1fbf   : > { %7798 = vmatprep.subr.bf16.mxu0 %v11512_v27 }
0x1fc1   : > { %10779 = vmatpush3.bf16.msra.mxu1 %v11500_v54  ;;  %v11515_v54 = vld [vmem:[#allocation38 + $0x34] ss:$8 sps:$4 sm:$0xff]  }
0x1fc2   : > { %7799 = vmatpush1.bf16.msra.mxu0 %v11510_v50 }
0x1fc3   : > { %7800 = vmatprep.subr.bf16.mxu0 %v11515_v54 }
0x1fc6   : > { %7801 = vmatpush1.bf16.msra.mxu0 %v11513_v53 }
0x206c   : > { %v10758_v58 = vpop.f32.mrf.mxu1 }
0x206d   : > { %v7342_v8 = vadd.f32 %v10758_v58, %v7081_v55  ;;  %v11518_v55 = vld [vmem:[#allocation38 + $0x24] ss:$8 sps:$4 sm:$0xff]   ;;  %v11516_v58 = vld [vmem:[#allocation38 + $0x20] ss:$8 sps:$4 sm:$0xff]  }
0x206e   : > { %v7325_v10 = vpop.f32.mrf.mxu1  ;;  %7802 = vmatprep.subr.bf16.mxu0 %v11518_v55 }
0x206f   : > { %v7340_v41 = vadd.f32 %v7325_v10, %v7073_v61  ;;  %v11521_v61 = vld [vmem:[#allocation38 + $0x14] ss:$8 sps:$4 sm:$0xff]   ;;  %7803 = vmatpush1.bf16.msra.mxu0 %v11516_v58  ;;  %v11524_v10 = vld [vmem:[#allocation38 + $0x4] ss:$8 sps:$4 sm:$0xff]  }
0x2070   : > { %v10759_v42 = vpop.f32.mrf.mxu1  ;;  %7804 = vmatprep.subr.bf16.mxu0 %v11521_v61 }
0x2071   : > { %v7343_v43 = vadd.f32 %v10759_v42, %v7084_v40  ;;  %v11522_v40 = vld [vmem:[#allocation38] ss:$8 sps:$4 sm:$0xff]  }
0x2072   : > { %v7328_v44 = vpop.f32.mrf.mxu1 }
0x2073   : > { %v7341_v46 = vadd.f32 %v7328_v44, %v7076_v38 }
0x207c   : > { %v10774_v47 = vpop.f32.mrf.mxu1 }
0x207e   : > { %v7509_v21 = vpop.f32.mrf.mxu1 }
0x2080   : > { %v10775_v12 = vpop.f32.mrf.mxu1 }
0x2081   : > { %v7525_v6 = vpack.c.bf16 %v10775_v12, %v10774_v47 }
0x2082   : > { %v7512_v23 = vpop.f32.mrf.mxu1 }
0x2083   : > { %v7524_v25 = vpack.c.bf16 %v7512_v23, %v7509_v21 }
0x2085   : > { %10780 = vmatprep.mubr.msk.bf16.mxu1 %vm3680_vm5, %v7524_v25 }
0x2086   : > { %10781 = vmatmul.mubr.msk.bf16.vlgmr.msra.gmra.mxu1 %vm3680_vm5, %v7525_v6 }
0x2146   : > { %v10782_v35 = vpop.f32.mrf.mxu1 }
0x2147   : > { %v7599_v37 = vadd.f32 %v10782_v35, %v7342_v8  ;;  %v11519_v8 = vld [vmem:[#allocation38 + $0x10] ss:$8 sps:$4 sm:$0xff]  }
0x2148   : > { %v7582_v22 = vpop.f32.mrf.mxu1  ;;  %7805 = vmatpush1.bf16.msra.mxu0 %v11519_v8 }
0x2149   : > { %v7597_v14 = vadd.f32 %v7582_v22, %v7340_v41  ;;  %v7610_v20 = vadd.f32 %v9712_v63, %v7599_v37  ;;  %7806 = vmatprep.subr.bf16.mxu0 %v11524_v10  ;;  %v9713_v37 = vld [vmem:[%s14625_s15] ss:$0 sm:$0xff]  ;;  %s8729_s15 = sshll.u32 %s2155_s13, 4  ;;  %s8730_s15 = int_to_ptr.vmem [resolvable:$true] %s8729_s15 }
0x214a   : > { %v10783_v16 = vpop.f32.mrf.mxu1 }
0x214b   : > { %v7608_v59 = vadd.f32 %v9712_v63, %v7597_v14  ;;  %v7600_v24 = vadd.f32 %v10783_v16, %v7343_v43  ;;  %v7614_v30 = vadd.f32 %v7610_v20, %v14142_v57 }
0x214c   : > { %v7585_v18 = vpop.f32.mrf.mxu1  ;;  %7807 = vmatpush1.bf16.msra.mxu0 %v11522_v40 }
0x214d   : > { %v7598_v26 = vadd.f32 %v7585_v18, %v7341_v46  ;;  %v7612_v28 = vadd.f32 %v7608_v59, %v14138_v51  ;;  %v7611_v34 = vadd.f32 %v9712_v63, %v7600_v24  ;;  %v9714_v18 = vld [vmem:[%s14626_s3] ss:$0 sm:$0xff]  ;;  %s8742_s3 = sshll.u32 %s2162_s18, 4  ;;  %s8743_s3 = int_to_ptr.vmem [resolvable:$true] %s8742_s3 }
0x214f   : > { %v7609_v29 = vadd.f32 %v9712_v63, %v7598_v26  ;;  %7618 = vadd.xlane.f32.xlu1 %v7612_v28  ;;  %v7615_v33 = vadd.f32 %v7611_v34, %v14136_v19 }
0x2151   : > { %v7613_v31 = vadd.f32 %v7609_v29, %v14140_v52 }
0x2153   : > { %7622 = vadd.xlane.f32.xlu1 %v7614_v30  ;;  %7620 = vadd.xlane.f32.xlu0 %v7613_v31 }
0x2157   : > { %7624 = vadd.xlane.f32.xlu0 %v7615_v33 }
0x21d8   : > { %v7619_v7 = vpop.xlane.xlu1 %7618 }
0x21d9   : > { %v7626_v4 = vmul.f32 0.0078125, %v7619_v7 }
0x21db   : > { %v14300_v5 = vsub.f32 %v7612_v28, %v7626_v4  ;;  %v11525_v4 = vld [vmem:[#allocation39 + $0x78] sm:$0xff]  }
0x21dc   : > { %v7623_v51 = vpop.xlane.xlu1 %7622  ;;  %v7621_v9 = vpop.xlane.xlu0 %7620  ;;  %10274 = vmatprep.subr.bf16.mxu1 %v11525_v4 }
0x21dd   : > { %v7628_v39 = vmul.f32 0.0078125, %v7623_v51  ;;  %v7627_v13 = vmul.f32 0.0078125, %v7621_v9  ;;  %v7634_v52 = vmul.f32 %v14300_v5, %v14300_v5  ;;  %v11527_v51 = vld [vmem:[#allocation39 + $0x70] sm:$0xff]  }
0x21de   : > { %v11528_v9 = vld [vmem:[#allocation39 + $0x30] sm:$0xff]  }
0x21df   : > { %v14304_v57 = vsub.f32 %v7614_v30, %v7628_v39  ;;  %v7631_v11 = vsub.f32 %v7613_v31, %v7627_v13  ;;  %7638 = vadd.xlane.f32.xlu1 %v7634_v52  ;;  %v11529_v39 = vld [vmem:[#allocation39 + $0x68] sm:$0xff]   ;;  %v11532_v52 = vld [vmem:[#allocation39 + $0x20] sm:$0xff]  }
0x21e0   : > { %v7625_v19 = vpop.xlane.xlu0 %7624  ;;  %v11530_v13 = vld [vmem:[#allocation39 + $0x28] sm:$0xff]  }
0x21e1   : > { %v7629_v3 = vmul.f32 0.0078125, %v7625_v19  ;;  %v7636_v15 = vmul.f32 %v14304_v57, %v14304_v57  ;;  %v7635_v17 = vmul.f32 %v7631_v11, %v7631_v11  ;;  %v11535_v19 = vld [vmem:[#allocation39 + $0x50] sm:$0xff]  }
0x21e3   : > { %v7633_v36 = vsub.f32 %v7615_v33, %v7629_v3  ;;  %7642 = vadd.xlane.f32.xlu1 %v7636_v15  ;;  %7640 = vadd.xlane.f32.xlu0 %v7635_v17  ;;  %v11536_v3 = vld [vmem:[#allocation39 + $0x10] sm:$0xff]   ;;  %v11537_v15 = vld [vmem:[#allocation39 + $0x48] sm:$0xff]  }
0x21e4   : > { %v11538_v17 = vld [vmem:[#allocation39 + $0x8] sm:$0xff]  }
0x21e5   : > { %v7637_v60 = vmul.f32 %v7633_v36, %v7633_v36 }
0x21e7   : > { %7644 = vadd.xlane.f32.xlu0 %v7637_v60  ;;  %v11540_v60 = vld [vmem:[#allocation39] sm:$0xff]  }
0x2268   : > { %v7639_v41 = vpop.xlane.xlu1 %7638 }
0x2269   : > { %v7646_v42 = vmul.f32 0.0078125, %v7639_v41 }
0x226b   : > { %v7650_v38 = vadd.f32 1e-05, %v7646_v42 }
0x226c   : > { %v7643_v43 = vpop.xlane.xlu1 %7642  ;;  %v7641_v44 = vpop.xlane.xlu0 %7640 }
0x226d   : > { %11671 = vrsqrt.f32 %v7650_v38  ;;  %v7648_v46 = vmul.f32 0.0078125, %v7643_v43  ;;  %v7647_v47 = vmul.f32 0.0078125, %v7641_v44 }
0x226f   : > { %v7651_v21 = vadd.f32 1e-05, %v7647_v47  ;;  %v7652_v12 = vadd.f32 1e-05, %v7648_v46 }
0x2270   : > { %v7645_v23 = vpop.xlane.xlu0 %7644 }
0x2271   : > { %v7649_v25 = vmul.f32 0.0078125, %v7645_v23  ;;  %11673 = vrsqrt.f32 %v7651_v21 }
0x2272   : > { %11675 = vrsqrt.f32 %v7652_v12 }
0x2273   : > { %v7653_v6 = vadd.f32 1e-05, %v7649_v25 }
0x2275   : > { %11677 = vrsqrt.f32 %v7653_v6 }
0x227a   : > { %v11672_v35 = vpop.eup %11671 }
0x227b   : > { %v7658_v22 = vmul.f32 %v11672_v35, %v14300_v5  ;;  %v11526_v5 = vld [vmem:[#allocation39 + $0x38] sm:$0xff]  }
0x227c   : > { %10275 = vmatpush3.bf16.msra.mxu1 %v11526_v5 }
0x227d   : > { %v7668_v16 = vmul.f32 %v9713_v37, %v7658_v22  ;;  %10276 = vmatprep.subr.bf16.mxu1 %v11527_v51 }
0x227e   : > { %v11674_v14 = vpop.eup %11673 }
0x227f   : > { %v7659_v63 = vmul.f32 %v11674_v14, %v7631_v11  ;;  %v11676_v59 = vpop.eup %11675  ;;  %v14311_v28 = vadd.f32 %v9714_v18, %v7668_v16  ;;  %v11534_v11 = vld [vmem:[#allocation39 + $0x18] sm:$0xff]  }
0x2280   : > { %v7660_v34 = vmul.f32 %v11676_v59, %v14304_v57  ;;  %10277 = vmatpush3.bf16.msra.mxu1 %v11528_v9  ;;  %v11533_v57 = vld [vmem:[#allocation39 + $0x58] sm:$0xff]  }
0x2281   : > { %v7669_v24 = vmul.f32 %v9713_v37, %v7659_v63  ;;  %10278 = vmatprep.subr.bf16.mxu1 %v11529_v39 }
0x2282   : > { %v11678_v20 = vpop.eup %11677  ;;  %v7670_v33 = vmul.f32 %v9713_v37, %v7660_v34 }
0x2283   : > { %v7661_v26 = vmul.f32 %v11678_v20, %v7633_v36  ;;  %v14313_v29 = vadd.f32 %v9714_v18, %v7669_v24  ;;  %v11539_v36 = vld [vmem:[#allocation39 + $0x40] sm:$0xff]  }
0x2284   : > { %v14321_v49 = vadd.f32 %v9714_v18, %v7670_v33  ;;  %10279 = vmatpush3.bf16.msra.mxu1 %v11530_v13 }
0x2285   : > { %v7682_v30 = vpack.c.bf16 %v14313_v29, %v14311_v28  ;;  %v7671_v31 = vmul.f32 %v9713_v37, %v7661_v26 }
0x2287   : > { %7825 = vmatmul.mubr.bf16.vlgmr.msra.gmra.mxu0 %v7682_v30  ;;  %v14319_v48 = vadd.f32 %v9714_v18, %v7671_v31 }
0x2288   : > { %7834 = vmatprep.mubr.bf16.mxu0 %v12893_v56  ;;  %v11531_v56 = vld [vmem:[#allocation39 + $0x60] sm:$0xff]  }
0x2289   : > { %v7683_v7 = vpack.c.bf16 %v14319_v48, %v14321_v49  ;;  %10280 = vmatprep.subr.bf16.mxu1 %v11531_v56 }
0x228a   : > { %10281 = vmatpush3.bf16.msra.mxu1 %v11532_v52 }
0x228b   : > { %10282 = vmatprep.subr.bf16.mxu1 %v11533_v57 }
0x228e   : > { %10283 = vmatpush3.bf16.msra.mxu1 %v11534_v11 }
0x228f   : > { %7835 = vmatmul.mubr.bf16.gmra.mxu0 %v7683_v7  ;;  %10284 = vmatprep.subr.bf16.mxu1 %v11535_v19 }
0x2292   : > { %10285 = vmatpush3.bf16.msra.mxu1 %v11536_v3 }
0x2293   : > { %10286 = vmatprep.subr.bf16.mxu1 %v11537_v15 }
0x2296   : > { %10287 = vmatpush3.bf16.msra.mxu1 %v11538_v17 }
0x2297   : > { %10288 = vmatprep.subr.bf16.mxu1 %v11539_v36 }
0x229a   : > { %10289 = vmatpush3.bf16.msra.mxu1 %v11540_v60 }
0x2347   : > { %v7826_v45 = vpop.f32.mrf.mxu0 }
0x2348   : > { %v14328_v27 = vadd.f32 %v7826_v45, %v7705_v2 }
0x2349   : > { %v7828_v50 = vpop.f32.mrf.mxu0 }
0x234a   : > { %v7853_v53 = vmul.f32 0.044715, %v14328_v27  ;;  %v14331_v54 = vadd.f32 %v7828_v50, %v7709_v0 }
0x234b   : > { %v7830_v55 = vpop.f32.mrf.mxu0 }
0x234c   : > { %v7861_v58 = vmul.f32 %v7853_v53, %v14328_v27  ;;  %v7854_v61 = vmul.f32 0.044715, %v14331_v54  ;;  %v7831_v8 = vadd.f32 %v7830_v55, %v7705_v2 }
0x234d   : > { %v7832_v10 = vpop.f32.mrf.mxu0 }
0x234e   : > { %v7869_v40 = vmul.f32 %v7861_v58, %v14328_v27  ;;  %v7862_v32 = vmul.f32 %v7854_v61, %v14331_v54  ;;  %v7855_v1 = vmul.f32 0.044715, %v7831_v8  ;;  %v7833_v41 = vadd.f32 %v7832_v10, %v7709_v0 }
0x234f   : > { %v7836_v42 = vpop.f32.mrf.mxu0  ;;  %v7847_v53 = vmul.f32 0.5, %v7831_v8  ;;  %v7846_v58 = vmul.f32 0.5, %v14331_v54 }
0x2350   : > { %v7877_v38 = vadd.f32 %v7869_v40, %v14328_v27  ;;  %v7870_v43 = vmul.f32 %v7862_v32, %v14331_v54  ;;  %v7863_v44 = vmul.f32 %v7855_v1, %v7831_v8  ;;  %v14339_v46 = vadd.f32 %v7836_v42, %v7705_v2 }
0x2351   : > { %v7856_v47 = vmul.f32 0.044715, %v7833_v41  ;;  %v7838_v21 = vpop.f32.mrf.mxu0  ;;  %v7848_v61 = vmul.f32 0.5, %v7833_v41  ;;  %v7845_v40 = vmul.f32 0.5, %v14328_v27 }
0x2352   : > { %v7885_v12 = vmul.f32 0.7978846, %v7877_v38  ;;  %v7871_v23 = vmul.f32 %v7863_v44, %v7831_v8  ;;  %v7857_v25 = vmul.f32 0.044715, %v14339_v46  ;;  %v14342_v6 = vadd.f32 %v7838_v21, %v7709_v0 }
0x2353   : > { %v7864_v35 = vmul.f32 %v7856_v47, %v7833_v41  ;;  %v7840_v22 = vpop.f32.mrf.mxu0  ;;  %v7878_v37 = vadd.f32 %v7870_v43, %v14331_v54 }
0x2354   : > { %v7879_v14 = vadd.f32 %v7871_v23, %v7831_v8  ;;  %v7865_v63 = vmul.f32 %v7857_v25, %v14339_v46  ;;  %v7858_v16 = vmul.f32 0.044715, %v14342_v6  ;;  %11679 = vtanh.f32 %v7885_v12 }
0x2355   : > { %v7872_v59 = vmul.f32 %v7864_v35, %v7833_v41  ;;  %v7841_v18 = vadd.f32 %v7840_v22, %v7705_v2  ;;  %v7842_v20 = vpop.f32.mrf.mxu0  ;;  %v7886_v24 = vmul.f32 0.7978846, %v7878_v37  ;;  %v7850_v8 = vmul.f32 0.5, %v14342_v6 }
0x2356   : > { %v7887_v26 = vmul.f32 0.7978846, %v7879_v14  ;;  %v7873_v34 = vmul.f32 %v7865_v63, %v14339_v46  ;;  %v7866_v30 = vmul.f32 %v7858_v16, %v14342_v6  ;;  %v7843_v31 = vadd.f32 %v7842_v20, %v7709_v0 }
0x2357   : > { %v7859_v33 = vmul.f32 0.044715, %v7841_v18  ;;  %v7880_v7 = vadd.f32 %v7872_v59, %v7833_v41  ;;  %11681 = vtanh.f32 %v7886_v24  ;;  %v7851_v22 = vmul.f32 0.5, %v7841_v18 }
0x2358   : > { %11683 = vtanh.f32 %v7887_v26  ;;  %v7881_v4 = vadd.f32 %v7873_v34, %v14339_v46  ;;  %v7874_v5 = vmul.f32 %v7866_v30, %v14342_v6  ;;  %v7860_v51 = vmul.f32 0.044715, %v7843_v31  ;;  %v9731_v34 = vld [vmem:[#allocation32] ss:$0 sm:$0xff] }
0x2359   : > { %v7867_v9 = vmul.f32 %v7859_v33, %v7841_v18  ;;  %v7888_v39 = vmul.f32 0.7978846, %v7880_v7  ;;  %v7852_v54 = vmul.f32 0.5, %v7843_v31  ;;  %v7849_v63 = vmul.f32 0.5, %v14339_v46 }
0x235a   : > { %v7868_v13 = vmul.f32 %v7860_v51, %v7843_v31  ;;  %v7882_v56 = vadd.f32 %v7874_v5, %v14342_v6  ;;  %v7889_v57 = vmul.f32 0.7978846, %v7881_v4 }
0x235b   : > { %v7875_v52 = vmul.f32 %v7867_v9, %v7841_v18  ;;  %11685 = vtanh.f32 %v7888_v39 }
0x235c   : > { %v7876_v11 = vmul.f32 %v7868_v13, %v7843_v31  ;;  %v7890_v19 = vmul.f32 0.7978846, %v7882_v56 }
0x235d   : > { %v7883_v3 = vadd.f32 %v7875_v52, %v7841_v18 }
0x235e   : > { %v7884_v15 = vadd.f32 %v7876_v11, %v7843_v31  ;;  %11687 = vtanh.f32 %v7890_v19 }
0x235f   : > { %v7891_v17 = vmul.f32 0.7978846, %v7883_v3  ;;  %11689 = vtanh.f32 %v7889_v57 }
0x2360   : > { %v7892_v36 = vmul.f32 0.7978846, %v7884_v15 }
0x2361   : > { %11691 = vtanh.f32 %v7891_v17  ;;  %v11680_v60 = vpop.eup %11679 }
0x2362   : > { %11693 = vtanh.f32 %v7892_v36  ;;  %v7901_v55 = vadd.f32 1.0, %v11680_v60 }
0x2364   : > { %v11682_v62 = vpop.eup %11681  ;;  %v7909_v43 = vmul.f32 %v7901_v55, %v7845_v40  ;;  %v11543_v40 = vld [vmem:[#allocation20 + $0x70] sm:$0xff]  }
0x2365   : > { %v11684_v2 = vpop.eup %11683  ;;  %v7902_v45 = vadd.f32 1.0, %v11682_v62 }
0x2366   : > { %v7903_v0 = vadd.f32 1.0, %v11684_v2 }
0x2367   : > { %v7910_v42 = vmul.f32 %v7902_v45, %v7846_v58 }
0x2368   : > { %v11686_v50 = vpop.eup %11685  ;;  %v7911_v32 = vmul.f32 %v7903_v0, %v7847_v53 }
0x2369   : > { %v7904_v10 = vadd.f32 1.0, %v11686_v50 }
0x236a   : > { %v7917_v12 = vpack.c.bf16 %v7911_v32, %v7909_v43  ;;  %v11544_v32 = vld [vmem:[#allocation20 + $0x30] sm:$0xff]   ;;  %v11548_v43 = vld [vmem:[#allocation20 + $0x28] sm:$0xff]  }
0x236b   : > { %v11688_v1 = vpop.eup %11687  ;;  %v7912_v38 = vmul.f32 %v7904_v10, %v7848_v61  ;;  %v11541_v61 = vld [vmem:[#allocation20 + $0x78] sm:$0xff]  }
0x236c   : > { %v11690_v44 = vpop.eup %11689  ;;  %v7906_v23 = vadd.f32 1.0, %v11688_v1  ;;  %v11542_v10 = vld [vmem:[#allocation20 + $0x38] sm:$0xff]   ;;  %10302 = vmatprep.subr.bf16.mxu0 %v11541_v61 }
0x236d   : > { %v7918_v47 = vpack.c.bf16 %v7912_v38, %v7910_v42  ;;  %v7905_v27 = vadd.f32 1.0, %v11690_v44  ;;  %10303 = vmatpush3.bf16.msra.mxu0 %v11542_v10  ;;  %v11545_v1 = vld [vmem:[#allocation20 + $0xf8] sm:$0xff]   ;;  %v11547_v38 = vld [vmem:[#allocation20 + $0x68] sm:$0xff]   ;;  %v11549_v44 = vld [vmem:[#allocation20 + $0xf0] sm:$0xff]  }
0x236e   : > { %v11692_v21 = vpop.eup %11691  ;;  %v7914_v37 = vmul.f32 %v7906_v23, %v7850_v8  ;;  %10304 = vmatprep.subr.bf16.mxu0 %v11543_v40  ;;  %v11546_v42 = vld [vmem:[#allocation20 + $0xb8] sm:$0xff]   ;;  %10330 = vmatprep.subr.bf16.mxu1 %v11545_v1  ;;  %v11553_v23 = vld [vmem:[#allocation20 + $0xe8] sm:$0xff]  }
0x236f   : > { %v11694_v25 = vpop.eup %11693  ;;  %8088 = vmatprep.mubr.bf16.mxu1 %v7918_v47  ;;  %v7907_v35 = vadd.f32 1.0, %v11692_v21  ;;  %v7913_v20 = vmul.f32 %v7905_v27, %v7849_v63  ;;  %v11550_v47 = vld [vmem:[#allocation20 + $0xb0] sm:$0xff]   ;;  %v11551_v21 = vld [vmem:[#allocation20 + $0x60] sm:$0xff]   ;;  %v11555_v8 = vld [vmem:[#allocation20 + $0x58] sm:$0xff]  }
0x2370   : > { %8089 = vmatmul.mubr.bf16.vlgmr.msra.gmra.mxu1 %v7917_v12  ;;  %v7908_v41 = vadd.f32 1.0, %v11694_v25  ;;  %v11552_v12 = vld [vmem:[#allocation20 + $0x20] sm:$0xff]   ;;  %v11554_v25 = vld [vmem:[#allocation20 + $0xa8] sm:$0xff]   ;;  %v11560_v27 = vld [vmem:[#allocation20 + $0x10] sm:$0xff]  }
0x2371   : > { %v7915_v16 = vmul.f32 %v7907_v35, %v7851_v22  ;;  %10305 = vmatpush3.bf16.msra.mxu0 %v11544_v32  ;;  %10331 = vmatpush3.bf16.msra.mxu1 %v11546_v42  ;;  %v11556_v35 = vld [vmem:[#allocation20 + $0x18] sm:$0xff]   ;;  %v11559_v22 = vld [vmem:[#allocation20 + $0x50] sm:$0xff]   ;;  %v11563_v63 = vld [vmem:[#allocation20 + $0x48] sm:$0xff]  }
0x2372   : > { %v7916_v14 = vmul.f32 %v7908_v41, %v7852_v54  ;;  %10306 = vmatprep.subr.bf16.mxu0 %v11547_v38  ;;  %10332 = vmatprep.subr.bf16.mxu1 %v11549_v44  ;;  %v11557_v54 = vld [vmem:[#allocation20 + $0xe0] sm:$0xff]  }
0x2373   : > { %v7919_v24 = vpack.c.bf16 %v7915_v16, %v7913_v20  ;;  %v11558_v41 = vld [vmem:[#allocation20 + $0xa0] sm:$0xff]   ;;  %v11564_v16 = vld [vmem:[#allocation20 + $0x8] sm:$0xff]   ;;  %v11566_v20 = vld [vmem:[#allocation20 + $0x90] sm:$0xff]  }
0x2374   : > { %v7920_v59 = vpack.c.bf16 %v7916_v14, %v7914_v37  ;;  %v11561_v37 = vld [vmem:[#allocation20 + $0xd8] sm:$0xff]  }
0x2375   : > { %10307 = vmatpush3.bf16.msra.mxu0 %v11548_v43  ;;  %10333 = vmatpush3.bf16.msra.mxu1 %v11550_v47  ;;  %v11562_v14 = vld [vmem:[#allocation20 + $0x98] sm:$0xff]   ;;  %v11574_v43 = vld [vmem:[#allocation20 + $0x130] sm:$0xff]  }
0x2376   : > { %8096 = vmatprep.mubr.bf16.mxu1 %v7920_v59  ;;  %10308 = vmatprep.subr.bf16.mxu0 %v11551_v21  ;;  %v11565_v59 = vld [vmem:[#allocation20 + $0xd0] sm:$0xff]  }
0x2377   : > { %10334 = vmatprep.subr.bf16.mxu1 %v11553_v23 }
0x2378   : > { %8097 = vmatmul.mubr.bf16.gmra.mxu1 %v7919_v24  ;;  %v11567_v24 = vld [vmem:[#allocation20 + $0x40] sm:$0xff]  }
0x2379   : > { %10309 = vmatpush3.bf16.msra.mxu0 %v11552_v12  ;;  %10335 = vmatpush3.bf16.msra.mxu1 %v11554_v25 }
0x237a   : > { %10310 = vmatprep.subr.bf16.mxu0 %v11555_v8  ;;  %10336 = vmatprep.subr.bf16.mxu1 %v11557_v54 }
0x237d   : > { %10311 = vmatpush3.bf16.msra.mxu0 %v11556_v35  ;;  %10337 = vmatpush3.bf16.msra.mxu1 %v11558_v41 }
0x237e   : > { %10312 = vmatprep.subr.bf16.mxu0 %v11559_v22  ;;  %10338 = vmatprep.subr.bf16.mxu1 %v11561_v37 }
0x2381   : > { %10313 = vmatpush3.bf16.msra.mxu0 %v11560_v27  ;;  %10339 = vmatpush3.bf16.msra.mxu1 %v11562_v14 }
0x2382   : > { %10314 = vmatprep.subr.bf16.mxu0 %v11563_v63  ;;  %10340 = vmatprep.subr.bf16.mxu1 %v11565_v59  ;;  %v11576_v63 = vld [vmem:[#allocation20 + $0x120] sm:$0xff]  }
0x2385   : > { %10315 = vmatpush3.bf16.msra.mxu0 %v11564_v16  ;;  %10341 = vmatpush3.bf16.msra.mxu1 %v11566_v20  ;;  %v11577_v20 = vld [vmem:[#allocation20 + $0x118] sm:$0xff]  }
0x2386   : > { %10316 = vmatprep.subr.bf16.mxu0 %v11567_v24  ;;  %v11578_v24 = vld [vmem:[#allocation20 + $0x110] sm:$0xff]  }
0x2430   : > { %v10290_v26 = vpop.f32.mrf.mxu1 }
0x2432   : > { %v10291_v30 = vpop.f32.mrf.mxu1 }
0x2433   : > { %v10292_v6 = vadd.f32 %v10291_v30, %v10290_v26  ;;  %v11568_v26 = vld [vmem:[#allocation20] sm:$0xff]   ;;  %v11570_v30 = vld [vmem:[#allocation20 + $0x88] sm:$0xff]  }
0x2434   : > { %v10293_v33 = vpop.f32.mrf.mxu1  ;;  %10317 = vmatpush3.bf16.msra.mxu0 %v11568_v26  ;;  %v11579_v26 = vld [vmem:[#allocation20 + $0x108] sm:$0xff]  }
0x2435   : > { %v8091_v7 = vadd.f32 %v10292_v6, %v9731_v34  ;;  %v11571_v6 = vld [vmem:[#allocation20 + $0x138] sm:$0xff]  }
0x2436   : > { %v10294_v31 = vpop.f32.mrf.mxu1  ;;  %10784 = vmatprep.subr.bf16.mxu0 %v11571_v6 }
0x2437   : > { %v10295_v4 = vadd.f32 %v10294_v31, %v10293_v33  ;;  %v8105_v18 = vadd.f32 %v8091_v7, %v14311_v28  ;;  %v11572_v33 = vld [vmem:[#allocation20 + $0xc0] sm:$0xff]  }
0x2438   : > { %v10296_v5 = vpop.f32.mrf.mxu1  ;;  %v11573_v7 = vld [vmem:[#allocation20 + $0x80] sm:$0xff]  }
0x2439   : > { %v8094_v51 = vadd.f32 %v10295_v4, %v9731_v34  ;;  %8111 = vadd.xlane.f32.xlu1 %v8105_v18 }
0x243a   : > { %v10297_v46 = vpop.f32.mrf.mxu1 }
0x243b   : > { %v10298_v9 = vadd.f32 %v10297_v46, %v10296_v5  ;;  %v8106_v39 = vadd.f32 %v8094_v51, %v14313_v29 }
0x243c   : > { %v10299_v13 = vpop.f32.mrf.mxu1 }
0x243d   : > { %v8099_v56 = vadd.f32 %v10298_v9, %v9731_v34  ;;  %8113 = vadd.xlane.f32.xlu0 %v8106_v39 }
0x243e   : > { %v10300_v52 = vpop.f32.mrf.mxu1 }
0x243f   : > { %v10301_v57 = vadd.f32 %v10300_v52, %v10299_v13  ;;  %v8107_v11 = vadd.f32 %v8099_v56, %v14321_v49 }
0x2441   : > { %v8102_v19 = vadd.f32 %v10301_v57, %v9731_v34  ;;  %8115 = vadd.xlane.f32.xlu1 %v8107_v11  ;;  %v11569_v34 = vld [vmem:[#allocation20 + $0xc8] sm:$0xff]  }
0x2442   : > { %10342 = vmatprep.subr.bf16.mxu1 %v11569_v34  ;;  %v11580_v34 = vld [vmem:[#allocation20 + $0x100] sm:$0xff]  }
0x2443   : > { %v8108_v3 = vadd.f32 %v8102_v19, %v14319_v48  ;;  %10343 = vmatpush3.bf16.msra.mxu1 %v11570_v30  ;;  %v9748_v19 = vld [vmem:[%s14628_s16] ss:$0 sm:$0xff]  ;;  %s12599_s16 = scalar_lea.vmem %s8730_s15, 128 }
0x2444   : > { %10344 = vmatprep.subr.bf16.mxu1 %v11572_v33  ;;  %p12600_p1 = scmp.ne.s32.totalorder %s8730_s15, %s12599_s16 }
0x2445   : > { %8117 = vadd.xlane.f32.xlu0 %v8108_v3 }
0x2446   : > { %p12601_p7 = pnand %p12600_p1, %p14631_p12 }
0x2447   : > { %10345 = vmatpush3.bf16.msra.mxu1 %v11573_v7 }
0x2448   : > { %p12602_p8 = pneg %p12601_p7 }
0x24c2   : > { %v8112_v28 = vpop.xlane.xlu1 %8111 }
0x24c3   : > { %v8119_v15 = vmul.f32 0.0078125, %v8112_v28  ;;  %v9749_v28 = vld [vmem:[%s14629_s10] ss:$0 sm:$0xff]  ;;  %s12897_s10 = smov [#allocation67]  }
0x24c4   : > { %s12603_s2 = sshll.u32 %s12897_s10, 4  ;;  %s12604_s2 = int_to_ptr.vmem [resolvable:$false] %s12603_s2 }
0x24c5   : > { %v14360_v17 = vsub.f32 %v8105_v18, %v8119_v15  ;;  %s12605_s6 = scalar_lea.vmem %s12604_s2, 256  ;;  %p12606_p4 = scmp.lt.s32.totalorder %s8730_s15, %s12604_s2 }
0x24c6   : > { %v8114_v36 = vpop.xlane.xlu0 %8113  ;;  %p12607_p0 = scmp.lt.s32.totalorder %s12605_s6, %s12599_s16 }
0x24c7   : > { %v8120_v60 = vmul.f32 0.0078125, %v8114_v36  ;;  %v8127_v29 = vmul.f32 %v14360_v17, %v14360_v17 }
0x24c8   : > { %p12608_p2 = por %p12607_p0, %p12606_p4 }
0x24c9   : > { %v14364_v62 = vsub.f32 %v8106_v39, %v8120_v60  ;;  %8131 = vadd.xlane.f32.xlu1 %v8127_v29 }
0x24ca   : > { %v8116_v2 = vpop.xlane.xlu1 %8115  ;;  %p12609_p3 = pnand %p12608_p2, %p12602_p8 }
0x24cb   : > { %v8121_v0 = vmul.f32 0.0078125, %v8116_v2  ;;  %v8128_v49 = vmul.f32 %v14364_v62, %v14364_v62 }
0x24cd   : > { %v14368_v45 = vsub.f32 %v8107_v11, %v8121_v0  ;;  %8133 = vadd.xlane.f32.xlu0 %v8128_v49 }
0x24ce   : > { %v8118_v48 = vpop.xlane.xlu0 %8117 }
0x24cf   : > { %v8122_v50 = vmul.f32 0.0078125, %v8118_v48  ;;  %v8129_v53 = vmul.f32 %v14368_v45, %v14368_v45 }
0x24d1   : > { %v14372_v55 = vsub.f32 %v8108_v3, %v8122_v50  ;;  %8135 = vadd.xlane.f32.xlu1 %v8129_v53 }
0x24d3   : > { %v8130_v58 = vmul.f32 %v14372_v55, %v14372_v55 }
0x24d5   : > { %8137 = vadd.xlane.f32.xlu0 %v8130_v58 }
0x2552   : > { %v8132_v31 = vpop.xlane.xlu1 %8131 }
0x2553   : > { %v8139_v4 = vmul.f32 0.0078125, %v8132_v31 }
0x2555   : > { %v8143_v18 = vadd.f32 1e-05, %v8139_v4 }
0x2556   : > { %v8134_v5 = vpop.xlane.xlu0 %8133 }
0x2557   : > { %11695 = vrsqrt.f32 %v8143_v18  ;;  %v8140_v51 = vmul.f32 0.0078125, %v8134_v5 }
0x2559   : > { %v8144_v46 = vadd.f32 1e-05, %v8140_v51 }
0x255a   : > { %v8136_v9 = vpop.xlane.xlu1 %8135 }
0x255b   : > { %11697 = vrsqrt.f32 %v8144_v46  ;;  %v8141_v39 = vmul.f32 0.0078125, %v8136_v9 }
0x255d   : > { %v8145_v13 = vadd.f32 1e-05, %v8141_v39 }
0x255e   : > { %v8138_v56 = vpop.xlane.xlu0 %8137 }
0x255f   : > { %11699 = vrsqrt.f32 %v8145_v13  ;;  %v8142_v52 = vmul.f32 0.0078125, %v8138_v56 }
0x2561   : > { %v8146_v57 = vadd.f32 1e-05, %v8142_v52 }
0x2563   : > { %11701 = vrsqrt.f32 %v8146_v57 }
0x2564   : > { %v11696_v11 = vpop.eup %11695 }
0x2565   : > { %v8151_v3 = vmul.f32 %v11696_v11, %v14360_v17 }
0x2567   : > { %v8161_v15 = vmul.f32 %v9748_v19, %v8151_v3 }
0x2568   : > { %v11698_v36 = vpop.eup %11697 }
0x2569   : > { %v8171_v60 = vadd.f32 %v9749_v28, %v8161_v15  ;;  %v8152_v29 = vmul.f32 %v11698_v36, %v14364_v62 }
0x256b   : > { %8175 = vst [vmem:[#allocation8 + $0x2] sm:$0xff] %v8171_v60  ;;  %v8162_v2 = vmul.f32 %v9748_v19, %v8152_v29 }
0x256c   : > { %v11700_v0 = vpop.eup %11699 }
0x256d   : > { %v8172_v49 = vadd.f32 %v9749_v28, %v8162_v2  ;;  %v8153_v48 = vmul.f32 %v11700_v0, %v14368_v45 }
0x256f   : > { %8176 = vst [vmem:[#allocation8 + $0xa] sm:$0xff] %v8172_v49  ;;  %v8163_v50 = vmul.f32 %v9748_v19, %v8153_v48  ;;  %v8203_v21 = vpack.c.bf16 %v8172_v49, %v8171_v60 }
0x2570   : > { %v11702_v53 = vpop.eup %11701 }
0x2571   : > { %v8173_v58 = vadd.f32 %v9749_v28, %v8163_v50  ;;  %v8154_v61 = vmul.f32 %v11702_v53, %v14372_v55  ;;  %v11575_v55 = vld [vmem:[#allocation20 + $0x128] sm:$0xff]  }
0x2572   : > { %v8185_v40 = vld [vmem:[#allocation8 + $0x1] sm:$0xff] }
0x2573   : > { %8177 = vst [vmem:[#allocation8 + $0x12] sm:$0xff] %v8173_v58  ;;  %v8164_v17 = vmul.f32 %v9748_v19, %v8154_v61  ;;  %v8181_v1 = vld [vmem:[#allocation8] sm:$0xff] }
0x2575   : > { %v8174_v10 = vadd.f32 %v9749_v28, %v8164_v17 }
0x2576   : > { %v8186_v32 = vld [vmem:[#allocation8 + $0x9] sm:$0xff] }
0x2577   : > { %v8182_v42 = vld [vmem:[#allocation8 + $0x8] sm:$0xff]  ;;  %8178 = vst [vmem:[#allocation8 + $0x1a] sm:$0xff] %v8174_v10  ;;  %v8202_v62 = vpack.c.bf16 %v8186_v32, %v8185_v40  ;;  %v8208_v59 = vpack.c.bf16 %v8174_v10, %v8173_v58 }
0x2578   : > { %v8201_v38 = vpack.c.bf16 %v8182_v42, %v8181_v1  ;;  %v8193_v45 = vld [vmem:[#allocation8 + $0x3] sm:$0xff] }
0x2579   : > { %8570 = vmatprep.mubr.bf16.mxu0 %v8202_v62  ;;  %v8197_v14 = vld [vmem:[#allocation8 + $0x4] sm:$0xff] }
0x257a   : > { %8571 = vmatmul.mubr.bf16.vlgmr.msra.gmra.mxu0 %v8201_v38  ;;  %v8194_v44 = vld [vmem:[#allocation8 + $0xb] sm:$0xff] }
0x257b   : > { %10785 = vmatpush3.bf16.msra.mxu0 %v11571_v6  ;;  %v8204_v47 = vpack.c.bf16 %v8194_v44, %v8193_v45  ;;  %v8187_v12 = vld [vmem:[#allocation8 + $0x11] sm:$0xff] }
0x257c   : > { %10786 = vmatprep.subr.bf16.mxu0 %v11574_v43  ;;  %v8198_v23 = vld [vmem:[#allocation8 + $0xc] sm:$0xff] }
0x257d   : > { %8619 = vmatprep.mubr.bf16.mxu1 %v8204_v47  ;;  %v8183_v22 = vld [vmem:[#allocation8 + $0x10] sm:$0xff]  ;;  %v8205_v16 = vpack.c.bf16 %v8198_v23, %v8197_v14 }
0x257e   : > { %8620 = vmatmul.mubr.bf16.vlgmr.msra.gmra.mxu1 %v8203_v21  ;;  %v8188_v25 = vld [vmem:[#allocation8 + $0x19] sm:$0xff] }
0x257f   : > { %v8195_v8 = vld [vmem:[#allocation8 + $0x13] sm:$0xff]  ;;  %v8196_v35 = vld [vmem:[#allocation8 + $0x1b] sm:$0xff]  ;;  %10787 = vmatpush3.bf16.msra.mxu0 %v11574_v43  ;;  %v8207_v54 = vpack.c.bf16 %v8188_v25, %v8187_v12 }
0x2580   : > { %v8209_v41 = vpack.c.bf16 %v8196_v35, %v8195_v8  ;;  %v8184_v27 = vld [vmem:[#allocation8 + $0x18] sm:$0xff]  ;;  %10788 = vmatprep.subr.bf16.mxu0 %v11575_v55 }
0x2581   : > { %v8206_v37 = vpack.c.bf16 %v8184_v27, %v8183_v22  ;;  %8578 = vmatprep.mubr.bf16.mxu0 %v8207_v54  ;;  %v8199_v30 = vld [vmem:[#allocation8 + $0x14] sm:$0xff]  ;;  %v8200_v6 = vld [vmem:[#allocation8 + $0x1c] sm:$0xff] }
0x2582   : > { %8627 = vmatprep.mubr.bf16.mxu1 %v8209_v41  ;;  %v8210_v33 = vpack.c.bf16 %v8200_v6, %v8199_v30 }
0x2583   : > { %8579 = vmatmul.mubr.bf16.gmra.mxu0 %v8206_v37 }
0x2584   : > { %10789 = vmatpush3.bf16.msra.mxu0 %v11575_v55  ;;  %10800 = vmatprep.mubr.bf16.mxu0 %v8205_v16 }
0x2585   : > { %10790 = vmatprep.subr.bf16.mxu0 %v11576_v63 }
0x2586   : > { %8628 = vmatmul.mubr.bf16.gmra.mxu1 %v8208_v59 }
0x2588   : > { %10791 = vmatpush3.bf16.msra.mxu0 %v11576_v63 }
0x2589   : > { %10792 = vmatprep.subr.bf16.mxu0 %v11577_v20 }
0x258c   : > { %10793 = vmatpush3.bf16.msra.mxu0 %v11577_v20 }
0x258d   : > { %10794 = vmatprep.subr.bf16.mxu0 %v11578_v24 }
0x2590   : > { %10795 = vmatpush3.bf16.msra.mxu0 %v11578_v24 }
0x2591   : > { %10796 = vmatprep.subr.bf16.mxu0 %v11579_v26 }
0x2594   : > { %10797 = vmatpush3.bf16.msra.mxu0 %v11579_v26 }
0x2595   : > { %10798 = vmatprep.subr.bf16.mxu0 %v11580_v34 }
0x2598   : > { %10799 = vmatpush3.bf16.msra.mxu0 %v11580_v34 }
0x259b   : > { %10801 = vmatmul.mubr.bf16.vlgmr.msra.gmra.mxu0 %v8210_v33 }
0x259c   : > { %12612 = shalt.err (!%p12609_p3)
}
0x259d   : > { %s12613_s0 = scalar_lea.hbm %s14387_s7, 128  ;;  %s12617_s13 = scalar_lea.hbm %s13180_s17, 256 }
0x259e   : > { %p12614_p6 = scmp.ne.s32.totalorder %s14387_s7, %s12613_s0  ;;  %p12618_p9 = scmp.lt.s32.totalorder %s14387_s7, %s13180_s17 }
0x259f   : > { %p12619_p5 = scmp.lt.s32.totalorder %s12617_s13, %s12613_s0 }
0x25a0   : > { %p12615_p11 = pnand %p12614_p6, %p14631_p12 }
0x25a1   : > { %p12620_p10 = por %p12619_p5, %p12618_p9 }
0x25a2   : > { %p12616_p13 = pneg %p12615_p11 }
0x25a4   : > { %p12621_p1 = pnand %p12620_p10, %p12616_p13 }
0x25a6   : > { %12624 = shalt.err (!%p12621_p1)
}
0x25a7   : > { %s14632_s6 = sld [smem:[#allocation135_spill]]  ;;  %s12625_s18 = scalar_lea.vmem %s8743_s3, 128 }
0x25a8   : > { %10959 = dma.vmem_to_hbm [thread:$0]  (%p14631_p12), %s8730_s15, 128, %s14387_s7, %s14393_s5  }
0x25a9   : > { %p12626_p7 = scmp.ne.s32.totalorder %s8743_s3, %s12625_s18  ;;  %s12898_s1 = smov [#allocation69]  }
0x25aa   : > { %s12629_s16 = sshll.u32 %s12898_s1, 4  ;;  %s12630_s16 = int_to_ptr.vmem [resolvable:$false] %s12629_s16 }
0x25ab   : > { %p12627_p8 = pnand %p12626_p7, %p14631_p12  ;;  %s12631_s10 = scalar_lea.vmem %s12630_s16, 256 }
0x25ac   : > { %p12632_p0 = scmp.lt.s32.totalorder %s8743_s3, %s12630_s16  ;;  %p12633_p2 = scmp.lt.s32.totalorder %s12631_s10, %s12625_s18 }
0x25ad   : > { %s8740_s2 = scalar_lea.hbm %s14632_s6, %s9796_s27  ;;  %p12628_p4 = pneg %p12627_p8 }
0x25ae   : > { %p12634_p3 = por %p12633_p2, %p12632_p0 }
0x25b0   : > { %p12635_p6 = pnand %p12634_p3, %p12628_p4 }
0x25b2   : > { %12638 = shalt.err (!%p12635_p6)
}
0x25b3   : > { %s12639_s0 = scalar_lea.hbm %s8740_s2, 128  ;;  %s12643_s27 = scalar_lea.hbm %s14632_s6, 256 }
0x25b4   : > { %p12640_p11 = scmp.ne.s32.totalorder %s8740_s2, %s12639_s0  ;;  %p12644_p5 = scmp.lt.s32.totalorder %s8740_s2, %s14632_s6 }
0x25b5   : > { %p12645_p10 = scmp.lt.s32.totalorder %s12643_s27, %s12639_s0 }
0x25b6   : > { %p12641_p13 = pnand %p12640_p11, %p14631_p12 }
0x25b7   : > { %p12646_p1 = por %p12645_p10, %p12644_p5 }
0x25b8   : > { %p12642_p9 = pneg %p12641_p13 }
0x25ba   : > { %p12647_p7 = pnand %p12646_p1, %p12642_p9 }
0x25bc   : > { %12650 = shalt.err (!%p12647_p7)
}
0x25bd   : > { %10960 = dma.vmem_to_hbm [thread:$0]  (%p14631_p12), %s8743_s3, 128, %s8740_s2, %s14393_s5   ;;  %v9750_v36 = vld [vmem:[#allocation18] ss:$0 sm:$0xff] }
0x25be   : > { %s9361_s7 = sshll.u32 %s13509_s20, 5  ;;  %s14633_s3 = sld [smem:[#allocation134_spill]] }
0x25bf   : > { %s2148_s15 = scalar_lea.vmem [#allocation66], %s9361_s7  ;;  %s9801_s13 = sshll.u32 %s13208_s28, 9 }
0x25c0   : > { %s8713_s5 = sshll.u32 %s2148_s15, 4  ;;  %s8690_s18 = scalar_lea.sflag [#allocation11], %s13509_s20  ;;  %s14422_s5 = int_to_ptr.vmem [resolvable:$true] %s8713_s5 }
0x25c1   : > { %s12651_s1 = scalar_lea.vmem %s14422_s5, 512  ;;  %s12899_s28 = smov [#allocation66]  }
0x25c2   : > { %p12652_p8 = scmp.ne.s32.totalorder %s14422_s5, %s12651_s1  ;;  %s12655_s16 = sshll.u32 %s12899_s28, 4  ;;  %s12656_s16 = int_to_ptr.vmem [resolvable:$false] %s12655_s16 }
0x25c3   : > { %s12657_s10 = scalar_lea.vmem %s12656_s16, 1024  ;;  %p12658_p2 = scmp.lt.s32.totalorder %s14422_s5, %s12656_s16 }
0x25c4   : > { %s14425_s2 = scalar_lea.hbm %s14633_s3, %s9801_s13  ;;  %p12653_p4 = pnand %p12652_p8, %p14631_p12 }
0x25c5   : > { %p12659_p3 = scmp.lt.s32.totalorder %s12657_s10, %s12651_s1 }
0x25c6   : > { %p12654_p0 = pneg %p12653_p4 }
0x25c7   : > { %p12660_p6 = por %p12659_p3, %p12658_p2 }
0x25c9   : > { %p12661_p11 = pnand %p12660_p6, %p12654_p0 }
0x263a   : > { %v10318_v7 = vpop.f32.mrf.mxu0 }
0x263c   : > { %v10319_v31 = vpop.f32.mrf.mxu0 }
0x263d   : > { %v10320_v28 = vadd.f32 %v10319_v31, %v10318_v7 }
0x263e   : > { %v10346_v4 = vpop.f32.mrf.mxu1  ;;  %v10321_v18 = vpop.f32.mrf.mxu0 }
0x263f   : > { %v8573_v49 = vadd.f32 %v10320_v28, %v9750_v36 }
0x2640   : > { %v10347_v5 = vpop.f32.mrf.mxu1  ;;  %v10322_v46 = vpop.f32.mrf.mxu0 }
0x2641   : > { %v10348_v29 = vadd.f32 %v10347_v5, %v10346_v4  ;;  %v10323_v48 = vadd.f32 %v10322_v46, %v10321_v18 }
0x2642   : > { %v10349_v51 = vpop.f32.mrf.mxu1 }
0x2643   : > { %v10324_v39 = vpop.f32.mrf.mxu0  ;;  %v8622_v40 = vadd.f32 %v10348_v29, %v8573_v49  ;;  %v8576_v1 = vadd.f32 %v10323_v48, %v9750_v36 }
0x2644   : > { %v10350_v9 = vpop.f32.mrf.mxu1 }
0x2645   : > { %v10325_v56 = vpop.f32.mrf.mxu0  ;;  %v10351_v61 = vadd.f32 %v10350_v9, %v10349_v51 }
0x2646   : > { %v10352_v13 = vpop.f32.mrf.mxu1  ;;  %v10326_v19 = vadd.f32 %v10325_v56, %v10324_v39 }
0x2647   : > { %v10327_v57 = vpop.f32.mrf.mxu0  ;;  %v8625_v45 = vadd.f32 %v10351_v61, %v8576_v1 }
0x2648   : > { %v10353_v52 = vpop.f32.mrf.mxu1  ;;  %v8581_v2 = vadd.f32 %v10326_v19, %v9750_v36 }
0x2649   : > { %v10328_v3 = vpop.f32.mrf.mxu0  ;;  %v10354_v15 = vadd.f32 %v10353_v52, %v10352_v13 }
0x264a   : > { %v10355_v11 = vpop.f32.mrf.mxu1  ;;  %v10329_v0 = vadd.f32 %v10328_v3, %v10327_v57 }
0x264b   : > { %v8630_v53 = vadd.f32 %v10354_v15, %v8581_v2 }
0x264c   : > { %v10356_v60 = vpop.f32.mrf.mxu1  ;;  %v8584_v17 = vadd.f32 %v10329_v0, %v9750_v36 }
0x264d   : > { %v10357_v50 = vadd.f32 %v10356_v60, %v10355_v11 }
0x264f   : > { %v8633_v62 = vadd.f32 %v10357_v50, %v8584_v17 }
0x265b   : > { %v10802_v58 = vpop.f32.mrf.mxu0 }
0x265c   : > { %v8679_v10 = vadd.f32 %v10802_v58, %v8630_v53 }
0x265d   : > { %v8670_v32 = vpop.f32.mrf.mxu0 }
0x265e   : > { %8687 = vst [vmem:[%s2148_s15 + $0x10] sm:$0xff] %v8679_v10  ;;  %v8671_v42 = vadd.f32 %v8670_v32, %v8622_v40 }
0x265f   : > { %v10803_v38 = vpop.f32.mrf.mxu0 }
0x2660   : > { %8685 = vst [vmem:[%s2148_s15] sm:$0xff] %v8671_v42  ;;  %v8682_v43 = vadd.f32 %v10803_v38, %v8633_v62 }
0x2661   : > { %v8673_v44 = vpop.f32.mrf.mxu0 }
0x2662   : > { %8688 = vst [vmem:[%s2148_s15 + $0x18] sm:$0xff] %v8682_v43  ;;  %v8674_v47 = vadd.f32 %v8673_v44, %v8625_v45 }
0x2664   : > { %8686 = vst [vmem:[%s2148_s15 + $0x8] sm:$0xff] %v8674_v47 }
0x2665   : > { %12664 = shalt.err (!%p12661_p11)
}
0x2666   : > { %s12665_s0 = scalar_lea.hbm %s14425_s2, 512  ;;  %s12669_s27 = scalar_lea.hbm %s14633_s3, 1024 }
0x2667   : > { %p12666_p13 = scmp.ne.s32.totalorder %s14425_s2, %s12665_s0  ;;  %p12670_p10 = scmp.lt.s32.totalorder %s14425_s2, %s14633_s3 }
0x2668   : > { %p12671_p1 = scmp.lt.s32.totalorder %s12669_s27, %s12665_s0 }
0x2669   : > { %p12667_p9 = pnand %p12666_p13, %p14631_p12 }
0x266a   : > { %p12672_p7 = por %p12671_p1, %p12670_p10 }
0x266b   : > { %p12668_p5 = pneg %p12667_p9 }
0x266d   : > { %p12673_p8 = pnand %p12672_p7, %p12668_p5 }
0x266f   : > { %12676 = shalt.err (!%p12673_p8)
}
0x2670   : > { %s12900_s7 = smov 128   ;;  %s12901_s15 = smov 8  }
0x2671   : > { %10958 = dma.vmem_to_hbm [thread:$0]  (%p14631_p12), %s14422_s5, 512, %s14425_s2, %s8690_s18, %s12900_s7, %s12900_s7, %s12901_s15  }
0x2672 PF: > { %s14634_s13 = sld [smem:[#allocation136_spill]]  ;;  %p14637_p0 = scmp.ge.s32.totalorder %s12791_s26, 2 }
0x2673   : > { %s14635_s1 = sld [smem:[#allocation140_spill]] }
0x2678   : > { %s8754_s28 = sand.u32 1, %s14634_s13  }
0x2679   : > { %p14636_p4 = scmp.ne.s32.totalorder %s14635_s1, 0  ;;  %s8755_s16 = scalar_lea.sflag [#allocation11], %s8754_s28 }
0x267b   : > { %p10969_p2 = pnand %p14637_p0, %p14636_p4 }
0x267d   : > { %p10970_p3 = pneg %p10969_p2 }
0x267f   : > { %12770 = dma.done.wait (%p10970_p3), %s8755_s16, 512  }
0x2680   : > { %12772 = vsyncadd (%p10970_p3), %s8755_s16, 4294966784  ;;  %s14638_s10 = sadd.s32 4294967294, %s12791_s26  }
0x2681   : > { %s8763_s0 = sand.u32 1, %s14638_s10  }
0x2682   : > { %s8764_s27 = scalar_lea.sflag [#allocation68], %s8763_s0 }
0x2683   : > { %12774 = dma.done.wait (%p10970_p3), %s8764_s27, 256  }
0x2684   : > { %12776 = vsyncadd (%p10970_p3), %s8764_s27, 4294967040  ;;  %s14639_s26 = sld [smem:[#allocation137_spill]]  ;;  %s14641_s0 = smov %s12783_s22 }
0x2685   : > { %s14640_s20 = sld [smem:[#allocation138_spill]]  ;;  %s14642_s22 = smov %s12787_s23 }
0x268a   : > { %p146_p12 = scmp.ge.s32.totalorder %s14639_s26, 4  }
0x268b   : > { %s14643_s23 = smov %s14640_s20 }
0x268c   :  { %148 = sbr.rel (!%p146_p12) target bundleno = 134 (0x86), region = 525 }
0x2691   :  { %8778 = vsyncpa [#allocation10], 1 }
0x2692   :  { %8780 = vsyncpa [#allocation10 + $0x1], 1 }
0x2693   :  { %8781 = vsyncpa [#allocation13], 1 }
0x2694   :  { %8782 = vsyncpa [#allocation16], 1 }
0x2695   :  { %8783 = vsyncpa [#allocation19], 1 }
0x2696   :  { %8784 = vsyncpa [#allocation22], 1 }
0x2697   :  { %8785 = vsyncpa [#allocation25], 1 }
0x2698   :  { %8786 = vsyncpa [#allocation28], 1 }
0x2699   :  { %8787 = vsyncpa [#allocation31], 1 }
0x269a   :  { %8788 = vsyncpa [#allocation34], 1 }
0x269b   :  { %8789 = vsyncpa [#allocation37], 1 }
0x269c   :  { %8790 = vsyncpa [#allocation40], 1 }
0x269d   :  { %8791 = vsyncpa [#allocation43], 1 }
0x269e   :  { %8792 = vsyncpa [#allocation46], 1 }
0x269f   :  { %8793 = vsyncpa [#allocation49], 1 }
0x26a0   :  { %8794 = vsyncpa [#allocation52], 1 }
0x26a1   :  { %8795 = vsyncpa [#allocation55], 1 }
0x26a2   :  { %8796 = vsyncpa [#allocation58], 1 }
0x26a3   :  { %8797 = vsyncpa [#allocation61], 1 }
0x26a4   :  { %8798 = vsyncpa [#allocation64], 1 }
0x26a5   :  { %8799 = vsyncpa [#allocation11], 1 }
0x26a6   :  { %8801 = vsyncpa [#allocation11 + $0x1], 1 }
0x26a7   :  { %8802 = vsyncpa [#allocation68], 1 }
0x26a8   :  { %8804 = vsyncpa [#allocation68 + $0x1], 1 }

</bundles_post_ra>
